<compile_context>
chip_gen: v7x
topology: tpu7x:2x2x1
jax: 0.10.0
libtpu: 0.0.40
codegen_flags: <defaults>
</compile_context>

<pallas_src>
import jax
import jax.numpy as jnp
import numpy as np
from jax import lax
from jax.experimental import pallas as pl
from jax.experimental.pallas import tpu as pltpu


H1 = W1 = 32               # conv1 spatial
C1_IN, C1_OUT = 3, 32
H2 = W2 = 16               # conv2 spatial (after pool1)
C2_IN, C2_OUT = 32, 64
H3 = W3 = 8                # spatial after pool2
D_FLAT = H3 * W3 * C2_OUT  # 4096
D_FC1, D_FC2 = 256, 128

P2_PIX = H2 * W2           # 256 pixels of the pooled 16x16 map
K1 = 4 * 27                # 108: conv1 patch features (4 pool quadrants x 3x3x3)
N1 = 4 * C1_OUT            # 128: conv1 outputs for the 4 quadrants (lane-dense)
K2 = 3 * C2_IN             # 96: per-dy conv2 contraction (3 dx taps x 32 ch)
PAD = 16                   # one 16-pixel h-row of halo in the conv2 scratch
ROWS_Y1F = P2_PIX + 2 * PAD  # 288


# ----------------------------------------------------------------------------
# Fused kernel: conv1+pool1 -> conv2+pool2 -> flatten -> fc1 -> fc2
# ----------------------------------------------------------------------------
def _fused_repr_kernel(p1_ref, w1_ref, b1_ref, w2_ref, b2_ref,
                       fc1w_ref, fc1b_ref, fc2w_ref, fc2b_ref,
                       o_ref,
                       y1f_ref, pool2_ref, flat_ref):
    B = p1_ref.shape[0]
    R1 = B * P2_PIX

    # ---- conv1 + relu: one MXU matmul; the 4 pixels of each 2x2 pool window
    # are lane-packed via a block-diagonal weight -> (R1, 128), lanes=(q, co).
    a1 = jnp.dot(p1_ref[...].reshape(R1, K1), w1_ref[...],
                 preferred_element_type=jnp.float32)
    a1 = jnp.maximum(a1 + b1_ref[...], 0.0)

    # ---- maxpool1: max over the 4 lane-packed quadrants -> (R1, 32),
    # rows = (b, h*16 + w) of the pooled 16x16 map.
    y1 = jnp.maximum(jnp.maximum(a1[:, 0:32], a1[:, 32:64]),
                     jnp.maximum(a1[:, 64:96], a1[:, 96:128]))

    # ---- conv2 LHS scratch: h-padded (16-row halo) map with a w-im2col along
    # lanes:  y1f[b, 16+g, dx*32:(dx+1)*32] = y1_map(b, g_h, g_w + dx - 1)
    # (zero outside the map).  Only the halo rim is zeroed.
    z = jnp.zeros((B, PAD, K2), jnp.float32)
    y1f_ref[:, 0:PAD, :] = z
    y1f_ref[:, PAD + P2_PIX:ROWS_Y1F, :] = z
    y1f_ref[:, PAD:PAD + P2_PIX, 32:64] = y1.reshape(B, P2_PIX, C2_IN)  # dx=1

    wcol = lax.broadcasted_iota(jnp.int32, (B, P2_PIX, C2_IN), 1) % W2
    left = y1f_ref[:, PAD - 1:PAD - 1 + P2_PIX, 32:64]       # y1_map(., w-1)
    y1f_ref[:, PAD:PAD + P2_PIX, 0:32] = jnp.where(wcol >= 1, left, 0.0)
    right = y1f_ref[:, PAD + 1:PAD + 1 + P2_PIX, 32:64]      # y1_map(., w+1)
    y1f_ref[:, PAD:PAD + P2_PIX, 64:96] = jnp.where(wcol <= W2 - 2, right, 0.0)

    # ---- conv2 + relu: 3 accumulating MXU matmuls (one per dy), K = 96 each;
    # the dy shift is a tile-aligned row-window of the scratch (offsets 0/16/32).
    c2 = jnp.dot(y1f_ref[:, 0:P2_PIX, :].reshape(R1, K2), w2_ref[0],
                 preferred_element_type=jnp.float32)
    c2 = c2 + jnp.dot(y1f_ref[:, PAD:PAD + P2_PIX, :].reshape(R1, K2),
                      w2_ref[1], preferred_element_type=jnp.float32)
    c2 = c2 + jnp.dot(y1f_ref[:, 2 * PAD:2 * PAD + P2_PIX, :].reshape(R1, K2),
                      w2_ref[2], preferred_element_type=jnp.float32)
    c2 = jnp.maximum(c2 + b2_ref[...], 0.0)                  # (R1, 64)

    # ---- maxpool2: h-pool in value space (tile-aligned reshape + max), then
    # the stride-2 w-pool from a half-size staging scratch.
    cr = c2.reshape(B, H3, 2, W2, C2_OUT)
    vh = jnp.maximum(cr[:, :, 0], cr[:, :, 1])               # (B, 8, 16, 64)
    pool2_ref[...] = vh.reshape(B * H3 * W2, C2_OUT)
    half = B * H3 * W3
    p2 = jnp.maximum(pool2_ref[pl.ds(0, half, stride=2), :],
                     pool2_ref[pl.ds(1, half, stride=2), :])  # (B*64, 64)

    # ---- flatten (pix, c) onto lanes (fc1 weights are pre-permuted to match)
    p2v = p2.reshape(B, H3 * W3, C2_OUT)
    for pix in range(H3 * W3):
        flat_ref[:, pix * C2_OUT:(pix + 1) * C2_OUT] = p2v[:, pix, :]

    # ---- fc1 -> relu -> fc2 -> relu
    h = jnp.dot(flat_ref[...], fc1w_ref[...], preferred_element_type=jnp.float32)
    h = jnp.maximum(h + fc1b_ref[...], 0.0)
    o = jnp.dot(h, fc2w_ref[...], preferred_element_type=jnp.float32)
    o = jnp.maximum(o + fc2b_ref[...], 0.0)
    o_ref[...] = o.astype(o_ref.dtype)


# ----------------------------------------------------------------------------
# Wrapper-side (XLA) conv1 im2col with pool-quadrant lane packing
# ----------------------------------------------------------------------------
def _conv1_pool_patches(x_nhwc):
    """(N,32,32,3) -> (N, 256, 108); row = pooled pixel (hp*16+wp), lanes =
    (quadrant q=2*(h%2)+(w%2), tap dy*3+dx, cin)."""
    n = x_nhwc.shape[0]
    xp = jnp.pad(x_nhwc, ((0, 0), (1, 1), (1, 1), (0, 0)))
    taps = [xp[:, dy:dy + H1, dx:dx + W1, :]
            for dy in range(3) for dx in range(3)]
    pat = jnp.stack(taps, axis=3).reshape(n, H1, W1, 27)      # (N,32,32,27)
    pat = pat.reshape(n, H2, 2, W2, 2, 27).transpose(0, 1, 3, 2, 4, 5)
    return pat.reshape(n, P2_PIX, K1)


def representation_forward(x_nchw, params, *, block_b=16):
    N = x_nchw.shape[0]
    B = min(block_b, N)
    num_blocks = -(-N // B)
    Np = num_blocks * B

    x = jnp.transpose(x_nchw, (0, 2, 3, 1)).astype(jnp.float32)  # NCHW -> NHWC
    patches = _conv1_pool_patches(x)
    if Np != N:
        patches = jnp.pad(patches, ((0, Np - N), (0, 0), (0, 0)))

    out = pl.pallas_call(
        _fused_repr_kernel,
        out_shape=jax.ShapeDtypeStruct((Np, D_FC2), jnp.float32),
        grid=(num_blocks,),
        in_specs=[
            pl.BlockSpec((B, P2_PIX, K1), lambda i: (i, 0, 0)),     # patches
            pl.BlockSpec((K1, N1), lambda i: (0, 0)),               # w1 block-diag
            pl.BlockSpec((1, N1), lambda i: (0, 0)),                # b1 (tiled x4)
            pl.BlockSpec((3, K2, C2_OUT), lambda i: (0, 0, 0)),     # w2 per-dy
            pl.BlockSpec((1, C2_OUT), lambda i: (0, 0)),            # b2
            pl.BlockSpec((D_FLAT, D_FC1), lambda i: (0, 0)),        # fc1 w
            pl.BlockSpec((1, D_FC1), lambda i: (0, 0)),             # fc1 b
            pl.BlockSpec((D_FC1, D_FC2), lambda i: (0, 0)),         # fc2 w
            pl.BlockSpec((1, D_FC2), lambda i: (0, 0)),             # fc2 b
        ],
        out_specs=pl.BlockSpec((B, D_FC2), lambda i: (i, 0)),
        scratch_shapes=[
            pltpu.VMEM((B, ROWS_Y1F, K2), jnp.float32),     # conv2 LHS scratch
            pltpu.VMEM((B * H3 * W2, C2_OUT), jnp.float32), # pool2 staging (half)
            pltpu.VMEM((B, D_FLAT), jnp.float32),           # flattened features
        ],
        compiler_params=pltpu.CompilerParams(
            dimension_semantics=("parallel",),
            vmem_limit_bytes=48 * 1024 * 1024),
    )(patches, params["w1blk"], params["b1"], params["w2r"], params["b2"],
      params["fc1w"], params["fc1b"], params["fc2w"], params["fc2b"])

    return out[:N]


def prepare_params(p):
    """One-time layout prep (hoisted out of the forward): conv1 block-diagonal
    weight, conv2 per-dy weights, fc transposes, NCHW-flatten permutation."""
    # conv1: (O,I,3,3) -> (dy,dx,ci,co) -> (27,32), then block-diagonal (108,128)
    w1k = jnp.transpose(p["conv1_w"], (2, 3, 1, 0)).reshape(27, C1_OUT)
    w1k = w1k.astype(jnp.float32)
    w1blk = jnp.zeros((K1, N1), jnp.float32)
    for q in range(4):
        w1blk = w1blk.at[q * 27:(q + 1) * 27,
                         q * C1_OUT:(q + 1) * C1_OUT].set(w1k)
    b1 = jnp.tile(p["conv1_b"].astype(jnp.float32), 4).reshape(1, N1)

    # conv2: (O,I,3,3) -> (dy, dx*32+ci, co) = (3, 96, 64)
    w2r = jnp.transpose(p["conv2_w"], (2, 3, 1, 0)).reshape(3, K2, C2_OUT)
    w2r = w2r.astype(jnp.float32)
    b2 = p["conv2_b"].reshape(1, C2_OUT).astype(jnp.float32)

    # torch flattens NCHW order (c, h, w); the kernel flattens (h, w, c).
    fc1w = (p["fc1_w"].T.reshape(C2_OUT, H3, W3, D_FC1)
            .transpose(1, 2, 0, 3).reshape(D_FLAT, D_FC1)).astype(jnp.float32)
    return {
        "w1blk": w1blk, "b1": b1, "w2r": w2r, "b2": b2,
        "fc1w": fc1w, "fc1b": p["fc1_b"].reshape(1, D_FC1).astype(jnp.float32),
        "fc2w": p["fc2_w"].T.astype(jnp.float32),
        "fc2b": p["fc2_b"].reshape(1, D_FC2).astype(jnp.float32),
    }


def reference_forward(x, p):
    """Pure-JAX reference identical to the PyTorch forward (torch-shaped params)."""
    dn = ("NCHW", "OIHW", "NCHW")
    y = lax.conv_general_dilated(x, p["conv1_w"], (1, 1), ((1, 1), (1, 1)),
                                 dimension_numbers=dn)
    y = jax.nn.relu(y + p["conv1_b"][None, :, None, None])
    y = lax.reduce_window(y, -jnp.inf, lax.max, (1, 1, 2, 2), (1, 1, 2, 2),
                          "VALID")
    y = lax.conv_general_dilated(y, p["conv2_w"], (1, 1), ((1, 1), (1, 1)),
                                 dimension_numbers=dn)
    y = jax.nn.relu(y + p["conv2_b"][None, :, None, None])
    y = lax.reduce_window(y, -jnp.inf, lax.max, (1, 1, 2, 2), (1, 1, 2, 2),
                          "VALID")
    y = y.reshape(x.shape[0], -1)
    y = jax.nn.relu(y @ p["fc1_w"].T + p["fc1_b"])
    y = jax.nn.relu(y @ p["fc2_w"].T + p["fc2_b"])
    return y


if __name__ == "__main__":
    key = jax.random.PRNGKey(0)
    ks = jax.random.split(key, 9)

    torch_params = {
        # PyTorch-shaped parameters (Conv2d: OIHW, Linear: (out, in))
        "conv1_w": jax.random.normal(ks[0], (32, 3, 3, 3), jnp.float32) * 0.10,
        "conv1_b": jax.random.normal(ks[1], (32,), jnp.float32) * 0.10,
        "conv2_w": jax.random.normal(ks[2], (64, 32, 3, 3), jnp.float32) * 0.05,
        "conv2_b": jax.random.normal(ks[3], (64,), jnp.float32) * 0.05,
        "fc1_w": jax.random.normal(ks[4], (256, 8 * 8 * 64), jnp.float32) * 0.02,
        "fc1_b": jax.random.normal(ks[5], (256,), jnp.float32) * 0.02,
        "fc2_w": jax.random.normal(ks[6], (128, 256), jnp.float32) * 0.05,
        "fc2_b": jax.random.normal(ks[7], (128,), jnp.float32) * 0.05,
    }
    params = prepare_params(torch_params)

    # 32x32 spatial is required by the module (two 2x pools -> 8x8 before fc1)
    x = jax.random.normal(ks[8], (2, 3, 32, 32), jnp.float32)

    fwd = jax.jit(representation_forward)
    out = jax.block_until_ready(fwd(x, params))
    assert out.shape == (2, 128), out.shape

    ref = reference_forward(x, torch_params)
    np.testing.assert_allclose(np.asarray(out), np.asarray(ref),
                               rtol=1e-3, atol=1e-3)

    print("KERNEL_OK")
</pallas_src>

<mosaic_0001>
module attributes {stable_mosaic.version = 11 : i64} {
  func.func @_fused_repr_kernel(%arg0: i32, %arg1: memref<2x256x108xf32, #tpu.memory_space<vmem>>, %arg2: memref<108x128xf32, #tpu.memory_space<vmem>>, %arg3: memref<1x128xf32, #tpu.memory_space<vmem>>, %arg4: memref<3x96x64xf32, #tpu.memory_space<vmem>>, %arg5: memref<1x64xf32, #tpu.memory_space<vmem>>, %arg6: memref<4096x256xf32, #tpu.memory_space<vmem>>, %arg7: memref<1x256xf32, #tpu.memory_space<vmem>>, %arg8: memref<256x128xf32, #tpu.memory_space<vmem>>, %arg9: memref<1x128xf32, #tpu.memory_space<vmem>>, %arg10: memref<2x128xf32, #tpu.memory_space<vmem>>, %arg11: memref<2x288x96xf32, #tpu.memory_space<vmem>>, %arg12: memref<256x64xf32, #tpu.memory_space<vmem>>, %arg13: memref<2x4096xf32, #tpu.memory_space<vmem>>) attributes {dimension_semantics = [#tpu.dimension_semantics<parallel>], iteration_bounds = array<i64: 1>, scalar_prefetch = 0 : i64, scratch_operands = 3 : i64, tpu.core_type = #tpu.core_type<tc>, window_params = [{transform_indices = @transform_0, window_bounds = array<i64: 2, 256, 108>}, {pipeline_mode = #tpu.pipeline_mode<synchronous>, transform_indices = @transform_1, window_bounds = array<i64: 108, 128>}, {pipeline_mode = #tpu.pipeline_mode<synchronous>, transform_indices = @transform_2, window_bounds = array<i64: 1, 128>}, {pipeline_mode = #tpu.pipeline_mode<synchronous>, transform_indices = @transform_3, window_bounds = array<i64: 3, 96, 64>}, {pipeline_mode = #tpu.pipeline_mode<synchronous>, transform_indices = @transform_4, window_bounds = array<i64: 1, 64>}, {pipeline_mode = #tpu.pipeline_mode<synchronous>, transform_indices = @transform_5, window_bounds = array<i64: 4096, 256>}, {pipeline_mode = #tpu.pipeline_mode<synchronous>, transform_indices = @transform_6, window_bounds = array<i64: 1, 256>}, {pipeline_mode = #tpu.pipeline_mode<synchronous>, transform_indices = @transform_7, window_bounds = array<i64: 256, 128>}, {pipeline_mode = #tpu.pipeline_mode<synchronous>, transform_indices = @transform_8, window_bounds = array<i64: 1, 128>}, {transform_indices = @transform_9, window_bounds = array<i64: 2, 128>}]} {
    %c0 = arith.constant 0 : index
    %c0_0 = arith.constant 0 : index
    %c0_1 = arith.constant 0 : index
    %0 = vector.load %arg1[%c0, %c0_0, %c0_1] : memref<2x256x108xf32, #tpu.memory_space<vmem>>, vector<2x256x108xf32>
    %1 = vector.shape_cast %0 : vector<2x256x108xf32> to vector<512x108xf32>
    %c0_2 = arith.constant 0 : index
    %c0_3 = arith.constant 0 : index
    %2 = vector.load %arg2[%c0_2, %c0_3] : memref<108x128xf32, #tpu.memory_space<vmem>>, vector<108x128xf32>
    %cst = arith.constant dense<0.000000e+00> : vector<512x128xf32>
    %3 = tpu.matmul %1, %2, %cst {dimension_numbers = #tpu.dot_dimension_numbers<[1], [0], [0], [1], [0, 0, 1, 1], [], []>} : vector<512x108xf32>, vector<108x128xf32>, vector<512x128xf32> -> vector<512x128xf32>
    %c0_4 = arith.constant 0 : index
    %c0_5 = arith.constant 0 : index
    %4 = vector.load %arg3[%c0_4, %c0_5] : memref<1x128xf32, #tpu.memory_space<vmem>>, vector<1x128xf32>
    %5 = vector.broadcast %4 : vector<1x128xf32> to vector<512x128xf32>
    %6 = arith.addf %3, %5 : vector<512x128xf32>
    %cst_6 = arith.constant 0.000000e+00 : f32
    %7 = vector.broadcast %cst_6 : f32 to vector<512x128xf32>
    %8 = arith.maximumf %6, %7 : vector<512x128xf32>
    %9 = vector.extract_strided_slice %8 {offsets = [0, 0], sizes = [512, 32], strides = [1, 1]} : vector<512x128xf32> to vector<512x32xf32>
    %10 = vector.extract_strided_slice %8 {offsets = [0, 32], sizes = [512, 32], strides = [1, 1]} : vector<512x128xf32> to vector<512x32xf32>
    %11 = arith.maximumf %9, %10 : vector<512x32xf32>
    %12 = vector.extract_strided_slice %8 {offsets = [0, 64], sizes = [512, 32], strides = [1, 1]} : vector<512x128xf32> to vector<512x32xf32>
    %13 = vector.extract_strided_slice %8 {offsets = [0, 96], sizes = [512, 32], strides = [1, 1]} : vector<512x128xf32> to vector<512x32xf32>
    %14 = arith.maximumf %12, %13 : vector<512x32xf32>
    %15 = arith.maximumf %11, %14 : vector<512x32xf32>
    %cst_7 = arith.constant 0.000000e+00 : f32
    %16 = vector.broadcast %cst_7 : f32 to vector<2x16x96xf32>
    %c0_8 = arith.constant 0 : index
    %c0_9 = arith.constant 0 : index
    %c0_10 = arith.constant 0 : index
    %17 = vector.load %arg11[%c0_8, %c0_9, %c0_10] : memref<2x288x96xf32, #tpu.memory_space<vmem>>, vector<2x16x96xf32>
    tpu.vector_store %arg11[%c0_8, %c0_9, %c0_10], %16 {strides = array<i32>} : memref<2x288x96xf32, #tpu.memory_space<vmem>>, vector<2x16x96xf32>,
    %c0_11 = arith.constant 0 : index
    %c272 = arith.constant 272 : index
    %c0_12 = arith.constant 0 : index
    %18 = vector.load %arg11[%c0_11, %c272, %c0_12] : memref<2x288x96xf32, #tpu.memory_space<vmem>>, vector<2x16x96xf32>
    tpu.vector_store %arg11[%c0_11, %c272, %c0_12], %16 {strides = array<i32>} : memref<2x288x96xf32, #tpu.memory_space<vmem>>, vector<2x16x96xf32>,
    %19 = vector.shape_cast %15 : vector<512x32xf32> to vector<2x256x32xf32>
    %c0_13 = arith.constant 0 : index
    %c16 = arith.constant 16 : index
    %c32 = arith.constant 32 : index
    %20 = vector.load %arg11[%c0_13, %c16, %c32] : memref<2x288x96xf32, #tpu.memory_space<vmem>>, vector<2x256x32xf32>
    tpu.vector_store %arg11[%c0_13, %c16, %c32], %19 {strides = array<i32>} : memref<2x288x96xf32, #tpu.memory_space<vmem>>, vector<2x256x32xf32>,
    %21 = tpu.iota {dimensions = array<i32: 1>} : vector<2x256x32xi32>
    %c16_i32 = arith.constant 16 : i32
    %c0_i32 = arith.constant 0 : i32
    %22 = arith.cmpi eq, %c16_i32, %c0_i32 : i32
    %c1_i32 = arith.constant 1 : i32
    %23 = arith.select %22, %c1_i32, %c16_i32 : i32
    %24 = vector.broadcast %23 : i32 to vector<2x256x32xi32>
    %25 = arith.remsi %21, %24 : vector<2x256x32xi32>
    %c0_i32_14 = arith.constant 0 : i32
    %26 = vector.broadcast %c0_i32_14 : i32 to vector<2x256x32xi32>
    %27 = arith.cmpi ne, %25, %26 : vector<2x256x32xi32>
    %c0_i32_15 = arith.constant 0 : i32
    %28 = vector.broadcast %c0_i32_15 : i32 to vector<2x256x32xi32>
    %29 = arith.cmpi slt, %25, %28 : vector<2x256x32xi32>
    %c0_i32_16 = arith.constant 0 : i32
    %30 = arith.cmpi slt, %23, %c0_i32_16 : i32
    %31 = vector.broadcast %30 : i1 to vector<2x256x32xi1>
    %32 = vector.broadcast %31 : vector<2x256x32xi1> to vector<2x256x32xi1>
    %33 = arith.xori %29, %32 : vector<2x256x32xi1>
    %34 = arith.andi %33, %27 : vector<2x256x32xi1>
    %35 = vector.broadcast %23 : i32 to vector<2x256x32xi32>
    %36 = arith.addi %25, %35 : vector<2x256x32xi32>
    %37 = arith.select %34, %36, %25 : vector<2x256x32xi1>, vector<2x256x32xi32>
    %c0_17 = arith.constant 0 : index
    %c15 = arith.constant 15 : index
    %c32_18 = arith.constant 32 : index
    %38 = vector.load %arg11[%c0_17, %c15, %c32_18] : memref<2x288x96xf32, #tpu.memory_space<vmem>>, vector<2x256x32xf32>
    %c1_i32_19 = arith.constant 1 : i32
    %39 = vector.broadcast %c1_i32_19 : i32 to vector<2x256x32xi32>
    %40 = arith.cmpi sge, %37, %39 : vector<2x256x32xi32>
    %cst_20 = arith.constant 0.000000e+00 : f32
    %41 = vector.broadcast %cst_20 : f32 to vector<2x256x32xf32>
    %42 = arith.select %40, %38, %41 : vector<2x256x32xi1>, vector<2x256x32xf32>
    %c0_21 = arith.constant 0 : index
    %c16_22 = arith.constant 16 : index
    %c0_23 = arith.constant 0 : index
    %43 = vector.load %arg11[%c0_21, %c16_22, %c0_23] : memref<2x288x96xf32, #tpu.memory_space<vmem>>, vector<2x256x32xf32>
    tpu.vector_store %arg11[%c0_21, %c16_22, %c0_23], %42 {strides = array<i32>} : memref<2x288x96xf32, #tpu.memory_space<vmem>>, vector<2x256x32xf32>,
    %c0_24 = arith.constant 0 : index
    %c17 = arith.constant 17 : index
    %c32_25 = arith.constant 32 : index
    %44 = vector.load %arg11[%c0_24, %c17, %c32_25] : memref<2x288x96xf32, #tpu.memory_space<vmem>>, vector<2x256x32xf32>
    %c14_i32 = arith.constant 14 : i32
    %45 = vector.broadcast %c14_i32 : i32 to vector<2x256x32xi32>
    %46 = arith.cmpi sle, %37, %45 : vector<2x256x32xi32>
    %cst_26 = arith.constant 0.000000e+00 : f32
    %47 = vector.broadcast %cst_26 : f32 to vector<2x256x32xf32>
    %48 = arith.select %46, %44, %47 : vector<2x256x32xi1>, vector<2x256x32xf32>
    %c0_27 = arith.constant 0 : index
    %c16_28 = arith.constant 16 : index
    %c64 = arith.constant 64 : index
    %49 = vector.load %arg11[%c0_27, %c16_28, %c64] : memref<2x288x96xf32, #tpu.memory_space<vmem>>, vector<2x256x32xf32>
    tpu.vector_store %arg11[%c0_27, %c16_28, %c64], %48 {strides = array<i32>} : memref<2x288x96xf32, #tpu.memory_space<vmem>>, vector<2x256x32xf32>,
    %c0_29 = arith.constant 0 : index
    %c0_30 = arith.constant 0 : index
    %c0_31 = arith.constant 0 : index
    %50 = vector.load %arg11[%c0_29, %c0_30, %c0_31] : memref<2x288x96xf32, #tpu.memory_space<vmem>>, vector<2x256x96xf32>
    %51 = vector.shape_cast %50 : vector<2x256x96xf32> to vector<512x96xf32>
    %c0_32 = arith.constant 0 : index
    %c0_33 = arith.constant 0 : index
    %c0_34 = arith.constant 0 : index
    %52 = vector.load %arg4[%c0_32, %c0_33, %c0_34] : memref<3x96x64xf32, #tpu.memory_space<vmem>>, vector<1x96x64xf32>
    %53 = vector.shape_cast %52 : vector<1x96x64xf32> to vector<96x64xf32>
    %cst_35 = arith.constant dense<0.000000e+00> : vector<512x64xf32>
    %54 = tpu.matmul %51, %53, %cst_35 {dimension_numbers = #tpu.dot_dimension_numbers<[1], [0], [0], [1], [0, 0, 1, 1], [], []>} : vector<512x96xf32>, vector<96x64xf32>, vector<512x64xf32> -> vector<512x64xf32>
    %c0_36 = arith.constant 0 : index
    %c16_37 = arith.constant 16 : index
    %c0_38 = arith.constant 0 : index
    %55 = vector.load %arg11[%c0_36, %c16_37, %c0_38] : memref<2x288x96xf32, #tpu.memory_space<vmem>>, vector<2x256x96xf32>
    %56 = vector.shape_cast %55 : vector<2x256x96xf32> to vector<512x96xf32>
    %c1 = arith.constant 1 : index
    %c0_39 = arith.constant 0 : index
    %c0_40 = arith.constant 0 : index
    %57 = vector.load %arg4[%c1, %c0_39, %c0_40] : memref<3x96x64xf32, #tpu.memory_space<vmem>>, vector<1x96x64xf32>
    %58 = vector.shape_cast %57 : vector<1x96x64xf32> to vector<96x64xf32>
    %cst_41 = arith.constant dense<0.000000e+00> : vector<512x64xf32>
    %59 = tpu.matmul %56, %58, %cst_41 {dimension_numbers = #tpu.dot_dimension_numbers<[1], [0], [0], [1], [0, 0, 1, 1], [], []>} : vector<512x96xf32>, vector<96x64xf32>, vector<512x64xf32> -> vector<512x64xf32>
    %60 = arith.addf %54, %59 : vector<512x64xf32>
    %c0_42 = arith.constant 0 : index
    %c32_43 = arith.constant 32 : index
    %c0_44 = arith.constant 0 : index
    %61 = vector.load %arg11[%c0_42, %c32_43, %c0_44] : memref<2x288x96xf32, #tpu.memory_space<vmem>>, vector<2x256x96xf32>
    %62 = vector.shape_cast %61 : vector<2x256x96xf32> to vector<512x96xf32>
    %c2 = arith.constant 2 : index
    %c0_45 = arith.constant 0 : index
    %c0_46 = arith.constant 0 : index
    %63 = vector.load %arg4[%c2, %c0_45, %c0_46] : memref<3x96x64xf32, #tpu.memory_space<vmem>>, vector<1x96x64xf32>
    %64 = vector.shape_cast %63 : vector<1x96x64xf32> to vector<96x64xf32>
    %cst_47 = arith.constant dense<0.000000e+00> : vector<512x64xf32>
    %65 = tpu.matmul %62, %64, %cst_47 {dimension_numbers = #tpu.dot_dimension_numbers<[1], [0], [0], [1], [0, 0, 1, 1], [], []>} : vector<512x96xf32>, vector<96x64xf32>, vector<512x64xf32> -> vector<512x64xf32>
    %66 = arith.addf %60, %65 : vector<512x64xf32>
    %c0_48 = arith.constant 0 : index
    %c0_49 = arith.constant 0 : index
    %67 = vector.load %arg5[%c0_48, %c0_49] : memref<1x64xf32, #tpu.memory_space<vmem>>, vector<1x64xf32>
    %68 = vector.broadcast %67 : vector<1x64xf32> to vector<512x64xf32>
    %69 = arith.addf %66, %68 : vector<512x64xf32>
    %cst_50 = arith.constant 0.000000e+00 : f32
    %70 = vector.broadcast %cst_50 : f32 to vector<512x64xf32>
    %71 = arith.maximumf %69, %70 : vector<512x64xf32>
    %72 = vector.shape_cast %71 : vector<512x64xf32> to vector<2x8x2x16x64xf32>
    %73 = vector.extract_strided_slice %72 {offsets = [0, 0, 0, 0, 0], sizes = [2, 8, 1, 16, 64], strides = [1, 1, 1, 1, 1]} : vector<2x8x2x16x64xf32> to vector<2x8x1x16x64xf32>
    %74 = vector.shape_cast %73 : vector<2x8x1x16x64xf32> to vector<2x8x16x64xf32>
    %75 = vector.extract_strided_slice %72 {offsets = [0, 0, 1, 0, 0], sizes = [2, 8, 1, 16, 64], strides = [1, 1, 1, 1, 1]} : vector<2x8x2x16x64xf32> to vector<2x8x1x16x64xf32>
    %76 = vector.shape_cast %75 : vector<2x8x1x16x64xf32> to vector<2x8x16x64xf32>
    %77 = arith.maximumf %74, %76 : vector<2x8x16x64xf32>
    %78 = vector.shape_cast %77 : vector<2x8x16x64xf32> to vector<256x64xf32>
    %c0_51 = arith.constant 0 : index
    %c0_52 = arith.constant 0 : index
    %79 = vector.load %arg12[%c0_51, %c0_52] : memref<256x64xf32, #tpu.memory_space<vmem>>, vector<256x64xf32>
    tpu.vector_store %arg12[%c0_51, %c0_52], %78 {strides = array<i32>} : memref<256x64xf32, #tpu.memory_space<vmem>>, vector<256x64xf32>,
    %c0_53 = arith.constant 0 : index
    %c0_54 = arith.constant 0 : index
    %80 = tpu.strided_load %arg12[%c0_53, %c0_54] {strides = array<i32: 2, 1>} : memref<256x64xf32, #tpu.memory_space<vmem>>, vector<128x64xf32>
    %c1_55 = arith.constant 1 : index
    %c0_56 = arith.constant 0 : index
    %81 = tpu.strided_load %arg12[%c1_55, %c0_56] {strides = array<i32: 2, 1>} : memref<256x64xf32, #tpu.memory_space<vmem>>, vector<128x64xf32>
    %82 = arith.maximumf %80, %81 : vector<128x64xf32>
    %83 = vector.shape_cast %82 : vector<128x64xf32> to vector<2x64x64xf32>
    %84 = vector.extract_strided_slice %83 {offsets = [0, 0, 0], sizes = [2, 1, 64], strides = [1, 1, 1]} : vector<2x64x64xf32> to vector<2x1x64xf32>
    %85 = vector.shape_cast %84 : vector<2x1x64xf32> to vector<2x64xf32>
    %c0_57 = arith.constant 0 : index
    %c0_58 = arith.constant 0 : index
    %86 = vector.load %arg13[%c0_57, %c0_58] : memref<2x4096xf32, #tpu.memory_space<vmem>>, vector<2x64xf32>
    tpu.vector_store %arg13[%c0_57, %c0_58], %85 {strides = array<i32>} : memref<2x4096xf32, #tpu.memory_space<vmem>>, vector<2x64xf32>,
    %87 = vector.extract_strided_slice %83 {offsets = [0, 1, 0], sizes = [2, 1, 64], strides = [1, 1, 1]} : vector<2x64x64xf32> to vector<2x1x64xf32>
    %88 = vector.shape_cast %87 : vector<2x1x64xf32> to vector<2x64xf32>
    %c0_59 = arith.constant 0 : index
    %c64_60 = arith.constant 64 : index
    %89 = vector.load %arg13[%c0_59, %c64_60] : memref<2x4096xf32, #tpu.memory_space<vmem>>, vector<2x64xf32>
    tpu.vector_store %arg13[%c0_59, %c64_60], %88 {strides = array<i32>} : memref<2x4096xf32, #tpu.memory_space<vmem>>, vector<2x64xf32>,
    %90 = vector.extract_strided_slice %83 {offsets = [0, 2, 0], sizes = [2, 1, 64], strides = [1, 1, 1]} : vector<2x64x64xf32> to vector<2x1x64xf32>
    %91 = vector.shape_cast %90 : vector<2x1x64xf32> to vector<2x64xf32>
    %c0_61 = arith.constant 0 : index
    %c128 = arith.constant 128 : index
    %92 = vector.load %arg13[%c0_61, %c128] : memref<2x4096xf32, #tpu.memory_space<vmem>>, vector<2x64xf32>
    tpu.vector_store %arg13[%c0_61, %c128], %91 {strides = array<i32>} : memref<2x4096xf32, #tpu.memory_space<vmem>>, vector<2x64xf32>,
    %93 = vector.extract_strided_slice %83 {offsets = [0, 3, 0], sizes = [2, 1, 64], strides = [1, 1, 1]} : vector<2x64x64xf32> to vector<2x1x64xf32>
    %94 = vector.shape_cast %93 : vector<2x1x64xf32> to vector<2x64xf32>
    %c0_62 = arith.constant 0 : index
    %c192 = arith.constant 192 : index
    %95 = vector.load %arg13[%c0_62, %c192] : memref<2x4096xf32, #tpu.memory_space<vmem>>, vector<2x64xf32>
    tpu.vector_store %arg13[%c0_62, %c192], %94 {strides = array<i32>} : memref<2x4096xf32, #tpu.memory_space<vmem>>, vector<2x64xf32>,
    %96 = vector.extract_strided_slice %83 {offsets = [0, 4, 0], sizes = [2, 1, 64], strides = [1, 1, 1]} : vector<2x64x64xf32> to vector<2x1x64xf32>
    %97 = vector.shape_cast %96 : vector<2x1x64xf32> to vector<2x64xf32>
    %c0_63 = arith.constant 0 : index
    %c256 = arith.constant 256 : index
    %98 = vector.load %arg13[%c0_63, %c256] : memref<2x4096xf32, #tpu.memory_space<vmem>>, vector<2x64xf32>
    tpu.vector_store %arg13[%c0_63, %c256], %97 {strides = array<i32>} : memref<2x4096xf32, #tpu.memory_space<vmem>>, vector<2x64xf32>,
    %99 = vector.extract_strided_slice %83 {offsets = [0, 5, 0], sizes = [2, 1, 64], strides = [1, 1, 1]} : vector<2x64x64xf32> to vector<2x1x64xf32>
    %100 = vector.shape_cast %99 : vector<2x1x64xf32> to vector<2x64xf32>
    %c0_64 = arith.constant 0 : index
    %c320 = arith.constant 320 : index
    %101 = vector.load %arg13[%c0_64, %c320] : memref<2x4096xf32, #tpu.memory_space<vmem>>, vector<2x64xf32>
    tpu.vector_store %arg13[%c0_64, %c320], %100 {strides = array<i32>} : memref<2x4096xf32, #tpu.memory_space<vmem>>, vector<2x64xf32>,
    %102 = vector.extract_strided_slice %83 {offsets = [0, 6, 0], sizes = [2, 1, 64], strides = [1, 1, 1]} : vector<2x64x64xf32> to vector<2x1x64xf32>
    %103 = vector.shape_cast %102 : vector<2x1x64xf32> to vector<2x64xf32>
    %c0_65 = arith.constant 0 : index
    %c384 = arith.constant 384 : index
    %104 = vector.load %arg13[%c0_65, %c384] : memref<2x4096xf32, #tpu.memory_space<vmem>>, vector<2x64xf32>
    tpu.vector_store %arg13[%c0_65, %c384], %103 {strides = array<i32>} : memref<2x4096xf32, #tpu.memory_space<vmem>>, vector<2x64xf32>,
    %105 = vector.extract_strided_slice %83 {offsets = [0, 7, 0], sizes = [2, 1, 64], strides = [1, 1, 1]} : vector<2x64x64xf32> to vector<2x1x64xf32>
    %106 = vector.shape_cast %105 : vector<2x1x64xf32> to vector<2x64xf32>
    %c0_66 = arith.constant 0 : index
    %c448 = arith.constant 448 : index
    %107 = vector.load %arg13[%c0_66, %c448] : memref<2x4096xf32, #tpu.memory_space<vmem>>, vector<2x64xf32>
    tpu.vector_store %arg13[%c0_66, %c448], %106 {strides = array<i32>} : memref<2x4096xf32, #tpu.memory_space<vmem>>, vector<2x64xf32>,
    %108 = vector.extract_strided_slice %83 {offsets = [0, 8, 0], sizes = [2, 1, 64], strides = [1, 1, 1]} : vector<2x64x64xf32> to vector<2x1x64xf32>
    %109 = vector.shape_cast %108 : vector<2x1x64xf32> to vector<2x64xf32>
    %c0_67 = arith.constant 0 : index
    %c512 = arith.constant 512 : index
    %110 = vector.load %arg13[%c0_67, %c512] : memref<2x4096xf32, #tpu.memory_space<vmem>>, vector<2x64xf32>
    tpu.vector_store %arg13[%c0_67, %c512], %109 {strides = array<i32>} : memref<2x4096xf32, #tpu.memory_space<vmem>>, vector<2x64xf32>,
    %111 = vector.extract_strided_slice %83 {offsets = [0, 9, 0], sizes = [2, 1, 64], strides = [1, 1, 1]} : vector<2x64x64xf32> to vector<2x1x64xf32>
    %112 = vector.shape_cast %111 : vector<2x1x64xf32> to vector<2x64xf32>
    %c0_68 = arith.constant 0 : index
    %c576 = arith.constant 576 : index
    %113 = vector.load %arg13[%c0_68, %c576] : memref<2x4096xf32, #tpu.memory_space<vmem>>, vector<2x64xf32>
    tpu.vector_store %arg13[%c0_68, %c576], %112 {strides = array<i32>} : memref<2x4096xf32, #tpu.memory_space<vmem>>, vector<2x64xf32>,
    %114 = vector.extract_strided_slice %83 {offsets = [0, 10, 0], sizes = [2, 1, 64], strides = [1, 1, 1]} : vector<2x64x64xf32> to vector<2x1x64xf32>
    %115 = vector.shape_cast %114 : vector<2x1x64xf32> to vector<2x64xf32>
    %c0_69 = arith.constant 0 : index
    %c640 = arith.constant 640 : index
    %116 = vector.load %arg13[%c0_69, %c640] : memref<2x4096xf32, #tpu.memory_space<vmem>>, vector<2x64xf32>
    tpu.vector_store %arg13[%c0_69, %c640], %115 {strides = array<i32>} : memref<2x4096xf32, #tpu.memory_space<vmem>>, vector<2x64xf32>,
    %117 = vector.extract_strided_slice %83 {offsets = [0, 11, 0], sizes = [2, 1, 64], strides = [1, 1, 1]} : vector<2x64x64xf32> to vector<2x1x64xf32>
    %118 = vector.shape_cast %117 : vector<2x1x64xf32> to vector<2x64xf32>
    %c0_70 = arith.constant 0 : index
    %c704 = arith.constant 704 : index
    %119 = vector.load %arg13[%c0_70, %c704] : memref<2x4096xf32, #tpu.memory_space<vmem>>, vector<2x64xf32>
    tpu.vector_store %arg13[%c0_70, %c704], %118 {strides = array<i32>} : memref<2x4096xf32, #tpu.memory_space<vmem>>, vector<2x64xf32>,
    %120 = vector.extract_strided_slice %83 {offsets = [0, 12, 0], sizes = [2, 1, 64], strides = [1, 1, 1]} : vector<2x64x64xf32> to vector<2x1x64xf32>
    %121 = vector.shape_cast %120 : vector<2x1x64xf32> to vector<2x64xf32>
    %c0_71 = arith.constant 0 : index
    %c768 = arith.constant 768 : index
    %122 = vector.load %arg13[%c0_71, %c768] : memref<2x4096xf32, #tpu.memory_space<vmem>>, vector<2x64xf32>
    tpu.vector_store %arg13[%c0_71, %c768], %121 {strides = array<i32>} : memref<2x4096xf32, #tpu.memory_space<vmem>>, vector<2x64xf32>,
    %123 = vector.extract_strided_slice %83 {offsets = [0, 13, 0], sizes = [2, 1, 64], strides = [1, 1, 1]} : vector<2x64x64xf32> to vector<2x1x64xf32>
    %124 = vector.shape_cast %123 : vector<2x1x64xf32> to vector<2x64xf32>
    %c0_72 = arith.constant 0 : index
    %c832 = arith.constant 832 : index
    %125 = vector.load %arg13[%c0_72, %c832] : memref<2x4096xf32, #tpu.memory_space<vmem>>, vector<2x64xf32>
    tpu.vector_store %arg13[%c0_72, %c832], %124 {strides = array<i32>} : memref<2x4096xf32, #tpu.memory_space<vmem>>, vector<2x64xf32>,
    %126 = vector.extract_strided_slice %83 {offsets = [0, 14, 0], sizes = [2, 1, 64], strides = [1, 1, 1]} : vector<2x64x64xf32> to vector<2x1x64xf32>
    %127 = vector.shape_cast %126 : vector<2x1x64xf32> to vector<2x64xf32>
    %c0_73 = arith.constant 0 : index
    %c896 = arith.constant 896 : index
    %128 = vector.load %arg13[%c0_73, %c896] : memref<2x4096xf32, #tpu.memory_space<vmem>>, vector<2x64xf32>
    tpu.vector_store %arg13[%c0_73, %c896], %127 {strides = array<i32>} : memref<2x4096xf32, #tpu.memory_space<vmem>>, vector<2x64xf32>,
    %129 = vector.extract_strided_slice %83 {offsets = [0, 15, 0], sizes = [2, 1, 64], strides = [1, 1, 1]} : vector<2x64x64xf32> to vector<2x1x64xf32>
    %130 = vector.shape_cast %129 : vector<2x1x64xf32> to vector<2x64xf32>
    %c0_74 = arith.constant 0 : index
    %c960 = arith.constant 960 : index
    %131 = vector.load %arg13[%c0_74, %c960] : memref<2x4096xf32, #tpu.memory_space<vmem>>, vector<2x64xf32>
    tpu.vector_store %arg13[%c0_74, %c960], %130 {strides = array<i32>} : memref<2x4096xf32, #tpu.memory_space<vmem>>, vector<2x64xf32>,
    %132 = vector.extract_strided_slice %83 {offsets = [0, 16, 0], sizes = [2, 1, 64], strides = [1, 1, 1]} : vector<2x64x64xf32> to vector<2x1x64xf32>
    %133 = vector.shape_cast %132 : vector<2x1x64xf32> to vector<2x64xf32>
    %c0_75 = arith.constant 0 : index
    %c1024 = arith.constant 1024 : index
    %134 = vector.load %arg13[%c0_75, %c1024] : memref<2x4096xf32, #tpu.memory_space<vmem>>, vector<2x64xf32>
    tpu.vector_store %arg13[%c0_75, %c1024], %133 {strides = array<i32>} : memref<2x4096xf32, #tpu.memory_space<vmem>>, vector<2x64xf32>,
    %135 = vector.extract_strided_slice %83 {offsets = [0, 17, 0], sizes = [2, 1, 64], strides = [1, 1, 1]} : vector<2x64x64xf32> to vector<2x1x64xf32>
    %136 = vector.shape_cast %135 : vector<2x1x64xf32> to vector<2x64xf32>
    %c0_76 = arith.constant 0 : index
    %c1088 = arith.constant 1088 : index
    %137 = vector.load %arg13[%c0_76, %c1088] : memref<2x4096xf32, #tpu.memory_space<vmem>>, vector<2x64xf32>
    tpu.vector_store %arg13[%c0_76, %c1088], %136 {strides = array<i32>} : memref<2x4096xf32, #tpu.memory_space<vmem>>, vector<2x64xf32>,
    %138 = vector.extract_strided_slice %83 {offsets = [0, 18, 0], sizes = [2, 1, 64], strides = [1, 1, 1]} : vector<2x64x64xf32> to vector<2x1x64xf32>
    %139 = vector.shape_cast %138 : vector<2x1x64xf32> to vector<2x64xf32>
    %c0_77 = arith.constant 0 : index
    %c1152 = arith.constant 1152 : index
    %140 = vector.load %arg13[%c0_77, %c1152] : memref<2x4096xf32, #tpu.memory_space<vmem>>, vector<2x64xf32>
    tpu.vector_store %arg13[%c0_77, %c1152], %139 {strides = array<i32>} : memref<2x4096xf32, #tpu.memory_space<vmem>>, vector<2x64xf32>,
    %141 = vector.extract_strided_slice %83 {offsets = [0, 19, 0], sizes = [2, 1, 64], strides = [1, 1, 1]} : vector<2x64x64xf32> to vector<2x1x64xf32>
    %142 = vector.shape_cast %141 : vector<2x1x64xf32> to vector<2x64xf32>
    %c0_78 = arith.constant 0 : index
    %c1216 = arith.constant 1216 : index
    %143 = vector.load %arg13[%c0_78, %c1216] : memref<2x4096xf32, #tpu.memory_space<vmem>>, vector<2x64xf32>
    tpu.vector_store %arg13[%c0_78, %c1216], %142 {strides = array<i32>} : memref<2x4096xf32, #tpu.memory_space<vmem>>, vector<2x64xf32>,
    %144 = vector.extract_strided_slice %83 {offsets = [0, 20, 0], sizes = [2, 1, 64], strides = [1, 1, 1]} : vector<2x64x64xf32> to vector<2x1x64xf32>
    %145 = vector.shape_cast %144 : vector<2x1x64xf32> to vector<2x64xf32>
    %c0_79 = arith.constant 0 : index
    %c1280 = arith.constant 1280 : index
    %146 = vector.load %arg13[%c0_79, %c1280] : memref<2x4096xf32, #tpu.memory_space<vmem>>, vector<2x64xf32>
    tpu.vector_store %arg13[%c0_79, %c1280], %145 {strides = array<i32>} : memref<2x4096xf32, #tpu.memory_space<vmem>>, vector<2x64xf32>,
    %147 = vector.extract_strided_slice %83 {offsets = [0, 21, 0], sizes = [2, 1, 64], strides = [1, 1, 1]} : vector<2x64x64xf32> to vector<2x1x64xf32>
    %148 = vector.shape_cast %147 : vector<2x1x64xf32> to vector<2x64xf32>
    %c0_80 = arith.constant 0 : index
    %c1344 = arith.constant 1344 : index
    %149 = vector.load %arg13[%c0_80, %c1344] : memref<2x4096xf32, #tpu.memory_space<vmem>>, vector<2x64xf32>
    tpu.vector_store %arg13[%c0_80, %c1344], %148 {strides = array<i32>} : memref<2x4096xf32, #tpu.memory_space<vmem>>, vector<2x64xf32>,
    %150 = vector.extract_strided_slice %83 {offsets = [0, 22, 0], sizes = [2, 1, 64], strides = [1, 1, 1]} : vector<2x64x64xf32> to vector<2x1x64xf32>
    %151 = vector.shape_cast %150 : vector<2x1x64xf32> to vector<2x64xf32>
    %c0_81 = arith.constant 0 : index
    %c1408 = arith.constant 1408 : index
    %152 = vector.load %arg13[%c0_81, %c1408] : memref<2x4096xf32, #tpu.memory_space<vmem>>, vector<2x64xf32>
    tpu.vector_store %arg13[%c0_81, %c1408], %151 {strides = array<i32>} : memref<2x4096xf32, #tpu.memory_space<vmem>>, vector<2x64xf32>,
    %153 = vector.extract_strided_slice %83 {offsets = [0, 23, 0], sizes = [2, 1, 64], strides = [1, 1, 1]} : vector<2x64x64xf32> to vector<2x1x64xf32>
    %154 = vector.shape_cast %153 : vector<2x1x64xf32> to vector<2x64xf32>
    %c0_82 = arith.constant 0 : index
    %c1472 = arith.constant 1472 : index
    %155 = vector.load %arg13[%c0_82, %c1472] : memref<2x4096xf32, #tpu.memory_space<vmem>>, vector<2x64xf32>
    tpu.vector_store %arg13[%c0_82, %c1472], %154 {strides = array<i32>} : memref<2x4096xf32, #tpu.memory_space<vmem>>, vector<2x64xf32>,
    %156 = vector.extract_strided_slice %83 {offsets = [0, 24, 0], sizes = [2, 1, 64], strides = [1, 1, 1]} : vector<2x64x64xf32> to vector<2x1x64xf32>
    %157 = vector.shape_cast %156 : vector<2x1x64xf32> to vector<2x64xf32>
    %c0_83 = arith.constant 0 : index
    %c1536 = arith.constant 1536 : index
    %158 = vector.load %arg13[%c0_83, %c1536] : memref<2x4096xf32, #tpu.memory_space<vmem>>, vector<2x64xf32>
    tpu.vector_store %arg13[%c0_83, %c1536], %157 {strides = array<i32>} : memref<2x4096xf32, #tpu.memory_space<vmem>>, vector<2x64xf32>,
    %159 = vector.extract_strided_slice %83 {offsets = [0, 25, 0], sizes = [2, 1, 64], strides = [1, 1, 1]} : vector<2x64x64xf32> to vector<2x1x64xf32>
    %160 = vector.shape_cast %159 : vector<2x1x64xf32> to vector<2x64xf32>
    %c0_84 = arith.constant 0 : index
    %c1600 = arith.constant 1600 : index
    %161 = vector.load %arg13[%c0_84, %c1600] : memref<2x4096xf32, #tpu.memory_space<vmem>>, vector<2x64xf32>
    tpu.vector_store %arg13[%c0_84, %c1600], %160 {strides = array<i32>} : memref<2x4096xf32, #tpu.memory_space<vmem>>, vector<2x64xf32>,
    %162 = vector.extract_strided_slice %83 {offsets = [0, 26, 0], sizes = [2, 1, 64], strides = [1, 1, 1]} : vector<2x64x64xf32> to vector<2x1x64xf32>
    %163 = vector.shape_cast %162 : vector<2x1x64xf32> to vector<2x64xf32>
    %c0_85 = arith.constant 0 : index
    %c1664 = arith.constant 1664 : index
    %164 = vector.load %arg13[%c0_85, %c1664] : memref<2x4096xf32, #tpu.memory_space<vmem>>, vector<2x64xf32>
    tpu.vector_store %arg13[%c0_85, %c1664], %163 {strides = array<i32>} : memref<2x4096xf32, #tpu.memory_space<vmem>>, vector<2x64xf32>,
    %165 = vector.extract_strided_slice %83 {offsets = [0, 27, 0], sizes = [2, 1, 64], strides = [1, 1, 1]} : vector<2x64x64xf32> to vector<2x1x64xf32>
    %166 = vector.shape_cast %165 : vector<2x1x64xf32> to vector<2x64xf32>
    %c0_86 = arith.constant 0 : index
    %c1728 = arith.constant 1728 : index
    %167 = vector.load %arg13[%c0_86, %c1728] : memref<2x4096xf32, #tpu.memory_space<vmem>>, vector<2x64xf32>
    tpu.vector_store %arg13[%c0_86, %c1728], %166 {strides = array<i32>} : memref<2x4096xf32, #tpu.memory_space<vmem>>, vector<2x64xf32>,
    %168 = vector.extract_strided_slice %83 {offsets = [0, 28, 0], sizes = [2, 1, 64], strides = [1, 1, 1]} : vector<2x64x64xf32> to vector<2x1x64xf32>
    %169 = vector.shape_cast %168 : vector<2x1x64xf32> to vector<2x64xf32>
    %c0_87 = arith.constant 0 : index
    %c1792 = arith.constant 1792 : index
    %170 = vector.load %arg13[%c0_87, %c1792] : memref<2x4096xf32, #tpu.memory_space<vmem>>, vector<2x64xf32>
    tpu.vector_store %arg13[%c0_87, %c1792], %169 {strides = array<i32>} : memref<2x4096xf32, #tpu.memory_space<vmem>>, vector<2x64xf32>,
    %171 = vector.extract_strided_slice %83 {offsets = [0, 29, 0], sizes = [2, 1, 64], strides = [1, 1, 1]} : vector<2x64x64xf32> to vector<2x1x64xf32>
    %172 = vector.shape_cast %171 : vector<2x1x64xf32> to vector<2x64xf32>
    %c0_88 = arith.constant 0 : index
    %c1856 = arith.constant 1856 : index
    %173 = vector.load %arg13[%c0_88, %c1856] : memref<2x4096xf32, #tpu.memory_space<vmem>>, vector<2x64xf32>
    tpu.vector_store %arg13[%c0_88, %c1856], %172 {strides = array<i32>} : memref<2x4096xf32, #tpu.memory_space<vmem>>, vector<2x64xf32>,
    %174 = vector.extract_strided_slice %83 {offsets = [0, 30, 0], sizes = [2, 1, 64], strides = [1, 1, 1]} : vector<2x64x64xf32> to vector<2x1x64xf32>
    %175 = vector.shape_cast %174 : vector<2x1x64xf32> to vector<2x64xf32>
    %c0_89 = arith.constant 0 : index
    %c1920 = arith.constant 1920 : index
    %176 = vector.load %arg13[%c0_89, %c1920] : memref<2x4096xf32, #tpu.memory_space<vmem>>, vector<2x64xf32>
    tpu.vector_store %arg13[%c0_89, %c1920], %175 {strides = array<i32>} : memref<2x4096xf32, #tpu.memory_space<vmem>>, vector<2x64xf32>,
    %177 = vector.extract_strided_slice %83 {offsets = [0, 31, 0], sizes = [2, 1, 64], strides = [1, 1, 1]} : vector<2x64x64xf32> to vector<2x1x64xf32>
    %178 = vector.shape_cast %177 : vector<2x1x64xf32> to vector<2x64xf32>
    %c0_90 = arith.constant 0 : index
    %c1984 = arith.constant 1984 : index
    %179 = vector.load %arg13[%c0_90, %c1984] : memref<2x4096xf32, #tpu.memory_space<vmem>>, vector<2x64xf32>
    tpu.vector_store %arg13[%c0_90, %c1984], %178 {strides = array<i32>} : memref<2x4096xf32, #tpu.memory_space<vmem>>, vector<2x64xf32>,
    %180 = vector.extract_strided_slice %83 {offsets = [0, 32, 0], sizes = [2, 1, 64], strides = [1, 1, 1]} : vector<2x64x64xf32> to vector<2x1x64xf32>
    %181 = vector.shape_cast %180 : vector<2x1x64xf32> to vector<2x64xf32>
    %c0_91 = arith.constant 0 : index
    %c2048 = arith.constant 2048 : index
    %182 = vector.load %arg13[%c0_91, %c2048] : memref<2x4096xf32, #tpu.memory_space<vmem>>, vector<2x64xf32>
    tpu.vector_store %arg13[%c0_91, %c2048], %181 {strides = array<i32>} : memref<2x4096xf32, #tpu.memory_space<vmem>>, vector<2x64xf32>,
    %183 = vector.extract_strided_slice %83 {offsets = [0, 33, 0], sizes = [2, 1, 64], strides = [1, 1, 1]} : vector<2x64x64xf32> to vector<2x1x64xf32>
    %184 = vector.shape_cast %183 : vector<2x1x64xf32> to vector<2x64xf32>
    %c0_92 = arith.constant 0 : index
    %c2112 = arith.constant 2112 : index
    %185 = vector.load %arg13[%c0_92, %c2112] : memref<2x4096xf32, #tpu.memory_space<vmem>>, vector<2x64xf32>
    tpu.vector_store %arg13[%c0_92, %c2112], %184 {strides = array<i32>} : memref<2x4096xf32, #tpu.memory_space<vmem>>, vector<2x64xf32>,
    %186 = vector.extract_strided_slice %83 {offsets = [0, 34, 0], sizes = [2, 1, 64], strides = [1, 1, 1]} : vector<2x64x64xf32> to vector<2x1x64xf32>
    %187 = vector.shape_cast %186 : vector<2x1x64xf32> to vector<2x64xf32>
    %c0_93 = arith.constant 0 : index
    %c2176 = arith.constant 2176 : index
    %188 = vector.load %arg13[%c0_93, %c2176] : memref<2x4096xf32, #tpu.memory_space<vmem>>, vector<2x64xf32>
    tpu.vector_store %arg13[%c0_93, %c2176], %187 {strides = array<i32>} : memref<2x4096xf32, #tpu.memory_space<vmem>>, vector<2x64xf32>,
    %189 = vector.extract_strided_slice %83 {offsets = [0, 35, 0], sizes = [2, 1, 64], strides = [1, 1, 1]} : vector<2x64x64xf32> to vector<2x1x64xf32>
    %190 = vector.shape_cast %189 : vector<2x1x64xf32> to vector<2x64xf32>
    %c0_94 = arith.constant 0 : index
    %c2240 = arith.constant 2240 : index
    %191 = vector.load %arg13[%c0_94, %c2240] : memref<2x4096xf32, #tpu.memory_space<vmem>>, vector<2x64xf32>
    tpu.vector_store %arg13[%c0_94, %c2240], %190 {strides = array<i32>} : memref<2x4096xf32, #tpu.memory_space<vmem>>, vector<2x64xf32>,
    %192 = vector.extract_strided_slice %83 {offsets = [0, 36, 0], sizes = [2, 1, 64], strides = [1, 1, 1]} : vector<2x64x64xf32> to vector<2x1x64xf32>
    %193 = vector.shape_cast %192 : vector<2x1x64xf32> to vector<2x64xf32>
    %c0_95 = arith.constant 0 : index
    %c2304 = arith.constant 2304 : index
    %194 = vector.load %arg13[%c0_95, %c2304] : memref<2x4096xf32, #tpu.memory_space<vmem>>, vector<2x64xf32>
    tpu.vector_store %arg13[%c0_95, %c2304], %193 {strides = array<i32>} : memref<2x4096xf32, #tpu.memory_space<vmem>>, vector<2x64xf32>,
    %195 = vector.extract_strided_slice %83 {offsets = [0, 37, 0], sizes = [2, 1, 64], strides = [1, 1, 1]} : vector<2x64x64xf32> to vector<2x1x64xf32>
    %196 = vector.shape_cast %195 : vector<2x1x64xf32> to vector<2x64xf32>
    %c0_96 = arith.constant 0 : index
    %c2368 = arith.constant 2368 : index
    %197 = vector.load %arg13[%c0_96, %c2368] : memref<2x4096xf32, #tpu.memory_space<vmem>>, vector<2x64xf32>
    tpu.vector_store %arg13[%c0_96, %c2368], %196 {strides = array<i32>} : memref<2x4096xf32, #tpu.memory_space<vmem>>, vector<2x64xf32>,
    %198 = vector.extract_strided_slice %83 {offsets = [0, 38, 0], sizes = [2, 1, 64], strides = [1, 1, 1]} : vector<2x64x64xf32> to vector<2x1x64xf32>
    %199 = vector.shape_cast %198 : vector<2x1x64xf32> to vector<2x64xf32>
    %c0_97 = arith.constant 0 : index
    %c2432 = arith.constant 2432 : index
    %200 = vector.load %arg13[%c0_97, %c2432] : memref<2x4096xf32, #tpu.memory_space<vmem>>, vector<2x64xf32>
    tpu.vector_store %arg13[%c0_97, %c2432], %199 {strides = array<i32>} : memref<2x4096xf32, #tpu.memory_space<vmem>>, vector<2x64xf32>,
    %201 = vector.extract_strided_slice %83 {offsets = [0, 39, 0], sizes = [2, 1, 64], strides = [1, 1, 1]} : vector<2x64x64xf32> to vector<2x1x64xf32>
    %202 = vector.shape_cast %201 : vector<2x1x64xf32> to vector<2x64xf32>
    %c0_98 = arith.constant 0 : index
    %c2496 = arith.constant 2496 : index
    %203 = vector.load %arg13[%c0_98, %c2496] : memref<2x4096xf32, #tpu.memory_space<vmem>>, vector<2x64xf32>
    tpu.vector_store %arg13[%c0_98, %c2496], %202 {strides = array<i32>} : memref<2x4096xf32, #tpu.memory_space<vmem>>, vector<2x64xf32>,
    %204 = vector.extract_strided_slice %83 {offsets = [0, 40, 0], sizes = [2, 1, 64], strides = [1, 1, 1]} : vector<2x64x64xf32> to vector<2x1x64xf32>
    %205 = vector.shape_cast %204 : vector<2x1x64xf32> to vector<2x64xf32>
    %c0_99 = arith.constant 0 : index
    %c2560 = arith.constant 2560 : index
    %206 = vector.load %arg13[%c0_99, %c2560] : memref<2x4096xf32, #tpu.memory_space<vmem>>, vector<2x64xf32>
    tpu.vector_store %arg13[%c0_99, %c2560], %205 {strides = array<i32>} : memref<2x4096xf32, #tpu.memory_space<vmem>>, vector<2x64xf32>,
    %207 = vector.extract_strided_slice %83 {offsets = [0, 41, 0], sizes = [2, 1, 64], strides = [1, 1, 1]} : vector<2x64x64xf32> to vector<2x1x64xf32>
    %208 = vector.shape_cast %207 : vector<2x1x64xf32> to vector<2x64xf32>
    %c0_100 = arith.constant 0 : index
    %c2624 = arith.constant 2624 : index
    %209 = vector.load %arg13[%c0_100, %c2624] : memref<2x4096xf32, #tpu.memory_space<vmem>>, vector<2x64xf32>
    tpu.vector_store %arg13[%c0_100, %c2624], %208 {strides = array<i32>} : memref<2x4096xf32, #tpu.memory_space<vmem>>, vector<2x64xf32>,
    %210 = vector.extract_strided_slice %83 {offsets = [0, 42, 0], sizes = [2, 1, 64], strides = [1, 1, 1]} : vector<2x64x64xf32> to vector<2x1x64xf32>
    %211 = vector.shape_cast %210 : vector<2x1x64xf32> to vector<2x64xf32>
    %c0_101 = arith.constant 0 : index
    %c2688 = arith.constant 2688 : index
    %212 = vector.load %arg13[%c0_101, %c2688] : memref<2x4096xf32, #tpu.memory_space<vmem>>, vector<2x64xf32>
    tpu.vector_store %arg13[%c0_101, %c2688], %211 {strides = array<i32>} : memref<2x4096xf32, #tpu.memory_space<vmem>>, vector<2x64xf32>,
    %213 = vector.extract_strided_slice %83 {offsets = [0, 43, 0], sizes = [2, 1, 64], strides = [1, 1, 1]} : vector<2x64x64xf32> to vector<2x1x64xf32>
    %214 = vector.shape_cast %213 : vector<2x1x64xf32> to vector<2x64xf32>
    %c0_102 = arith.constant 0 : index
    %c2752 = arith.constant 2752 : index
    %215 = vector.load %arg13[%c0_102, %c2752] : memref<2x4096xf32, #tpu.memory_space<vmem>>, vector<2x64xf32>
    tpu.vector_store %arg13[%c0_102, %c2752], %214 {strides = array<i32>} : memref<2x4096xf32, #tpu.memory_space<vmem>>, vector<2x64xf32>,
    %216 = vector.extract_strided_slice %83 {offsets = [0, 44, 0], sizes = [2, 1, 64], strides = [1, 1, 1]} : vector<2x64x64xf32> to vector<2x1x64xf32>
    %217 = vector.shape_cast %216 : vector<2x1x64xf32> to vector<2x64xf32>
    %c0_103 = arith.constant 0 : index
    %c2816 = arith.constant 2816 : index
    %218 = vector.load %arg13[%c0_103, %c2816] : memref<2x4096xf32, #tpu.memory_space<vmem>>, vector<2x64xf32>
    tpu.vector_store %arg13[%c0_103, %c2816], %217 {strides = array<i32>} : memref<2x4096xf32, #tpu.memory_space<vmem>>, vector<2x64xf32>,
    %219 = vector.extract_strided_slice %83 {offsets = [0, 45, 0], sizes = [2, 1, 64], strides = [1, 1, 1]} : vector<2x64x64xf32> to vector<2x1x64xf32>
    %220 = vector.shape_cast %219 : vector<2x1x64xf32> to vector<2x64xf32>
    %c0_104 = arith.constant 0 : index
    %c2880 = arith.constant 2880 : index
    %221 = vector.load %arg13[%c0_104, %c2880] : memref<2x4096xf32, #tpu.memory_space<vmem>>, vector<2x64xf32>
    tpu.vector_store %arg13[%c0_104, %c2880], %220 {strides = array<i32>} : memref<2x4096xf32, #tpu.memory_space<vmem>>, vector<2x64xf32>,
    %222 = vector.extract_strided_slice %83 {offsets = [0, 46, 0], sizes = [2, 1, 64], strides = [1, 1, 1]} : vector<2x64x64xf32> to vector<2x1x64xf32>
    %223 = vector.shape_cast %222 : vector<2x1x64xf32> to vector<2x64xf32>
    %c0_105 = arith.constant 0 : index
    %c2944 = arith.constant 2944 : index
    %224 = vector.load %arg13[%c0_105, %c2944] : memref<2x4096xf32, #tpu.memory_space<vmem>>, vector<2x64xf32>
    tpu.vector_store %arg13[%c0_105, %c2944], %223 {strides = array<i32>} : memref<2x4096xf32, #tpu.memory_space<vmem>>, vector<2x64xf32>,
    %225 = vector.extract_strided_slice %83 {offsets = [0, 47, 0], sizes = [2, 1, 64], strides = [1, 1, 1]} : vector<2x64x64xf32> to vector<2x1x64xf32>
    %226 = vector.shape_cast %225 : vector<2x1x64xf32> to vector<2x64xf32>
    %c0_106 = arith.constant 0 : index
    %c3008 = arith.constant 3008 : index
    %227 = vector.load %arg13[%c0_106, %c3008] : memref<2x4096xf32, #tpu.memory_space<vmem>>, vector<2x64xf32>
    tpu.vector_store %arg13[%c0_106, %c3008], %226 {strides = array<i32>} : memref<2x4096xf32, #tpu.memory_space<vmem>>, vector<2x64xf32>,
    %228 = vector.extract_strided_slice %83 {offsets = [0, 48, 0], sizes = [2, 1, 64], strides = [1, 1, 1]} : vector<2x64x64xf32> to vector<2x1x64xf32>
    %229 = vector.shape_cast %228 : vector<2x1x64xf32> to vector<2x64xf32>
    %c0_107 = arith.constant 0 : index
    %c3072 = arith.constant 3072 : index
    %230 = vector.load %arg13[%c0_107, %c3072] : memref<2x4096xf32, #tpu.memory_space<vmem>>, vector<2x64xf32>
    tpu.vector_store %arg13[%c0_107, %c3072], %229 {strides = array<i32>} : memref<2x4096xf32, #tpu.memory_space<vmem>>, vector<2x64xf32>,
    %231 = vector.extract_strided_slice %83 {offsets = [0, 49, 0], sizes = [2, 1, 64], strides = [1, 1, 1]} : vector<2x64x64xf32> to vector<2x1x64xf32>
    %232 = vector.shape_cast %231 : vector<2x1x64xf32> to vector<2x64xf32>
    %c0_108 = arith.constant 0 : index
    %c3136 = arith.constant 3136 : index
    %233 = vector.load %arg13[%c0_108, %c3136] : memref<2x4096xf32, #tpu.memory_space<vmem>>, vector<2x64xf32>
    tpu.vector_store %arg13[%c0_108, %c3136], %232 {strides = array<i32>} : memref<2x4096xf32, #tpu.memory_space<vmem>>, vector<2x64xf32>,
    %234 = vector.extract_strided_slice %83 {offsets = [0, 50, 0], sizes = [2, 1, 64], strides = [1, 1, 1]} : vector<2x64x64xf32> to vector<2x1x64xf32>
    %235 = vector.shape_cast %234 : vector<2x1x64xf32> to vector<2x64xf32>
    %c0_109 = arith.constant 0 : index
    %c3200 = arith.constant 3200 : index
    %236 = vector.load %arg13[%c0_109, %c3200] : memref<2x4096xf32, #tpu.memory_space<vmem>>, vector<2x64xf32>
    tpu.vector_store %arg13[%c0_109, %c3200], %235 {strides = array<i32>} : memref<2x4096xf32, #tpu.memory_space<vmem>>, vector<2x64xf32>,
    %237 = vector.extract_strided_slice %83 {offsets = [0, 51, 0], sizes = [2, 1, 64], strides = [1, 1, 1]} : vector<2x64x64xf32> to vector<2x1x64xf32>
    %238 = vector.shape_cast %237 : vector<2x1x64xf32> to vector<2x64xf32>
    %c0_110 = arith.constant 0 : index
    %c3264 = arith.constant 3264 : index
    %239 = vector.load %arg13[%c0_110, %c3264] : memref<2x4096xf32, #tpu.memory_space<vmem>>, vector<2x64xf32>
    tpu.vector_store %arg13[%c0_110, %c3264], %238 {strides = array<i32>} : memref<2x4096xf32, #tpu.memory_space<vmem>>, vector<2x64xf32>,
    %240 = vector.extract_strided_slice %83 {offsets = [0, 52, 0], sizes = [2, 1, 64], strides = [1, 1, 1]} : vector<2x64x64xf32> to vector<2x1x64xf32>
    %241 = vector.shape_cast %240 : vector<2x1x64xf32> to vector<2x64xf32>
    %c0_111 = arith.constant 0 : index
    %c3328 = arith.constant 3328 : index
    %242 = vector.load %arg13[%c0_111, %c3328] : memref<2x4096xf32, #tpu.memory_space<vmem>>, vector<2x64xf32>
    tpu.vector_store %arg13[%c0_111, %c3328], %241 {strides = array<i32>} : memref<2x4096xf32, #tpu.memory_space<vmem>>, vector<2x64xf32>,
    %243 = vector.extract_strided_slice %83 {offsets = [0, 53, 0], sizes = [2, 1, 64], strides = [1, 1, 1]} : vector<2x64x64xf32> to vector<2x1x64xf32>
    %244 = vector.shape_cast %243 : vector<2x1x64xf32> to vector<2x64xf32>
    %c0_112 = arith.constant 0 : index
    %c3392 = arith.constant 3392 : index
    %245 = vector.load %arg13[%c0_112, %c3392] : memref<2x4096xf32, #tpu.memory_space<vmem>>, vector<2x64xf32>
    tpu.vector_store %arg13[%c0_112, %c3392], %244 {strides = array<i32>} : memref<2x4096xf32, #tpu.memory_space<vmem>>, vector<2x64xf32>,
    %246 = vector.extract_strided_slice %83 {offsets = [0, 54, 0], sizes = [2, 1, 64], strides = [1, 1, 1]} : vector<2x64x64xf32> to vector<2x1x64xf32>
    %247 = vector.shape_cast %246 : vector<2x1x64xf32> to vector<2x64xf32>
    %c0_113 = arith.constant 0 : index
    %c3456 = arith.constant 3456 : index
    %248 = vector.load %arg13[%c0_113, %c3456] : memref<2x4096xf32, #tpu.memory_space<vmem>>, vector<2x64xf32>
    tpu.vector_store %arg13[%c0_113, %c3456], %247 {strides = array<i32>} : memref<2x4096xf32, #tpu.memory_space<vmem>>, vector<2x64xf32>,
    %249 = vector.extract_strided_slice %83 {offsets = [0, 55, 0], sizes = [2, 1, 64], strides = [1, 1, 1]} : vector<2x64x64xf32> to vector<2x1x64xf32>
    %250 = vector.shape_cast %249 : vector<2x1x64xf32> to vector<2x64xf32>
    %c0_114 = arith.constant 0 : index
    %c3520 = arith.constant 3520 : index
    %251 = vector.load %arg13[%c0_114, %c3520] : memref<2x4096xf32, #tpu.memory_space<vmem>>, vector<2x64xf32>
    tpu.vector_store %arg13[%c0_114, %c3520], %250 {strides = array<i32>} : memref<2x4096xf32, #tpu.memory_space<vmem>>, vector<2x64xf32>,
    %252 = vector.extract_strided_slice %83 {offsets = [0, 56, 0], sizes = [2, 1, 64], strides = [1, 1, 1]} : vector<2x64x64xf32> to vector<2x1x64xf32>
    %253 = vector.shape_cast %252 : vector<2x1x64xf32> to vector<2x64xf32>
    %c0_115 = arith.constant 0 : index
    %c3584 = arith.constant 3584 : index
    %254 = vector.load %arg13[%c0_115, %c3584] : memref<2x4096xf32, #tpu.memory_space<vmem>>, vector<2x64xf32>
    tpu.vector_store %arg13[%c0_115, %c3584], %253 {strides = array<i32>} : memref<2x4096xf32, #tpu.memory_space<vmem>>, vector<2x64xf32>,
    %255 = vector.extract_strided_slice %83 {offsets = [0, 57, 0], sizes = [2, 1, 64], strides = [1, 1, 1]} : vector<2x64x64xf32> to vector<2x1x64xf32>
    %256 = vector.shape_cast %255 : vector<2x1x64xf32> to vector<2x64xf32>
    %c0_116 = arith.constant 0 : index
    %c3648 = arith.constant 3648 : index
    %257 = vector.load %arg13[%c0_116, %c3648] : memref<2x4096xf32, #tpu.memory_space<vmem>>, vector<2x64xf32>
    tpu.vector_store %arg13[%c0_116, %c3648], %256 {strides = array<i32>} : memref<2x4096xf32, #tpu.memory_space<vmem>>, vector<2x64xf32>,
    %258 = vector.extract_strided_slice %83 {offsets = [0, 58, 0], sizes = [2, 1, 64], strides = [1, 1, 1]} : vector<2x64x64xf32> to vector<2x1x64xf32>
    %259 = vector.shape_cast %258 : vector<2x1x64xf32> to vector<2x64xf32>
    %c0_117 = arith.constant 0 : index
    %c3712 = arith.constant 3712 : index
    %260 = vector.load %arg13[%c0_117, %c3712] : memref<2x4096xf32, #tpu.memory_space<vmem>>, vector<2x64xf32>
    tpu.vector_store %arg13[%c0_117, %c3712], %259 {strides = array<i32>} : memref<2x4096xf32, #tpu.memory_space<vmem>>, vector<2x64xf32>,
    %261 = vector.extract_strided_slice %83 {offsets = [0, 59, 0], sizes = [2, 1, 64], strides = [1, 1, 1]} : vector<2x64x64xf32> to vector<2x1x64xf32>
    %262 = vector.shape_cast %261 : vector<2x1x64xf32> to vector<2x64xf32>
    %c0_118 = arith.constant 0 : index
    %c3776 = arith.constant 3776 : index
    %263 = vector.load %arg13[%c0_118, %c3776] : memref<2x4096xf32, #tpu.memory_space<vmem>>, vector<2x64xf32>
    tpu.vector_store %arg13[%c0_118, %c3776], %262 {strides = array<i32>} : memref<2x4096xf32, #tpu.memory_space<vmem>>, vector<2x64xf32>,
    %264 = vector.extract_strided_slice %83 {offsets = [0, 60, 0], sizes = [2, 1, 64], strides = [1, 1, 1]} : vector<2x64x64xf32> to vector<2x1x64xf32>
    %265 = vector.shape_cast %264 : vector<2x1x64xf32> to vector<2x64xf32>
    %c0_119 = arith.constant 0 : index
    %c3840 = arith.constant 3840 : index
    %266 = vector.load %arg13[%c0_119, %c3840] : memref<2x4096xf32, #tpu.memory_space<vmem>>, vector<2x64xf32>
    tpu.vector_store %arg13[%c0_119, %c3840], %265 {strides = array<i32>} : memref<2x4096xf32, #tpu.memory_space<vmem>>, vector<2x64xf32>,
    %267 = vector.extract_strided_slice %83 {offsets = [0, 61, 0], sizes = [2, 1, 64], strides = [1, 1, 1]} : vector<2x64x64xf32> to vector<2x1x64xf32>
    %268 = vector.shape_cast %267 : vector<2x1x64xf32> to vector<2x64xf32>
    %c0_120 = arith.constant 0 : index
    %c3904 = arith.constant 3904 : index
    %269 = vector.load %arg13[%c0_120, %c3904] : memref<2x4096xf32, #tpu.memory_space<vmem>>, vector<2x64xf32>
    tpu.vector_store %arg13[%c0_120, %c3904], %268 {strides = array<i32>} : memref<2x4096xf32, #tpu.memory_space<vmem>>, vector<2x64xf32>,
    %270 = vector.extract_strided_slice %83 {offsets = [0, 62, 0], sizes = [2, 1, 64], strides = [1, 1, 1]} : vector<2x64x64xf32> to vector<2x1x64xf32>
    %271 = vector.shape_cast %270 : vector<2x1x64xf32> to vector<2x64xf32>
    %c0_121 = arith.constant 0 : index
    %c3968 = arith.constant 3968 : index
    %272 = vector.load %arg13[%c0_121, %c3968] : memref<2x4096xf32, #tpu.memory_space<vmem>>, vector<2x64xf32>
    tpu.vector_store %arg13[%c0_121, %c3968], %271 {strides = array<i32>} : memref<2x4096xf32, #tpu.memory_space<vmem>>, vector<2x64xf32>,
    %273 = vector.extract_strided_slice %83 {offsets = [0, 63, 0], sizes = [2, 1, 64], strides = [1, 1, 1]} : vector<2x64x64xf32> to vector<2x1x64xf32>
    %274 = vector.shape_cast %273 : vector<2x1x64xf32> to vector<2x64xf32>
    %c0_122 = arith.constant 0 : index
    %c4032 = arith.constant 4032 : index
    %275 = vector.load %arg13[%c0_122, %c4032] : memref<2x4096xf32, #tpu.memory_space<vmem>>, vector<2x64xf32>
    tpu.vector_store %arg13[%c0_122, %c4032], %274 {strides = array<i32>} : memref<2x4096xf32, #tpu.memory_space<vmem>>, vector<2x64xf32>,
    %c0_123 = arith.constant 0 : index
    %c0_124 = arith.constant 0 : index
    %276 = vector.load %arg13[%c0_123, %c0_124] : memref<2x4096xf32, #tpu.memory_space<vmem>>, vector<2x4096xf32>
    %c0_125 = arith.constant 0 : index
    %c0_126 = arith.constant 0 : index
    %277 = vector.load %arg6[%c0_125, %c0_126] : memref<4096x256xf32, #tpu.memory_space<vmem>>, vector<4096x256xf32>
    %cst_127 = arith.constant dense<0.000000e+00> : vector<2x256xf32>
    %278 = tpu.matmul %276, %277, %cst_127 {dimension_numbers = #tpu.dot_dimension_numbers<[1], [0], [0], [1], [0, 0, 1, 1], [], []>} : vector<2x4096xf32>, vector<4096x256xf32>, vector<2x256xf32> -> vector<2x256xf32>
    %c0_128 = arith.constant 0 : index
    %c0_129 = arith.constant 0 : index
    %279 = vector.load %arg7[%c0_128, %c0_129] : memref<1x256xf32, #tpu.memory_space<vmem>>, vector<1x256xf32>
    %280 = vector.broadcast %279 : vector<1x256xf32> to vector<2x256xf32>
    %281 = arith.addf %278, %280 : vector<2x256xf32>
    %cst_130 = arith.constant 0.000000e+00 : f32
    %282 = vector.broadcast %cst_130 : f32 to vector<2x256xf32>
    %283 = arith.maximumf %281, %282 : vector<2x256xf32>
    %c0_131 = arith.constant 0 : index
    %c0_132 = arith.constant 0 : index
    %284 = vector.load %arg8[%c0_131, %c0_132] : memref<256x128xf32, #tpu.memory_space<vmem>>, vector<256x128xf32>
    %cst_133 = arith.constant dense<0.000000e+00> : vector<2x128xf32>
    %285 = tpu.matmul %283, %284, %cst_133 {dimension_numbers = #tpu.dot_dimension_numbers<[1], [0], [0], [1], [0, 0, 1, 1], [], []>} : vector<2x256xf32>, vector<256x128xf32>, vector<2x128xf32> -> vector<2x128xf32>
    %c0_134 = arith.constant 0 : index
    %c0_135 = arith.constant 0 : index
    %286 = vector.load %arg9[%c0_134, %c0_135] : memref<1x128xf32, #tpu.memory_space<vmem>>, vector<1x128xf32>
    %287 = vector.broadcast %286 : vector<1x128xf32> to vector<2x128xf32>
    %288 = arith.addf %285, %287 : vector<2x128xf32>
    %cst_136 = arith.constant 0.000000e+00 : f32
    %289 = vector.broadcast %cst_136 : f32 to vector<2x128xf32>
    %290 = arith.maximumf %288, %289 : vector<2x128xf32>
    %c0_137 = arith.constant 0 : index
    %c0_138 = arith.constant 0 : index
    %291 = vector.load %arg10[%c0_137, %c0_138] : memref<2x128xf32, #tpu.memory_space<vmem>>, vector<2x128xf32>
    tpu.vector_store %arg10[%c0_137, %c0_138], %290 {strides = array<i32>} : memref<2x128xf32, #tpu.memory_space<vmem>>, vector<2x128xf32>,
    return
  }
  func.func @transform_0(%arg0: i32) -> (i32, i32, i32) {
    %c0_i32 = arith.constant 0 : i32
    %c0_i32_0 = arith.constant 0 : i32
    %c0_i32_1 = arith.constant 0 : i32
    return %arg0, %c0_i32, %c0_i32_0 : i32, i32, i32
  }
  func.func @transform_1(%arg0: i32) -> (i32, i32) {
    %c0_i32 = arith.constant 0 : i32
    %c0_i32_0 = arith.constant 0 : i32
    %c0_i32_1 = arith.constant 0 : i32
    return %c0_i32, %c0_i32_0 : i32, i32
  }
  func.func @transform_2(%arg0: i32) -> (i32, i32) {
    %c0_i32 = arith.constant 0 : i32
    %c0_i32_0 = arith.constant 0 : i32
    %c0_i32_1 = arith.constant 0 : i32
    return %c0_i32, %c0_i32_0 : i32, i32
  }
  func.func @transform_3(%arg0: i32) -> (i32, i32, i32) {
    %c0_i32 = arith.constant 0 : i32
    %c0_i32_0 = arith.constant 0 : i32
    %c0_i32_1 = arith.constant 0 : i32
    %c0_i32_2 = arith.constant 0 : i32
    return %c0_i32, %c0_i32_0, %c0_i32_1 : i32, i32, i32
  }
  func.func @transform_4(%arg0: i32) -> (i32, i32) {
    %c0_i32 = arith.constant 0 : i32
    %c0_i32_0 = arith.constant 0 : i32
    %c0_i32_1 = arith.constant 0 : i32
    return %c0_i32, %c0_i32_0 : i32, i32
  }
  func.func @transform_5(%arg0: i32) -> (i32, i32) {
    %c0_i32 = arith.constant 0 : i32
    %c0_i32_0 = arith.constant 0 : i32
    %c0_i32_1 = arith.constant 0 : i32
    return %c0_i32, %c0_i32_0 : i32, i32
  }
  func.func @transform_6(%arg0: i32) -> (i32, i32) {
    %c0_i32 = arith.constant 0 : i32
    %c0_i32_0 = arith.constant 0 : i32
    %c0_i32_1 = arith.constant 0 : i32
    return %c0_i32, %c0_i32_0 : i32, i32
  }
  func.func @transform_7(%arg0: i32) -> (i32, i32) {
    %c0_i32 = arith.constant 0 : i32
    %c0_i32_0 = arith.constant 0 : i32
    %c0_i32_1 = arith.constant 0 : i32
    return %c0_i32, %c0_i32_0 : i32, i32
  }
  func.func @transform_8(%arg0: i32) -> (i32, i32) {
    %c0_i32 = arith.constant 0 : i32
    %c0_i32_0 = arith.constant 0 : i32
    %c0_i32_1 = arith.constant 0 : i32
    return %c0_i32, %c0_i32_0 : i32, i32
  }
  func.func @transform_9(%arg0: i32) -> (i32, i32) {
    %c0_i32 = arith.constant 0 : i32
    %c0_i32_0 = arith.constant 0 : i32
    return %arg0, %c0_i32 : i32, i32
  }
}

</mosaic_0001>

<bundles_post_ra>
// kernel: representation_forward.1
= control target key start
LH: loop header
LB: loop body
LE: loop exit
PB: predicated region body
PF: predicated region fallthrough
CT: control target
= control target key end

     0   :  { %vm118_vm0 = vcmask 883712   ;;  %vm311_vm1 = vcmask 1043456   ;;  %vm11062_vm2 = vmmov 1   ;;  %s17982_s0 = inlined_call_operand.vmem [shape: f32[2,256,108], index: 0, kind: input, shape index: {}]   ;;  %s17983_s1 = inlined_call_operand.vmem [shape: f32[108,128], index: 1, kind: input, shape index: {}]   ;;  %s17984_s2 = inlined_call_operand.vmem [shape: f32[1,128], index: 2, kind: input, shape index: {}]   ;;  %s17985_s3 = inlined_call_operand.vmem [shape: f32[3,96,64], index: 3, kind: input, shape index: {}]   ;;  %s17986_s4 = inlined_call_operand.vmem [shape: f32[1,64], index: 4, kind: input, shape index: {}]   ;;  %s17987_s5 = inlined_call_operand.vmem [shape: f32[4096,256], index: 5, kind: input, shape index: {}]   ;;  %s17988_s6 = inlined_call_operand.vmem [shape: f32[1,256], index: 6, kind: input, shape index: {}]   ;;  %s17989_s7 = inlined_call_operand.vmem [shape: f32[256,128], index: 7, kind: input, shape index: {}]   ;;  %s17990_s8 = inlined_call_operand.vmem [shape: f32[1,128], index: 8, kind: input, shape index: {}]   ;;  %s17991_s9 = inlined_call_operand.hbm [shape: f32[2,128], index: 9, kind: output, shape index: {}]  }
   0x1   :  { %v97_v0 = vld [vmem:[%s17983_s1] sm:$0xff]  ;;  %v98_v1 = vld [vmem:[%s17983_s1 + $0x8] sm:$0xff]  ;;  %v99_v2 = vld [vmem:[%s17983_s1 + $0x10] sm:$0xff] }
   0x2   :  { %v9705_v3 = vpack.c.bf16 %v98_v1, %v97_v0  ;;  %v100_v4 = vld [vmem:[%s17983_s1 + $0x18] sm:$0xff]  ;;  %v101_v6 = vld [vmem:[%s17983_s1 + $0x20] sm:$0xff]  ;;  %v102_v7 = vld [vmem:[%s17983_s1 + $0x28] sm:$0xff] }
   0x3   :  { %v9709_v5 = vpack.c.bf16 %v100_v4, %v99_v2  ;;  %v9713_v8 = vpack.c.bf16 %v102_v7, %v101_v6  ;;  %v33_v9 = vld [vmem:[%s17982_s0] sm:$0xff]  ;;  %v103_v10 = vld [vmem:[%s17983_s1 + $0x30] sm:$0xff]  ;;  %v104_v11 = vld [vmem:[%s17983_s1 + $0x38] sm:$0xff] }
   0x4   :  { %9706 = vmatprep.subr.bf16.mxu1 %v9705_v3  ;;  %9249 = vmatprep.mubr.msk.f32.mxu1 %vm118_vm0, %v33_v9  ;;  %v9717_v12 = vpack.c.bf16 %v104_v11, %v103_v10  ;;  %v105_v13 = vld [vmem:[%s17983_s1 + $0x40] sm:$0xff]  ;;  %v106_v14 = vld [vmem:[%s17983_s1 + $0x48] sm:$0xff]  ;;  %v107_v16 = vld [vmem:[%s17983_s1 + $0x50] sm:$0xff] }
   0x5   :  { %9708 = vmatpush3.bf16.msra.mxu1 %v9705_v3  ;;  %v9721_v15 = vpack.c.bf16 %v106_v14, %v105_v13  ;;  %v108_v17 = vld [vmem:[%s17983_s1 + $0x58] sm:$0xff]  ;;  %v109_v19 = vld [vmem:[%s17983_s1 + $0x60] sm:$0xff]  ;;  %v110_v20 = vld [vmem:[%s17983_s1 + $0x68] sm:$0xf] }
   0x6   :  { %9710 = vmatprep.subr.bf16.mxu1 %v9709_v5  ;;  %v9725_v18 = vpack.c.bf16 %v108_v17, %v107_v16  ;;  %v9729_v21 = vpack.c.bf16 %v110_v20, %v109_v19  ;;  %vm9730_vm3 = vmpackc.low %vm311_vm1, %vm11062_vm2 }
   0x9   :  { %9712 = vmatpush3.bf16.msra.mxu1 %v9709_v5 }
   0xa   :  { %9714 = vmatprep.subr.bf16.mxu1 %v9713_v8 }
   0xd   :  { %9716 = vmatpush3.bf16.msra.mxu1 %v9713_v8 }
   0xe   :  { %9718 = vmatprep.subr.bf16.mxu1 %v9717_v12 }
  0x11   :  { %9720 = vmatpush3.bf16.msra.mxu1 %v9717_v12 }
  0x12   :  { %9722 = vmatprep.subr.bf16.mxu1 %v9721_v15 }
  0x15   :  { %9724 = vmatpush3.bf16.msra.mxu1 %v9721_v15 }
  0x16   :  { %9726 = vmatprep.subr.bf16.mxu1 %v9725_v18 }
  0x19   :  { %9728 = vmatpush3.bf16.msra.mxu1 %v9725_v18 }
  0x1a   :  { %9731 = vmatprep.subr.msk.bf16.mxu1 %vm9730_vm3, %v9729_v21 }
  0x1b   :  { %14 = vsyncpa [#allocation6], 0  ;;  %v34_v22 = vld [vmem:[%s17982_s0 + $0x8] sm:$0xff]  ;;  %v35_v23 = vld [vmem:[%s17982_s0 + $0x10] sm:$0xff]  ;;  %vm18085_vm4 = vcmask 785408   ;;  %s11066_s14 = smov 32  }
  0x1c   :  { %v36_v24 = vld [vmem:[%s17982_s0 + $0x18] sm:$0xff]  ;;  %v37_v25 = vld [vmem:[%s17982_s0 + $0x20] sm:$0xff]  ;;  %v38_v26 = vld [vmem:[%s17982_s0 + $0x28] sm:$0xff]  ;;  %vm1669_vm5 = vcmask 523520  }
  0x1d   :  { %9734 = vmatpush3.bf16.msk.msra.mxu1 %vm9730_vm3, %v9729_v21  ;;  %v39_v27 = vld [vmem:[%s17982_s0 + $0x30] sm:$0xff]  ;;  %v40_v28 = vld [vmem:[%s17982_s0 + $0x38] sm:$0xff]  ;;  %v41_v29 = vld [vmem:[%s17982_s0 + $0x40] sm:$0xff] }
  0x1e   :  { %v42_v30 = vld [vmem:[%s17982_s0 + $0x48] sm:$0xff]  ;;  %v43_v31 = vld [vmem:[%s17982_s0 + $0x50] sm:$0xff]  ;;  %v44_v32 = vld [vmem:[%s17982_s0 + $0x58] sm:$0xff] }
  0x1f   :  { %v45_v33 = vld [vmem:[%s17982_s0 + $0x60] sm:$0xff]  ;;  %v46_v34 = vld [vmem:[%s17982_s0 + $0x68] sm:$0xff]  ;;  %v47_v35 = vld [vmem:[%s17982_s0 + $0x70] sm:$0xff] }
  0x20   :  { %9250 = vmatmul.mubr.msk.f32.vlgmr.msra.gmra.mrb[0].mxu1 %vm118_vm0, %v34_v22  ;;  %v48_v36 = vld [vmem:[%s17982_s0 + $0x78] sm:$0xff]  ;;  %v49_v37 = vld [vmem:[%s17982_s0 + $0x80] sm:$0xff]  ;;  %v50_v38 = vld [vmem:[%s17982_s0 + $0x88] sm:$0xff] }
  0x21   :  { %9252 = vmatprep.mubr.msk.f32.mxu1 %vm118_vm0, %v35_v23  ;;  %v51_v39 = vld [vmem:[%s17982_s0 + $0x90] sm:$0xff]  ;;  %v52_v40 = vld [vmem:[%s17982_s0 + $0x98] sm:$0xff]  ;;  %v53_v41 = vld [vmem:[%s17982_s0 + $0xa0] sm:$0xff] }
  0x22   :  { %v54_v42 = vld [vmem:[%s17982_s0 + $0xa8] sm:$0xff]  ;;  %v55_v43 = vld [vmem:[%s17982_s0 + $0xb0] sm:$0xff]  ;;  %v56_v44 = vld [vmem:[%s17982_s0 + $0xb8] sm:$0xff] }
  0x23   :  { %v57_v45 = vld [vmem:[%s17982_s0 + $0xc0] sm:$0xff]  ;;  %v58_v46 = vld [vmem:[%s17982_s0 + $0xc8] sm:$0xff]  ;;  %v59_v47 = vld [vmem:[%s17982_s0 + $0xd0] sm:$0xff] }
  0x24   :  { %9253 = vmatmul.mubr.msk.f32.gmra.mrb[2].mxu1 %vm118_vm0, %v36_v24  ;;  %v60_v48 = vld [vmem:[%s17982_s0 + $0xd8] sm:$0xff]  ;;  %v61_v49 = vld [vmem:[%s17982_s0 + $0xe0] sm:$0xff]  ;;  %v62_v50 = vld [vmem:[%s17982_s0 + $0xe8] sm:$0xff] }
  0x25   :  { %9255 = vmatprep.mubr.msk.f32.mxu1 %vm118_vm0, %v37_v25  ;;  %v63_v51 = vld [vmem:[%s17982_s0 + $0xf0] sm:$0xff]  ;;  %v64_v52 = vld [vmem:[%s17982_s0 + $0xf8] sm:$0xff]  ;;  %v65_v53 = vld [vmem:[%s17982_s0 + $0x100] sm:$0xff] }
  0x26   :  { %v66_v54 = vld [vmem:[%s17982_s0 + $0x108] sm:$0xff]  ;;  %v67_v55 = vld [vmem:[%s17982_s0 + $0x110] sm:$0xff]  ;;  %v68_v56 = vld [vmem:[%s17982_s0 + $0x118] sm:$0xff] }
  0x27   :  { %v69_v57 = vld [vmem:[%s17982_s0 + $0x120] sm:$0xff]  ;;  %v70_v58 = vld [vmem:[%s17982_s0 + $0x128] sm:$0xff]  ;;  %v71_v59 = vld [vmem:[%s17982_s0 + $0x130] sm:$0xff] }
  0x28   :  { %9256 = vmatmul.mubr.msk.f32.gmra.mrb[4].mxu1 %vm118_vm0, %v38_v26  ;;  %v72_v60 = vld [vmem:[%s17982_s0 + $0x138] sm:$0xff]  ;;  %v73_v61 = vld [vmem:[%s17982_s0 + $0x140] sm:$0xff]  ;;  %v74_v62 = vld [vmem:[%s17982_s0 + $0x148] sm:$0xff] }
  0x29   :  { %9258 = vmatprep.mubr.msk.f32.mxu1 %vm118_vm0, %v39_v27  ;;  %v75_v63 = vld [vmem:[%s17982_s0 + $0x150] sm:$0xff]  ;;  %v76_v0 = vld [vmem:[%s17982_s0 + $0x158] sm:$0xff]  ;;  %v77_v1 = vld [vmem:[%s17982_s0 + $0x160] sm:$0xff] }
  0x2a   :  { %v78_v2 = vld [vmem:[%s17982_s0 + $0x168] sm:$0xff]  ;;  %v79_v3 = vld [vmem:[%s17982_s0 + $0x170] sm:$0xff]  ;;  %v80_v4 = vld [vmem:[%s17982_s0 + $0x178] sm:$0xff] }
  0x2b   :  { %v81_v5 = vld [vmem:[%s17982_s0 + $0x180] sm:$0xff]  ;;  %v82_v6 = vld [vmem:[%s17982_s0 + $0x188] sm:$0xff]  ;;  %v83_v7 = vld [vmem:[%s17982_s0 + $0x190] sm:$0xff] }
  0x2c   :  { %9259 = vmatmul.mubr.msk.f32.gmra.mrb[6].mxu1 %vm118_vm0, %v40_v28  ;;  %v84_v8 = vld [vmem:[%s17982_s0 + $0x198] sm:$0xff]  ;;  %v85_v9 = vld [vmem:[%s17982_s0 + $0x1a0] sm:$0xff]  ;;  %v86_v10 = vld [vmem:[%s17982_s0 + $0x1a8] sm:$0xff] }
  0x2d   :  { %9261 = vmatprep.mubr.msk.f32.mxu1 %vm118_vm0, %v41_v29  ;;  %v87_v11 = vld [vmem:[%s17982_s0 + $0x1b0] sm:$0xff]  ;;  %v88_v12 = vld [vmem:[%s17982_s0 + $0x1b8] sm:$0xff]  ;;  %v89_v13 = vld [vmem:[%s17982_s0 + $0x1c0] sm:$0xff] }
  0x2e   :  { %v90_v14 = vld [vmem:[%s17982_s0 + $0x1c8] sm:$0xff]  ;;  %v91_v15 = vld [vmem:[%s17982_s0 + $0x1d0] sm:$0xff]  ;;  %v92_v16 = vld [vmem:[%s17982_s0 + $0x1d8] sm:$0xff] }
  0x2f   :  { %v93_v17 = vld [vmem:[%s17982_s0 + $0x1e0] sm:$0xff]  ;;  %v94_v18 = vld [vmem:[%s17982_s0 + $0x1e8] sm:$0xff]  ;;  %v95_v19 = vld [vmem:[%s17982_s0 + $0x1f0] sm:$0xff] }
  0x30   :  { %9262 = vmatmul.mubr.msk.f32.gmra.mrb[8].mxu1 %vm118_vm0, %v42_v30  ;;  %v96_v20 = vld [vmem:[%s17982_s0 + $0x1f8] sm:$0xff]  ;;  %v11420_v21 = vld [vmem:[%s17984_s2] ss:$0 sm:$0xff]  ;;  %s11063_s0 = smov 96   ;;  %s11064_s2 = smov 64  }
  0x31   :  { %9264 = vmatprep.mubr.msk.f32.mxu1 %vm118_vm0, %v43_v31 }
  0x34   :  { %9265 = vmatmul.mubr.msk.f32.gmra.mrb[10].mxu1 %vm118_vm0, %v44_v32 }
  0x35   :  { %9267 = vmatprep.mubr.msk.f32.mxu1 %vm118_vm0, %v45_v33 }
  0x38   :  { %9268 = vmatmul.mubr.msk.f32.gmra.mrb[12].mxu1 %vm118_vm0, %v46_v34 }
  0x39   :  { %9270 = vmatprep.mubr.msk.f32.mxu1 %vm118_vm0, %v47_v35 }
  0x3c   :  { %9271 = vmatmul.mubr.msk.f32.gmra.mrb[14].mxu1 %vm118_vm0, %v48_v36 }
  0x3d   :  { %9273 = vmatprep.mubr.msk.f32.mxu1 %vm118_vm0, %v49_v37 }
  0x40   :  { %9274 = vmatmul.mubr.msk.f32.gmra.mrb[16].mxu1 %vm118_vm0, %v50_v38 }
  0x41   :  { %9276 = vmatprep.mubr.msk.f32.mxu1 %vm118_vm0, %v51_v39 }
  0x44   :  { %9277 = vmatmul.mubr.msk.f32.gmra.mrb[18].mxu1 %vm118_vm0, %v52_v40 }
  0x45   :  { %9279 = vmatprep.mubr.msk.f32.mxu1 %vm118_vm0, %v53_v41 }
  0x48   :  { %9280 = vmatmul.mubr.msk.f32.gmra.mrb[20].mxu1 %vm118_vm0, %v54_v42 }
  0x49   :  { %9282 = vmatprep.mubr.msk.f32.mxu1 %vm118_vm0, %v55_v43 }
  0x4c   :  { %9283 = vmatmul.mubr.msk.f32.gmra.mrb[22].mxu1 %vm118_vm0, %v56_v44 }
  0x4d   :  { %9285 = vmatprep.mubr.msk.f32.mxu1 %vm118_vm0, %v57_v45 }
  0x50   :  { %9286 = vmatmul.mubr.msk.f32.gmra.mrb[24].mxu1 %vm118_vm0, %v58_v46 }
  0x51   :  { %9288 = vmatprep.mubr.msk.f32.mxu1 %vm118_vm0, %v59_v47 }
  0x54   :  { %9289 = vmatmul.mubr.msk.f32.gmra.mrb[26].mxu1 %vm118_vm0, %v60_v48 }
  0x55   :  { %9291 = vmatprep.mubr.msk.f32.mxu1 %vm118_vm0, %v61_v49 }
  0x58   :  { %9292 = vmatmul.mubr.msk.f32.gmra.mrb[28].mxu1 %vm118_vm0, %v62_v50 }
  0x59   :  { %9294 = vmatprep.mubr.msk.f32.mxu1 %vm118_vm0, %v63_v51 }
  0x5c   :  { %9295 = vmatmul.mubr.msk.f32.gmra.mrb[30].mxu1 %vm118_vm0, %v64_v52 }
  0x5d   :  { %9297 = vmatprep.mubr.msk.f32.mxu1 %vm118_vm0, %v65_v53 }
  0x60   :  { %9298 = vmatmul.mubr.msk.f32.gmra.mrb[32].mxu1 %vm118_vm0, %v66_v54 }
  0x61   :  { %9300 = vmatprep.mubr.msk.f32.mxu1 %vm118_vm0, %v67_v55 }
  0x64   :  { %9301 = vmatmul.mubr.msk.f32.gmra.mrb[34].mxu1 %vm118_vm0, %v68_v56 }
  0x65   :  { %9303 = vmatprep.mubr.msk.f32.mxu1 %vm118_vm0, %v69_v57 }
  0x68   :  { %9304 = vmatmul.mubr.msk.f32.gmra.mrb[36].mxu1 %vm118_vm0, %v70_v58 }
  0x69   :  { %9306 = vmatprep.mubr.msk.f32.mxu1 %vm118_vm0, %v71_v59 }
  0x6c   :  { %9307 = vmatmul.mubr.msk.f32.gmra.mrb[38].mxu1 %vm118_vm0, %v72_v60 }
  0x6d   :  { %9309 = vmatprep.mubr.msk.f32.mxu1 %vm118_vm0, %v73_v61 }
  0x70   :  { %9310 = vmatmul.mubr.msk.f32.gmra.mrb[40].mxu1 %vm118_vm0, %v74_v62 }
  0x71   :  { %9312 = vmatprep.mubr.msk.f32.mxu1 %vm118_vm0, %v75_v63 }
  0x74   :  { %9313 = vmatmul.mubr.msk.f32.gmra.mrb[42].mxu1 %vm118_vm0, %v76_v0 }
  0x75   :  { %9315 = vmatprep.mubr.msk.f32.mxu1 %vm118_vm0, %v77_v1 }
  0x78   :  { %9316 = vmatmul.mubr.msk.f32.gmra.mrb[44].mxu1 %vm118_vm0, %v78_v2 }
  0x79   :  { %9318 = vmatprep.mubr.msk.f32.mxu1 %vm118_vm0, %v79_v3 }
  0x7c   :  { %9319 = vmatmul.mubr.msk.f32.gmra.mrb[46].mxu1 %vm118_vm0, %v80_v4 }
  0x7d   :  { %9321 = vmatprep.mubr.msk.f32.mxu1 %vm118_vm0, %v81_v5 }
  0x80   :  { %9322 = vmatmul.mubr.msk.f32.gmra.mrb[48].mxu1 %vm118_vm0, %v82_v6 }
  0x81   :  { %9324 = vmatprep.mubr.msk.f32.mxu1 %vm118_vm0, %v83_v7 }
  0x84   :  { %9325 = vmatmul.mubr.msk.f32.gmra.mrb[50].mxu1 %vm118_vm0, %v84_v8 }
  0x85   :  { %9327 = vmatprep.mubr.msk.f32.mxu1 %vm118_vm0, %v85_v9 }
  0x88   :  { %9328 = vmatmul.mubr.msk.f32.gmra.mrb[52].mxu1 %vm118_vm0, %v86_v10 }
  0x89   :  { %9330 = vmatprep.mubr.msk.f32.mxu1 %vm118_vm0, %v87_v11 }
  0x8c   :  { %9331 = vmatmul.mubr.msk.f32.gmra.mrb[54].mxu1 %vm118_vm0, %v88_v12 }
  0x8d   :  { %9333 = vmatprep.mubr.msk.f32.mxu1 %vm118_vm0, %v89_v13 }
  0x90   :  { %9334 = vmatmul.mubr.msk.f32.gmra.mrb[56].mxu1 %vm118_vm0, %v90_v14 }
  0x91   :  { %9336 = vmatprep.mubr.msk.f32.mxu1 %vm118_vm0, %v91_v15 }
  0x94   :  { %9337 = vmatmul.mubr.msk.f32.gmra.mrb[58].mxu1 %vm118_vm0, %v92_v16 }
  0x95   :  { %9339 = vmatprep.mubr.msk.f32.mxu1 %vm118_vm0, %v93_v17 }
  0x98   :  { %9340 = vmatmul.mubr.msk.f32.gmra.mrb[60].mxu1 %vm118_vm0, %v94_v18 }
  0x99   :  { %9342 = vmatprep.mubr.msk.f32.mxu1 %vm118_vm0, %v95_v19 }
  0x9c   :  { %9343 = vmatmul.mubr.msk.f32.gmra.mrb[62].mxu1 %vm118_vm0, %v96_v20 }
  0xf3   :  { %v9251_v22 = vpop.f32.mrb[0].mxu1 }
  0xf4   :  { %v11423_v23 = vadd.f32 %v9251_v22, %v11420_v21  ;;  %v381_v24 = vpop.f32.mrb[1].mxu1 }
  0xf5   :  { %v11427_v26 = vadd.f32 %v11420_v21, %v381_v24 }
  0xf6   :  { %v18039_v25 = vmax.f32 %v11423_v23, 0.0 }
  0xf7   :  { %v9254_v27 = vpop.f32.mrb[2].mxu1  ;;  %v18042_v30 = vmax.f32 %v11427_v26, 0.0 }
  0xf8   :  { %v11430_v28 = vadd.f32 %v9254_v27, %v11420_v21  ;;  %830 = vrot.lane.b32.xlu0 %v18039_v25, %s11063_s0  ;;  %v391_v29 = vpop.f32.mrb[3].mxu1 }
  0xf9   :  { %v11438_v32 = vadd.f32 %v11420_v21, %v391_v29 }
  0xfa   :  { %v18035_v31 = vmax.f32 %v11430_v28, 0.0 }
  0xfb   :  { %v9257_v33 = vpop.f32.mrb[4].mxu1  ;;  %v18038_v36 = vmax.f32 %v11438_v32, 0.0 }
  0xfc   :  { %834 = vrot.lane.b32.xlu1 %v18035_v31, %s11063_s0  ;;  %v401_v34 = vpop.f32.mrb[5].mxu1  ;;  %828 = vrot.lane.b32.xlu0 %v18042_v30, %s11063_s0  ;;  %v11451_v37 = vadd.f32 %v9257_v33, %v11420_v21 }
  0xfd   :  { %v11447_v35 = vadd.f32 %v11420_v21, %v401_v34 }
  0xfe   :  { %v18034_v42 = vmax.f32 %v11451_v37, 0.0 }
  0xff   :  { %v18031_v38 = vmax.f32 %v11447_v35, 0.0  ;;  %v9260_v39 = vpop.f32.mrb[6].mxu1 }
 0x100   :  { %v411_v40 = vpop.f32.mrb[7].mxu1  ;;  %832 = vrot.lane.b32.xlu1 %v18038_v36, %s11063_s0  ;;  %v11465_v43 = vadd.f32 %v9260_v39, %v11420_v21 }
 0x101   :  { %v11458_v41 = vadd.f32 %v11420_v21, %v411_v40  ;;  %836 = vrot.lane.b32.xlu0 %v18031_v38, %s11063_s0 }
 0x102   :  { %v18030_v48 = vmax.f32 %v11465_v43, 0.0 }
 0x103   :  { %v18027_v44 = vmax.f32 %v11458_v41, 0.0  ;;  %v9263_v45 = vpop.f32.mrb[8].mxu1 }
 0x104   :  { %v421_v46 = vpop.f32.mrb[9].mxu1  ;;  %838 = vrot.lane.b32.xlu1 %v18034_v42, %s11063_s0  ;;  %v11479_v49 = vadd.f32 %v9263_v45, %v11420_v21 }
 0x105   :  { %v11472_v47 = vadd.f32 %v11420_v21, %v421_v46  ;;  %840 = vrot.lane.b32.xlu0 %v18027_v44, %s11063_s0 }
 0x106   :  { %v18026_v54 = vmax.f32 %v11479_v49, 0.0 }
 0x107   :  { %v18023_v50 = vmax.f32 %v11472_v47, 0.0  ;;  %v9266_v51 = vpop.f32.mrb[10].mxu1 }
 0x108   :  { %v431_v52 = vpop.f32.mrb[11].mxu1  ;;  %842 = vrot.lane.b32.xlu1 %v18030_v48, %s11063_s0  ;;  %v11493_v55 = vadd.f32 %v9266_v51, %v11420_v21 }
 0x109   :  { %v11486_v53 = vadd.f32 %v11420_v21, %v431_v52  ;;  %844 = vrot.lane.b32.xlu0 %v18023_v50, %s11063_s0 }
 0x10a   :  { %v18022_v60 = vmax.f32 %v11493_v55, 0.0 }
 0x10b   :  { %v18019_v56 = vmax.f32 %v11486_v53, 0.0  ;;  %v9269_v57 = vpop.f32.mrb[12].mxu1 }
 0x10c   :  { %v441_v58 = vpop.f32.mrb[13].mxu1  ;;  %846 = vrot.lane.b32.xlu1 %v18026_v54, %s11063_s0  ;;  %v11507_v61 = vadd.f32 %v9269_v57, %v11420_v21 }
 0x10d   :  { %v11500_v59 = vadd.f32 %v11420_v21, %v441_v58  ;;  %848 = vrot.lane.b32.xlu0 %v18019_v56, %s11063_s0 }
 0x10e   :  { %v18018_v2 = vmax.f32 %v11507_v61, 0.0 }
 0x10f   :  { %v18015_v62 = vmax.f32 %v11500_v59, 0.0  ;;  %v9272_v63 = vpop.f32.mrb[14].mxu1 }
 0x110   :  { %v451_v0 = vpop.f32.mrb[15].mxu1  ;;  %850 = vrot.lane.b32.xlu1 %v18022_v60, %s11063_s0  ;;  %v11521_v3 = vadd.f32 %v9272_v63, %v11420_v21 }
 0x111   :  { %v11514_v1 = vadd.f32 %v11420_v21, %v451_v0  ;;  %852 = vrot.lane.b32.xlu0 %v18015_v62, %s11063_s0 }
 0x112   :  { %v18014_v8 = vmax.f32 %v11521_v3, 0.0 }
 0x113   :  { %v18011_v4 = vmax.f32 %v11514_v1, 0.0  ;;  %v9275_v5 = vpop.f32.mrb[16].mxu1 }
 0x114   :  { %v461_v6 = vpop.f32.mrb[17].mxu1  ;;  %854 = vrot.lane.b32.xlu1 %v18018_v2, %s11063_s0  ;;  %v11535_v9 = vadd.f32 %v9275_v5, %v11420_v21 }
 0x115   :  { %v11528_v7 = vadd.f32 %v11420_v21, %v461_v6  ;;  %856 = vrot.lane.b32.xlu0 %v18011_v4, %s11063_s0 }
 0x116   :  { %v18010_v14 = vmax.f32 %v11535_v9, 0.0 }
 0x117   :  { %v18007_v10 = vmax.f32 %v11528_v7, 0.0  ;;  %v9278_v11 = vpop.f32.mrb[18].mxu1 }
 0x118   :  { %v471_v12 = vpop.f32.mrb[19].mxu1  ;;  %858 = vrot.lane.b32.xlu1 %v18014_v8, %s11063_s0  ;;  %v11549_v15 = vadd.f32 %v9278_v11, %v11420_v21 }
 0x119   :  { %v11542_v13 = vadd.f32 %v11420_v21, %v471_v12  ;;  %860 = vrot.lane.b32.xlu0 %v18007_v10, %s11063_s0 }
 0x11a   :  { %v18006_v20 = vmax.f32 %v11549_v15, 0.0 }
 0x11b   :  { %v18003_v16 = vmax.f32 %v11542_v13, 0.0  ;;  %v9281_v17 = vpop.f32.mrb[20].mxu1 }
 0x11c   :  { %v481_v18 = vpop.f32.mrb[21].mxu1  ;;  %862 = vrot.lane.b32.xlu1 %v18010_v14, %s11063_s0  ;;  %v11563_v22 = vadd.f32 %v9281_v17, %v11420_v21 }
 0x11d   :  { %v11556_v19 = vadd.f32 %v11420_v21, %v481_v18  ;;  %864 = vrot.lane.b32.xlu0 %v18003_v16, %s11063_s0 }
 0x11e   :  { %v18000_v34 = vmax.f32 %v11563_v22, 0.0 }
 0x11f   :  { %v17999_v24 = vmax.f32 %v11556_v19, 0.0  ;;  %v9284_v27 = vpop.f32.mrb[22].mxu1 }
 0x120   :  { %v491_v29 = vpop.f32.mrb[23].mxu1  ;;  %866 = vrot.lane.b32.xlu1 %v18006_v20, %s11063_s0  ;;  %v11577_v39 = vadd.f32 %v9284_v27, %v11420_v21 }
 0x121   :  { %v11570_v33 = vadd.f32 %v11420_v21, %v491_v29  ;;  %868 = vrot.lane.b32.xlu0 %v17999_v24, %s11063_s0 }
 0x122   :  { %v17998_v52 = vmax.f32 %v11577_v39, 0.0 }
 0x123   :  { %v17995_v40 = vmax.f32 %v11570_v33, 0.0  ;;  %v9287_v45 = vpop.f32.mrb[24].mxu1 }
 0x124   :  { %v501_v46 = vpop.f32.mrb[25].mxu1  ;;  %870 = vrot.lane.b32.xlu1 %v18000_v34, %s11063_s0  ;;  %v11591_v57 = vadd.f32 %v9287_v45, %v11420_v21 }
 0x125   :  { %v11584_v51 = vadd.f32 %v11420_v21, %v501_v46  ;;  %872 = vrot.lane.b32.xlu0 %v17995_v40, %s11063_s0 }
 0x126   :  { %v17994_v6 = vmax.f32 %v11591_v57, 0.0 }
 0x127   :  { %v17992_v58 = vmax.f32 %v11584_v51, 0.0  ;;  %v9290_v63 = vpop.f32.mrb[26].mxu1 }
 0x128   :  { %v511_v0 = vpop.f32.mrb[27].mxu1  ;;  %874 = vrot.lane.b32.xlu1 %v17998_v52, %s11063_s0  ;;  %v11605_v11 = vadd.f32 %v9290_v63, %v11420_v21 }
 0x129   :  { %v11598_v5 = vadd.f32 %v11420_v21, %v511_v0  ;;  %876 = vrot.lane.b32.xlu0 %v17992_v58, %s11063_s0 }
 0x12a   :  { %v17997_v29 = vmax.f32 %v11605_v11, 0.0 }
 0x12b   :  { %v17993_v12 = vmax.f32 %v11598_v5, 0.0  ;;  %v9293_v17 = vpop.f32.mrb[28].mxu1 }
 0x12c   :  { %v521_v18 = vpop.f32.mrb[29].mxu1  ;;  %878 = vrot.lane.b32.xlu1 %v17994_v6, %s11063_s0  ;;  %v11619_v45 = vadd.f32 %v9293_v17, %v11420_v21 }
 0x12d   :  { %v11612_v27 = vadd.f32 %v11420_v21, %v521_v18  ;;  %880 = vrot.lane.b32.xlu0 %v17993_v12, %s11063_s0 }
 0x12e   :  { %v18002_v18 = vmax.f32 %v11619_v45, 0.0 }
 0x12f   :  { %v17996_v46 = vmax.f32 %v11612_v27, 0.0  ;;  %v9296_v63 = vpop.f32.mrb[30].mxu1 }
 0x130   :  { %v11623_v0 = vadd.f32 %v9296_v63, %v11420_v21  ;;  %v531_v58 = vpop.f32.mrb[31].mxu1  ;;  %882 = vrot.lane.b32.xlu1 %v17997_v29, %s11063_s0 }
 0x131   :  { %884 = vrot.lane.b32.xlu0 %v17996_v46, %s11063_s0  ;;  %v11634_v12 = vadd.f32 %v11420_v21, %v531_v58 }
 0x132   :  { %v18001_v17 = vmax.f32 %v11623_v0, 0.0 }
 0x133   :  { %v9299_v6 = vpop.f32.mrb[32].mxu1  ;;  %v18004_v46 = vmax.f32 %v11634_v12, 0.0 }
 0x134   :  { %v541_v40 = vpop.f32.mrb[33].mxu1  ;;  %886 = vrot.lane.b32.xlu1 %v18002_v18, %s11063_s0  ;;  %v11647_v29 = vadd.f32 %v9299_v6, %v11420_v21 }
 0x135   :  { %v11640_v63 = vadd.f32 %v11420_v21, %v541_v40  ;;  %890 = vrot.lane.b32.xlu0 %v18001_v17, %s11063_s0 }
 0x136   :  { %v18008_v40 = vmax.f32 %v11647_v29, 0.0 }
 0x137   :  { %v18005_v58 = vmax.f32 %v11640_v63, 0.0  ;;  %v9302_v52 = vpop.f32.mrb[34].mxu1 }
 0x138   :  { %v551_v24 = vpop.f32.mrb[35].mxu1  ;;  %v11661_v6 = vadd.f32 %v9302_v52, %v11420_v21 }
 0x139   :  { %v11651_v34 = vadd.f32 %v11420_v21, %v551_v24  ;;  %892 = vrot.lane.b32.xlu1 %v18005_v58, %s11063_s0  ;;  %888 = vrot.lane.b32.xlu0 %v18004_v46, %s11063_s0 }
 0x13a   :  { %v18013_v46 = vmax.f32 %v11661_v6, 0.0 }
 0x13b   :  { %v18009_v17 = vmax.f32 %v11651_v34, 0.0  ;;  %v9305_v18 = vpop.f32.mrb[36].mxu1 }
 0x13c   :  { %v561_v16 = vpop.f32.mrb[37].mxu1  ;;  %v11675_v52 = vadd.f32 %v9305_v18, %v11420_v21 }
 0x13d   :  { %v11665_v24 = vadd.f32 %v11420_v21, %v561_v16  ;;  %896 = vrot.lane.b32.xlu1 %v18009_v17, %s11063_s0  ;;  %894 = vrot.lane.b32.xlu0 %v18008_v40, %s11063_s0 }
 0x13e   :  { %v18017_v40 = vmax.f32 %v11675_v52, 0.0 }
 0x13f   :  { %v18012_v58 = vmax.f32 %v11665_v24, 0.0  ;;  %v9308_v20 = vpop.f32.mrb[38].mxu1 }
 0x140   :  { %v571_v10 = vpop.f32.mrb[39].mxu1  ;;  %v11689_v18 = vadd.f32 %v9308_v20, %v11420_v21 }
 0x141   :  { %v11679_v16 = vadd.f32 %v11420_v21, %v571_v10  ;;  %900 = vrot.lane.b32.xlu1 %v18012_v58, %s11063_s0  ;;  %898 = vrot.lane.b32.xlu0 %v18013_v46, %s11063_s0 }
 0x142   :  { %v18021_v58 = vmax.f32 %v11689_v18, 0.0 }
 0x143   :  { %v18016_v17 = vmax.f32 %v11679_v16, 0.0  ;;  %v9311_v14 = vpop.f32.mrb[40].mxu1 }
 0x144   :  { %v581_v4 = vpop.f32.mrb[41].mxu1  ;;  %v11703_v20 = vadd.f32 %v9311_v14, %v11420_v21 }
 0x145   :  { %v11693_v10 = vadd.f32 %v11420_v21, %v581_v4  ;;  %904 = vrot.lane.b32.xlu1 %v18016_v17, %s11063_s0  ;;  %902 = vrot.lane.b32.xlu0 %v18017_v40, %s11063_s0 }
 0x146   :  { %v18025_v17 = vmax.f32 %v11703_v20, 0.0 }
 0x147   :  { %v18020_v46 = vmax.f32 %v11693_v10, 0.0  ;;  %v9314_v8 = vpop.f32.mrb[42].mxu1 }
 0x148   :  { %v591_v62 = vpop.f32.mrb[43].mxu1  ;;  %v11717_v14 = vadd.f32 %v9314_v8, %v11420_v21 }
 0x149   :  { %v11707_v4 = vadd.f32 %v11420_v21, %v591_v62  ;;  %908 = vrot.lane.b32.xlu1 %v18020_v46, %s11063_s0  ;;  %906 = vrot.lane.b32.xlu0 %v18021_v58, %s11063_s0 }
 0x14a   :  { %v18029_v46 = vmax.f32 %v11717_v14, 0.0 }
 0x14b   :  { %v18024_v40 = vmax.f32 %v11707_v4, 0.0  ;;  %v9317_v2 = vpop.f32.mrb[44].mxu1 }
 0x14c   :  { %v601_v56 = vpop.f32.mrb[45].mxu1  ;;  %v11731_v8 = vadd.f32 %v9317_v2, %v11420_v21 }
 0x14d   :  { %v11721_v62 = vadd.f32 %v11420_v21, %v601_v56  ;;  %912 = vrot.lane.b32.xlu1 %v18024_v40, %s11063_s0  ;;  %910 = vrot.lane.b32.xlu0 %v18025_v17, %s11063_s0 }
 0x14e   :  { %v18033_v40 = vmax.f32 %v11731_v8, 0.0 }
 0x14f   :  { %v18028_v58 = vmax.f32 %v11721_v62, 0.0  ;;  %v9320_v60 = vpop.f32.mrb[46].mxu1 }
 0x150   :  { %v611_v50 = vpop.f32.mrb[47].mxu1  ;;  %v11745_v2 = vadd.f32 %v9320_v60, %v11420_v21 }
 0x151   :  { %v11735_v56 = vadd.f32 %v11420_v21, %v611_v50  ;;  %916 = vrot.lane.b32.xlu1 %v18028_v58, %s11063_s0  ;;  %914 = vrot.lane.b32.xlu0 %v18029_v46, %s11063_s0 }
 0x152   :  { %v18037_v58 = vmax.f32 %v11745_v2, 0.0 }
 0x153   :  { %18129 = vst [vmem:[#allocation8_spill] sm:$0xff] %v11735_v56  ;;  %v18032_v17 = vmax.f32 %v11735_v56, 0.0  ;;  %v9323_v54 = vpop.f32.mrb[48].mxu1 }
 0x154   :  { %v621_v44 = vpop.f32.mrb[49].mxu1  ;;  %v11759_v60 = vadd.f32 %v9323_v54, %v11420_v21 }
 0x155   :  { %v11749_v50 = vadd.f32 %v11420_v21, %v621_v44  ;;  %920 = vrot.lane.b32.xlu1 %v18032_v17, %s11063_s0  ;;  %918 = vrot.lane.b32.xlu0 %v18033_v40, %s11063_s0 }
 0x156   :  { %18131 = vst [vmem:[#allocation10_spill] sm:$0xff] %v11759_v60  ;;  %v18041_v17 = vmax.f32 %v11759_v60, 0.0 }
 0x157   :  { %18130 = vst [vmem:[#allocation9_spill] sm:$0xff] %v11749_v50  ;;  %v18036_v46 = vmax.f32 %v11749_v50, 0.0  ;;  %v9326_v48 = vpop.f32.mrb[50].mxu1 }
 0x158   :  { %v631_v38 = vpop.f32.mrb[51].mxu1  ;;  %v11773_v54 = vadd.f32 %v9326_v48, %v11420_v21 }
 0x159   :  { %v11763_v44 = vadd.f32 %v11420_v21, %v631_v38  ;;  %924 = vrot.lane.b32.xlu1 %v18036_v46, %s11063_s0  ;;  %922 = vrot.lane.b32.xlu0 %v18037_v58, %s11063_s0 }
 0x15a   :  { %18133 = vst [vmem:[#allocation12_spill] sm:$0xff] %v11773_v54  ;;  %v18045_v46 = vmax.f32 %v11773_v54, 0.0 }
 0x15b   :  { %18132 = vst [vmem:[#allocation11_spill] sm:$0xff] %v11763_v44  ;;  %v18040_v40 = vmax.f32 %v11763_v44, 0.0  ;;  %v9329_v42 = vpop.f32.mrb[52].mxu1 }
 0x15c   :  { %v641_v31 = vpop.f32.mrb[53].mxu1  ;;  %v11787_v48 = vadd.f32 %v9329_v42, %v11420_v21 }
 0x15d   :  { %v11777_v38 = vadd.f32 %v11420_v21, %v641_v31  ;;  %928 = vrot.lane.b32.xlu1 %v18040_v40, %s11063_s0  ;;  %926 = vrot.lane.b32.xlu0 %v18041_v17, %s11063_s0 }
 0x15e   :  { %18135 = vst [vmem:[#allocation14_spill] sm:$0xff] %v11787_v48  ;;  %v18049_v40 = vmax.f32 %v11787_v48, 0.0 }
 0x15f   :  { %18134 = vst [vmem:[#allocation13_spill] sm:$0xff] %v11777_v38  ;;  %v18044_v58 = vmax.f32 %v11777_v38, 0.0  ;;  %v9332_v36 = vpop.f32.mrb[54].mxu1 }
 0x160   :  { %v651_v25 = vpop.f32.mrb[55].mxu1  ;;  %v11801_v42 = vadd.f32 %v9332_v36, %v11420_v21 }
 0x161   :  { %v11791_v31 = vadd.f32 %v11420_v21, %v651_v25  ;;  %932 = vrot.lane.b32.xlu1 %v18044_v58, %s11063_s0  ;;  %930 = vrot.lane.b32.xlu0 %v18045_v46, %s11063_s0 }
 0x162   :  { %18137 = vst [vmem:[#allocation16_spill] sm:$0xff] %v11801_v42  ;;  %v18054_v58 = vmax.f32 %v11801_v42, 0.0 }
 0x163   :  { %18136 = vst [vmem:[#allocation15_spill] sm:$0xff] %v11791_v31  ;;  %v18048_v17 = vmax.f32 %v11791_v31, 0.0  ;;  %v9335_v30 = vpop.f32.mrb[56].mxu1 }
 0x164   :  { %v661_v44 = vpop.f32.mrb[57].mxu1  ;;  %v11815_v36 = vadd.f32 %v9335_v30, %v11420_v21 }
 0x165   :  { %v11805_v25 = vadd.f32 %v11420_v21, %v661_v44  ;;  %936 = vrot.lane.b32.xlu1 %v18048_v17, %s11063_s0  ;;  %934 = vrot.lane.b32.xlu0 %v18049_v40, %s11063_s0 }
 0x166   :  { %v18061_v40 = vmax.f32 %v11815_v36, 0.0 }
 0x167   :  { %18138 = vst [vmem:[#allocation17_spill] sm:$0xff] %v11805_v25  ;;  %v18053_v46 = vmax.f32 %v11805_v25, 0.0  ;;  %v9338_v38 = vpop.f32.mrb[58].mxu1  ;;  %v18141_v25 = vmax.f32 %v11427_v26, 0.0 }
 0x168   :  { %v671_v54 = vpop.f32.mrb[59].mxu1  ;;  %v11829_v30 = vadd.f32 %v9338_v38, %v11420_v21 }
 0x169   :  { %v11819_v44 = vadd.f32 %v11420_v21, %v671_v54  ;;  %940 = vrot.lane.b32.xlu1 %v18053_v46, %s11063_s0  ;;  %938 = vrot.lane.b32.xlu0 %v18054_v58, %s11063_s0 }
 0x16a   :  { %v831_v17 = vpop.permute.xlu0 %830  ;;  %v18062_v38 = vmax.f32 %v11829_v30, 0.0 }
 0x16b   :  { %18139 = vst [vmem:[#allocation18_spill] sm:$0xff] %v11819_v44  ;;  %v18060_v31 = vmax.f32 %v11819_v44, 0.0  ;;  %v9341_v48 = vpop.f32.mrb[60].mxu1 }
 0x16c   :  { %v681_v50 = vpop.f32.mrb[61].mxu1  ;;  %v11857_v26 = vadd.f32 %v9341_v48, %v11420_v21 }
 0x16d   :  { %944 = vrot.lane.b32.xlu1 %v18060_v31, %s11063_s0  ;;  %942 = vrot.lane.b32.xlu0 %v18061_v40, %s11063_s0  ;;  %v11839_v54 = vadd.f32 %v11420_v21, %v681_v50  ;;  %v18143_v31 = vmax.f32 %v11423_v23, 0.0  ;;  %v18145_v23 = vmax.f32 %v11438_v32, 0.0 }
 0x16e   :  { %v835_v46 = vpop.permute.xlu1 %834  ;;  %v829_v58 = vpop.permute.xlu0 %828 }
 0x16f   :  { %18140 = vst [vmem:[#allocation19_spill] sm:$0xff] %v11839_v54  ;;  %v11844_v42 = vmax.f32 %v18141_v25, %v829_v58  ;;  %v9344_v60 = vpop.f32.mrb[62].mxu1  ;;  %v18064_v44 = vmax.f32 %v11839_v54, 0.0  ;;  %v11854_v40 = vmax.f32 %v18143_v31, %v831_v17 }
 0x170   :  { %v691_v56 = vpop.f32.mrb[63].mxu1  ;;  %v11865_v25 = vadd.f32 %v9344_v60, %v11420_v21  ;;  %v18146_v60 = vmax.f32 %v11430_v28, 0.0 }
 0x171   :  { %18142 = vst [vmem:[#allocation20_spill] sm:$0xff] %v11844_v42  ;;  %946 = vrot.lane.b32.xlu0 %v18062_v38, %s11063_s0  ;;  %1148 = vrot.lane.b32.xlu1 %v11844_v42, %s11064_s2  ;;  %18144 = vst [vmem:[#allocation21_spill] sm:$0xff] %v11854_v40  ;;  %v18067_v42 = vmax.f32 %v11857_v26, 0.0 }
 0x172   :  { %v833_v50 = vpop.permute.xlu1 %832  ;;  %v18068_v31 = vmax.f32 %v11865_v25, 0.0  ;;  %v11880_v54 = vmax.f32 %v18146_v60, %v835_v46 }
 0x173   :  { %v837_v58 = vpop.permute.xlu0 %836  ;;  %v11870_v17 = vmax.f32 %v18145_v23, %v833_v50  ;;  %v18147_v23 = vmax.f32 %v11451_v37, 0.0 }
 0x175   :  { %1150 = vrot.lane.b32.xlu0 %v11854_v40, %s11064_s2  ;;  %948 = vrot.lane.b32.xlu1 %v18064_v44, %s11063_s0  ;;  %v11883_v40 = vadd.f32 %v11420_v21, %v691_v56  ;;  %v18149_v56 = vmax.f32 %v11447_v35, 0.0  ;;  %v18152_v35 = vmax.f32 %v11479_v49, 0.0 }
 0x176   :  { %v839_v38 = vpop.permute.xlu1 %838 }
 0x177   :  { %v841_v48 = vpop.permute.xlu0 %840  ;;  %v18070_v28 = vmax.f32 %v11883_v40, 0.0  ;;  %v11902_v60 = vmax.f32 %v18149_v56, %v837_v58 }
 0x179   :  { %950 = vrot.lane.b32.xlu0 %v18067_v42, %s11063_s0  ;;  %1152 = vrot.lane.b32.xlu1 %v11870_v17, %s11064_s2  ;;  %v11892_v42 = vmax.f32 %v18147_v23, %v839_v38 }
 0x17a   :  { %v843_v44 = vpop.permute.xlu1 %842 }
 0x17b   :  { %v845_v32 = vpop.permute.xlu0 %844  ;;  %18148 = vst [vmem:[#allocation22_spill] sm:$0xff] %v11892_v42 }
 0x17d   :  { %1154 = vrot.lane.b32.xlu0 %v11880_v54, %s11064_s2  ;;  %954 = vrot.lane.b32.xlu1 %v18068_v31, %s11063_s0  ;;  %v18150_v31 = vmax.f32 %v11465_v43, 0.0 }
 0x17e   :  { %v847_v50 = vpop.permute.xlu1 %846 }
 0x17f   :  { %v849_v46 = vpop.permute.xlu0 %848  ;;  %v11906_v37 = vmax.f32 %v18150_v31, %v843_v44  ;;  %v11918_v58 = vmax.f32 %v18152_v35, %v847_v50  ;;  %v18153_v44 = vmax.f32 %v11472_v47, 0.0  ;;  %v18155_v50 = vmax.f32 %v11486_v53, 0.0 }
 0x180   :  { %v18156_v47 = vmax.f32 %v11507_v61, 0.0  ;;  %v18158_v53 = vmax.f32 %v11521_v3, 0.0 }
 0x181   :  { %1158 = vrot.lane.b32.xlu0 %v11892_v42, %s11064_s2  ;;  %952 = vrot.lane.b32.xlu1 %v18070_v28, %s11063_s0  ;;  %v18151_v42 = vmax.f32 %v11458_v41, 0.0  ;;  %v11926_v31 = vmax.f32 %v18153_v44, %v845_v32  ;;  %v18154_v41 = vmax.f32 %v11493_v55, 0.0  ;;  %v11938_v35 = vmax.f32 %v18155_v50, %v849_v46 }
 0x182   :  { %v851_v21 = vpop.permute.xlu1 %850 }
 0x183   :  { %v853_v38 = vpop.permute.xlu0 %852  ;;  %v11914_v28 = vmax.f32 %v18151_v42, %v841_v48  ;;  %v11930_v42 = vmax.f32 %v18154_v41, %v851_v21  ;;  %v18157_v21 = vmax.f32 %v11500_v59, 0.0  ;;  %v18160_v59 = vmax.f32 %v11535_v9, 0.0 }
 0x185   :  { %1162 = vrot.lane.b32.xlu0 %v11906_v37, %s11064_s2  ;;  %1156 = vrot.lane.b32.xlu1 %v11902_v60, %s11064_s2  ;;  %v11950_v41 = vmax.f32 %v18157_v21, %v853_v38 }
 0x186   :  { %v855_v23 = vpop.permute.xlu1 %854 }
 0x187   :  { %v857_v56 = vpop.permute.xlu0 %856  ;;  %v11942_v32 = vmax.f32 %v18156_v47, %v855_v23  ;;  %v18159_v23 = vmax.f32 %v11514_v1, 0.0  ;;  %v18162_v1 = vmax.f32 %v11549_v15, 0.0 }
 0x189   :  { %1166 = vrot.lane.b32.xlu0 %v11918_v58, %s11064_s2  ;;  %1160 = vrot.lane.b32.xlu1 %v11914_v28, %s11064_s2  ;;  %v11962_v47 = vmax.f32 %v18159_v23, %v857_v56 }
 0x18a   :  { %v859_v43 = vpop.permute.xlu1 %858 }
 0x18b   :  { %v861_v48 = vpop.permute.xlu0 %860  ;;  %v11954_v46 = vmax.f32 %v18158_v53, %v859_v43  ;;  %v18161_v43 = vmax.f32 %v11528_v7, 0.0  ;;  %v18164_v7 = vmax.f32 %v11563_v22, 0.0 }
 0x18d   :  { %1170 = vrot.lane.b32.xlu0 %v11930_v42, %s11064_s2  ;;  %1164 = vrot.lane.b32.xlu1 %v11926_v31, %s11064_s2  ;;  %v11974_v53 = vmax.f32 %v18161_v43, %v861_v48 }
 0x18e   :  { %v863_v49 = vpop.permute.xlu1 %862 }
 0x18f   :  { %v865_v44 = vpop.permute.xlu0 %864  ;;  %v11966_v38 = vmax.f32 %v18160_v59, %v863_v49  ;;  %v18163_v49 = vmax.f32 %v11542_v13, 0.0  ;;  %v18166_v13 = vmax.f32 %v11577_v39, 0.0  ;;  %v18169_v39 = vmax.f32 %v11584_v51, 0.0 }
 0x190   :  { %v18172_v51 = vmax.f32 %v11619_v45, 0.0 }
 0x191   :  { %1174 = vrot.lane.b32.xlu0 %v11942_v32, %s11064_s2  ;;  %1168 = vrot.lane.b32.xlu1 %v11938_v35, %s11064_s2  ;;  %v11986_v59 = vmax.f32 %v18163_v49, %v865_v44 }
 0x192   :  { %v867_v55 = vpop.permute.xlu1 %866 }
 0x193   :  { %v869_v50 = vpop.permute.xlu0 %868  ;;  %v11978_v56 = vmax.f32 %v18162_v1, %v867_v55  ;;  %v18165_v55 = vmax.f32 %v11556_v19, 0.0  ;;  %v18168_v19 = vmax.f32 %v11591_v57, 0.0  ;;  %v18171_v57 = vmax.f32 %v11598_v5, 0.0 }
 0x194   :  { %v18174_v5 = vmax.f32 %v11640_v63, 0.0 }
 0x195   :  { %1178 = vrot.lane.b32.xlu0 %v11954_v46, %s11064_s2  ;;  %1172 = vrot.lane.b32.xlu1 %v11950_v41, %s11064_s2  ;;  %v11998_v1 = vmax.f32 %v18165_v55, %v869_v50 }
 0x196   :  { %v871_v61 = vpop.permute.xlu1 %870 }
 0x197   :  { %v873_v21 = vpop.permute.xlu0 %872  ;;  %v11990_v48 = vmax.f32 %v18164_v7, %v871_v61  ;;  %v18167_v61 = vmax.f32 %v11570_v33, 0.0 }
 0x199   :  { %1182 = vrot.lane.b32.xlu0 %v11966_v38, %s11064_s2  ;;  %1176 = vrot.lane.b32.xlu1 %v11962_v47, %s11064_s2  ;;  %v12010_v7 = vmax.f32 %v18167_v61, %v873_v21 }
 0x19a   :  { %v875_v3 = vpop.permute.xlu1 %874 }
 0x19b   :  { %v877_v23 = vpop.permute.xlu0 %876  ;;  %v12002_v44 = vmax.f32 %v18166_v13, %v875_v3  ;;  %v18170_v13 = vmax.f32 %v11605_v11, 0.0 }
 0x19c   :  { %v12022_v3 = vmax.f32 %v18169_v39, %v877_v23 }
 0x19d   :  { %1186 = vrot.lane.b32.xlu0 %v11978_v56, %s11064_s2  ;;  %1180 = vrot.lane.b32.xlu1 %v11974_v53, %s11064_s2 }
 0x19e   :  { %v879_v9 = vpop.permute.xlu1 %878 }
 0x19f   :  { %v881_v43 = vpop.permute.xlu0 %880  ;;  %v12014_v50 = vmax.f32 %v18168_v19, %v879_v9 }
 0x1a0   :  { %v12034_v9 = vmax.f32 %v18171_v57, %v881_v43 }
 0x1a1   :  { %1190 = vrot.lane.b32.xlu0 %v11990_v48, %s11064_s2  ;;  %1184 = vrot.lane.b32.xlu1 %v11986_v59, %s11064_s2 }
 0x1a2   :  { %v883_v15 = vpop.permute.xlu1 %882 }
 0x1a3   :  { %v885_v49 = vpop.permute.xlu0 %884  ;;  %v12026_v33 = vmax.f32 %v18170_v13, %v883_v15  ;;  %v18173_v15 = vmax.f32 %v11612_v27, 0.0  ;;  %v18176_v27 = vmax.f32 %v11661_v6, 0.0 }
 0x1a5   :  { %1194 = vrot.lane.b32.xlu0 %v12002_v44, %s11064_s2  ;;  %1188 = vrot.lane.b32.xlu1 %v11998_v1, %s11064_s2  ;;  %v12046_v39 = vmax.f32 %v18173_v15, %v885_v49 }
 0x1a6   :  { %v887_v22 = vpop.permute.xlu1 %886 }
 0x1a7   :  { %v891_v55 = vpop.permute.xlu0 %890  ;;  %v12038_v23 = vmax.f32 %v18172_v51, %v887_v22  ;;  %v18175_v22 = vmax.f32 %v11623_v0, 0.0  ;;  %v18178_v0 = vmax.f32 %v11651_v34, 0.0 }
 0x1a9   :  { %1198 = vrot.lane.b32.xlu0 %v12014_v50, %s11064_s2  ;;  %1192 = vrot.lane.b32.xlu1 %v12010_v7, %s11064_s2  ;;  %v12058_v57 = vmax.f32 %v18175_v22, %v891_v55 }
 0x1ab   :  { %v893_v21 = vpop.permute.xlu1 %892  ;;  %v889_v61 = vpop.permute.xlu0 %888 }
 0x1ac   :  { %v12050_v43 = vmax.f32 %v18174_v5, %v893_v21  ;;  %v18177_v21 = vmax.f32 %v11634_v12, 0.0  ;;  %v18180_v12 = vmax.f32 %v11675_v52, 0.0 }
 0x1ad   :  { %1202 = vrot.lane.b32.xlu0 %v12026_v33, %s11064_s2  ;;  %1196 = vrot.lane.b32.xlu1 %v12022_v3, %s11064_s2 }
 0x1ae   :  { %v12070_v15 = vmax.f32 %v18177_v21, %v889_v61 }
 0x1af   :  { %v897_v19 = vpop.permute.xlu1 %896  ;;  %v895_v11 = vpop.permute.xlu0 %894 }
 0x1b0   :  { %v12074_v55 = vmax.f32 %v18178_v0, %v897_v19  ;;  %v18181_v19 = vmax.f32 %v11665_v24, 0.0  ;;  %v18184_v24 = vmax.f32 %v11703_v20, 0.0 }
 0x1b1   :  { %1206 = vrot.lane.b32.xlu0 %v12038_v23, %s11064_s2  ;;  %1200 = vrot.lane.b32.xlu1 %v12034_v9, %s11064_s2 }
 0x1b3   :  { %v901_v13 = vpop.permute.xlu1 %900  ;;  %v899_v45 = vpop.permute.xlu0 %898 }
 0x1b4   :  { %v12062_v49 = vmax.f32 %v18176_v27, %v899_v45  ;;  %v18179_v45 = vmax.f32 %v11647_v29, 0.0  ;;  %v12094_v21 = vmax.f32 %v18181_v19, %v901_v13  ;;  %v18182_v29 = vmax.f32 %v11689_v18, 0.0 }
 0x1b5   :  { %1212 = vrot.lane.b32.xlu0 %v12050_v43, %s11064_s2  ;;  %1204 = vrot.lane.b32.xlu1 %v12046_v39, %s11064_s2 }
 0x1b6   :  { %v12082_v22 = vmax.f32 %v18179_v45, %v895_v11 }
 0x1b7   :  { %v905_v51 = vpop.permute.xlu1 %904  ;;  %v903_v63 = vpop.permute.xlu0 %902 }
 0x1b8   :  { %v12086_v61 = vmax.f32 %v18180_v12, %v903_v63  ;;  %v18183_v63 = vmax.f32 %v11679_v16, 0.0  ;;  %v18186_v16 = vmax.f32 %v11717_v14, 0.0 }
 0x1b9   :  { %1210 = vrot.lane.b32.xlu1 %v12058_v57, %s11064_s2  ;;  %1218 = vrot.lane.b32.xlu0 %v12062_v49, %s11064_s2 }
 0x1ba   :  { %v12106_v45 = vmax.f32 %v18183_v63, %v905_v51 }
 0x1bb   :  { %v909_v5 = vpop.permute.xlu1 %908  ;;  %v907_v6 = vpop.permute.xlu0 %906 }
 0x1bc   :  { %v12098_v11 = vmax.f32 %v18182_v29, %v907_v6  ;;  %v18185_v6 = vmax.f32 %v11693_v10, 0.0  ;;  %v18188_v10 = vmax.f32 %v11731_v8, 0.0 }
 0x1bd   :  { %1208 = vrot.lane.b32.xlu1 %v12070_v15, %s11064_s2  ;;  %1216 = vrot.lane.b32.xlu0 %v12074_v55, %s11064_s2 }
 0x1be   :  { %v12118_v19 = vmax.f32 %v18185_v6, %v909_v5 }
 0x1bf   :  { %v913_v27 = vpop.permute.xlu1 %912  ;;  %v911_v34 = vpop.permute.xlu0 %910 }
 0x1c0   :  { %v12110_v13 = vmax.f32 %v18184_v24, %v911_v34  ;;  %v18187_v34 = vmax.f32 %v11707_v4, 0.0  ;;  %v18192_v4 = vmax.f32 %v11745_v2, 0.0 }
 0x1c1   :  { %1214 = vrot.lane.b32.xlu1 %v12082_v22, %s11064_s2  ;;  %1222 = vrot.lane.b32.xlu0 %v12086_v61, %s11064_s2 }
 0x1c2   :  { %v12130_v63 = vmax.f32 %v18187_v34, %v913_v27 }
 0x1c3   :  { %v917_v0 = vpop.permute.xlu1 %916  ;;  %v915_v52 = vpop.permute.xlu0 %914 }
 0x1c4   :  { %v12122_v51 = vmax.f32 %v18186_v16, %v915_v52  ;;  %v18190_v52 = vmax.f32 %v11721_v62, 0.0 }
 0x1c5   :  { %1220 = vrot.lane.b32.xlu1 %v12094_v21, %s11064_s2  ;;  %1226 = vrot.lane.b32.xlu0 %v12098_v11, %s11064_s2 }
 0x1c6   :  { %v12142_v6 = vmax.f32 %v18190_v52, %v917_v0 }
 0x1c7   :  { %v921_v12 = vpop.permute.xlu1 %920  ;;  %v919_v18 = vpop.permute.xlu0 %918 }
 0x1c8   :  { %v12134_v5 = vmax.f32 %v18188_v10, %v919_v18  ;;  %18191 = vst [vmem:[#allocation24_spill] sm:$0xff] %v12142_v6  ;;  %v18194_v18 = vld [vmem:[#allocation8_spill] sm:$0xff] }
 0x1c9   :  { %1224 = vrot.lane.b32.xlu1 %v12106_v45, %s11064_s2  ;;  %1230 = vrot.lane.b32.xlu0 %v12110_v13, %s11064_s2  ;;  %v18195_v34 = vmax.f32 %v18194_v18, 0.0 }
 0x1ca   :  { %18189 = vst [vmem:[#allocation23_spill] sm:$0xff] %v12134_v5 }
 0x1cb   :  { %v925_v29 = vpop.permute.xlu1 %924  ;;  %v923_v20 = vpop.permute.xlu0 %922  ;;  %v12154_v10 = vmax.f32 %v18195_v34, %v921_v12 }
 0x1cc   :  { %v12146_v27 = vmax.f32 %v18192_v4, %v923_v20  ;;  %v18200_v20 = vld [vmem:[#allocation9_spill] sm:$0xff] }
 0x1cd   :  { %1228 = vrot.lane.b32.xlu1 %v12118_v19, %s11064_s2  ;;  %1234 = vrot.lane.b32.xlu0 %v12122_v51, %s11064_s2  ;;  %18196 = vst [vmem:[#allocation8_spill] sm:$0xff] %v12154_v10  ;;  %v18201_v4 = vmax.f32 %v18200_v20, 0.0 }
 0x1ce   :  { %18193 = vst [vmem:[#allocation25_spill] sm:$0xff] %v12146_v27 }
 0x1cf   :  { %v929_v24 = vpop.permute.xlu1 %928  ;;  %v927_v14 = vpop.permute.xlu0 %926 }
 0x1d1   :  { %1232 = vrot.lane.b32.xlu1 %v12130_v63, %s11064_s2  ;;  %1238 = vrot.lane.b32.xlu0 %v12134_v5, %s11064_s2  ;;  %v18197_v5 = vld [vmem:[#allocation10_spill] sm:$0xff] }
 0x1d2   :  { %v18198_v62 = vmax.f32 %v18197_v5, 0.0 }
 0x1d3   :  { %v933_v16 = vpop.permute.xlu1 %932  ;;  %v931_v8 = vpop.permute.xlu0 %930 }
 0x1d4   :  { %v12158_v0 = vmax.f32 %v18198_v62, %v927_v14  ;;  %v18206_v14 = vld [vmem:[#allocation11_spill] sm:$0xff] }
 0x1d5   :  { %1236 = vrot.lane.b32.xlu1 %v12142_v6, %s11064_s2  ;;  %1242 = vrot.lane.b32.xlu0 %v12146_v27, %s11064_s2  ;;  %v12166_v6 = vmax.f32 %v18201_v4, %v925_v29  ;;  %v18203_v27 = vld [vmem:[#allocation12_spill] sm:$0xff]  ;;  %v18207_v62 = vmax.f32 %v18206_v14, 0.0 }
 0x1d6   :  { %18199 = vst [vmem:[#allocation10_spill] sm:$0xff] %v12158_v0  ;;  %v18204_v18 = vmax.f32 %v18203_v27, 0.0 }
 0x1d7   :  { %v937_v52 = vpop.permute.xlu1 %936  ;;  %v935_v2 = vpop.permute.xlu0 %934  ;;  %18202 = vst [vmem:[#allocation9_spill] sm:$0xff] %v12166_v6 }
 0x1d8   :  { %v12170_v12 = vmax.f32 %v18204_v18, %v931_v8  ;;  %v18211_v8 = vld [vmem:[#allocation13_spill] sm:$0xff] }
 0x1d9   :  { %1240 = vrot.lane.b32.xlu1 %v12154_v10, %s11064_s2  ;;  %1246 = vrot.lane.b32.xlu0 %v12158_v0, %s11064_s2  ;;  %v12178_v10 = vmax.f32 %v18207_v62, %v929_v24  ;;  %v18208_v0 = vld [vmem:[#allocation14_spill] sm:$0xff]  ;;  %v18212_v18 = vmax.f32 %v18211_v8, 0.0 }
 0x1da   :  { %18205 = vst [vmem:[#allocation12_spill] sm:$0xff] %v12170_v12  ;;  %v18209_v20 = vmax.f32 %v18208_v0, 0.0 }
 0x1db   :  { %v941_v34 = vpop.permute.xlu1 %940  ;;  %v939_v5 = vpop.permute.xlu0 %938 }
 0x1dc   :  { %v12182_v29 = vmax.f32 %v18209_v20, %v935_v2  ;;  %v11065_v2 = vmov 0.0   ;;  %v18220_v20 = vmax.f32 %v11815_v36, 0.0 }
 0x1dd   :  { %1244 = vrot.lane.b32.xlu1 %v12166_v6, %s11064_s2  ;;  %1250 = vrot.lane.b32.xlu0 %v12170_v12, %s11064_s2  ;;  %v12190_v6 = vmax.f32 %v18212_v18, %v933_v16  ;;  %v18214_v12 = vld [vmem:[#allocation16_spill] sm:$0xff]  ;;  %1406 = vst.msk [vmem:[#allocation2 + $0x8] sm:$0xff] %vm18085_vm4, %v11065_v2  ;;  %1405 = vst.msk [vmem:[#allocation2] sm:$0xff] %vm18085_vm4, %v11065_v2  ;;  %v18217_v16 = vld [vmem:[#allocation15_spill] sm:$0xff] }
 0x1de   :  { %18210 = vst [vmem:[#allocation11_spill] sm:$0xff] %v12182_v29  ;;  %v18215_v14 = vmax.f32 %v18214_v12, 0.0  ;;  %1407 = vst.msk [vmem:[#allocation2 + $0x120] sm:$0xff] %vm18085_vm4, %v11065_v2  ;;  %v18218_v12 = vmax.f32 %v18217_v16, 0.0  ;;  %v18225_v16 = vmax.f32 %v11829_v30, 0.0  ;;  %v18229_v30 = vld [vmem:[#allocation18_spill] sm:$0xff] }
 0x1df   :  { %v945_v4 = vpop.permute.xlu1 %944  ;;  %v943_v27 = vpop.permute.xlu0 %942  ;;  %18213 = vst [vmem:[#allocation14_spill] sm:$0xff] %v12190_v6  ;;  %1408 = vst.msk [vmem:[#allocation2 + $0x128] sm:$0xff] %vm18085_vm4, %v11065_v2 }
 0x1e0   :  { %v12194_v24 = vmax.f32 %v18215_v14, %v939_v5  ;;  %1409 = vst.msk [vmem:[#allocation2 + $0x110] sm:$0xff] %vm18085_vm4, %v11065_v2  ;;  %1410 = vst.msk [vmem:[#allocation2 + $0x118] sm:$0xff] %vm18085_vm4, %v11065_v2  ;;  %v12210_v5 = vmax.f32 %v18218_v12, %v937_v52  ;;  %v12214_v8 = vmax.f32 %v18220_v20, %v943_v27  ;;  %v18227_v27 = vld [vmem:[#allocation20_spill] sm:$0xff] }
 0x1e1   :  { %1248 = vrot.lane.b32.xlu1 %v12178_v10, %s11064_s2  ;;  %1254 = vrot.lane.b32.xlu0 %v12182_v29, %s11064_s2  ;;  %1411 = vst.msk [vmem:[#allocation2 + $0x230] sm:$0xff] %vm18085_vm4, %v11065_v2  ;;  %1412 = vst.msk [vmem:[#allocation2 + $0x238] sm:$0xff] %vm18085_vm4, %v11065_v2  ;;  %v18222_v2 = vld [vmem:[#allocation17_spill] sm:$0xff] }
 0x1e2   :  { %18216 = vst [vmem:[#allocation13_spill] sm:$0xff] %v12194_v24  ;;  %18219 = vst [vmem:[#allocation16_spill] sm:$0xff] %v12210_v5  ;;  %v18223_v29 = vmax.f32 %v18222_v2, 0.0 }
 0x1e3   :  { %v1149_v62 = vpop.permute.xlu1 %1148  ;;  %v947_v0 = vpop.permute.xlu0 %946  ;;  %18221 = vst [vmem:[#allocation15_spill] sm:$0xff] %v12214_v8 }
 0x1e4   :  { %v12226_v52 = vmax.f32 %v18225_v16, %v947_v0  ;;  %v1340_v20 = vmax.f32 %v18227_v27, %v1149_v62  ;;  %v18231_v0 = vmax.f32 %v11857_v26, 0.0  ;;  %v18232_v26 = vld [vmem:[#allocation19_spill] sm:$0xff]  ;;  %v18234_v27 = vmax.f32 %v11865_v25, 0.0 }
 0x1e5   :  { %1252 = vrot.lane.b32.xlu1 %v12190_v6, %s11064_s2  ;;  %1258 = vrot.lane.b32.xlu0 %v12194_v24, %s11064_s2  ;;  %v12222_v6 = vmax.f32 %v18223_v29, %v941_v34  ;;  %v18228_v24 = vld [vmem:[#allocation21_spill] sm:$0xff]  ;;  %v18230_v34 = vmax.f32 %v18229_v30, 0.0 }
 0x1e6   :  { %18226 = vst [vmem:[#allocation26_spill] sm:$0xff] %v12226_v52 }
 0x1e7   :  { %v949_v18 = vpop.permute.xlu1 %948  ;;  %v1151_v14 = vpop.permute.xlu0 %1150  ;;  %18224 = vst [vmem:[#allocation17_spill] sm:$0xff] %v12222_v6  ;;  %v12238_v29 = vmax.f32 %v18230_v34, %v945_v4  ;;  %v18233_v4 = vmax.f32 %v18232_v26, 0.0 }
 0x1e9   :  { %1256 = vrot.lane.b32.xlu1 %v12210_v5, %s11064_s2  ;;  %1262 = vrot.lane.b32.xlu0 %v12214_v8, %s11064_s2  ;;  %v1341_v8 = vmax.f32 %v18228_v24, %v1151_v14 }
 0x1eb   :  { %v1153_v12 = vpop.permute.xlu1 %1152  ;;  %v951_v36 = vpop.permute.xlu0 %950 }
 0x1ec   :  { %v12242_v16 = vmax.f32 %v18231_v0, %v951_v36  ;;  %v1342_v24 = vmax.f32 %v11870_v17, %v1153_v12  ;;  %v12254_v36 = vmax.f32 %v18233_v4, %v949_v18  ;;  %v18236_v12 = vld [vmem:[#allocation22_spill] sm:$0xff] }
 0x1ed   :  { %1260 = vrot.lane.b32.xlu1 %v12222_v6, %s11064_s2  ;;  %1266 = vrot.lane.b32.xlu0 %v12226_v52, %s11064_s2 }
 0x1ef   :  { %v955_v5 = vpop.permute.xlu1 %954  ;;  %v1155_v2 = vpop.permute.xlu0 %1154 }
 0x1f0   :  { %v1343_v62 = vmax.f32 %v11880_v54, %v1155_v2  ;;  %v18235_v54 = vmax.f32 %v11883_v40, 0.0 }
 0x1f1   :  { %1477 = vrot.lane.b32.xlu0 %v1340_v20, %s11066_s14  ;;  %1479 = vrot.lane.b32.xlu1 %v1341_v8, %s11066_s14  ;;  %v12258_v20 = vmax.f32 %v18234_v27, %v955_v5 }
 0x1f3   :  { %v953_v52 = vpop.permute.xlu1 %952  ;;  %v1159_v6 = vpop.permute.xlu0 %1158 }
 0x1f4   :  { %v12266_v17 = vmax.f32 %v18235_v54, %v953_v52  ;;  %v1345_v2 = vmax.f32 %v18236_v12, %v1159_v6 }
 0x1f5   :  { %1264 = vrot.lane.b32.xlu1 %v12238_v29, %s11064_s2  ;;  %1270 = vrot.lane.b32.xlu0 %v12242_v16, %s11064_s2 }
 0x1f7   :  { %v1157_v8 = vpop.permute.xlu1 %1156  ;;  %v1163_v14 = vpop.permute.xlu0 %1162 }
 0x1f8   :  { %v1344_v25 = vmax.f32 %v11902_v60, %v1157_v8  ;;  %v1347_v40 = vmax.f32 %v11906_v37, %v1163_v14 }
 0x1f9   :  { %1481 = vrot.lane.b32.xlu0 %v1342_v24, %s11066_s14  ;;  %1483 = vrot.lane.b32.xlu1 %v1343_v62, %s11066_s14 }
 0x1fb   :  { %v1161_v30 = vpop.permute.xlu1 %1160  ;;  %v1167_v34 = vpop.permute.xlu0 %1166 }
 0x1fc   :  { %v1346_v5 = vmax.f32 %v11914_v28, %v1161_v30  ;;  %v1349_v60 = vmax.f32 %v11918_v58, %v1167_v34 }
 0x1fd   :  { %1274 = vrot.lane.b32.xlu0 %v12258_v20, %s11064_s2  ;;  %1268 = vrot.lane.b32.xlu1 %v12254_v36, %s11064_s2 }
 0x1ff   :  { %v1165_v18 = vpop.permute.xlu1 %1164  ;;  %v1171_v0 = vpop.permute.xlu0 %1170 }
 0x200   :  { %v1348_v6 = vmax.f32 %v11926_v31, %v1165_v18  ;;  %v1351_v37 = vmax.f32 %v11930_v42, %v1171_v0 }
 0x201   :  { %1272 = vrot.lane.b32.xlu1 %v12266_v17, %s11064_s2  ;;  %1487 = vrot.lane.b32.xlu0 %v1345_v2, %s11066_s14 }
 0x203   :  { %v1169_v24 = vpop.permute.xlu1 %1168  ;;  %v1175_v62 = vpop.permute.xlu0 %1174 }
 0x204   :  { %v1350_v28 = vmax.f32 %v11938_v35, %v1169_v24  ;;  %v1353_v58 = vmax.f32 %v11942_v32, %v1175_v62 }
 0x205   :  { %1489 = vrot.lane.b32.xlu1 %v1346_v5, %s11066_s14  ;;  %1485 = vrot.lane.b32.xlu0 %v1344_v25, %s11066_s14 }
 0x207   :  { %v1173_v52 = vpop.permute.xlu1 %1172  ;;  %v1179_v26 = vpop.permute.xlu0 %1178 }
 0x208   :  { %v1352_v31 = vmax.f32 %v11950_v41, %v1173_v52  ;;  %v1355_v42 = vmax.f32 %v11954_v46, %v1179_v26 }
 0x209   :  { %1493 = vrot.lane.b32.xlu1 %v1348_v6, %s11066_s14  ;;  %1491 = vrot.lane.b32.xlu0 %v1347_v40, %s11066_s14 }
 0x20b   :  { %v1177_v8 = vpop.permute.xlu1 %1176  ;;  %v1183_v4 = vpop.permute.xlu0 %1182 }
 0x20c   :  { %v1354_v35 = vmax.f32 %v11962_v47, %v1177_v8  ;;  %v1357_v32 = vmax.f32 %v11966_v38, %v1183_v4 }
 0x20d   :  { %1497 = vrot.lane.b32.xlu1 %v1350_v28, %s11066_s14  ;;  %1495 = vrot.lane.b32.xlu0 %v1349_v60, %s11066_s14 }
 0x20f   :  { %v1181_v14 = vpop.permute.xlu1 %1180  ;;  %v1187_v27 = vpop.permute.xlu0 %1186 }
 0x210   :  { %v1356_v41 = vmax.f32 %v11974_v53, %v1181_v14  ;;  %v1359_v46 = vmax.f32 %v11978_v56, %v1187_v27 }
 0x211   :  { %1501 = vrot.lane.b32.xlu1 %v1352_v31, %s11066_s14  ;;  %1499 = vrot.lane.b32.xlu0 %v1351_v37, %s11066_s14 }
 0x213   :  { %v1185_v30 = vpop.permute.xlu1 %1184  ;;  %v1191_v34 = vpop.permute.xlu0 %1190 }
 0x214   :  { %v1358_v47 = vmax.f32 %v11986_v59, %v1185_v30  ;;  %v1361_v38 = vmax.f32 %v11990_v48, %v1191_v34 }
 0x215   :  { %1505 = vrot.lane.b32.xlu1 %v1354_v35, %s11066_s14  ;;  %1503 = vrot.lane.b32.xlu0 %v1353_v58, %s11066_s14 }
 0x217   :  { %v1189_v54 = vpop.permute.xlu1 %1188  ;;  %v1195_v12 = vpop.permute.xlu0 %1194 }
 0x218   :  { %v1360_v53 = vmax.f32 %v11998_v1, %v1189_v54  ;;  %v1363_v56 = vmax.f32 %v12002_v44, %v1195_v12  ;;  %v18237_v12 = vld [vmem:[#allocation24_spill] sm:$0xff] }
 0x219   :  { %1509 = vrot.lane.b32.xlu1 %v1356_v41, %s11066_s14  ;;  %1507 = vrot.lane.b32.xlu0 %v1355_v42, %s11066_s14 }
 0x21b   :  { %v1193_v2 = vpop.permute.xlu1 %1192  ;;  %v1199_v18 = vpop.permute.xlu0 %1198 }
 0x21c   :  { %v1362_v59 = vmax.f32 %v12010_v7, %v1193_v2  ;;  %v1365_v48 = vmax.f32 %v12014_v50, %v1199_v18  ;;  %v18238_v2 = vld [vmem:[#allocation23_spill] sm:$0xff]  ;;  %v18239_v18 = vld [vmem:[#allocation8_spill] sm:$0xff] }
 0x21d   :  { %1513 = vrot.lane.b32.xlu1 %v1358_v47, %s11066_s14  ;;  %1511 = vrot.lane.b32.xlu0 %v1357_v32, %s11066_s14 }
 0x21f   :  { %v1197_v0 = vpop.permute.xlu1 %1196  ;;  %v1203_v25 = vpop.permute.xlu0 %1202 }
 0x220   :  { %v1364_v1 = vmax.f32 %v12022_v3, %v1197_v0  ;;  %v1367_v44 = vmax.f32 %v12026_v33, %v1203_v25  ;;  %v18240_v0 = vld [vmem:[#allocation25_spill] sm:$0xff] }
 0x221   :  { %1517 = vrot.lane.b32.xlu1 %v1360_v53, %s11066_s14  ;;  %1515 = vrot.lane.b32.xlu0 %v1359_v46, %s11066_s14  ;;  %v18241_v25 = vld [vmem:[#allocation9_spill] sm:$0xff] }
 0x223   :  { %v1201_v5 = vpop.permute.xlu1 %1200  ;;  %v1207_v24 = vpop.permute.xlu0 %1206 }
 0x224   :  { %v1366_v7 = vmax.f32 %v12034_v9, %v1201_v5  ;;  %v1369_v50 = vmax.f32 %v12038_v23, %v1207_v24  ;;  %v18242_v24 = vld [vmem:[#allocation10_spill] sm:$0xff] }
 0x225   :  { %1521 = vrot.lane.b32.xlu1 %v1362_v59, %s11066_s14  ;;  %1519 = vrot.lane.b32.xlu0 %v1361_v38, %s11066_s14 }
 0x227   :  { %v1205_v62 = vpop.permute.xlu1 %1204  ;;  %v1213_v40 = vpop.permute.xlu0 %1212 }
 0x228   :  { %v1368_v3 = vmax.f32 %v12046_v39, %v1205_v62  ;;  %v1372_v33 = vmax.f32 %v12050_v43, %v1213_v40 }
 0x229   :  { %1525 = vrot.lane.b32.xlu1 %v1364_v1, %s11066_s14  ;;  %1523 = vrot.lane.b32.xlu0 %v1363_v56, %s11066_s14 }
 0x22b   :  { %v1211_v6 = vpop.permute.xlu1 %1210  ;;  %v1219_v52 = vpop.permute.xlu0 %1218 }
 0x22c   :  { %v1371_v39 = vmax.f32 %v12058_v57, %v1211_v6  ;;  %v1375_v43 = vmax.f32 %v12062_v49, %v1219_v52  ;;  %v18244_v6 = vld [vmem:[#allocation14_spill] sm:$0xff] }
 0x22d   :  { %1529 = vrot.lane.b32.xlu1 %v1366_v7, %s11066_s14  ;;  %1527 = vrot.lane.b32.xlu0 %v1365_v48, %s11066_s14  ;;  %v18243_v48 = vld [vmem:[#allocation12_spill] sm:$0xff] }
 0x22f   :  { %v1209_v26 = vpop.permute.xlu1 %1208  ;;  %v1217_v60 = vpop.permute.xlu0 %1216 }
 0x230   :  { %v1370_v9 = vmax.f32 %v12070_v15, %v1209_v26  ;;  %v1374_v23 = vmax.f32 %v12074_v55, %v1217_v60  ;;  %v18245_v26 = vld [vmem:[#allocation11_spill] sm:$0xff] }
 0x231   :  { %1533 = vrot.lane.b32.xlu1 %v1368_v3, %s11066_s14  ;;  %1531 = vrot.lane.b32.xlu0 %v1367_v44, %s11066_s14 }
 0x233   :  { %v1215_v28 = vpop.permute.xlu1 %1214  ;;  %v1223_v8 = vpop.permute.xlu0 %1222 }
 0x234   :  { %v1373_v15 = vmax.f32 %v12082_v22, %v1215_v28  ;;  %v1377_v55 = vmax.f32 %v12086_v61, %v1223_v8  ;;  %v1734_v8 = vlaneseq }
 0x235   :  { %1537 = vrot.lane.b32.xlu1 %v1370_v9, %s11066_s14  ;;  %1535 = vrot.lane.b32.xlu0 %v1369_v50, %s11066_s14 }
 0x237   :  { %v1221_v4 = vpop.permute.xlu1 %1220  ;;  %v1227_v37 = vpop.permute.xlu0 %1226 }
 0x238   :  { %v1376_v57 = vmax.f32 %v12094_v21, %v1221_v4  ;;  %v1379_v49 = vmax.f32 %v12098_v11, %v1227_v37  ;;  %v18248_v4 = vld [vmem:[#allocation17_spill] sm:$0xff] }
 0x239   :  { %1539 = vrot.lane.b32.xlu0 %v1371_v39, %s11066_s14  ;;  %1541 = vrot.lane.b32.xlu1 %v1372_v33, %s11066_s14  ;;  %v18247_v33 = vld [vmem:[#allocation13_spill] sm:$0xff] }
 0x23b   :  { %v1225_v31 = vpop.permute.xlu1 %1224  ;;  %v1231_v14 = vpop.permute.xlu0 %1230 }
 0x23c   :  { %v1378_v22 = vmax.f32 %v12106_v45, %v1225_v31  ;;  %v1381_v61 = vmax.f32 %v12110_v13, %v1231_v14  ;;  %v12378_v31 = vshrl.u32 %v1734_v8, 7  ;;  %v18250_v14 = vld [vmem:[#allocation15_spill] sm:$0xff] }
 0x23d   :  { %1543 = vrot.lane.b32.xlu0 %v1373_v15, %s11066_s14  ;;  %1545 = vrot.lane.b32.xlu1 %v1374_v23, %s11066_s14 }
 0x23e   :  { %18249 = vst [vmem:[#allocation20_spill] sm:$0xff] %v12378_v31 }
 0x23f   :  { %v1229_v27 = vpop.permute.xlu1 %1228  ;;  %v1235_v58 = vpop.permute.xlu0 %1234 }
 0x240   :  { %v1380_v21 = vmax.f32 %v12118_v19, %v1229_v27  ;;  %v1383_v11 = vmax.f32 %v12122_v51, %v1235_v58 }
 0x241   :  { %1547 = vrot.lane.b32.xlu0 %v1375_v43, %s11066_s14  ;;  %1549 = vrot.lane.b32.xlu1 %v1376_v57, %s11066_s14 }
 0x243   :  { %v1233_v35 = vpop.permute.xlu1 %1232  ;;  %v1239_v30 = vpop.permute.xlu0 %1238 }
 0x244   :  { %v1382_v45 = vmax.f32 %v12130_v63, %v1233_v35  ;;  %v1385_v13 = vmax.f32 %v18238_v2, %v1239_v30 }
 0x245   :  { %1553 = vrot.lane.b32.xlu1 %v1378_v22, %s11066_s14  ;;  %1551 = vrot.lane.b32.xlu0 %v1377_v55, %s11066_s14  ;;  %v1771_v55 = vand.u32 15, %v12378_v31  ;;  %v18251_v22 = vld [vmem:[#allocation26_spill] sm:$0xff] }
 0x247   :  { %v1237_v34 = vpop.permute.xlu1 %1236  ;;  %v1243_v42 = vpop.permute.xlu0 %1242  ;;  %vm12391_vm6 = vcmp.ge.s32.totalorder %v1771_v55, 1 }
 0x248   :  { %v1384_v19 = vmax.f32 %v18237_v12, %v1237_v34  ;;  %v1387_v51 = vmax.f32 %v18240_v0, %v1243_v42  ;;  %v1737_v42 = vadd.s32 16, %v12378_v31 }
 0x249   :  { %1557 = vrot.lane.b32.xlu1 %v1380_v21, %s11066_s14  ;;  %1555 = vrot.lane.b32.xlu0 %v1379_v49, %s11066_s14 }
 0x24b   :  { %v1241_v41 = vpop.permute.xlu1 %1240  ;;  %v1247_v54 = vpop.permute.xlu0 %1246 }
 0x24c   :  { %v1386_v63 = vmax.f32 %v18239_v18, %v1241_v41  ;;  %v1389_v56 = vmax.f32 %v18242_v24, %v1247_v54  ;;  %v1739_v54 = vadd.s32 32, %v12378_v31  ;;  %v1741_v18 = vadd.s32 48, %v12378_v31 }
 0x24d   :  { %1561 = vrot.lane.b32.xlu1 %v1382_v45, %s11066_s14  ;;  %1559 = vrot.lane.b32.xlu0 %v1381_v61, %s11066_s14 }
 0x24f   :  { %v1245_v32 = vpop.permute.xlu1 %1244  ;;  %v1251_v47 = vpop.permute.xlu0 %1250 }
 0x250   :  { %v1388_v38 = vmax.f32 %v18241_v25, %v1245_v32  ;;  %v1391_v7 = vmax.f32 %v18243_v48, %v1251_v47  ;;  %v1799_v47 = vand.u32 15, %v1739_v54 }
 0x251   :  { %1565 = vrot.lane.b32.xlu1 %v1384_v19, %s11066_s14  ;;  %1563 = vrot.lane.b32.xlu0 %v1383_v11, %s11066_s14  ;;  %v1785_v11 = vand.u32 15, %v1737_v42  ;;  %v1753_v42 = vadd.s32 144, %v12378_v31 }
 0x252   :  { %vm12419_vm8 = vcmp.ge.s32.totalorder %v1799_v47, 1 }
 0x253   :  { %v1249_v46 = vpop.permute.xlu1 %1248  ;;  %v1255_v53 = vpop.permute.xlu0 %1254  ;;  %vm12408_vm7 = vcmp.ge.s32.totalorder %v1785_v11, 1 }
 0x254   :  { %v1390_v1 = vmax.f32 %v12178_v10, %v1249_v46  ;;  %v1393_v60 = vmax.f32 %v18245_v26, %v1255_v53  ;;  %v18246_v10 = vld [vmem:[#allocation16_spill] sm:$0xff] }
 0x255   :  { %1569 = vrot.lane.b32.xlu1 %v1386_v63, %s11066_s14  ;;  %1567 = vrot.lane.b32.xlu0 %v1385_v13, %s11066_s14 }
 0x257   :  { %v1253_v59 = vpop.permute.xlu1 %1252  ;;  %v1259_v5 = vpop.permute.xlu0 %1258 }
 0x258   :  { %v1392_v52 = vmax.f32 %v18244_v6, %v1253_v59  ;;  %v1395_v39 = vmax.f32 %v18247_v33, %v1259_v5 }
 0x259   :  { %1573 = vrot.lane.b32.xlu1 %v1388_v38, %s11066_s14  ;;  %1571 = vrot.lane.b32.xlu0 %v1387_v51, %s11066_s14  ;;  %v1813_v51 = vand.u32 15, %v1741_v18 }
 0x25b   :  { %v1257_v62 = vpop.permute.xlu1 %1256  ;;  %v1263_v40 = vpop.permute.xlu0 %1262  ;;  %vm12431_vm9 = vcmp.ge.s32.totalorder %v1813_v51, 1 }
 0x25c   :  { %v1394_v50 = vmax.f32 %v18246_v10, %v1257_v62  ;;  %v1397_v43 = vmax.f32 %v18250_v14, %v1263_v40  ;;  %v1745_v40 = vadd.s32 80, %v12378_v31 }
 0x25d   :  { %1577 = vrot.lane.b32.xlu1 %v1390_v1, %s11066_s14  ;;  %1575 = vrot.lane.b32.xlu0 %v1389_v56, %s11066_s14 }
 0x25e   :  { %v1841_v26 = vand.u32 15, %v1745_v40 }
 0x25f   :  { %v1261_v44 = vpop.permute.xlu1 %1260  ;;  %v1267_v3 = vpop.permute.xlu0 %1266 }
 0x260   :  { %v1396_v37 = vmax.f32 %v18248_v4, %v1261_v44  ;;  %v1399_v35 = vmax.f32 %v18251_v22, %v1267_v3  ;;  %vm12453_vm11 = vcmp.ge.s32.totalorder %v1841_v26, 1  ;;  %v1749_v4 = vadd.s32 112, %v12378_v31 }
 0x261   :  { %1581 = vrot.lane.b32.xlu1 %v1392_v52, %s11066_s14  ;;  %1579 = vrot.lane.b32.xlu0 %v1391_v7, %s11066_s14 }
 0x263   :  { %v1480_v9 = vpop.permute.xlu1 %1479  ;;  %v1478_v28 = vpop.permute.xlu0 %1477 }
 0x264   :  { %1671 = vst.msk [vmem:[#allocation2 + $0x18] sm:$0xff] %vm1669_vm5, %v1480_v9  ;;  %1670 = vst.msk [vmem:[#allocation2 + $0x10] sm:$0xff] %vm1669_vm5, %v1478_v28 }
 0x265   :  { %1585 = vrot.lane.b32.xlu1 %v1394_v50, %s11066_s14  ;;  %1583 = vrot.lane.b32.xlu0 %v1393_v60, %s11066_s14  ;;  %v1747_v60 = vadd.s32 96, %v12378_v31 }
 0x267   :  { %v1265_v23 = vpop.permute.xlu1 %1264  ;;  %v1271_v15 = vpop.permute.xlu0 %1270 }
 0x268   :  { %v1398_v57 = vmax.f32 %v12238_v29, %v1265_v23  ;;  %v1401_v61 = vmax.f32 %v12242_v16, %v1271_v15 }
 0x269   :  { %1589 = vrot.lane.b32.xlu1 %v1396_v37, %s11066_s14  ;;  %1587 = vrot.lane.b32.xlu0 %v1395_v39, %s11066_s14  ;;  %v1855_v39 = vand.u32 15, %v1747_v60 }
 0x26b   :  { %v1484_v27 = vpop.permute.xlu1 %1483  ;;  %v1482_v58 = vpop.permute.xlu0 %1481  ;;  %v2151_v29 = vld [vmem:[#allocation2 + $0xf] sm:$0xff]  ;;  %v2152_v16 = vld [vmem:[#allocation2 + $0x17] sm:$0xff]  ;;  %vm12464_vm12 = vcmp.ge.s32.totalorder %v1855_v39, 1  ;;  %v1763_v39 = vadd.s32 224, %v12378_v31 }
 0x26c   :  { %1673 = vst.msk [vmem:[#allocation2 + $0x28] sm:$0xff] %vm1669_vm5, %v1484_v27  ;;  %1672 = vst.msk [vmem:[#allocation2 + $0x20] sm:$0xff] %vm1669_vm5, %v1482_v58  ;;  %v1869_v27 = vand.u32 15, %v1749_v4  ;;  %v1751_v58 = vadd.s32 128, %v12378_v31 }
 0x26d   :  { %1593 = vrot.lane.b32.xlu1 %v1398_v57, %s11066_s14  ;;  %1591 = vrot.lane.b32.xlu0 %v1397_v43, %s11066_s14 }
 0x26e   :  { %vm12475_vm13 = vcmp.ge.s32.totalorder %v1869_v27, 1  ;;  %v1967_v27 = vand.u32 15, %v1763_v39 }
 0x26f   :  { %v1269_v30 = vpop.permute.xlu1 %1268  ;;  %v1275_v49 = vpop.permute.xlu0 %1274 }
 0x270   :  { %v1400_v21 = vmax.f32 %v12254_v36, %v1269_v30  ;;  %v2247_v36 = vsel %vm12391_vm6, %v2151_v29, 0.0  ;;  %v1403_v63 = vmax.f32 %v12258_v20, %v1275_v49  ;;  %v1743_v20 = vadd.s32 64, %v12378_v31 }
 0x271   :  { %1595 = vrot.lane.b32.xlu0 %v1399_v35, %s11066_s14  ;;  %v1883_v29 = vand.u32 15, %v1751_v58  ;;  %vm12551_vm4 = vcmp.ge.s32.totalorder %v1967_v27, 1 }
 0x272   :  { %1597 = vrot.lane.b32.xlu1 %v1400_v21, %s11066_s14  ;;  %v1827_v62 = vand.u32 15, %v1743_v20 }
 0x273   :  { %v1273_v45 = vpop.permute.xlu1 %1272  ;;  %v1488_v41 = vpop.permute.xlu0 %1487  ;;  %v2153_v2 = vld [vmem:[#allocation2 + $0x1f] sm:$0xff]  ;;  %v2154_v5 = vld [vmem:[#allocation2 + $0x27] sm:$0xff]  ;;  %vm12486_vm14 = vcmp.ge.s32.totalorder %v1883_v29, 1  ;;  %v1765_v29 = vadd.s32 240, %v12378_v31 }
 0x274   :  { %1675 = vst.msk [vmem:[#allocation2 + $0x38] sm:$0xff] %vm1669_vm5, %v1488_v41  ;;  %v1402_v32 = vmax.f32 %v12266_v17, %v1273_v45  ;;  %v2249_v53 = vsel %vm12408_vm7, %v2153_v2, 0.0  ;;  %vm12442_vm10 = vcmp.ge.s32.totalorder %v1827_v62, 1 }
 0x275   :  { %1599 = vrot.lane.b32.xlu0 %v1401_v61, %s11066_s14 }
 0x276   :  { %2375 = vrot.lane.b32.xlu1 %v2247_v36, %s11063_s0 }
 0x277   :  { %v1490_v12 = vpop.permute.xlu1 %1489  ;;  %v1486_v19 = vpop.permute.xlu0 %1485 }
 0x278   :  { %1676 = vst.msk [vmem:[#allocation2 + $0x40] sm:$0xff] %vm1669_vm5, %v1490_v12  ;;  %1674 = vst.msk [vmem:[#allocation2 + $0x30] sm:$0xff] %vm1669_vm5, %v1486_v19  ;;  %v1897_v12 = vand.u32 15, %v1753_v42  ;;  %v1755_v19 = vadd.s32 160, %v12378_v31 }
 0x279   :  { %2377 = vrot.lane.b32.xlu0 %v2152_v16, %s11063_s0 }
 0x27a   :  { %1601 = vrot.lane.b32.xlu1 %v1402_v32, %s11066_s14  ;;  %vm12497_vm15 = vcmp.ge.s32.totalorder %v1897_v12, 1 }
 0x27b   :  { %v1494_v17 = vpop.permute.xlu1 %1493  ;;  %v1492_v46 = vpop.permute.xlu0 %1491 }
 0x27c   :  { %1678 = vst.msk [vmem:[#allocation2 + $0x50] sm:$0xff] %vm1669_vm5, %v1494_v17  ;;  %1677 = vst.msk [vmem:[#allocation2 + $0x48] sm:$0xff] %vm1669_vm5, %v1492_v46  ;;  %v1911_v17 = vand.u32 15, %v1755_v19  ;;  %v1757_v46 = vadd.s32 176, %v12378_v31  ;;  %v1981_v19 = vand.u32 15, %v1765_v29 }
 0x27d   :  { %1603 = vrot.lane.b32.xlu0 %v1403_v63, %s11066_s14 }
 0x27e   :  { %2379 = vrot.lane.b32.xlu1 %v2249_v53, %s11063_s0  ;;  %vm12508_vm0 = vcmp.ge.s32.totalorder %v1911_v17, 1 }
 0x27f   :  { %v1498_v25 = vpop.permute.xlu1 %1497  ;;  %v1496_v38 = vpop.permute.xlu0 %1495  ;;  %v2155_v59 = vld [vmem:[#allocation2 + $0x2f] sm:$0xff]  ;;  %v2157_v56 = vld [vmem:[#allocation2 + $0x3f] sm:$0xff]  ;;  %v2156_v6 = vld [vmem:[#allocation2 + $0x37] sm:$0xff] }
 0x280   :  { %1680 = vst.msk [vmem:[#allocation2 + $0x60] sm:$0xff] %vm1669_vm5, %v1498_v25  ;;  %1679 = vst.msk [vmem:[#allocation2 + $0x58] sm:$0xff] %vm1669_vm5, %v1496_v38  ;;  %v2251_v24 = vsel %vm12419_vm8, %v2155_v59, 0.0  ;;  %v2253_v52 = vsel %vm12431_vm9, %v2157_v56, 0.0 }
 0x281   :  { %2381 = vrot.lane.b32.xlu0 %v2154_v5, %s11063_s0  ;;  %v1925_v5 = vand.u32 15, %v1757_v46 }
 0x282   :  { %2383 = vrot.lane.b32.xlu1 %v2251_v24, %s11063_s0  ;;  %v1759_v24 = vadd.s32 192, %v12378_v31 }
 0x283   :  { %v1502_v48 = vpop.permute.xlu1 %1501  ;;  %v1500_v7 = vpop.permute.xlu0 %1499  ;;  %v2159_v44 = vld [vmem:[#allocation2 + $0x4f] sm:$0xff]  ;;  %v2158_v9 = vld [vmem:[#allocation2 + $0x47] sm:$0xff]  ;;  %vm12519_vm1 = vcmp.ge.s32.totalorder %v1925_v5, 1 }
 0x284   :  { %1682 = vst.msk [vmem:[#allocation2 + $0x70] sm:$0xff] %vm1669_vm5, %v1502_v48  ;;  %1681 = vst.msk [vmem:[#allocation2 + $0x68] sm:$0xff] %vm1669_vm5, %v1500_v7  ;;  %v2255_v28 = vsel %vm12442_vm10, %v2159_v44, 0.0  ;;  %v1761_v44 = vadd.s32 208, %v12378_v31 }
 0x285   :  { %2385 = vrot.lane.b32.xlu0 %v2156_v6, %s11063_s0 }
 0x286   :  { %2387 = vrot.lane.b32.xlu1 %v2253_v52, %s11063_s0  ;;  %v1939_v52 = vand.u32 15, %v1759_v24 }
 0x287   :  { %v1506_v10 = vpop.permute.xlu1 %1505  ;;  %v1504_v50 = vpop.permute.xlu0 %1503  ;;  %v2161_v8 = vld [vmem:[#allocation2 + $0x5f] sm:$0xff]  ;;  %v2160_v15 = vld [vmem:[#allocation2 + $0x57] sm:$0xff] }
 0x288   :  { %1684 = vst.msk [vmem:[#allocation2 + $0x80] sm:$0xff] %vm1669_vm5, %v1506_v10  ;;  %1683 = vst.msk [vmem:[#allocation2 + $0x78] sm:$0xff] %vm1669_vm5, %v1504_v50  ;;  %v2257_v14 = vsel %vm12453_vm11, %v2161_v8, 0.0  ;;  %vm12530_vm2 = vcmp.ge.s32.totalorder %v1939_v52, 1  ;;  %v1953_v8 = vand.u32 15, %v1761_v44 }
 0x289   :  { %2389 = vrot.lane.b32.xlu0 %v2158_v9, %s11063_s0 }
 0x28a   :  { %2391 = vrot.lane.b32.xlu1 %v2255_v28, %s11063_s0  ;;  %vm12541_vm3 = vcmp.ge.s32.totalorder %v1953_v8, 1  ;;  %v8670_v28 = vld [vmem:[%s17985_s3 + $0xa0] sm:$0xff] }
 0x28b   :  { %v1510_v37 = vpop.permute.xlu1 %1509  ;;  %v1508_v23 = vpop.permute.xlu0 %1507  ;;  %v2163_v43 = vld [vmem:[#allocation2 + $0x6f] sm:$0xff]  ;;  %v2162_v35 = vld [vmem:[#allocation2 + $0x67] sm:$0xff] }
 0x28c   :  { %1686 = vst.msk [vmem:[#allocation2 + $0x90] sm:$0xff] %vm1669_vm5, %v1510_v37  ;;  %1685 = vst.msk [vmem:[#allocation2 + $0x88] sm:$0xff] %vm1669_vm5, %v1508_v23  ;;  %v2259_v30 = vsel %vm12464_vm12, %v2163_v43, 0.0  ;;  %v8673_v43 = vld [vmem:[%s17985_s3 + $0xb8] sm:$0xff] }
 0x28d   :  { %2393 = vrot.lane.b32.xlu0 %v2160_v15, %s11063_s0 }
 0x28e   :  { %2395 = vrot.lane.b32.xlu1 %v2257_v14, %s11063_s0 }
 0x28f   :  { %v1514_v55 = vpop.permute.xlu1 %1513  ;;  %v1512_v22 = vpop.permute.xlu0 %1511  ;;  %v2165_v49 = vld [vmem:[#allocation2 + $0x7f] sm:$0xff]  ;;  %v2164_v41 = vld [vmem:[#allocation2 + $0x77] sm:$0xff] }
 0x290   :  { %1688 = vst.msk [vmem:[#allocation2 + $0xa0] sm:$0xff] %vm1669_vm5, %v1514_v55  ;;  %1687 = vst.msk [vmem:[#allocation2 + $0x98] sm:$0xff] %vm1669_vm5, %v1512_v22  ;;  %v2261_v36 = vsel %vm12475_vm13, %v2165_v49, 0.0  ;;  %v18280_v49 = vmov 0 }
 0x291   :  { %2397 = vrot.lane.b32.xlu0 %v2162_v35, %s11063_s0  ;;  %v18281_v49 = vsel %vm12551_vm4, 4294967295, %v18280_v49 }
 0x292   :  { %2399 = vrot.lane.b32.xlu1 %v2259_v30, %s11063_s0 }
 0x293   :  { %v1518_v61 = vpop.permute.xlu1 %1517  ;;  %v1516_v45 = vpop.permute.xlu0 %1515  ;;  %v2167_v54 = vld [vmem:[#allocation2 + $0x8f] sm:$0xff]  ;;  %v2166_v47 = vld [vmem:[#allocation2 + $0x87] sm:$0xff] }
 0x294   :  { %1690 = vst.msk [vmem:[#allocation2 + $0xb0] sm:$0xff] %vm1669_vm5, %v1518_v61  ;;  %1689 = vst.msk [vmem:[#allocation2 + $0xa8] sm:$0xff] %vm1669_vm5, %v1516_v45  ;;  %v2263_v2 = vsel %vm12486_vm14, %v2167_v54, 0.0 }
 0x295   :  { %2401 = vrot.lane.b32.xlu0 %v2164_v41, %s11063_s0  ;;  %v8662_v41 = vld [vmem:[%s17985_s3 + $0x60] sm:$0xff] }
 0x296   :  { %2403 = vrot.lane.b32.xlu1 %v2261_v36, %s11063_s0  ;;  %v8663_v36 = vld [vmem:[%s17985_s3 + $0x68] sm:$0xff] }
 0x297   :  { %v1522_v32 = vpop.permute.xlu1 %1521  ;;  %v1520_v16 = vpop.permute.xlu0 %1519  ;;  %v2169_v18 = vld [vmem:[#allocation2 + $0x9f] sm:$0xff]  ;;  %v2168_v20 = vld [vmem:[#allocation2 + $0x97] sm:$0xff]  ;;  %v9735_v12 = vpack.c.bf16 %v8663_v36, %v8662_v41 }
 0x298   :  { %1692 = vst.msk [vmem:[#allocation2 + $0xc0] sm:$0xff] %vm1669_vm5, %v1522_v32  ;;  %1691 = vst.msk [vmem:[#allocation2 + $0xb8] sm:$0xff] %vm1669_vm5, %v1520_v16  ;;  %v2265_v25 = vsel %vm12497_vm15, %v2169_v18, 0.0 }
 0x299   :  { %2405 = vrot.lane.b32.xlu0 %v2166_v47, %s11063_s0  ;;  %9736 = vmatprep.subr.bf16.mxu1 %v9735_v12 }
 0x29a   :  { %2407 = vrot.lane.b32.xlu1 %v2263_v2, %s11063_s0  ;;  %9738 = vmatpush3.bf16.msra.mxu1 %v9735_v12 }
 0x29b   :  { %v1526_v53 = vpop.permute.xlu1 %1525  ;;  %v1524_v51 = vpop.permute.xlu0 %1523  ;;  %v2171_v38 = vld [vmem:[#allocation2 + $0xaf] sm:$0xff]  ;;  %v2170_v40 = vld [vmem:[#allocation2 + $0xa7] sm:$0xff] }
 0x29c   :  { %1694 = vst.msk [vmem:[#allocation2 + $0xd0] sm:$0xff] %vm1669_vm5, %v1526_v53  ;;  %1693 = vst.msk [vmem:[#allocation2 + $0xc8] sm:$0xff] %vm1669_vm5, %v1524_v51  ;;  %v2267_v48 = vsel %vm12508_vm0, %v2171_v38, 0.0 }
 0x29d   :  { %2409 = vrot.lane.b32.xlu0 %v2168_v20, %s11063_s0 }
 0x29e   :  { %2411 = vrot.lane.b32.xlu1 %v2265_v25, %s11063_s0 }
 0x29f   :  { %v1530_v56 = vpop.permute.xlu1 %1529  ;;  %v1528_v62 = vpop.permute.xlu0 %1527  ;;  %v2173_v7 = vld [vmem:[#allocation2 + $0xbf] sm:$0xff]  ;;  %v2172_v10 = vld [vmem:[#allocation2 + $0xb7] sm:$0xff] }
 0x2a0   :  { %1696 = vst.msk [vmem:[#allocation2 + $0xe0] sm:$0xff] %vm1669_vm5, %v1530_v56  ;;  %1695 = vst.msk [vmem:[#allocation2 + $0xd8] sm:$0xff] %vm1669_vm5, %v1528_v62  ;;  %v2269_v50 = vsel %vm12519_vm1, %v2173_v7, 0.0 }
 0x2a1   :  { %2413 = vrot.lane.b32.xlu0 %v2170_v40, %s11063_s0 }
 0x2a2   :  { %2415 = vrot.lane.b32.xlu1 %v2267_v48, %s11063_s0 }
 0x2a3   :  { %v1534_v26 = vpop.permute.xlu1 %1533  ;;  %v1532_v60 = vpop.permute.xlu0 %1531  ;;  %v2175_v9 = vld [vmem:[#allocation2 + $0xcf] sm:$0xff]  ;;  %v2174_v23 = vld [vmem:[#allocation2 + $0xc7] sm:$0xff] }
 0x2a4   :  { %1698 = vst.msk [vmem:[#allocation2 + $0xf0] sm:$0xff] %vm1669_vm5, %v1534_v26  ;;  %1697 = vst.msk [vmem:[#allocation2 + $0xe8] sm:$0xff] %vm1669_vm5, %v1532_v60  ;;  %v2271_v15 = vsel %vm12530_vm2, %v2175_v9, 0.0  ;;  %v8665_v9 = vld [vmem:[%s17985_s3 + $0x78] sm:$0xff] }
 0x2a5   :  { %2417 = vrot.lane.b32.xlu0 %v2172_v10, %s11063_s0 }
 0x2a6   :  { %2419 = vrot.lane.b32.xlu1 %v2269_v50, %s11063_s0  ;;  %v8664_v50 = vld [vmem:[%s17985_s3 + $0x70] sm:$0xff] }
 0x2a7   :  { %v1538_v4 = vpop.permute.xlu1 %1537  ;;  %v1536_v37 = vpop.permute.xlu0 %1535  ;;  %v2177_v14 = vld [vmem:[#allocation2 + $0xdf] sm:$0xff]  ;;  %v2176_v22 = vld [vmem:[#allocation2 + $0xd7] sm:$0xff]  ;;  %v9739_v8 = vpack.c.bf16 %v8665_v9, %v8664_v50 }
 0x2a8   :  { %1700 = vst.msk [vmem:[#allocation2 + $0x100] sm:$0xff] %vm1669_vm5, %v1538_v4  ;;  %1699 = vst.msk [vmem:[#allocation2 + $0xf8] sm:$0xff] %vm1669_vm5, %v1536_v37  ;;  %v2273_v35 = vsel %vm12541_vm3, %v2177_v14, 0.0 }
 0x2a9   :  { %2421 = vrot.lane.b32.xlu0 %v2174_v23, %s11063_s0  ;;  %9740 = vmatprep.subr.bf16.mxu1 %v9739_v8 }
 0x2aa   :  { %2423 = vrot.lane.b32.xlu1 %v2271_v15, %s11063_s0  ;;  %9742 = vmatpush3.bf16.msra.mxu1 %v9739_v8  ;;  %v1736_v8 = vadd.s32 8, %v12378_v31 }
 0x2ab   :  { %v1542_v58 = vpop.permute.xlu1 %1541  ;;  %v1540_v55 = vpop.permute.xlu0 %1539  ;;  %v2179_v30 = vld [vmem:[#allocation2 + $0xef] sm:$0xff]  ;;  %v2178_v45 = vld [vmem:[#allocation2 + $0xe7] sm:$0xff] }
 0x2ac   :  { %1702 = vst.msk [vmem:[#allocation2 + $0x130] sm:$0xff] %vm1669_vm5, %v1542_v58  ;;  %1701 = vst.msk [vmem:[#allocation2 + $0x108] sm:$0xff] %vm1669_vm5, %v1540_v55  ;;  %v2275_v54 = vsel %vm12551_vm4, %v2179_v30, 0.0  ;;  %vm12572_vm4 = vcmp.ge.s32.totalorder %v1981_v19, 1  ;;  %v8666_v19 = vld [vmem:[%s17985_s3 + $0x80] sm:$0xff] }
 0x2ad   :  { %2425 = vrot.lane.b32.xlu0 %v2176_v22, %s11063_s0 }
 0x2ae   :  { %2427 = vrot.lane.b32.xlu1 %v2273_v35, %s11063_s0 }
 0x2af   :  { %v1546_v42 = vpop.permute.xlu1 %1545  ;;  %v1544_v61 = vpop.permute.xlu0 %1543  ;;  %v2180_v47 = vld [vmem:[#allocation2 + $0xf7] sm:$0xff]  ;;  %v2181_v17 = vld [vmem:[#allocation2 + $0xff] sm:$0xff] }
 0x2b0   :  { %1704 = vst.msk [vmem:[#allocation2 + $0x140] sm:$0xff] %vm1669_vm5, %v1546_v42  ;;  %1703 = vst.msk [vmem:[#allocation2 + $0x138] sm:$0xff] %vm1669_vm5, %v1544_v61  ;;  %v2277_v25 = vsel %vm12572_vm4, %v2181_v17, 0.0 }
 0x2b1   :  { %2429 = vrot.lane.b32.xlu0 %v2178_v45, %s11063_s0 }
 0x2b2   :  { %2431 = vrot.lane.b32.xlu1 %v2275_v54, %s11063_s0 }
 0x2b3   :  { %v1550_v32 = vpop.permute.xlu1 %1549  ;;  %v1548_v16 = vpop.permute.xlu0 %1547  ;;  %v2182_v2 = vld [vmem:[#allocation2 + $0x107] sm:$0xff]  ;;  %v2183_v18 = vld [vmem:[#allocation2 + $0x12f] sm:$0xff] }
 0x2b4   :  { %1706 = vst.msk [vmem:[#allocation2 + $0x150] sm:$0xff] %vm1669_vm5, %v1550_v32  ;;  %1705 = vst.msk [vmem:[#allocation2 + $0x148] sm:$0xff] %vm1669_vm5, %v1548_v16  ;;  %v2279_v20 = vsel %vm12391_vm6, %v2183_v18, 0.0  ;;  %v8667_v32 = vld [vmem:[%s17985_s3 + $0x88] sm:$0xff]  ;;  %vm2567_vm6 = vcmask 261120  }
 0x2b5   :  { %2433 = vrot.lane.b32.xlu0 %v2180_v47, %s11063_s0 }
 0x2b6   :  { %2437 = vrot.lane.b32.xlu1 %v2182_v2, %s11063_s0  ;;  %v9743_v2 = vpack.c.bf16 %v8667_v32, %v8666_v19 }
 0x2b7   :  { %v1554_v53 = vpop.permute.xlu1 %1553  ;;  %v1552_v51 = vpop.permute.xlu0 %1551  ;;  %v2185_v38 = vld [vmem:[#allocation2 + $0x13f] sm:$0xff]  ;;  %v2184_v34 = vld [vmem:[#allocation2 + $0x137] sm:$0xff] }
 0x2b8   :  { %1708 = vst.msk [vmem:[#allocation2 + $0x160] sm:$0xff] %vm1669_vm5, %v1554_v53  ;;  %1707 = vst.msk [vmem:[#allocation2 + $0x158] sm:$0xff] %vm1669_vm5, %v1552_v51  ;;  %v2281_v56 = vsel %vm12408_vm7, %v2185_v38, 0.0  ;;  %9744 = vmatprep.subr.bf16.mxu1 %v9743_v2  ;;  %vm18284_vm7 = vnez %v18281_v49 }
 0x2b9   :  { %2439 = vrot.lane.b32.xlu0 %v2279_v20, %s11063_s0  ;;  %9746 = vmatpush3.bf16.msra.mxu1 %v9743_v2  ;;  %v1744_v2 = vadd.s32 72, %v12378_v31 }
 0x2ba   :  { %2435 = vrot.lane.b32.xlu1 %v2277_v25, %s11063_s0 }
 0x2bb   :  { %v1558_v5 = vpop.permute.xlu1 %1557  ;;  %v1556_v24 = vpop.permute.xlu0 %1555  ;;  %v2187_v62 = vld [vmem:[#allocation2 + $0x14f] sm:$0xff]  ;;  %v2186_v52 = vld [vmem:[#allocation2 + $0x147] sm:$0xff] }
 0x2bc   :  { %1710 = vst.msk [vmem:[#allocation2 + $0x170] sm:$0xff] %vm1669_vm5, %v1558_v5  ;;  %1709 = vst.msk [vmem:[#allocation2 + $0x168] sm:$0xff] %vm1669_vm5, %v1556_v24  ;;  %v2283_v7 = vsel %vm12419_vm8, %v2187_v62, 0.0  ;;  %v8668_v62 = vld [vmem:[%s17985_s3 + $0x90] sm:$0xff] }
 0x2bd   :  { %2443 = vrot.lane.b32.xlu0 %v2281_v56, %s11063_s0 }
 0x2be   :  { %2441 = vrot.lane.b32.xlu1 %v2184_v34, %s11063_s0 }
 0x2bf   :  { %v1562_v40 = vpop.permute.xlu1 %1561  ;;  %v1560_v48 = vpop.permute.xlu0 %1559  ;;  %v2189_v13 = vld [vmem:[#allocation2 + $0x15f] sm:$0xff]  ;;  %v2188_v10 = vld [vmem:[#allocation2 + $0x157] sm:$0xff] }
 0x2c0   :  { %1712 = vst.msk [vmem:[#allocation2 + $0x180] sm:$0xff] %vm1669_vm5, %v1562_v40  ;;  %1711 = vst.msk [vmem:[#allocation2 + $0x178] sm:$0xff] %vm1669_vm5, %v1560_v48  ;;  %v2285_v60 = vsel %vm12431_vm9, %v2189_v13, 0.0  ;;  %v8669_v48 = vld [vmem:[%s17985_s3 + $0x98] sm:$0xff] }
 0x2c1   :  { %2447 = vrot.lane.b32.xlu0 %v2283_v7, %s11063_s0  ;;  %v9747_v13 = vpack.c.bf16 %v8669_v48, %v8668_v62 }
 0x2c2   :  { %2445 = vrot.lane.b32.xlu1 %v2186_v52, %s11063_s0 }
 0x2c3   :  { %v1566_v44 = vpop.permute.xlu1 %1565  ;;  %v1564_v26 = vpop.permute.xlu0 %1563  ;;  %v2191_v0 = vld [vmem:[#allocation2 + $0x16f] sm:$0xff]  ;;  %v2190_v37 = vld [vmem:[#allocation2 + $0x167] sm:$0xff]  ;;  %9748 = vmatprep.subr.bf16.mxu1 %v9747_v13 }
 0x2c4   :  { %1714 = vst.msk [vmem:[#allocation2 + $0x190] sm:$0xff] %vm1669_vm5, %v1566_v44  ;;  %1713 = vst.msk [vmem:[#allocation2 + $0x188] sm:$0xff] %vm1669_vm5, %v1564_v26  ;;  %v2287_v1 = vsel %vm12442_vm10, %v2191_v0, 0.0  ;;  %v8671_v26 = vld [vmem:[%s17985_s3 + $0xa8] sm:$0xff]  ;;  %9750 = vmatpush3.bf16.msra.mxu1 %v9747_v13 }
 0x2c5   :  { %2451 = vrot.lane.b32.xlu0 %v2285_v60, %s11063_s0  ;;  %v9751_v0 = vpack.c.bf16 %v8671_v26, %v8670_v28  ;;  %v1750_v26 = vadd.s32 120, %v12378_v31 }
 0x2c6   :  { %2449 = vrot.lane.b32.xlu1 %v2188_v10, %s11063_s0 }
 0x2c7   :  { %v1570_v39 = vpop.permute.xlu1 %1569  ;;  %v1568_v4 = vpop.permute.xlu0 %1567  ;;  %v2193_v23 = vld [vmem:[#allocation2 + $0x17f] sm:$0xff]  ;;  %v2192_v3 = vld [vmem:[#allocation2 + $0x177] sm:$0xff]  ;;  %9752 = vmatprep.subr.bf16.mxu1 %v9751_v0 }
 0x2c8   :  { %1716 = vst.msk [vmem:[#allocation2 + $0x1a0] sm:$0xff] %vm1669_vm5, %v1570_v39  ;;  %1715 = vst.msk [vmem:[#allocation2 + $0x198] sm:$0xff] %vm1669_vm5, %v1568_v4  ;;  %v2289_v27 = vsel %vm12453_vm11, %v2193_v23, 0.0  ;;  %v8672_v4 = vld [vmem:[%s17985_s3 + $0xb0] sm:$0xff]  ;;  %9754 = vmatpush3.bf16.msra.mxu1 %v9751_v0 }
 0x2c9   :  { %2455 = vrot.lane.b32.xlu0 %v2287_v1, %s11063_s0  ;;  %v9755_v23 = vpack.c.bf16 %v8673_v43, %v8672_v4  ;;  %v1752_v4 = vadd.s32 136, %v12378_v31 }
 0x2ca   :  { %2453 = vrot.lane.b32.xlu1 %v2190_v37, %s11063_s0 }
 0x2cb   :  { %v1574_v15 = vpop.permute.xlu1 %1573  ;;  %v1572_v14 = vpop.permute.xlu0 %1571  ;;  %v2195_v58 = vld [vmem:[#allocation2 + $0x18f] sm:$0xff]  ;;  %v2194_v30 = vld [vmem:[#allocation2 + $0x187] sm:$0xff]  ;;  %9756 = vmatprep.subr.bf16.mxu1 %v9755_v23 }
 0x2cc   :  { %1718 = vst.msk [vmem:[#allocation2 + $0x1b0] sm:$0xff] %vm1669_vm5, %v1574_v15  ;;  %1717 = vst.msk [vmem:[#allocation2 + $0x1a8] sm:$0xff] %vm1669_vm5, %v1572_v14  ;;  %v2291_v35 = vsel %vm12464_vm12, %v2195_v58, 0.0  ;;  %v1778_v14 = vand.u32 15, %v1736_v8  ;;  %9758 = vmatpush3.bf16.msra.mxu1 %v9755_v23 }
 0x2cd   :  { %2459 = vrot.lane.b32.xlu0 %v2289_v27, %s11063_s0  ;;  %v1738_v27 = vadd.s32 24, %v12378_v31 }
 0x2ce   :  { %2457 = vrot.lane.b32.xlu1 %v2192_v3, %s11063_s0 }
 0x2cf   :  { %v1578_v55 = vpop.permute.xlu1 %1577  ;;  %v1576_v22 = vpop.permute.xlu0 %1575  ;;  %v2197_v33 = vld [vmem:[#allocation2 + $0x19f] sm:$0xff]  ;;  %v2196_v45 = vld [vmem:[#allocation2 + $0x197] sm:$0xff] }
 0x2d0   :  { %1720 = vst.msk [vmem:[#allocation2 + $0x1c0] sm:$0xff] %vm1669_vm5, %v1578_v55  ;;  %1719 = vst.msk [vmem:[#allocation2 + $0x1b8] sm:$0xff] %vm1669_vm5, %v1576_v22  ;;  %v2293_v61 = vsel %vm12475_vm13, %v2197_v33, 0.0  ;;  %v1740_v33 = vadd.s32 40, %v12378_v31 }
 0x2d1   :  { %2463 = vrot.lane.b32.xlu0 %v2291_v35, %s11063_s0 }
 0x2d2   :  { %2461 = vrot.lane.b32.xlu1 %v2194_v30, %s11063_s0  ;;  %v1792_v30 = vand.u32 15, %v1738_v27  ;;  %v1890_v27 = vand.u32 15, %v1752_v4 }
 0x2d3   :  { %v1582_v29 = vpop.permute.xlu1 %1581  ;;  %v1580_v42 = vpop.permute.xlu0 %1579  ;;  %v2199_v57 = vld [vmem:[#allocation2 + $0x1af] sm:$0xff]  ;;  %v2198_v12 = vld [vmem:[#allocation2 + $0x1a7] sm:$0xff] }
 0x2d4   :  { %1722 = vst.msk [vmem:[#allocation2 + $0x1d0] sm:$0xff] %vm1669_vm5, %v1582_v29  ;;  %1721 = vst.msk [vmem:[#allocation2 + $0x1c8] sm:$0xff] %vm1669_vm5, %v1580_v42  ;;  %v2295_v54 = vsel %vm12486_vm14, %v2199_v57, 0.0  ;;  %vm12794_vm14 = vcmp.le.s32.totalorder %v1890_v27, 14 }
 0x2d5   :  { %2467 = vrot.lane.b32.xlu0 %v2293_v61, %s11063_s0 }
 0x2d6   :  { %2465 = vrot.lane.b32.xlu1 %v2196_v45, %s11063_s0 }
 0x2d7   :  { %v1586_v41 = vpop.permute.xlu1 %1585  ;;  %v1584_v36 = vpop.permute.xlu0 %1583  ;;  %v2201_v21 = vld [vmem:[#allocation2 + $0x1bf] sm:$0xff]  ;;  %v2200_v18 = vld [vmem:[#allocation2 + $0x1b7] sm:$0xff] }
 0x2d8   :  { %1724 = vst.msk [vmem:[#allocation2 + $0x1e0] sm:$0xff] %vm1669_vm5, %v1586_v41  ;;  %1723 = vst.msk [vmem:[#allocation2 + $0x1d8] sm:$0xff] %vm1669_vm5, %v1584_v36  ;;  %v2297_v11 = vsel %vm12497_vm15, %v2201_v21, 0.0  ;;  %v1806_v41 = vand.u32 15, %v1740_v33  ;;  %v1742_v36 = vadd.s32 56, %v12378_v31 }
 0x2d9   :  { %2471 = vrot.lane.b32.xlu0 %v2295_v54, %s11063_s0 }
 0x2da   :  { %2469 = vrot.lane.b32.xlu1 %v2198_v12, %s11063_s0  ;;  %vm12728_vm8 = vcmp.le.s32.totalorder %v1806_v41, 14 }
 0x2db   :  { %v1590_v16 = vpop.permute.xlu1 %1589  ;;  %v1588_v47 = vpop.permute.xlu0 %1587  ;;  %v2203_v17 = vld [vmem:[#allocation2 + $0x1cf] sm:$0xff]  ;;  %v2202_v63 = vld [vmem:[#allocation2 + $0x1c7] sm:$0xff] }
 0x2dc   :  { %1726 = vst.msk [vmem:[#allocation2 + $0x1f0] sm:$0xff] %vm1669_vm5, %v1590_v16  ;;  %1725 = vst.msk [vmem:[#allocation2 + $0x1e8] sm:$0xff] %vm1669_vm5, %v1588_v47  ;;  %v2299_v20 = vsel %vm12508_vm0, %v2203_v17, 0.0  ;;  %v1820_v47 = vand.u32 15, %v1742_v36 }
 0x2dd   :  { %2475 = vrot.lane.b32.xlu0 %v2297_v11, %s11063_s0 }
 0x2de   :  { %2473 = vrot.lane.b32.xlu1 %v2200_v18, %s11063_s0  ;;  %vm12739_vm9 = vcmp.le.s32.totalorder %v1820_v47, 14 }
 0x2df   :  { %v1594_v53 = vpop.permute.xlu1 %1593  ;;  %v1592_v51 = vpop.permute.xlu0 %1591  ;;  %v2205_v25 = vld [vmem:[#allocation2 + $0x1df] sm:$0xff]  ;;  %v2204_v56 = vld [vmem:[#allocation2 + $0x1d7] sm:$0xff] }
 0x2e0   :  { %1728 = vst.msk [vmem:[#allocation2 + $0x200] sm:$0xff] %vm1669_vm5, %v1594_v53  ;;  %1727 = vst.msk [vmem:[#allocation2 + $0x1f8] sm:$0xff] %vm1669_vm5, %v1592_v51  ;;  %v2301_v24 = vsel %vm12519_vm1, %v2205_v25, 0.0  ;;  %v1746_v25 = vadd.s32 88, %v12378_v31 }
 0x2e1   :  { %2479 = vrot.lane.b32.xlu0 %v2299_v20, %s11063_s0 }
 0x2e2   :  { %2477 = vrot.lane.b32.xlu1 %v2202_v63, %s11063_s0  ;;  %v1834_v63 = vand.u32 15, %v1744_v2  ;;  %v1848_v62 = vand.u32 15, %v1746_v25 }
 0x2e3   :  { %v1596_v38 = vpop.permute.xlu0 %1595  ;;  %v2207_v59 = vld [vmem:[#allocation2 + $0x1ef] sm:$0xff]  ;;  %v2206_v7 = vld [vmem:[#allocation2 + $0x1e7] sm:$0xff] }
 0x2e4   :  { %1729 = vst.msk [vmem:[#allocation2 + $0x208] sm:$0xff] %vm1669_vm5, %v1596_v38  ;;  %v1598_v5 = vpop.permute.xlu1 %1597  ;;  %v2303_v6 = vsel %vm12530_vm2, %v2207_v59, 0.0  ;;  %vm12750_vm10 = vcmp.le.s32.totalorder %v1834_v63, 14  ;;  %vm12761_vm11 = vcmp.le.s32.totalorder %v1848_v62, 14 }
 0x2e5   :  { %1730 = vst.msk [vmem:[#allocation2 + $0x210] sm:$0xff] %vm1669_vm5, %v1598_v5  ;;  %2483 = vrot.lane.b32.xlu0 %v2301_v24, %s11063_s0 }
 0x2e6   :  { %2481 = vrot.lane.b32.xlu1 %v2204_v56, %s11063_s0 }
 0x2e7   :  { %v1600_v34 = vpop.permute.xlu0 %1599  ;;  %v2209_v52 = vld [vmem:[#allocation2 + $0x1ff] sm:$0xff]  ;;  %v2208_v50 = vld [vmem:[#allocation2 + $0x1f7] sm:$0xff] }
 0x2e8   :  { %1731 = vst.msk [vmem:[#allocation2 + $0x218] sm:$0xff] %vm1669_vm5, %v1600_v34  ;;  %v2376_v40 = vpop.permute.xlu1 %2375  ;;  %v2305_v10 = vsel %vm12541_vm3, %v2209_v52, 0.0 }
 0x2e9   :  { %2568 = vst.msk [vmem:[#allocation2 + $0x10] sm:$0xff] %vm2567_vm6, %v2376_v40  ;;  %2487 = vrot.lane.b32.xlu0 %v2303_v6, %s11063_s0  ;;  %v1748_v40 = vadd.s32 104, %v12378_v31 }
 0x2ea   :  { %2485 = vrot.lane.b32.xlu1 %v2206_v7, %s11063_s0 }
 0x2eb   :  { %v2378_v44 = vpop.permute.xlu0 %2377  ;;  %v2210_v15 = vld [vmem:[#allocation2 + $0x207] sm:$0xff]  ;;  %v1862_v28 = vand.u32 15, %v1748_v40 }
 0x2ec   :  { %2569 = vst.msk [vmem:[#allocation2 + $0x18] sm:$0xff] %vm2567_vm6, %v2378_v44  ;;  %v1602_v60 = vpop.permute.xlu1 %1601  ;;  %v2211_v9 = vld [vmem:[#allocation2 + $0x20f] sm:$0xff] }
 0x2ed   :  { %1732 = vst.msk [vmem:[#allocation2 + $0x220] sm:$0xff] %vm1669_vm5, %v1602_v60  ;;  %2491 = vrot.lane.b32.xlu0 %v2305_v10, %s11063_s0  ;;  %v2307_v37 = vsel %vm18284_vm7, %v2211_v9, 0.0  ;;  %vm12772_vm12 = vcmp.le.s32.totalorder %v1862_v28, 14 }
 0x2ee   :  { %2489 = vrot.lane.b32.xlu1 %v2208_v50, %s11063_s0 }
 0x2ef   :  { %v1604_v39 = vpop.permute.xlu0 %1603  ;;  %v2212_v22 = vld [vmem:[#allocation2 + $0x217] sm:$0xff] }
 0x2f0   :  { %1733 = vst.msk [vmem:[#allocation2 + $0x228] sm:$0xff] %vm1669_vm5, %v1604_v39  ;;  %v2380_v1 = vpop.permute.xlu1 %2379  ;;  %vm12706_vm5 = vcmp.le.s32.totalorder %v1778_v14, 14  ;;  %v1876_v39 = vand.u32 15, %v1750_v26 }
 0x2f1   :  { %2570 = vst.msk [vmem:[#allocation2 + $0x20] sm:$0xff] %vm2567_vm6, %v2380_v1  ;;  %2495 = vrot.lane.b32.xlu0 %v2307_v37, %s11063_s0 }
 0x2f2   :  { %2493 = vrot.lane.b32.xlu1 %v2210_v15, %s11063_s0  ;;  %vm12783_vm13 = vcmp.le.s32.totalorder %v1876_v39, 14 }
 0x2f3   :  { %v2382_v3 = vpop.permute.xlu0 %2381  ;;  %v2632_v45 = vld [vmem:[#allocation2 + $0x11] sm:$0xff] }
 0x2f4   :  { %2571 = vst.msk [vmem:[#allocation2 + $0x28] sm:$0xff] %vm2567_vm6, %v2382_v3  ;;  %v2384_v58 = vpop.permute.xlu1 %2383  ;;  %v2213_v55 = vld [vmem:[#allocation2 + $0x21f] sm:$0xff]  ;;  %v1754_v3 = vadd.s32 152, %v12378_v31 }
 0x2f5   :  { %2572 = vst.msk [vmem:[#allocation2 + $0x30] sm:$0xff] %vm2567_vm6, %v2384_v58  ;;  %v2309_v49 = vsel %vm12572_vm4, %v2213_v55, 0.0  ;;  %vm12717_vm4 = vcmp.le.s32.totalorder %v1792_v30, 14 }
 0x2f6   :  { %2499 = vrot.lane.b32.xlu0 %v2309_v49, %s11063_s0  ;;  %2497 = vrot.lane.b32.xlu1 %v2212_v22, %s11063_s0 }
 0x2f7   :  { %v2386_v29 = vpop.permute.xlu0 %2385 }
 0x2f8   :  { %2573 = vst.msk [vmem:[#allocation2 + $0x38] sm:$0xff] %vm2567_vm6, %v2386_v29  ;;  %v2388_v42 = vpop.permute.xlu1 %2387  ;;  %v2633_v61 = vld [vmem:[#allocation2 + $0x19] sm:$0xff]  ;;  %v1904_v29 = vand.u32 15, %v1754_v3  ;;  %v1766_v3 = vadd.s32 248, %v12378_v31 }
 0x2f9   :  { %2574 = vst.msk [vmem:[#allocation2 + $0x40] sm:$0xff] %vm2567_vm6, %v2388_v42  ;;  %v2729_v46 = vsel %vm12706_vm5, %v2633_v61, 0.0  ;;  %v1756_v42 = vadd.s32 168, %v12378_v31 }
 0x2fa   :  { %2858 = vrot.lane.b32.xlu0 %v2729_v46, %s11066_s14  ;;  %2856 = vrot.lane.b32.xlu1 %v2632_v45, %s11066_s14  ;;  %vm12805_vm15 = vcmp.le.s32.totalorder %v1904_v29, 14  ;;  %v1988_v29 = vand.u32 15, %v1766_v3 }
 0x2fb   :  { %v2390_v54 = vpop.permute.xlu0 %2389  ;;  %v2634_v32 = vld [vmem:[#allocation2 + $0x21] sm:$0xff] }
 0x2fc   :  { %2575 = vst.msk [vmem:[#allocation2 + $0x48] sm:$0xff] %vm2567_vm6, %v2390_v54  ;;  %v2392_v12 = vpop.permute.xlu1 %2391  ;;  %v2635_v21 = vld [vmem:[#allocation2 + $0x29] sm:$0xff] }
 0x2fd   :  { %2576 = vst.msk [vmem:[#allocation2 + $0x50] sm:$0xff] %vm2567_vm6, %v2392_v12  ;;  %v2731_v19 = vsel %vm12717_vm4, %v2635_v21, 0.0  ;;  %v1918_v12 = vand.u32 15, %v1756_v42  ;;  %v1758_v21 = vadd.s32 184, %v12378_v31 }
 0x2fe   :  { %2862 = vrot.lane.b32.xlu0 %v2731_v19, %s11066_s14  ;;  %2860 = vrot.lane.b32.xlu1 %v2634_v32, %s11066_s14 }
 0x2ff   :  { %v2394_v11 = vpop.permute.xlu0 %2393  ;;  %v2636_v51 = vld [vmem:[#allocation2 + $0x31] sm:$0xff]  ;;  %vm12816_vm0 = vcmp.le.s32.totalorder %v1918_v12, 14 }
 0x300   :  { %2577 = vst.msk [vmem:[#allocation2 + $0x58] sm:$0xff] %vm2567_vm6, %v2394_v11  ;;  %v2396_v18 = vpop.permute.xlu1 %2395  ;;  %v2637_v17 = vld [vmem:[#allocation2 + $0x39] sm:$0xff] }
 0x301   :  { %2578 = vst.msk [vmem:[#allocation2 + $0x60] sm:$0xff] %vm2567_vm6, %v2396_v18  ;;  %v2733_v53 = vsel %vm12728_vm8, %v2637_v17, 0.0  ;;  %v1932_v17 = vand.u32 15, %v1758_v21 }
 0x302   :  { %2866 = vrot.lane.b32.xlu0 %v2733_v53, %s11066_s14  ;;  %2864 = vrot.lane.b32.xlu1 %v2636_v51, %s11066_s14  ;;  %v1760_v53 = vadd.s32 200, %v12378_v31 }
 0x303   :  { %v2398_v38 = vpop.permute.xlu0 %2397  ;;  %v2638_v59 = vld [vmem:[#allocation2 + $0x41] sm:$0xff]  ;;  %vm12827_vm1 = vcmp.le.s32.totalorder %v1932_v17, 14 }
 0x304   :  { %2579 = vst.msk [vmem:[#allocation2 + $0x68] sm:$0xff] %vm2567_vm6, %v2398_v38  ;;  %v2400_v5 = vpop.permute.xlu1 %2399  ;;  %v2639_v24 = vld [vmem:[#allocation2 + $0x49] sm:$0xff] }
 0x305   :  { %2580 = vst.msk [vmem:[#allocation2 + $0x70] sm:$0xff] %vm2567_vm6, %v2400_v5  ;;  %v2735_v56 = vsel %vm12739_vm9, %v2639_v24, 0.0 }
 0x306   :  { %2870 = vrot.lane.b32.xlu0 %v2735_v56, %s11066_s14  ;;  %2868 = vrot.lane.b32.xlu1 %v2638_v59, %s11066_s14  ;;  %v1946_v56 = vand.u32 15, %v1760_v53  ;;  %v1762_v59 = vadd.s32 216, %v12378_v31 }
 0x307   :  { %v2402_v6 = vpop.permute.xlu0 %2401  ;;  %v2640_v13 = vld [vmem:[#allocation2 + $0x51] sm:$0xff] }
 0x308   :  { %2581 = vst.msk [vmem:[#allocation2 + $0x78] sm:$0xff] %vm2567_vm6, %v2402_v6  ;;  %v2404_v48 = vpop.permute.xlu1 %2403  ;;  %v2641_v7 = vld [vmem:[#allocation2 + $0x59] sm:$0xff]  ;;  %vm12838_vm2 = vcmp.le.s32.totalorder %v1946_v56, 14 }
 0x309   :  { %2582 = vst.msk [vmem:[#allocation2 + $0x80] sm:$0xff] %vm2567_vm6, %v2404_v48  ;;  %v2737_v52 = vsel %vm12750_vm10, %v2641_v7, 0.0 }
 0x30a   :  { %2874 = vrot.lane.b32.xlu0 %v2737_v52, %s11066_s14  ;;  %2872 = vrot.lane.b32.xlu1 %v2640_v13, %s11066_s14  ;;  %v1960_v13 = vand.u32 15, %v1762_v59 }
 0x30b   :  { %v2406_v60 = vpop.permute.xlu0 %2405  ;;  %v2642_v9 = vld [vmem:[#allocation2 + $0x61] sm:$0xff] }
 0x30c   :  { %2583 = vst.msk [vmem:[#allocation2 + $0x88] sm:$0xff] %vm2567_vm6, %v2406_v60  ;;  %v2408_v10 = vpop.permute.xlu1 %2407  ;;  %v2643_v0 = vld [vmem:[#allocation2 + $0x69] sm:$0xff]  ;;  %vm12848_vm3 = vcmp.le.s32.totalorder %v1960_v13, 14 }
 0x30d   :  { %2584 = vst.msk [vmem:[#allocation2 + $0x90] sm:$0xff] %vm2567_vm6, %v2408_v10  ;;  %v2739_v50 = vsel %vm12761_vm11, %v2643_v0, 0.0 }
 0x30e   :  { %2878 = vrot.lane.b32.xlu0 %v2739_v50, %s11066_s14  ;;  %2876 = vrot.lane.b32.xlu1 %v2642_v9, %s11066_s14  ;;  %v18311_v50 = vmov 0  ;;  %v1764_v9 = vadd.s32 232, %v12378_v31 }
 0x30f   :  { %v2410_v43 = vpop.permute.xlu0 %2409  ;;  %v2644_v15 = vld [vmem:[#allocation2 + $0x71] sm:$0xff]  ;;  %v18312_v50 = vsel %vm12848_vm3, 4294967295, %v18311_v50 }
 0x310   :  { %2585 = vst.msk [vmem:[#allocation2 + $0x98] sm:$0xff] %vm2567_vm6, %v2410_v43  ;;  %v2412_v1 = vpop.permute.xlu1 %2411  ;;  %v2645_v37 = vld [vmem:[#allocation2 + $0x79] sm:$0xff]  ;;  %v1974_v27 = vand.u32 15, %v1764_v9 }
 0x311   :  { %2586 = vst.msk [vmem:[#allocation2 + $0xa0] sm:$0xff] %vm2567_vm6, %v2412_v1  ;;  %v2741_v23 = vsel %vm12772_vm12, %v2645_v37, 0.0 }
 0x312   :  { %2882 = vrot.lane.b32.xlu0 %v2741_v23, %s11066_s14  ;;  %2880 = vrot.lane.b32.xlu1 %v2644_v15, %s11066_s14  ;;  %v3177_v23 = vld [vmem:[%s17985_s3] sm:$0xff]  ;;  %v3178_v15 = vld [vmem:[%s17985_s3 + $0x8] sm:$0xff]  ;;  %vm12872_vm7 = vcmp.le.s32.totalorder %v1974_v27, 14 }
 0x313   :  { %v2414_v58 = vpop.permute.xlu0 %2413  ;;  %v2646_v30 = vld [vmem:[#allocation2 + $0x81] sm:$0xff] }
 0x314   :  { %2587 = vst.msk [vmem:[#allocation2 + $0xa8] sm:$0xff] %vm2567_vm6, %v2414_v58  ;;  %v2416_v55 = vpop.permute.xlu1 %2415  ;;  %v2647_v49 = vld [vmem:[#allocation2 + $0x89] sm:$0xff]  ;;  %v12866_v58 = vpack.c.bf16 %v3178_v15, %v3177_v23 }
 0x315   :  { %2588 = vst.msk [vmem:[#allocation2 + $0xb0] sm:$0xff] %vm2567_vm6, %v2416_v55  ;;  %v2743_v22 = vsel %vm12783_vm13, %v2647_v49, 0.0 }
 0x316   :  { %2886 = vrot.lane.b32.xlu0 %v2743_v22, %s11066_s14  ;;  %2884 = vrot.lane.b32.xlu1 %v2646_v30, %s11066_s14 }
 0x317   :  { %v2418_v61 = vpop.permute.xlu0 %2417  ;;  %v2648_v36 = vld [vmem:[#allocation2 + $0x91] sm:$0xff]  ;;  %9760 = vmatprep.subr.bf16.mxu1 %v12866_v58 }
 0x318   :  { %2589 = vst.msk [vmem:[#allocation2 + $0xb8] sm:$0xff] %vm2567_vm6, %v2418_v61  ;;  %v2420_v46 = vpop.permute.xlu1 %2419  ;;  %v2649_v45 = vld [vmem:[#allocation2 + $0x99] sm:$0xff] }
 0x319   :  { %2590 = vst.msk [vmem:[#allocation2 + $0xc0] sm:$0xff] %vm2567_vm6, %v2420_v46  ;;  %v2745_v41 = vsel %vm12794_vm14, %v2649_v45, 0.0 }
 0x31a   :  { %2890 = vrot.lane.b32.xlu0 %v2745_v41, %s11066_s14  ;;  %2888 = vrot.lane.b32.xlu1 %v2648_v36, %s11066_s14  ;;  %v2214_v41 = vld [vmem:[#allocation2 + $0x227] sm:$0xff] }
 0x31b   :  { %v2422_v19 = vpop.permute.xlu0 %2421  ;;  %v2650_v11 = vld [vmem:[#allocation2 + $0xa1] sm:$0xff] }
 0x31c   :  { %2591 = vst.msk [vmem:[#allocation2 + $0xc8] sm:$0xff] %vm2567_vm6, %v2422_v19  ;;  %v2424_v32 = vpop.permute.xlu1 %2423  ;;  %v2651_v47 = vld [vmem:[#allocation2 + $0xa9] sm:$0xff] }
 0x31d   :  { %2592 = vst.msk [vmem:[#allocation2 + $0xd0] sm:$0xff] %vm2567_vm6, %v2424_v32  ;;  %v2747_v2 = vsel %vm12805_vm15, %v2651_v47, 0.0 }
 0x31e   :  { %2894 = vrot.lane.b32.xlu0 %v2747_v2, %s11066_s14  ;;  %2892 = vrot.lane.b32.xlu1 %v2650_v11, %s11066_s14 }
 0x31f   :  { %v2426_v51 = vpop.permute.xlu0 %2425  ;;  %v2652_v5 = vld [vmem:[#allocation2 + $0xb1] sm:$0xff] }
 0x320   :  { %2593 = vst.msk [vmem:[#allocation2 + $0xd8] sm:$0xff] %vm2567_vm6, %v2426_v51  ;;  %v2428_v63 = vpop.permute.xlu1 %2427  ;;  %v2653_v25 = vld [vmem:[#allocation2 + $0xb9] sm:$0xff] }
 0x321   :  { %2594 = vst.msk [vmem:[#allocation2 + $0xe0] sm:$0xff] %vm2567_vm6, %v2428_v63  ;;  %v2749_v38 = vsel %vm12816_vm0, %v2653_v25, 0.0 }
 0x322   :  { %2898 = vrot.lane.b32.xlu0 %v2749_v38, %s11066_s14  ;;  %2896 = vrot.lane.b32.xlu1 %v2652_v5, %s11066_s14 }
 0x323   :  { %v2430_v62 = vpop.permute.xlu0 %2429  ;;  %v2654_v7 = vld [vmem:[#allocation2 + $0xc1] sm:$0xff] }
 0x324   :  { %2595 = vst.msk [vmem:[#allocation2 + $0xe8] sm:$0xff] %vm2567_vm6, %v2430_v62  ;;  %v2432_v40 = vpop.permute.xlu1 %2431  ;;  %v2655_v6 = vld [vmem:[#allocation2 + $0xc9] sm:$0xff] }
 0x325   :  { %2596 = vst.msk [vmem:[#allocation2 + $0xf0] sm:$0xff] %vm2567_vm6, %v2432_v40  ;;  %v2751_v48 = vsel %vm12827_vm1, %v2655_v6, 0.0 }
 0x326   :  { %2902 = vrot.lane.b32.xlu0 %v2751_v48, %s11066_s14  ;;  %2900 = vrot.lane.b32.xlu1 %v2654_v7, %s11066_s14 }
 0x327   :  { %v2434_v28 = vpop.permute.xlu0 %2433  ;;  %v2656_v0 = vld [vmem:[#allocation2 + $0xd1] sm:$0xff] }
 0x328   :  { %2597 = vst.msk [vmem:[#allocation2 + $0xf8] sm:$0xff] %vm2567_vm6, %v2434_v28  ;;  %v2438_v26 = vpop.permute.xlu1 %2437  ;;  %v2657_v60 = vld [vmem:[#allocation2 + $0xd9] sm:$0xff] }
 0x329   :  { %2599 = vst.msk [vmem:[#allocation2 + $0x108] sm:$0xff] %vm2567_vm6, %v2438_v26  ;;  %v2753_v10 = vsel %vm12838_vm2, %v2657_v60, 0.0 }
 0x32a   :  { %2906 = vrot.lane.b32.xlu0 %v2753_v10, %s11066_s14  ;;  %2904 = vrot.lane.b32.xlu1 %v2656_v0, %s11066_s14 }
 0x32b   :  { %v2440_v39 = vpop.permute.xlu0 %2439  ;;  %v2658_v37 = vld [vmem:[#allocation2 + $0xe1] sm:$0xff] }
 0x32c   :  { %2600 = vst.msk [vmem:[#allocation2 + $0x130] sm:$0xff] %vm2567_vm6, %v2440_v39  ;;  %v2436_v4 = vpop.permute.xlu1 %2435  ;;  %v2659_v43 = vld [vmem:[#allocation2 + $0xe9] sm:$0xff] }
 0x32d   :  { %2598 = vst.msk [vmem:[#allocation2 + $0x100] sm:$0xff] %vm2567_vm6, %v2436_v4  ;;  %v2755_v1 = vsel %vm12848_vm3, %v2659_v43, 0.0  ;;  %vm12882_vm3 = vcmp.le.s32.totalorder %v1988_v29, 14 }
 0x32e   :  { %2910 = vrot.lane.b32.xlu0 %v2755_v1, %s11066_s14  ;;  %2908 = vrot.lane.b32.xlu1 %v2658_v37, %s11066_s14 }
 0x32f   :  { %v2444_v55 = vpop.permute.xlu0 %2443  ;;  %v2660_v22 = vld [vmem:[#allocation2 + $0xf1] sm:$0xff] }
 0x330   :  { %2602 = vst.msk [vmem:[#allocation2 + $0x140] sm:$0xff] %vm2567_vm6, %v2444_v55  ;;  %v2442_v49 = vpop.permute.xlu1 %2441  ;;  %v2663_v36 = vld [vmem:[#allocation2 + $0x109] sm:$0xff] }
 0x331   :  { %2601 = vst.msk [vmem:[#allocation2 + $0x138] sm:$0xff] %vm2567_vm6, %v2442_v49  ;;  %v2759_v47 = vsel %vm12882_vm3, %v2663_v36, 0.0 }
 0x332   :  { %2912 = vrot.lane.b32.xlu1 %v2660_v22, %s11066_s14 }
 0x333   :  { %v2448_v42 = vpop.permute.xlu0 %2447 }
 0x334   :  { %2604 = vst.msk [vmem:[#allocation2 + $0x150] sm:$0xff] %vm2567_vm6, %v2448_v42  ;;  %v2446_v61 = vpop.permute.xlu1 %2445  ;;  %v2661_v46 = vld [vmem:[#allocation2 + $0xf9] sm:$0xff]  ;;  %v2662_v32 = vld [vmem:[#allocation2 + $0x101] sm:$0xff] }
 0x335   :  { %2603 = vst.msk [vmem:[#allocation2 + $0x148] sm:$0xff] %vm2567_vm6, %v2446_v61  ;;  %v2757_v45 = vsel %vm12872_vm7, %v2661_v46, 0.0 }
 0x336   :  { %2914 = vrot.lane.b32.xlu0 %v2757_v45, %s11066_s14  ;;  %2501 = vrot.lane.b32.xlu1 %v2214_v41, %s11063_s0 }
 0x337   :  { %v2452_v21 = vpop.permute.xlu0 %2451 }
 0x338   :  { %2606 = vst.msk [vmem:[#allocation2 + $0x160] sm:$0xff] %vm2567_vm6, %v2452_v21  ;;  %v2450_v19 = vpop.permute.xlu1 %2449  ;;  %v2665_v2 = vld [vmem:[#allocation2 + $0x139] sm:$0xff]  ;;  %v2664_v53 = vld [vmem:[#allocation2 + $0x131] sm:$0xff] }
 0x339   :  { %2605 = vst.msk [vmem:[#allocation2 + $0x158] sm:$0xff] %vm2567_vm6, %v2450_v19  ;;  %v2761_v51 = vsel %vm12706_vm5, %v2665_v2, 0.0  ;;  %vm3048_vm5 = vcmask 785920  }
 0x33a   :  { %2916 = vrot.lane.b32.xlu0 %v2662_v32, %s11066_s14  ;;  %2918 = vrot.lane.b32.xlu1 %v2759_v47, %s11066_s14 }
 0x33b   :  { %v2456_v11 = vpop.permute.xlu0 %2455 }
 0x33c   :  { %2608 = vst.msk [vmem:[#allocation2 + $0x170] sm:$0xff] %vm2567_vm6, %v2456_v11  ;;  %v2454_v17 = vpop.permute.xlu1 %2453  ;;  %v2667_v63 = vld [vmem:[#allocation2 + $0x149] sm:$0xff]  ;;  %v2666_v5 = vld [vmem:[#allocation2 + $0x141] sm:$0xff] }
 0x33d   :  { %2607 = vst.msk [vmem:[#allocation2 + $0x168] sm:$0xff] %vm2567_vm6, %v2454_v17  ;;  %v2763_v56 = vsel %vm12717_vm4, %v2667_v63, 0.0  ;;  %vm18317_vm4 = vnez %v18312_v50 }
 0x33e   :  { %2920 = vrot.lane.b32.xlu0 %v2664_v53, %s11066_s14  ;;  %2922 = vrot.lane.b32.xlu1 %v2761_v51, %s11066_s14 }
 0x33f   :  { %v2460_v25 = vpop.permute.xlu0 %2459 }
 0x340   :  { %2610 = vst.msk [vmem:[#allocation2 + $0x180] sm:$0xff] %vm2567_vm6, %v2460_v25  ;;  %v2458_v38 = vpop.permute.xlu1 %2457  ;;  %v2669_v35 = vld [vmem:[#allocation2 + $0x159] sm:$0xff]  ;;  %v2668_v40 = vld [vmem:[#allocation2 + $0x151] sm:$0xff] }
 0x341   :  { %2609 = vst.msk [vmem:[#allocation2 + $0x178] sm:$0xff] %vm2567_vm6, %v2458_v38  ;;  %v2765_v6 = vsel %vm12728_vm8, %v2669_v35, 0.0  ;;  %vm18318_vm8 = vcmask 785408  }
 0x342   :  { %2924 = vrot.lane.b32.xlu0 %v2666_v5, %s11066_s14  ;;  %2926 = vrot.lane.b32.xlu1 %v2763_v56, %s11066_s14 }
 0x343   :  { %v2464_v59 = vpop.permute.xlu0 %2463 }
 0x344   :  { %2612 = vst.msk [vmem:[#allocation2 + $0x190] sm:$0xff] %vm2567_vm6, %v2464_v59  ;;  %v2462_v62 = vpop.permute.xlu1 %2461  ;;  %v2671_v57 = vld [vmem:[#allocation2 + $0x169] sm:$0xff]  ;;  %v2670_v13 = vld [vmem:[#allocation2 + $0x161] sm:$0xff] }
 0x345   :  { %2611 = vst.msk [vmem:[#allocation2 + $0x188] sm:$0xff] %vm2567_vm6, %v2462_v62  ;;  %v2767_v28 = vsel %vm12739_vm9, %v2671_v57, 0.0  ;;  %v3179_v62 = vld [vmem:[%s17985_s3 + $0x10] sm:$0xff]  ;;  %vm18319_vm9 = vmmov %vm18318_vm8 }
 0x346   :  { %2928 = vrot.lane.b32.xlu0 %v2668_v40, %s11066_s14  ;;  %2930 = vrot.lane.b32.xlu1 %v2765_v6, %s11066_s14  ;;  %v3180_v40 = vld [vmem:[%s17985_s3 + $0x18] sm:$0xff] }
 0x347   :  { %v2468_v48 = vpop.permute.xlu0 %2467 }
 0x348   :  { %2614 = vst.msk [vmem:[#allocation2 + $0x1a0] sm:$0xff] %vm2567_vm6, %v2468_v48  ;;  %v2466_v7 = vpop.permute.xlu1 %2465  ;;  %v2673_v16 = vld [vmem:[#allocation2 + $0x179] sm:$0xff]  ;;  %v2672_v10 = vld [vmem:[#allocation2 + $0x171] sm:$0xff] }
 0x349   :  { %2613 = vst.msk [vmem:[#allocation2 + $0x198] sm:$0xff] %vm2567_vm6, %v2466_v7  ;;  %v2769_v0 = vsel %vm12750_vm10, %v2673_v16, 0.0  ;;  %v3181_v16 = vld [vmem:[%s17985_s3 + $0x20] sm:$0xff]  ;;  %vm18320_vm10 = vmmov %vm18318_vm8 }
 0x34a   :  { %2932 = vrot.lane.b32.xlu0 %v2670_v13, %s11066_s14  ;;  %2934 = vrot.lane.b32.xlu1 %v2767_v28, %s11066_s14  ;;  %v9763_v28 = vpack.c.bf16 %v3180_v40, %v3179_v62 }
 0x34b   :  { %v2472_v26 = vpop.permute.xlu0 %2471 }
 0x34c   :  { %2616 = vst.msk [vmem:[#allocation2 + $0x1b0] sm:$0xff] %vm2567_vm6, %v2472_v26  ;;  %v2470_v60 = vpop.permute.xlu1 %2469  ;;  %v2675_v20 = vld [vmem:[#allocation2 + $0x189] sm:$0xff]  ;;  %v2674_v4 = vld [vmem:[#allocation2 + $0x181] sm:$0xff] }
 0x34d   :  { %2615 = vst.msk [vmem:[#allocation2 + $0x1a8] sm:$0xff] %vm2567_vm6, %v2470_v60  ;;  %v2771_v43 = vsel %vm12761_vm11, %v2675_v20, 0.0  ;;  %v3182_v26 = vld [vmem:[%s17985_s3 + $0x28] sm:$0xff]  ;;  %vm18321_vm11 = vmmov %vm18318_vm8 }
 0x34e   :  { %2936 = vrot.lane.b32.xlu0 %v2672_v10, %s11066_s14  ;;  %2938 = vrot.lane.b32.xlu1 %v2769_v0, %s11066_s14  ;;  %v9767_v20 = vpack.c.bf16 %v3182_v26, %v3181_v16 }
 0x34f   :  { %v2476_v9 = vpop.permute.xlu0 %2475 }
 0x350   :  { %2618 = vst.msk [vmem:[#allocation2 + $0x1c0] sm:$0xff] %vm2567_vm6, %v2476_v9  ;;  %v2474_v39 = vpop.permute.xlu1 %2473  ;;  %v2677_v34 = vld [vmem:[#allocation2 + $0x199] sm:$0xff]  ;;  %v2676_v23 = vld [vmem:[#allocation2 + $0x191] sm:$0xff] }
 0x351   :  { %2617 = vst.msk [vmem:[#allocation2 + $0x1b8] sm:$0xff] %vm2567_vm6, %v2474_v39  ;;  %v2773_v15 = vsel %vm12772_vm12, %v2677_v34, 0.0  ;;  %v3183_v9 = vld [vmem:[%s17985_s3 + $0x30] sm:$0xff]  ;;  %v3184_v39 = vld [vmem:[%s17985_s3 + $0x38] sm:$0xff]  ;;  %vm18322_vm12 = vmmov %vm18318_vm8 }
 0x352   :  { %2940 = vrot.lane.b32.xlu0 %v2674_v4, %s11066_s14  ;;  %2942 = vrot.lane.b32.xlu1 %v2771_v43, %s11066_s14 }
 0x353   :  { %v2480_v1 = vpop.permute.xlu0 %2479 }
 0x354   :  { %2620 = vst.msk [vmem:[#allocation2 + $0x1d0] sm:$0xff] %vm2567_vm6, %v2480_v1  ;;  %v2478_v37 = vpop.permute.xlu1 %2477  ;;  %v2679_v44 = vld [vmem:[#allocation2 + $0x1a9] sm:$0xff]  ;;  %v2678_v55 = vld [vmem:[#allocation2 + $0x1a1] sm:$0xff]  ;;  %v9771_v1 = vpack.c.bf16 %v3184_v39, %v3183_v9 }
 0x355   :  { %2619 = vst.msk [vmem:[#allocation2 + $0x1c8] sm:$0xff] %vm2567_vm6, %v2478_v37  ;;  %v2775_v49 = vsel %vm12783_vm13, %v2679_v44, 0.0  ;;  %v3185_v37 = vld [vmem:[%s17985_s3 + $0x40] sm:$0xff]  ;;  %vm18323_vm13 = vmmov %vm18318_vm8 }
 0x356   :  { %2944 = vrot.lane.b32.xlu0 %v2676_v23, %s11066_s14  ;;  %2946 = vrot.lane.b32.xlu1 %v2773_v15, %s11066_s14  ;;  %v3186_v23 = vld [vmem:[%s17985_s3 + $0x48] sm:$0xff]  ;;  %v8802_v39 = vld [vmem:[%s17985_s3 + $0xc0] sm:$0xff] }
 0x357   :  { %v2484_v27 = vpop.permute.xlu0 %2483 }
 0x358   :  { %2622 = vst.msk [vmem:[#allocation2 + $0x1e0] sm:$0xff] %vm2567_vm6, %v2484_v27  ;;  %v2482_v3 = vpop.permute.xlu1 %2481  ;;  %v2681_v8 = vld [vmem:[#allocation2 + $0x1b9] sm:$0xff]  ;;  %v2680_v42 = vld [vmem:[#allocation2 + $0x1b1] sm:$0xff] }
 0x359   :  { %2621 = vst.msk [vmem:[#allocation2 + $0x1d8] sm:$0xff] %vm2567_vm6, %v2482_v3  ;;  %v2777_v61 = vsel %vm12794_vm14, %v2681_v8, 0.0  ;;  %vm18324_vm14 = vmmov %vm18318_vm8  ;;  %v3188_v8 = vld [vmem:[%s17985_s3 + $0x58] sm:$0xff] }
 0x35a   :  { %2948 = vrot.lane.b32.xlu0 %v2678_v55, %s11066_s14  ;;  %2950 = vrot.lane.b32.xlu1 %v2775_v49, %s11066_s14  ;;  %v9775_v55 = vpack.c.bf16 %v3186_v23, %v3185_v37  ;;  %v3187_v49 = vld [vmem:[%s17985_s3 + $0x50] sm:$0xff] }
 0x35b   :  { %v2488_v22 = vpop.permute.xlu0 %2487 }
 0x35c   :  { %2624 = vst.msk [vmem:[#allocation2 + $0x1f0] sm:$0xff] %vm2567_vm6, %v2488_v22  ;;  %v2486_v29 = vpop.permute.xlu1 %2485  ;;  %v2683_v14 = vld [vmem:[#allocation2 + $0x1c9] sm:$0xff]  ;;  %v2682_v41 = vld [vmem:[#allocation2 + $0x1c1] sm:$0xff] }
 0x35d   :  { %2623 = vst.msk [vmem:[#allocation2 + $0x1e8] sm:$0xff] %vm2567_vm6, %v2486_v29  ;;  %v2779_v36 = vsel %vm12805_vm15, %v2683_v14, 0.0  ;;  %vm18325_vm15 = vmmov %vm18318_vm8  ;;  %v9779_v14 = vpack.c.bf16 %v3188_v8, %v3187_v49 }
 0x35e   :  { %2952 = vrot.lane.b32.xlu0 %v2680_v42, %s11066_s14  ;;  %2954 = vrot.lane.b32.xlu1 %v2777_v61, %s11066_s14 }
 0x35f   :  { %v2492_v46 = vpop.permute.xlu0 %2491 }
 0x360   :  { %2626 = vst.msk [vmem:[#allocation2 + $0x200] sm:$0xff] %vm2567_vm6, %v2492_v46  ;;  %v2490_v45 = vpop.permute.xlu1 %2489  ;;  %v2685_v33 = vld [vmem:[#allocation2 + $0x1d9] sm:$0xff]  ;;  %v2684_v32 = vld [vmem:[#allocation2 + $0x1d1] sm:$0xff] }
 0x361   :  { %2625 = vst.msk [vmem:[#allocation2 + $0x1f8] sm:$0xff] %vm2567_vm6, %v2490_v45  ;;  %v2781_v47 = vsel %vm12816_vm0, %v2685_v33, 0.0  ;;  %vm18326_vm0 = vmmov %vm18318_vm8 }
 0x362   :  { %2956 = vrot.lane.b32.xlu0 %v2682_v41, %s11066_s14  ;;  %2958 = vrot.lane.b32.xlu1 %v2779_v36, %s11066_s14 }
 0x363   :  { %v2496_v21 = vpop.permute.xlu0 %2495 }
 0x364   :  { %2628 = vst.msk [vmem:[#allocation2 + $0x210] sm:$0xff] %vm2567_vm6, %v2496_v21  ;;  %v2494_v19 = vpop.permute.xlu1 %2493  ;;  %v2687_v54 = vld [vmem:[#allocation2 + $0x1e9] sm:$0xff]  ;;  %v2686_v17 = vld [vmem:[#allocation2 + $0x1e1] sm:$0xff] }
 0x365   :  { %2627 = vst.msk [vmem:[#allocation2 + $0x208] sm:$0xff] %vm2567_vm6, %v2494_v19  ;;  %v2783_v53 = vsel %vm12827_vm1, %v2687_v54, 0.0  ;;  %vm18327_vm1 = vmmov %vm18326_vm0 }
 0x366   :  { %2960 = vrot.lane.b32.xlu0 %v2684_v32, %s11066_s14  ;;  %2962 = vrot.lane.b32.xlu1 %v2781_v47, %s11066_s14 }
 0x368   :  { %v2498_v2 = vpop.permute.xlu1 %2497  ;;  %v2500_v11 = vpop.permute.xlu0 %2499  ;;  %v2689_v18 = vld [vmem:[#allocation2 + $0x1f9] sm:$0xff]  ;;  %v2688_v25 = vld [vmem:[#allocation2 + $0x1f1] sm:$0xff] }
 0x369   :  { %2629 = vst.msk [vmem:[#allocation2 + $0x218] sm:$0xff] %vm2567_vm6, %v2498_v2  ;;  %2630 = vst.msk [vmem:[#allocation2 + $0x220] sm:$0xff] %vm2567_vm6, %v2500_v11  ;;  %v2785_v38 = vsel %vm12838_vm2, %v2689_v18, 0.0 }
 0x36a   :  { %2964 = vrot.lane.b32.xlu0 %v2686_v17, %s11066_s14  ;;  %2966 = vrot.lane.b32.xlu1 %v2783_v53, %s11066_s14  ;;  %vm18328_vm2 = vmmov %vm18326_vm0 }
 0x36c   :  { %v2857_v51 = vpop.permute.xlu1 %2856  ;;  %v2859_v63 = vpop.permute.xlu0 %2858  ;;  %v2691_v24 = vld [vmem:[#allocation2 + $0x209] sm:$0xff]  ;;  %v2690_v35 = vld [vmem:[#allocation2 + $0x201] sm:$0xff] }
 0x36d   :  { %3049 = vst.msk [vmem:[#allocation2 + $0x10] sm:$0xff] %vm3048_vm5, %v2857_v51  ;;  %3050 = vst.msk [vmem:[#allocation2 + $0x18] sm:$0xff] %vm3048_vm5, %v2859_v63  ;;  %v2787_v59 = vsel %vm18317_vm4, %v2691_v24, 0.0 }
 0x36e   :  { %2968 = vrot.lane.b32.xlu0 %v2688_v25, %s11066_s14  ;;  %2970 = vrot.lane.b32.xlu1 %v2785_v38, %s11066_s14  ;;  %vm18330_vm4 = vmmov %vm18326_vm0 }
 0x370   :  { %v2861_v5 = vpop.permute.xlu1 %2860  ;;  %v2863_v56 = vpop.permute.xlu0 %2862  ;;  %v2693_v52 = vld [vmem:[#allocation2 + $0x219] sm:$0xff]  ;;  %v2692_v50 = vld [vmem:[#allocation2 + $0x211] sm:$0xff] }
 0x371   :  { %3051 = vst.msk [vmem:[#allocation2 + $0x20] sm:$0xff] %vm3048_vm5, %v2861_v5  ;;  %3052 = vst.msk [vmem:[#allocation2 + $0x28] sm:$0xff] %vm3048_vm5, %v2863_v56  ;;  %v2789_v13 = vsel %vm12872_vm7, %v2693_v52, 0.0 }
 0x372   :  { %2972 = vrot.lane.b32.xlu0 %v2690_v35, %s11066_s14  ;;  %2974 = vrot.lane.b32.xlu1 %v2787_v59, %s11066_s14  ;;  %vm18329_vm7 = vmmov %vm18326_vm0 }
 0x374   :  { %v2865_v6 = vpop.permute.xlu1 %2864  ;;  %v2867_v57 = vpop.permute.xlu0 %2866  ;;  %v12982_v48 = vld [vmem:[#allocation2 + $0x10] sm:$0xff]  ;;  %v12984_v7 = vld [vmem:[#allocation2 + $0x18] sm:$0xff] }
 0x375   :  { %3053 = vst.msk [vmem:[#allocation2 + $0x30] sm:$0xff] %vm3048_vm5, %v2865_v6  ;;  %3054 = vst.msk [vmem:[#allocation2 + $0x38] sm:$0xff] %vm3048_vm5, %v2867_v57  ;;  %9369 = vmatprep.mubr.msk.f32.mxu1 %vm18318_vm8, %v12982_v48 }
 0x376   :  { %2976 = vrot.lane.b32.xlu0 %v2692_v50, %s11066_s14  ;;  %2978 = vrot.lane.b32.xlu1 %v2789_v13, %s11066_s14  ;;  %vm18331_vm8 = vmmov %vm18326_vm0 }
 0x377   :  { %9370 = vmatmul.mubr.msk.f32.vlgmr.msra.gmra.mrb[64].mxu1 %vm18319_vm9, %v12984_v7  ;;  %vm18332_vm9 = vmmov %vm18326_vm0 }
 0x378   :  { %v2869_v60 = vpop.permute.xlu1 %2868  ;;  %v2871_v10 = vpop.permute.xlu0 %2870  ;;  %v13002_v30 = vld [vmem:[#allocation2 + $0x20] sm:$0xff]  ;;  %v13004_v0 = vld [vmem:[#allocation2 + $0x28] sm:$0xff]  ;;  %9762 = vmatpush3.bf16.msra.mxu1 %v12866_v58 }
 0x379   :  { %3055 = vst.msk [vmem:[#allocation2 + $0x40] sm:$0xff] %vm3048_vm5, %v2869_v60  ;;  %3056 = vst.msk [vmem:[#allocation2 + $0x48] sm:$0xff] %vm3048_vm5, %v2871_v10  ;;  %9372 = vmatprep.mubr.msk.f32.mxu1 %vm18320_vm10, %v13002_v30  ;;  %9764 = vmatprep.subr.bf16.mxu1 %v9763_v28 }
 0x37a   :  { %vm18333_vm10 = vmmov %vm18326_vm0 }
 0x37b   :  { %9373 = vmatmul.mubr.msk.f32.gmra.mrb[66].mxu1 %vm18321_vm11, %v13004_v0  ;;  %vm18334_vm11 = vmmov %vm18326_vm0 }
 0x37c   :  { %v2873_v58 = vpop.permute.xlu1 %2872  ;;  %v2875_v4 = vpop.permute.xlu0 %2874  ;;  %v13019_v43 = vld [vmem:[#allocation2 + $0x30] sm:$0xff]  ;;  %v13021_v34 = vld [vmem:[#allocation2 + $0x38] sm:$0xff]  ;;  %9766 = vmatpush3.bf16.msra.mxu1 %v9763_v28 }
 0x37d   :  { %3057 = vst.msk [vmem:[#allocation2 + $0x50] sm:$0xff] %vm3048_vm5, %v2873_v58  ;;  %3058 = vst.msk [vmem:[#allocation2 + $0x58] sm:$0xff] %vm3048_vm5, %v2875_v4  ;;  %9375 = vmatprep.mubr.msk.f32.mxu1 %vm18322_vm12, %v13019_v43  ;;  %9768 = vmatprep.subr.bf16.mxu1 %v9767_v20  ;;  %v8803_v58 = vld [vmem:[%s17985_s3 + $0xc8] sm:$0xff] }
 0x37e   :  { %vm18335_vm12 = vmmov %vm18326_vm0  ;;  %v13162_v4 = vpack.c.bf16 %v8803_v58, %v8802_v39 }
 0x37f   :  { %9376 = vmatmul.mubr.msk.f32.gmra.mrb[68].mxu1 %vm18323_vm13, %v13021_v34  ;;  %vm18336_vm13 = vmmov %vm18326_vm0 }
 0x380   :  { %v2877_v15 = vpop.permute.xlu1 %2876  ;;  %v2879_v44 = vpop.permute.xlu0 %2878  ;;  %v13035_v27 = vld [vmem:[#allocation2 + $0x40] sm:$0xff]  ;;  %v13037_v3 = vld [vmem:[#allocation2 + $0x48] sm:$0xff]  ;;  %9770 = vmatpush3.bf16.msra.mxu1 %v9767_v20 }
 0x381   :  { %3059 = vst.msk [vmem:[#allocation2 + $0x60] sm:$0xff] %vm3048_vm5, %v2877_v15  ;;  %3060 = vst.msk [vmem:[#allocation2 + $0x68] sm:$0xff] %vm3048_vm5, %v2879_v44  ;;  %9378 = vmatprep.mubr.msk.f32.mxu1 %vm18324_vm14, %v13035_v27  ;;  %9772 = vmatprep.subr.bf16.mxu1 %v9771_v1 }
 0x382   :  { %vm18337_vm14 = vmmov %vm18326_vm0 }
 0x383   :  { %9379 = vmatmul.mubr.msk.f32.gmra.mrb[70].mxu1 %vm18325_vm15, %v13037_v3  ;;  %vm18338_vm15 = vmmov %vm18326_vm0 }
 0x384   :  { %v2881_v22 = vpop.permute.xlu1 %2880  ;;  %v2883_v29 = vpop.permute.xlu0 %2882  ;;  %v13051_v42 = vld [vmem:[#allocation2 + $0x50] sm:$0xff]  ;;  %v13053_v61 = vld [vmem:[#allocation2 + $0x58] sm:$0xff]  ;;  %9774 = vmatpush3.bf16.msra.mxu1 %v9771_v1 }
 0x385   :  { %3061 = vst.msk [vmem:[#allocation2 + $0x70] sm:$0xff] %vm3048_vm5, %v2881_v22  ;;  %3062 = vst.msk [vmem:[#allocation2 + $0x78] sm:$0xff] %vm3048_vm5, %v2883_v29  ;;  %9381 = vmatprep.mubr.msk.f32.mxu1 %vm18326_vm0, %v13051_v42  ;;  %9776 = vmatprep.subr.bf16.mxu1 %v9775_v55 }
 0x387   :  { %9382 = vmatmul.mubr.msk.f32.gmra.mrb[72].mxu1 %vm18327_vm1, %v13053_v61  ;;  %vm18339_vm1 = vmmov %vm18326_vm0 }
 0x388   :  { %v2885_v46 = vpop.permute.xlu1 %2884  ;;  %v2887_v45 = vpop.permute.xlu0 %2886  ;;  %v13061_v41 = vld [vmem:[#allocation2 + $0x60] sm:$0xff]  ;;  %v13063_v36 = vld [vmem:[#allocation2 + $0x68] sm:$0xff]  ;;  %9778 = vmatpush3.bf16.msra.mxu1 %v9775_v55 }
 0x389   :  { %3063 = vst.msk [vmem:[#allocation2 + $0x80] sm:$0xff] %vm3048_vm5, %v2885_v46  ;;  %3064 = vst.msk [vmem:[#allocation2 + $0x88] sm:$0xff] %vm3048_vm5, %v2887_v45  ;;  %9384 = vmatprep.mubr.msk.f32.mxu1 %vm18328_vm2, %v13061_v41  ;;  %9780 = vmatprep.subr.bf16.mxu1 %v9779_v14 }
 0x38a   :  { %vm18340_vm2 = vmmov %vm18326_vm0 }
 0x38b   :  { %9385 = vmatmul.mubr.msk.f32.gmra.mrb[74].mxu1 %vm18329_vm7, %v13063_v36  ;;  %vm18341_vm7 = vmmov %vm18326_vm0 }
 0x38c   :  { %v2889_v33 = vpop.permute.xlu1 %2888  ;;  %v2891_v21 = vpop.permute.xlu0 %2890  ;;  %v13071_v19 = vld [vmem:[#allocation2 + $0x70] sm:$0xff]  ;;  %v13073_v32 = vld [vmem:[#allocation2 + $0x78] sm:$0xff]  ;;  %9782 = vmatpush3.bf16.msra.mxu1 %v9779_v14 }
 0x38d   :  { %3065 = vst.msk [vmem:[#allocation2 + $0x90] sm:$0xff] %vm3048_vm5, %v2889_v33  ;;  %3066 = vst.msk [vmem:[#allocation2 + $0x98] sm:$0xff] %vm3048_vm5, %v2891_v21  ;;  %9387 = vmatprep.mubr.msk.f32.mxu1 %vm18330_vm4, %v13071_v19  ;;  %9784 = vmatprep.subr.bf16.mxu1 %v13162_v4 }
 0x38e   :  { %vm18342_vm4 = vmmov %vm18326_vm0 }
 0x38f   :  { %9388 = vmatmul.mubr.msk.f32.gmra.mrb[76].mxu1 %vm18331_vm8, %v13073_v32  ;;  %vm18343_vm8 = vmmov %vm18326_vm0 }
 0x390   :  { %v2893_v47 = vpop.permute.xlu1 %2892  ;;  %v2895_v54 = vpop.permute.xlu0 %2894  ;;  %v13081_v2 = vld [vmem:[#allocation2 + $0x80] sm:$0xff]  ;;  %v13083_v11 = vld [vmem:[#allocation2 + $0x88] sm:$0xff] }
 0x391   :  { %3067 = vst.msk [vmem:[#allocation2 + $0xa0] sm:$0xff] %vm3048_vm5, %v2893_v47  ;;  %3068 = vst.msk [vmem:[#allocation2 + $0xa8] sm:$0xff] %vm3048_vm5, %v2895_v54  ;;  %9390 = vmatprep.mubr.msk.f32.mxu1 %vm18332_vm9, %v13081_v2 }
 0x392   :  { %vm18344_vm9 = vmmov %vm18326_vm0 }
 0x393   :  { %9391 = vmatmul.mubr.msk.f32.gmra.mrb[78].mxu1 %vm18333_vm10, %v13083_v11  ;;  %vm18345_vm10 = vmmov %vm18326_vm0 }
 0x394   :  { %v2897_v17 = vpop.permute.xlu1 %2896  ;;  %v2899_v53 = vpop.permute.xlu0 %2898  ;;  %v13091_v18 = vld [vmem:[#allocation2 + $0x90] sm:$0xff]  ;;  %v13093_v51 = vld [vmem:[#allocation2 + $0x98] sm:$0xff] }
 0x395   :  { %3069 = vst.msk [vmem:[#allocation2 + $0xb0] sm:$0xff] %vm3048_vm5, %v2897_v17  ;;  %3070 = vst.msk [vmem:[#allocation2 + $0xb8] sm:$0xff] %vm3048_vm5, %v2899_v53  ;;  %9393 = vmatprep.mubr.msk.f32.mxu1 %vm18334_vm11, %v13091_v18 }
 0x396   :  { %vm18349_vm11 = vmmov %vm18326_vm0 }
 0x397   :  { %9394 = vmatmul.mubr.msk.f32.gmra.mrb[80].mxu1 %vm18335_vm12, %v13093_v51  ;;  %vm18350_vm12 = vmmov %vm18326_vm0 }
 0x398   :  { %v2901_v63 = vpop.permute.xlu1 %2900  ;;  %v2903_v25 = vpop.permute.xlu0 %2902  ;;  %v13101_v38 = vld [vmem:[#allocation2 + $0xa0] sm:$0xff]  ;;  %v13103_v24 = vld [vmem:[#allocation2 + $0xa8] sm:$0xff] }
 0x399   :  { %3071 = vst.msk [vmem:[#allocation2 + $0xc0] sm:$0xff] %vm3048_vm5, %v2901_v63  ;;  %3072 = vst.msk [vmem:[#allocation2 + $0xc8] sm:$0xff] %vm3048_vm5, %v2903_v25  ;;  %9396 = vmatprep.mubr.msk.f32.mxu1 %vm18336_vm13, %v13101_v38 }
 0x39a   :  { %vm18352_vm13 = vmmov %vm18326_vm0 }
 0x39b   :  { %9397 = vmatmul.mubr.msk.f32.gmra.mrb[82].mxu1 %vm18337_vm14, %v13103_v24  ;;  %vm18353_vm14 = vmmov %vm18326_vm0 }
 0x39c   :  { %v2905_v5 = vpop.permute.xlu1 %2904  ;;  %v2907_v56 = vpop.permute.xlu0 %2906  ;;  %v13111_v35 = vld [vmem:[#allocation2 + $0xb0] sm:$0xff]  ;;  %v13113_v59 = vld [vmem:[#allocation2 + $0xb8] sm:$0xff] }
 0x39d   :  { %3073 = vst.msk [vmem:[#allocation2 + $0xd0] sm:$0xff] %vm3048_vm5, %v2905_v5  ;;  %3074 = vst.msk [vmem:[#allocation2 + $0xd8] sm:$0xff] %vm3048_vm5, %v2907_v56  ;;  %9399 = vmatprep.mubr.msk.f32.mxu1 %vm18338_vm15, %v13111_v35 }
 0x39e   :  { %vm18354_vm15 = vmmov %vm18326_vm0 }
 0x39f   :  { %9400 = vmatmul.mubr.msk.f32.gmra.mrb[84].mxu1 %vm18326_vm0, %v13113_v59 }
 0x3a0   :  { %v2909_v52 = vpop.permute.xlu1 %2908  ;;  %v2911_v62 = vpop.permute.xlu0 %2910  ;;  %v13121_v40 = vld [vmem:[#allocation2 + $0xc0] sm:$0xff]  ;;  %v13123_v6 = vld [vmem:[#allocation2 + $0xc8] sm:$0xff] }
 0x3a1   :  { %3075 = vst.msk [vmem:[#allocation2 + $0xe0] sm:$0xff] %vm3048_vm5, %v2909_v52  ;;  %3076 = vst.msk [vmem:[#allocation2 + $0xe8] sm:$0xff] %vm3048_vm5, %v2911_v62  ;;  %9402 = vmatprep.mubr.msk.f32.mxu1 %vm18339_vm1, %v13121_v40 }
 0x3a2   :  { %vm18355_vm1 = vmmov %vm18326_vm0 }
 0x3a3   :  { %9403 = vmatmul.mubr.msk.f32.gmra.mrb[86].mxu1 %vm18340_vm2, %v13123_v6  ;;  %vm18356_vm2 = vmmov %vm18326_vm0 }
 0x3a4   :  { %v2913_v57 = vpop.permute.xlu1 %2912  ;;  %v13131_v50 = vld [vmem:[#allocation2 + $0xd0] sm:$0xff]  ;;  %v13133_v13 = vld [vmem:[#allocation2 + $0xd8] sm:$0xff] }
 0x3a5   :  { %3077 = vst.msk [vmem:[#allocation2 + $0xf0] sm:$0xff] %vm3048_vm5, %v2913_v57  ;;  %9405 = vmatprep.mubr.msk.f32.mxu1 %vm18341_vm7, %v13131_v50  ;;  %vm18357_vm7 = vmmov %vm18326_vm0 }
 0x3a7   :  { %9406 = vmatmul.mubr.msk.f32.gmra.mrb[88].mxu1 %vm18342_vm4, %v13133_v13  ;;  %vm18358_vm4 = vmmov %vm18326_vm0 }
 0x3a8   :  { %v2502_v28 = vpop.permute.xlu1 %2501  ;;  %v2915_v16 = vpop.permute.xlu0 %2914  ;;  %v13140_v26 = vld [vmem:[#allocation2 + $0xe0] sm:$0xff]  ;;  %v13142_v60 = vld [vmem:[#allocation2 + $0xe8] sm:$0xff] }
 0x3a9   :  { %2631 = vst.msk [vmem:[#allocation2 + $0x228] sm:$0xff] %vm2567_vm6, %v2502_v28  ;;  %9408 = vmatprep.mubr.msk.f32.mxu1 %vm18343_vm8, %v13140_v26  ;;  %vm18346_vm6 = vmmov %vm18326_vm0 }
 0x3aa   :  { %3078 = vst.msk [vmem:[#allocation2 + $0xf8] sm:$0xff] %vm3048_vm5, %v2915_v16  ;;  %vm18359_vm8 = vmmov %vm18326_vm0 }
 0x3ab   :  { %9409 = vmatmul.mubr.msk.f32.gmra.mrb[90].mxu1 %vm18344_vm9, %v13142_v60  ;;  %vm18360_vm9 = vmmov %vm18326_vm0 }
 0x3ac   :  { %v2919_v10 = vpop.permute.xlu1 %2918  ;;  %v2917_v20 = vpop.permute.xlu0 %2916  ;;  %v13150_v9 = vld [vmem:[#allocation2 + $0xf0] sm:$0xff] }
 0x3ad   :  { %3080 = vst.msk [vmem:[#allocation2 + $0x108] sm:$0xff] %vm3048_vm5, %v2919_v10  ;;  %3079 = vst.msk [vmem:[#allocation2 + $0x100] sm:$0xff] %vm3048_vm5, %v2917_v20  ;;  %9411 = vmatprep.mubr.msk.f32.mxu1 %vm18345_vm10, %v13150_v9 }
 0x3ae   :  { %vm18361_vm10 = vmmov %vm18326_vm0 }
 0x3b0   :  { %v2923_v1 = vpop.permute.xlu1 %2922  ;;  %v2921_v37 = vpop.permute.xlu0 %2920  ;;  %v2694_v23 = vld [vmem:[#allocation2 + $0x221] sm:$0xff]  ;;  %v2695_v44 = vld [vmem:[#allocation2 + $0x229] sm:$0xff] }
 0x3b1   :  { %v13164_v15 = vld [vmem:[#allocation2 + $0xf8] sm:$0xff]  ;;  %3082 = vst.msk [vmem:[#allocation2 + $0x138] sm:$0xff] %vm3048_vm5, %v2923_v1  ;;  %3081 = vst.msk [vmem:[#allocation2 + $0x130] sm:$0xff] %vm3048_vm5, %v2921_v37  ;;  %2980 = vrot.lane.b32.xlu0 %v2694_v23, %s11066_s14  ;;  %v2791_v55 = vsel %vm12882_vm3, %v2695_v44, 0.0 }
 0x3b2   :  { %9412 = vmatmul.mubr.msk.f32.gmra.mrb[92].mxu1 %vm18346_vm6, %v13164_v15  ;;  %2982 = vrot.lane.b32.xlu1 %v2791_v55, %s11066_s14  ;;  %vm18351_vm3 = vmmov %vm18326_vm0 }
 0x3b3   :  { %vm18362_vm6 = vmmov %vm18326_vm0 }
 0x3b4   :  { %v2927_v49 = vpop.permute.xlu1 %2926  ;;  %v2925_v8 = vpop.permute.xlu0 %2924  ;;  %v13175_v22 = vld [vmem:[#allocation2 + $0x100] sm:$0xff]  ;;  %v13177_v29 = vld [vmem:[#allocation2 + $0x108] sm:$0xff] }
 0x3b5   :  { %18347 = vst [vmem:[#allocation21_spill] sm:$0xff] %v13175_v22  ;;  %18348 = vst [vmem:[#allocation18_spill] sm:$0xff] %v13177_v29  ;;  %9414 = vmatprep.mubr.msk.f32.mxu1 %vm18349_vm11, %v13175_v22 }
 0x3b6   :  { %3084 = vst.msk [vmem:[#allocation2 + $0x148] sm:$0xff] %vm3048_vm5, %v2927_v49  ;;  %3083 = vst.msk [vmem:[#allocation2 + $0x140] sm:$0xff] %vm3048_vm5, %v2925_v8  ;;  %9415 = vmatmul.mubr.msk.f32.gmra.mrb[94].mxu1 %vm18350_vm12, %v13177_v29 }
 0x3b7   :  { %vm18363_vm11 = vmmov %vm18326_vm0 }
 0x3b8   :  { %v2931_v12 = vpop.permute.xlu1 %2930  ;;  %v2929_v14 = vpop.permute.xlu0 %2928  ;;  %v13185_v46 = vld [vmem:[#allocation2 + $0x130] sm:$0xff]  ;;  %v13187_v45 = vld [vmem:[#allocation2 + $0x138] sm:$0xff]  ;;  %vm18364_vm12 = vmmov %vm18326_vm0 }
 0x3b9   :  { %3086 = vst.msk [vmem:[#allocation2 + $0x158] sm:$0xff] %vm3048_vm5, %v2931_v12  ;;  %3085 = vst.msk [vmem:[#allocation2 + $0x150] sm:$0xff] %vm3048_vm5, %v2929_v14  ;;  %9417 = vmatprep.mubr.msk.f32.mxu1 %vm18351_vm3, %v13185_v46 }
 0x3ba   :  { %9418 = vmatmul.mubr.msk.f32.gmra.mrb[96].mxu1 %vm18352_vm13, %v13187_v45  ;;  %vm18365_vm3 = vmmov %vm18326_vm0 }
 0x3bb   :  { %vm18366_vm13 = vmmov %vm18326_vm0 }
 0x3bc   :  { %v2935_v33 = vpop.permute.xlu1 %2934  ;;  %v2933_v21 = vpop.permute.xlu0 %2932 }
 0x3bd   :  { %v13195_v47 = vld [vmem:[#allocation2 + $0x140] sm:$0xff]  ;;  %v13197_v54 = vld [vmem:[#allocation2 + $0x148] sm:$0xff]  ;;  %3088 = vst.msk [vmem:[#allocation2 + $0x168] sm:$0xff] %vm3048_vm5, %v2935_v33  ;;  %3087 = vst.msk [vmem:[#allocation2 + $0x160] sm:$0xff] %vm3048_vm5, %v2933_v21 }
 0x3be   :  { %9420 = vmatprep.mubr.msk.f32.mxu1 %vm18353_vm14, %v13195_v47  ;;  %vm18367_vm14 = vmmov %vm18326_vm0 }
 0x3bf   :  { %9421 = vmatmul.mubr.msk.f32.gmra.mrb[98].mxu1 %vm18354_vm15, %v13197_v54  ;;  %vm18368_vm15 = vmmov %vm18326_vm0 }
 0x3c0   :  { %v2939_v17 = vpop.permute.xlu1 %2938  ;;  %v2937_v53 = vpop.permute.xlu0 %2936  ;;  %v13205_v63 = vld [vmem:[#allocation2 + $0x150] sm:$0xff]  ;;  %v13207_v25 = vld [vmem:[#allocation2 + $0x158] sm:$0xff] }
 0x3c1   :  { %3090 = vst.msk [vmem:[#allocation2 + $0x178] sm:$0xff] %vm3048_vm5, %v2939_v17  ;;  %3089 = vst.msk [vmem:[#allocation2 + $0x170] sm:$0xff] %vm3048_vm5, %v2937_v53  ;;  %9423 = vmatprep.mubr.msk.f32.mxu1 %vm18326_vm0, %v13205_v63 }
 0x3c3   :  { %9424 = vmatmul.mubr.msk.f32.gmra.mrb[100].mxu1 %vm18355_vm1, %v13207_v25  ;;  %vm18369_vm1 = vmmov %vm18326_vm0 }
 0x3c4   :  { %v2943_v5 = vpop.permute.xlu1 %2942  ;;  %v2941_v56 = vpop.permute.xlu0 %2940  ;;  %v13215_v52 = vld [vmem:[#allocation2 + $0x160] sm:$0xff]  ;;  %v13217_v62 = vld [vmem:[#allocation2 + $0x168] sm:$0xff] }
 0x3c5   :  { %3092 = vst.msk [vmem:[#allocation2 + $0x188] sm:$0xff] %vm3048_vm5, %v2943_v5  ;;  %3091 = vst.msk [vmem:[#allocation2 + $0x180] sm:$0xff] %vm3048_vm5, %v2941_v56  ;;  %9426 = vmatprep.mubr.msk.f32.mxu1 %vm18356_vm2, %v13215_v52 }
 0x3c6   :  { %vm18370_vm2 = vmmov %vm18326_vm0 }
 0x3c7   :  { %9427 = vmatmul.mubr.msk.f32.gmra.mrb[102].mxu1 %vm18357_vm7, %v13217_v62  ;;  %vm18371_vm7 = vmmov %vm18326_vm0 }
 0x3c8   :  { %v2947_v57 = vpop.permute.xlu1 %2946  ;;  %v2945_v28 = vpop.permute.xlu0 %2944  ;;  %v13225_v16 = vld [vmem:[#allocation2 + $0x170] sm:$0xff]  ;;  %v13227_v10 = vld [vmem:[#allocation2 + $0x178] sm:$0xff] }
 0x3c9   :  { %3094 = vst.msk [vmem:[#allocation2 + $0x198] sm:$0xff] %vm3048_vm5, %v2947_v57  ;;  %3093 = vst.msk [vmem:[#allocation2 + $0x190] sm:$0xff] %vm3048_vm5, %v2945_v28  ;;  %9429 = vmatprep.mubr.msk.f32.mxu1 %vm18358_vm4, %v13225_v16 }
 0x3ca   :  { %vm18372_vm4 = vmmov %vm18326_vm0 }
 0x3cb   :  { %9430 = vmatmul.mubr.msk.f32.gmra.mrb[104].mxu1 %vm18359_vm8, %v13227_v10  ;;  %vm18374_vm8 = vmmov %vm18326_vm0 }
 0x3cc   :  { %v2951_v20 = vpop.permute.xlu1 %2950  ;;  %v2949_v39 = vpop.permute.xlu0 %2948  ;;  %v13235_v58 = vld [vmem:[#allocation2 + $0x180] sm:$0xff]  ;;  %v13237_v1 = vld [vmem:[#allocation2 + $0x188] sm:$0xff] }
 0x3cd   :  { %3096 = vst.msk [vmem:[#allocation2 + $0x1a8] sm:$0xff] %vm3048_vm5, %v2951_v20  ;;  %3095 = vst.msk [vmem:[#allocation2 + $0x1a0] sm:$0xff] %vm3048_vm5, %v2949_v39  ;;  %9432 = vmatprep.mubr.msk.f32.mxu1 %vm18360_vm9, %v13235_v58 }
 0x3ce   :  { %vm18375_vm9 = vmmov %vm18326_vm0 }
 0x3cf   :  { %9433 = vmatmul.mubr.msk.f32.gmra.mrb[106].mxu1 %vm18361_vm10, %v13237_v1  ;;  %vm18378_vm10 = vmmov %vm18326_vm0 }
 0x3d0   :  { %v2955_v37 = vpop.permute.xlu1 %2954  ;;  %v2953_v23 = vpop.permute.xlu0 %2952  ;;  %v13245_v44 = vld [vmem:[#allocation2 + $0x190] sm:$0xff]  ;;  %v13247_v55 = vld [vmem:[#allocation2 + $0x198] sm:$0xff] }
 0x3d1   :  { %3098 = vst.msk [vmem:[#allocation2 + $0x1b8] sm:$0xff] %vm3048_vm5, %v2955_v37  ;;  %3097 = vst.msk [vmem:[#allocation2 + $0x1b0] sm:$0xff] %vm3048_vm5, %v2953_v23  ;;  %9435 = vmatprep.mubr.msk.f32.mxu1 %vm18362_vm6, %v13245_v44 }
 0x3d2   :  { %vm18379_vm6 = vmmov %vm18326_vm0 }
 0x3d3   :  { %9436 = vmatmul.mubr.msk.f32.gmra.mrb[108].mxu1 %vm18363_vm11, %v13247_v55  ;;  %vm18382_vm11 = vmmov %vm18326_vm0 }
 0x3d4   :  { %v2959_v49 = vpop.permute.xlu1 %2958  ;;  %v2957_v8 = vpop.permute.xlu0 %2956  ;;  %v13255_v12 = vld [vmem:[#allocation2 + $0x1a0] sm:$0xff]  ;;  %v13257_v14 = vld [vmem:[#allocation2 + $0x1a8] sm:$0xff] }
 0x3d5   :  { %3100 = vst.msk [vmem:[#allocation2 + $0x1c8] sm:$0xff] %vm3048_vm5, %v2959_v49  ;;  %3099 = vst.msk [vmem:[#allocation2 + $0x1c0] sm:$0xff] %vm3048_vm5, %v2957_v8  ;;  %9438 = vmatprep.mubr.msk.f32.mxu1 %vm18364_vm12, %v13255_v12 }
 0x3d6   :  { %vm18383_vm12 = vmmov %vm18326_vm0 }
 0x3d7   :  { %9439 = vmatmul.mubr.msk.f32.gmra.mrb[110].mxu1 %vm18365_vm3, %v13257_v14  ;;  %vm18385_vm3 = vmmov %vm18326_vm0 }
 0x3d8   :  { %v2963_v33 = vpop.permute.xlu1 %2962  ;;  %v2961_v21 = vpop.permute.xlu0 %2960  ;;  %v13265_v17 = vld [vmem:[#allocation2 + $0x1b0] sm:$0xff]  ;;  %v13267_v53 = vld [vmem:[#allocation2 + $0x1b8] sm:$0xff] }
 0x3d9   :  { %3102 = vst.msk [vmem:[#allocation2 + $0x1d8] sm:$0xff] %vm3048_vm5, %v2963_v33  ;;  %3101 = vst.msk [vmem:[#allocation2 + $0x1d0] sm:$0xff] %vm3048_vm5, %v2961_v21  ;;  %9441 = vmatprep.mubr.msk.f32.mxu1 %vm18366_vm13, %v13265_v17 }
 0x3da   :  { %vm18387_vm13 = vmmov %vm18326_vm0 }
 0x3db   :  { %9442 = vmatmul.mubr.msk.f32.gmra.mrb[112].mxu1 %vm18367_vm14, %v13267_v53  ;;  %vm18389_vm14 = vmmov %vm18326_vm0 }
 0x3dc   :  { %v2967_v5 = vpop.permute.xlu1 %2966  ;;  %v2965_v56 = vpop.permute.xlu0 %2964  ;;  %v13275_v57 = vld [vmem:[#allocation2 + $0x1c0] sm:$0xff]  ;;  %v13277_v28 = vld [vmem:[#allocation2 + $0x1c8] sm:$0xff] }
 0x3dd   :  { %3104 = vst.msk [vmem:[#allocation2 + $0x1e8] sm:$0xff] %vm3048_vm5, %v2967_v5  ;;  %3103 = vst.msk [vmem:[#allocation2 + $0x1e0] sm:$0xff] %vm3048_vm5, %v2965_v56  ;;  %9444 = vmatprep.mubr.msk.f32.mxu1 %vm18368_vm15, %v13275_v57 }
 0x3de   :  { %vm18390_vm15 = vmmov %vm18326_vm0 }
 0x3df   :  { %9445 = vmatmul.mubr.msk.f32.gmra.mrb[114].mxu1 %vm18326_vm0, %v13277_v28 }
 0x3e0   :  { %v2971_v20 = vpop.permute.xlu1 %2970  ;;  %v2969_v39 = vpop.permute.xlu0 %2968  ;;  %v13285_v37 = vld [vmem:[#allocation2 + $0x1d0] sm:$0xff]  ;;  %v13287_v23 = vld [vmem:[#allocation2 + $0x1d8] sm:$0xff] }
 0x3e1   :  { %3106 = vst.msk [vmem:[#allocation2 + $0x1f8] sm:$0xff] %vm3048_vm5, %v2971_v20  ;;  %3105 = vst.msk [vmem:[#allocation2 + $0x1f0] sm:$0xff] %vm3048_vm5, %v2969_v39  ;;  %9447 = vmatprep.mubr.msk.f32.mxu1 %vm18369_vm1, %v13285_v37 }
 0x3e2   :  { %vm18391_vm1 = vmmov %vm18326_vm0 }
 0x3e3   :  { %9448 = vmatmul.mubr.msk.f32.gmra.mrb[116].mxu1 %vm18370_vm2, %v13287_v23  ;;  %vm18392_vm2 = vmmov %vm18326_vm0 }
 0x3e4   :  { %v2975_v49 = vpop.permute.xlu1 %2974  ;;  %v2973_v8 = vpop.permute.xlu0 %2972  ;;  %v13295_v33 = vld [vmem:[#allocation2 + $0x1e0] sm:$0xff]  ;;  %v13297_v21 = vld [vmem:[#allocation2 + $0x1e8] sm:$0xff] }
 0x3e5   :  { %3108 = vst.msk [vmem:[#allocation2 + $0x208] sm:$0xff] %vm3048_vm5, %v2975_v49  ;;  %3107 = vst.msk [vmem:[#allocation2 + $0x200] sm:$0xff] %vm3048_vm5, %v2973_v8  ;;  %9450 = vmatprep.mubr.msk.f32.mxu1 %vm18371_vm7, %v13295_v33 }
 0x3e6   :  { %vm18393_vm7 = vmmov %vm18326_vm0 }
 0x3e7   :  { %9451 = vmatmul.mubr.msk.f32.gmra.mrb[118].mxu1 %vm18372_vm4, %v13297_v21  ;;  %vm18394_vm4 = vmmov %vm18326_vm0 }
 0x3e8   :  { %v2979_v5 = vpop.permute.xlu1 %2978  ;;  %v2977_v56 = vpop.permute.xlu0 %2976  ;;  %v13305_v20 = vld [vmem:[#allocation2 + $0x1f0] sm:$0xff]  ;;  %v13307_v39 = vld [vmem:[#allocation2 + $0x1f8] sm:$0xff] }
 0x3e9   :  { %18373 = vst [vmem:[#allocation19_spill] sm:$0xff] %v13307_v39  ;;  %3110 = vst.msk [vmem:[#allocation2 + $0x218] sm:$0xff] %vm3048_vm5, %v2979_v5  ;;  %9453 = vmatprep.mubr.msk.f32.mxu1 %vm18374_vm8, %v13305_v20 }
 0x3ea   :  { %3109 = vst.msk [vmem:[#allocation2 + $0x210] sm:$0xff] %vm3048_vm5, %v2977_v56  ;;  %vm18395_vm8 = vmmov %vm18326_vm0 }
 0x3eb   :  { %9454 = vmatmul.mubr.msk.f32.gmra.mrb[120].mxu1 %vm18375_vm9, %v13307_v39  ;;  %v8807_v39 = vld [vmem:[%s17985_s3 + $0xe8] sm:$0xff]  ;;  %vm18396_vm9 = vmmov %vm18326_vm0 }
 0x3ec   :  { %v13315_v49 = vld [vmem:[#allocation2 + $0x200] sm:$0xff]  ;;  %v13317_v8 = vld [vmem:[#allocation2 + $0x208] sm:$0xff] }
 0x3ed   :  { %18376 = vst [vmem:[#allocation22_spill] sm:$0xff] %v13315_v49  ;;  %18377 = vst [vmem:[#allocation24_spill] sm:$0xff] %v13317_v8  ;;  %9456 = vmatprep.mubr.msk.f32.mxu1 %vm18378_vm10, %v13315_v49  ;;  %v3113_v49 = vld [vmem:[#allocation2] sm:$0xff] }
 0x3ee   :  { %vm18397_vm10 = vmmov %vm18326_vm0 }
 0x3ef   :  { %9457 = vmatmul.mubr.msk.f32.gmra.mrb[122].mxu1 %vm18379_vm6, %v13317_v8  ;;  %vm18398_vm6 = vmmov %vm18326_vm0 }
 0x3f0   :  { %v13325_v5 = vld [vmem:[#allocation2 + $0x218] sm:$0xff] }
 0x3f1   :  { %v13323_v31 = vld [vmem:[#allocation2 + $0x210] sm:$0xff]  ;;  %18381 = vst [vmem:[#allocation8_spill] sm:$0xff] %v13325_v5 }
 0x3f2   :  { %18380 = vst [vmem:[#allocation23_spill] sm:$0xff] %v13323_v31  ;;  %9459 = vmatprep.mubr.msk.f32.mxu1 %vm18382_vm11, %v13323_v31  ;;  %v8804_v31 = vld [vmem:[%s17985_s3 + $0xd0] sm:$0xff]  ;;  %vm18399_vm11 = vmmov %vm18326_vm0 }
 0x3f3   :  { %9460 = vmatmul.mubr.msk.f32.gmra.mrb[124].mxu1 %vm18383_vm12, %v13325_v5  ;;  %v8805_v5 = vld [vmem:[%s17985_s3 + $0xd8] sm:$0xff]  ;;  %vm18400_vm12 = vmmov %vm18326_vm0 }
 0x423   :  { %v2981_v56 = vpop.permute.xlu0 %2980 }
 0x424   :  { %3111 = vst.msk [vmem:[#allocation2 + $0x220] sm:$0xff] %vm3048_vm5, %v2981_v56  ;;  %v2983_v29 = vpop.permute.xlu1 %2982  ;;  %v9787_v56 = vpack.c.bf16 %v8805_v5, %v8804_v31  ;;  %v8808_v31 = vld [vmem:[%s17985_s3 + $0xf0] sm:$0xff]  ;;  %v8813_v5 = vld [vmem:[%s17985_s3 + $0x118] sm:$0xff] }
 0x425   :  { %3112 = vst.msk [vmem:[#allocation2 + $0x228] sm:$0xff] %vm3048_vm5, %v2983_v29  ;;  %vm18388_vm5 = vmmov %vm18326_vm0  ;;  %v3114_v29 = vld [vmem:[#allocation2 + $0x8] sm:$0xff] }
 0x42b   :  { %v13333_v22 = vld [vmem:[#allocation2 + $0x220] sm:$0xff] }
 0x42c   :  { %18384 = vst [vmem:[#allocation25_spill] sm:$0xff] %v13333_v22  ;;  %9462 = vmatprep.mubr.msk.f32.mxu1 %vm18385_vm3, %v13333_v22  ;;  %v13337_v8 = vld [vmem:[#allocation2 + $0x228] sm:$0xff]  ;;  %v8806_v22 = vld [vmem:[%s17985_s3 + $0xe0] sm:$0xff]  ;;  %vm18401_vm3 = vmmov %vm18326_vm0 }
 0x42d   :  { %18386 = vst [vmem:[#allocation9_spill] sm:$0xff] %v13337_v8  ;;  %9463 = vmatmul.mubr.msk.f32.gmra.mrb[126].mxu1 %vm18387_vm13, %v13337_v8  ;;  %v9791_v8 = vpack.c.bf16 %v8807_v39, %v8806_v22  ;;  %v8811_v22 = vld [vmem:[%s17985_s3 + $0x108] sm:$0xff]  ;;  %v8812_v39 = vld [vmem:[%s17985_s3 + $0x110] sm:$0xff]  ;;  %vm18402_vm13 = vmmov %vm18326_vm0 }
 0x42e   :  { %9489 = vmatprep.mubr.msk.f32.mxu1 %vm18388_vm5, %v3113_v49  ;;  %v8809_v49 = vld [vmem:[%s17985_s3 + $0xf8] sm:$0xff]  ;;  %vm18403_vm5 = vmmov %vm18326_vm0 }
 0x431   :  { %9490 = vmatmul.mubr.msk.f32.vlgmr.msra.gmra.mrb[64].mxu1 %vm18389_vm14, %v3114_v29  ;;  %v9803_v29 = vpack.c.bf16 %v8813_v5, %v8812_v39  ;;  %vm18404_vm14 = vmmov %vm18326_vm0 }
 0x432   :  { %9786 = vmatpush3.bf16.msra.mxu1 %v13162_v4  ;;  %9492 = vmatprep.mubr.msk.f32.mxu1 %vm18390_vm15, %v12982_v48  ;;  %v9795_v4 = vpack.c.bf16 %v8809_v49, %v8808_v31  ;;  %v8810_v48 = vld [vmem:[%s17985_s3 + $0x100] sm:$0xff]  ;;  %vm18405_vm15 = vmmov %vm18326_vm0 }
 0x433   :  { %9788 = vmatprep.subr.bf16.mxu1 %v9787_v56  ;;  %v18447_v31 = vld [vmem:[#allocation24_spill] sm:$0xff]  ;;  %v18449_v49 = vld [vmem:[#allocation23_spill] sm:$0xff] }
 0x435   :  { %9493 = vmatmul.mubr.msk.f32.gmra.mrb[66].mxu1 %vm18326_vm0, %v12984_v7  ;;  %v9799_v7 = vpack.c.bf16 %v8811_v22, %v8810_v48 }
 0x436   :  { %9495 = vmatprep.mubr.msk.f32.mxu1 %vm18391_vm1, %v13002_v30  ;;  %9790 = vmatpush3.bf16.msra.mxu1 %v9787_v56  ;;  %vm18406_vm1 = vmmov %vm18326_vm0  ;;  %v3146_v56 = vld [vmem:[#allocation2 + $0x128] sm:$0xff] }
 0x437   :  { %9792 = vmatprep.subr.bf16.mxu1 %v9791_v8 }
 0x439   :  { %9496 = vmatmul.mubr.msk.f32.gmra.mrb[68].mxu1 %vm18392_vm2, %v13004_v0  ;;  %vm18407_vm2 = vmmov %vm18326_vm0 }
 0x43a   :  { %9498 = vmatprep.mubr.msk.f32.mxu1 %vm18393_vm7, %v13019_v43  ;;  %9794 = vmatpush3.bf16.msra.mxu1 %v9791_v8  ;;  %vm18408_vm7 = vmmov %vm18326_vm0  ;;  %v3145_v8 = vld [vmem:[#allocation2 + $0x120] sm:$0xff] }
 0x43b   :  { %9796 = vmatprep.subr.bf16.mxu1 %v9795_v4 }
 0x43d   :  { %9499 = vmatmul.mubr.msk.f32.gmra.mrb[70].mxu1 %vm18394_vm4, %v13021_v34  ;;  %vm18409_vm4 = vmmov %vm18326_vm0 }
 0x43e   :  { %9501 = vmatprep.mubr.msk.f32.mxu1 %vm18395_vm8, %v13035_v27  ;;  %9798 = vmatpush3.bf16.msra.mxu1 %v9795_v4  ;;  %vm18410_vm8 = vmmov %vm18326_vm0  ;;  %v18451_v4 = vld [vmem:[#allocation8_spill] sm:$0xff] }
 0x43f   :  { %9800 = vmatprep.subr.bf16.mxu1 %v9799_v7 }
 0x441   :  { %9502 = vmatmul.mubr.msk.f32.gmra.mrb[72].mxu1 %vm18396_vm9, %v13037_v3  ;;  %vm18411_vm9 = vmmov %vm18326_vm0 }
 0x442   :  { %9504 = vmatprep.mubr.msk.f32.mxu1 %vm18397_vm10, %v13051_v42  ;;  %9802 = vmatpush3.bf16.msra.mxu1 %v9799_v7  ;;  %vm18412_vm10 = vmmov %vm18326_vm0 }
 0x443   :  { %9804 = vmatprep.subr.bf16.mxu1 %v9803_v29 }
 0x445   :  { %9505 = vmatmul.mubr.msk.f32.gmra.mrb[74].mxu1 %vm18398_vm6, %v13053_v61  ;;  %vm18413_vm6 = vmmov %vm18326_vm0 }
 0x446   :  { %9507 = vmatprep.mubr.msk.f32.mxu1 %vm18399_vm11, %v13061_v41  ;;  %9806 = vmatpush3.bf16.msra.mxu1 %v9803_v29  ;;  %vm18414_vm11 = vmmov %vm18326_vm0 }
 0x449   :  { %9508 = vmatmul.mubr.msk.f32.gmra.mrb[76].mxu1 %vm18400_vm12, %v13063_v36  ;;  %vm18415_vm12 = vmmov %vm18326_vm0 }
 0x44a   :  { %9510 = vmatprep.mubr.msk.f32.mxu1 %vm18401_vm3, %v13071_v19  ;;  %vm18416_vm3 = vmmov %vm18326_vm0 }
 0x44d   :  { %9511 = vmatmul.mubr.msk.f32.gmra.mrb[78].mxu1 %vm18402_vm13, %v13073_v32  ;;  %vm18417_vm13 = vmmov %vm18326_vm0 }
 0x44e   :  { %9513 = vmatprep.mubr.msk.f32.mxu1 %vm18403_vm5, %v13081_v2  ;;  %vm18418_vm5 = vmmov %vm18326_vm0 }
 0x451   :  { %9514 = vmatmul.mubr.msk.f32.gmra.mrb[80].mxu1 %vm18404_vm14, %v13083_v11  ;;  %vm18419_vm14 = vmmov %vm18326_vm0 }
 0x452   :  { %9516 = vmatprep.mubr.msk.f32.mxu1 %vm18405_vm15, %v13091_v18  ;;  %vm18420_vm15 = vmmov %vm18326_vm0 }
 0x455   :  { %9517 = vmatmul.mubr.msk.f32.gmra.mrb[82].mxu1 %vm18326_vm0, %v13093_v51 }
 0x456   :  { %9519 = vmatprep.mubr.msk.f32.mxu1 %vm18406_vm1, %v13101_v38  ;;  %vm18421_vm1 = vmmov %vm18326_vm0 }
 0x459   :  { %9520 = vmatmul.mubr.msk.f32.gmra.mrb[84].mxu1 %vm18407_vm2, %v13103_v24  ;;  %vm18422_vm2 = vmmov %vm18326_vm0 }
 0x45a   :  { %9522 = vmatprep.mubr.msk.f32.mxu1 %vm18408_vm7, %v13111_v35  ;;  %vm18423_vm7 = vmmov %vm18326_vm0 }
 0x45d   :  { %9523 = vmatmul.mubr.msk.f32.gmra.mrb[86].mxu1 %vm18409_vm4, %v13113_v59  ;;  %vm18424_vm4 = vmmov %vm18326_vm0 }
 0x45e   :  { %9525 = vmatprep.mubr.msk.f32.mxu1 %vm18410_vm8, %v13121_v40  ;;  %vm18425_vm8 = vmmov %vm18326_vm0 }
 0x461   :  { %9526 = vmatmul.mubr.msk.f32.gmra.mrb[88].mxu1 %vm18411_vm9, %v13123_v6  ;;  %vm18426_vm9 = vmmov %vm18326_vm0 }
 0x462   :  { %9528 = vmatprep.mubr.msk.f32.mxu1 %vm18412_vm10, %v13131_v50  ;;  %vm18427_vm10 = vmmov %vm18326_vm0 }
 0x465   :  { %9529 = vmatmul.mubr.msk.f32.gmra.mrb[90].mxu1 %vm18413_vm6, %v13133_v13  ;;  %vm18428_vm6 = vmmov %vm18326_vm0 }
 0x466   :  { %9531 = vmatprep.mubr.msk.f32.mxu1 %vm18414_vm11, %v13140_v26  ;;  %vm18429_vm11 = vmmov %vm18326_vm0 }
 0x469   :  { %9532 = vmatmul.mubr.msk.f32.gmra.mrb[92].mxu1 %vm18415_vm12, %v13142_v60  ;;  %vm18430_vm12 = vmmov %vm18326_vm0 }
 0x46a   :  { %9534 = vmatprep.mubr.msk.f32.mxu1 %vm18416_vm3, %v13150_v9  ;;  %vm18431_vm3 = vmmov %vm18326_vm0 }
 0x46d   :  { %9535 = vmatmul.mubr.msk.f32.gmra.mrb[94].mxu1 %vm18417_vm13, %v13164_v15  ;;  %vm18432_vm13 = vmmov %vm18326_vm0 }
 0x46e   :  { %9537 = vmatprep.mubr.msk.f32.mxu1 %vm18418_vm5, %v3145_v8  ;;  %vm18433_vm5 = vmmov %vm18326_vm0 }
 0x471   :  { %9538 = vmatmul.mubr.msk.f32.gmra.mrb[96].mxu1 %vm18419_vm14, %v3146_v56  ;;  %vm18434_vm14 = vmmov %vm18326_vm0 }
 0x472   :  { %9540 = vmatprep.mubr.msk.f32.mxu1 %vm18420_vm15, %v13185_v46  ;;  %vm18435_vm15 = vmmov %vm18326_vm0  ;;  %v18443_v46 = vld [vmem:[#allocation19_spill] sm:$0xff] }
 0x475   :  { %9541 = vmatmul.mubr.msk.f32.gmra.mrb[98].mxu1 %vm18326_vm0, %v13187_v45  ;;  %v18445_v45 = vld [vmem:[#allocation22_spill] sm:$0xff] }
 0x476   :  { %9543 = vmatprep.mubr.msk.f32.mxu1 %vm18421_vm1, %v13195_v47  ;;  %vm18436_vm1 = vmmov %vm18326_vm0 }
 0x479   :  { %9544 = vmatmul.mubr.msk.f32.gmra.mrb[100].mxu1 %vm18422_vm2, %v13197_v54  ;;  %vm18437_vm2 = vmmov %vm18326_vm0 }
 0x47a   :  { %9546 = vmatprep.mubr.msk.f32.mxu1 %vm18423_vm7, %v13205_v63  ;;  %vm18438_vm7 = vmmov %vm18326_vm0 }
 0x47d   :  { %9547 = vmatmul.mubr.msk.f32.gmra.mrb[102].mxu1 %vm18424_vm4, %v13207_v25  ;;  %vm18439_vm4 = vmmov %vm18326_vm0 }
 0x47e   :  { %9549 = vmatprep.mubr.msk.f32.mxu1 %vm18425_vm8, %v13215_v52  ;;  %vm18440_vm8 = vmmov %vm18326_vm0 }
 0x481   :  { %9550 = vmatmul.mubr.msk.f32.gmra.mrb[104].mxu1 %vm18426_vm9, %v13217_v62  ;;  %vm18441_vm9 = vmmov %vm18326_vm0 }
 0x482   :  { %9552 = vmatprep.mubr.msk.f32.mxu1 %vm18427_vm10, %v13225_v16  ;;  %vm18442_vm10 = vmmov %vm18326_vm0 }
 0x485   :  { %9553 = vmatmul.mubr.msk.f32.gmra.mrb[106].mxu1 %vm18428_vm6, %v13227_v10  ;;  %vm18444_vm6 = vmmov %vm18326_vm0 }
 0x486   :  { %9555 = vmatprep.mubr.msk.f32.mxu1 %vm18429_vm11, %v13235_v58  ;;  %vm18446_vm11 = vmmov %vm18326_vm0 }
 0x489   :  { %9556 = vmatmul.mubr.msk.f32.gmra.mrb[108].mxu1 %vm18430_vm12, %v13237_v1  ;;  %vm18448_vm12 = vmmov %vm18326_vm0 }
 0x48a   :  { %9558 = vmatprep.mubr.msk.f32.mxu1 %vm18431_vm3, %v13245_v44  ;;  %vm18450_vm3 = vmmov %vm18326_vm0 }
 0x48d   :  { %9559 = vmatmul.mubr.msk.f32.gmra.mrb[110].mxu1 %vm18432_vm13, %v13247_v55  ;;  %vm18452_vm13 = vmmov %vm18326_vm0 }
 0x48e   :  { %9561 = vmatprep.mubr.msk.f32.mxu1 %vm18433_vm5, %v13255_v12  ;;  %vm18453_vm5 = vmmov %vm18326_vm0 }
 0x491   :  { %9562 = vmatmul.mubr.msk.f32.gmra.mrb[112].mxu1 %vm18434_vm14, %v13257_v14  ;;  %vm18454_vm14 = vmmov %vm18326_vm0 }
 0x492   :  { %9564 = vmatprep.mubr.msk.f32.mxu1 %vm18435_vm15, %v13265_v17  ;;  %vm18455_vm15 = vmmov %vm18326_vm0 }
 0x495   :  { %9565 = vmatmul.mubr.msk.f32.gmra.mrb[114].mxu1 %vm18326_vm0, %v13267_v53 }
 0x496   :  { %9567 = vmatprep.mubr.msk.f32.mxu1 %vm18436_vm1, %v13275_v57  ;;  %vm18456_vm1 = vmmov %vm18326_vm0 }
 0x499   :  { %9568 = vmatmul.mubr.msk.f32.gmra.mrb[116].mxu1 %vm18437_vm2, %v13277_v28  ;;  %vm18457_vm2 = vmmov %vm18326_vm0 }
 0x49a   :  { %9570 = vmatprep.mubr.msk.f32.mxu1 %vm18438_vm7, %v13285_v37  ;;  %vm18458_vm7 = vmmov %vm18326_vm0 }
 0x49d   :  { %9571 = vmatmul.mubr.msk.f32.gmra.mrb[118].mxu1 %vm18439_vm4, %v13287_v23  ;;  %vm18459_vm4 = vmmov %vm18326_vm0 }
 0x49e   :  { %9573 = vmatprep.mubr.msk.f32.mxu1 %vm18440_vm8, %v13295_v33  ;;  %vm18460_vm8 = vmmov %vm18326_vm0 }
 0x4a1   :  { %9574 = vmatmul.mubr.msk.f32.gmra.mrb[120].mxu1 %vm18441_vm9, %v13297_v21  ;;  %vm18461_vm9 = vmmov %vm18326_vm0 }
 0x4a2   :  { %9576 = vmatprep.mubr.msk.f32.mxu1 %vm18442_vm10, %v13305_v20  ;;  %vm18462_vm10 = vmmov %vm18326_vm0 }
 0x4a5   :  { %9577 = vmatmul.mubr.msk.f32.gmra.mrb[122].mxu1 %vm18444_vm6, %v18443_v46  ;;  %vm18463_vm6 = vmmov %vm18326_vm0 }
 0x4a6   :  { %9579 = vmatprep.mubr.msk.f32.mxu1 %vm18446_vm11, %v18445_v45  ;;  %vm18464_vm11 = vmmov %vm18326_vm0 }
 0x4a9   :  { %9580 = vmatmul.mubr.msk.f32.gmra.mrb[124].mxu1 %vm18448_vm12, %v18447_v31  ;;  %vm18465_vm12 = vmmov %vm18326_vm0 }
 0x4aa   :  { %9582 = vmatprep.mubr.msk.f32.mxu1 %vm18450_vm3, %v18449_v49  ;;  %vm18466_vm3 = vmmov %vm18326_vm0 }
 0x4ad   :  { %9583 = vmatmul.mubr.msk.f32.gmra.mrb[126].mxu1 %vm18452_vm13, %v18451_v4  ;;  %vm18467_vm13 = vmmov %vm18326_vm0 }
 0x4ae   :  { %9609 = vmatprep.mubr.msk.f32.mxu1 %vm18453_vm5, %v13002_v30  ;;  %vm18468_vm5 = vmmov %vm18326_vm0  ;;  %v18479_v30 = vld [vmem:[#allocation21_spill] sm:$0xff] }
 0x4b1   :  { %9610 = vmatmul.mubr.msk.f32.vlgmr.msra.gmra.mrb[64].mxu1 %vm18454_vm14, %v13004_v0  ;;  %vm18469_vm14 = vmmov %vm18326_vm0  ;;  %v4210_v0 = vld [vmem:[#allocation2 + $0x110] sm:$0xff] }
 0x4b2   :  { %9612 = vmatprep.mubr.msk.f32.mxu1 %vm18455_vm15, %v13019_v43  ;;  %vm18470_vm15 = vmmov %vm18326_vm0  ;;  %v18481_v43 = vld [vmem:[#allocation18_spill] sm:$0xff] }
 0x4b5   :  { %9613 = vmatmul.mubr.msk.f32.gmra.mrb[66].mxu1 %vm18326_vm0, %v13021_v34  ;;  %v4211_v34 = vld [vmem:[#allocation2 + $0x118] sm:$0xff] }
 0x4b6   :  { %9615 = vmatprep.mubr.msk.f32.mxu1 %vm18456_vm1, %v13035_v27  ;;  %vm18471_vm1 = vmmov %vm18326_vm0  ;;  %v18511_v27 = vld [vmem:[#allocation25_spill] sm:$0xff] }
 0x4b9   :  { %9616 = vmatmul.mubr.msk.f32.gmra.mrb[68].mxu1 %vm18457_vm2, %v13037_v3  ;;  %vm18472_vm2 = vmmov %vm18326_vm0  ;;  %v4242_v3 = vld [vmem:[#allocation2 + $0x230] sm:$0xff] }
 0x4ba   :  { %9618 = vmatprep.mubr.msk.f32.mxu1 %vm18458_vm7, %v13051_v42  ;;  %vm18473_vm7 = vmmov %vm18326_vm0  ;;  %v18513_v42 = vld [vmem:[#allocation9_spill] sm:$0xff] }
 0x4bd   :  { %9619 = vmatmul.mubr.msk.f32.gmra.mrb[70].mxu1 %vm18459_vm4, %v13053_v61  ;;  %vm18474_vm4 = vmmov %vm18326_vm0  ;;  %v4243_v61 = vld [vmem:[#allocation2 + $0x238] sm:$0xff] }
 0x4be   :  { %9621 = vmatprep.mubr.msk.f32.mxu1 %vm18460_vm8, %v13061_v41  ;;  %vm18475_vm8 = vmmov %vm18326_vm0 }
 0x4c1   :  { %9622 = vmatmul.mubr.msk.f32.gmra.mrb[72].mxu1 %vm18461_vm9, %v13063_v36  ;;  %vm18476_vm9 = vmmov %vm18326_vm0  ;;  %v13623_v36 = vld [vmem:[%s17986_s4] ss:$0 sm:$0xff] }
 0x4c2   :  { %9624 = vmatprep.mubr.msk.f32.mxu1 %vm18462_vm10, %v13071_v19  ;;  %vm18477_vm10 = vmmov %vm18326_vm0 }
 0x4c5   :  { %9625 = vmatmul.mubr.msk.f32.gmra.mrb[74].mxu1 %vm18463_vm6, %v13073_v32  ;;  %vm18478_vm6 = vmmov %vm18326_vm0 }
 0x4c6   :  { %9627 = vmatprep.mubr.msk.f32.mxu1 %vm18464_vm11, %v13081_v2  ;;  %vm18480_vm11 = vmmov %vm18326_vm0 }
 0x4c9   :  { %9628 = vmatmul.mubr.msk.f32.gmra.mrb[76].mxu1 %vm18465_vm12, %v13083_v11  ;;  %vm18482_vm12 = vmmov %vm18326_vm0 }
 0x4ca   :  { %9630 = vmatprep.mubr.msk.f32.mxu1 %vm18466_vm3, %v13091_v18  ;;  %vm18483_vm3 = vmmov %vm18326_vm0 }
 0x4cd   :  { %9631 = vmatmul.mubr.msk.f32.gmra.mrb[78].mxu1 %vm18467_vm13, %v13093_v51  ;;  %vm18484_vm13 = vmmov %vm18326_vm0 }
 0x4ce   :  { %9633 = vmatprep.mubr.msk.f32.mxu1 %vm18468_vm5, %v13101_v38  ;;  %vm18485_vm5 = vmmov %vm18326_vm0 }
 0x4d1   :  { %9634 = vmatmul.mubr.msk.f32.gmra.mrb[80].mxu1 %vm18469_vm14, %v13103_v24  ;;  %vm18486_vm14 = vmmov %vm18326_vm0 }
 0x4d2   :  { %9636 = vmatprep.mubr.msk.f32.mxu1 %vm18470_vm15, %v13111_v35  ;;  %vm18487_vm15 = vmmov %vm18326_vm0 }
 0x4d5   :  { %9637 = vmatmul.mubr.msk.f32.gmra.mrb[82].mxu1 %vm18326_vm0, %v13113_v59 }
 0x4d6   :  { %9639 = vmatprep.mubr.msk.f32.mxu1 %vm18471_vm1, %v13121_v40  ;;  %vm18488_vm1 = vmmov %vm18326_vm0 }
 0x4d9   :  { %9640 = vmatmul.mubr.msk.f32.gmra.mrb[84].mxu1 %vm18472_vm2, %v13123_v6  ;;  %vm18489_vm2 = vmmov %vm18326_vm0 }
 0x4da   :  { %9642 = vmatprep.mubr.msk.f32.mxu1 %vm18473_vm7, %v13131_v50  ;;  %vm18490_vm7 = vmmov %vm18326_vm0 }
 0x4dd   :  { %9643 = vmatmul.mubr.msk.f32.gmra.mrb[86].mxu1 %vm18474_vm4, %v13133_v13  ;;  %vm18491_vm4 = vmmov %vm18326_vm0 }
 0x4de   :  { %9645 = vmatprep.mubr.msk.f32.mxu1 %vm18475_vm8, %v13140_v26  ;;  %vm18492_vm8 = vmmov %vm18326_vm0 }
 0x4e1   :  { %9646 = vmatmul.mubr.msk.f32.gmra.mrb[88].mxu1 %vm18476_vm9, %v13142_v60  ;;  %vm18493_vm9 = vmmov %vm18326_vm0 }
 0x4e2   :  { %9648 = vmatprep.mubr.msk.f32.mxu1 %vm18477_vm10, %v13150_v9  ;;  %vm18494_vm10 = vmmov %vm18326_vm0 }
 0x4e5   :  { %9649 = vmatmul.mubr.msk.f32.gmra.mrb[90].mxu1 %vm18478_vm6, %v13164_v15  ;;  %vm18495_vm6 = vmmov %vm18326_vm0 }
 0x4e6   :  { %9651 = vmatprep.mubr.msk.f32.mxu1 %vm18480_vm11, %v18479_v30  ;;  %vm18496_vm11 = vmmov %vm18326_vm0  ;;  %v11067_v30 = vmov 1983009808  }
 0x4e9   :  { %9652 = vmatmul.mubr.msk.f32.gmra.mrb[92].mxu1 %vm18482_vm12, %v18481_v43  ;;  %vm18497_vm12 = vmmov %vm18326_vm0 }
 0x4ea   :  { %9654 = vmatprep.mubr.msk.f32.mxu1 %vm18483_vm3, %v4210_v0  ;;  %vm18498_vm3 = vmmov %vm18326_vm0  ;;  %v5180_v0 = vunpack.c.l.s4 %v11067_v30 }
 0x4ed   :  { %9655 = vmatmul.mubr.msk.f32.gmra.mrb[94].mxu1 %vm18484_vm13, %v4211_v34  ;;  %vm18499_vm13 = vmmov %vm18326_vm0 }
 0x4ee   :  { %9657 = vmatprep.mubr.msk.f32.mxu1 %vm18485_vm5, %v13195_v47  ;;  %vm18500_vm5 = vmmov %vm18326_vm0 }
 0x4f1   :  { %9658 = vmatmul.mubr.msk.f32.gmra.mrb[96].mxu1 %vm18486_vm14, %v13197_v54  ;;  %vm18501_vm14 = vmmov %vm18326_vm0 }
 0x4f2   :  { %9660 = vmatprep.mubr.msk.f32.mxu1 %vm18487_vm15, %v13205_v63  ;;  %vm18502_vm15 = vmmov %vm18326_vm0 }
 0x4f5   :  { %9661 = vmatmul.mubr.msk.f32.gmra.mrb[98].mxu1 %vm18326_vm0, %v13207_v25 }
 0x4f6   :  { %9663 = vmatprep.mubr.msk.f32.mxu1 %vm18488_vm1, %v13215_v52  ;;  %vm18503_vm1 = vmmov %vm18326_vm0 }
 0x4f9   :  { %9664 = vmatmul.mubr.msk.f32.gmra.mrb[100].mxu1 %vm18489_vm2, %v13217_v62  ;;  %vm18504_vm2 = vmmov %vm18326_vm0 }
 0x4fa   :  { %9666 = vmatprep.mubr.msk.f32.mxu1 %vm18490_vm7, %v13225_v16  ;;  %vm18505_vm7 = vmmov %vm18326_vm0 }
 0x4fd   :  { %9667 = vmatmul.mubr.msk.f32.gmra.mrb[102].mxu1 %vm18491_vm4, %v13227_v10  ;;  %vm18506_vm4 = vmmov %vm18326_vm0 }
 0x4fe   :  { %9669 = vmatprep.mubr.msk.f32.mxu1 %vm18492_vm8, %v13235_v58  ;;  %vm18507_vm8 = vmmov %vm18326_vm0 }
 0x501   :  { %9670 = vmatmul.mubr.msk.f32.gmra.mrb[104].mxu1 %vm18493_vm9, %v13237_v1  ;;  %vm18508_vm9 = vmmov %vm18326_vm0 }
 0x502   :  { %9672 = vmatprep.mubr.msk.f32.mxu1 %vm18494_vm10, %v13245_v44  ;;  %vm18509_vm10 = vmmov %vm18326_vm0 }
 0x505   :  { %9673 = vmatmul.mubr.msk.f32.gmra.mrb[106].mxu1 %vm18495_vm6, %v13247_v55  ;;  %vm18510_vm6 = vmmov %vm18326_vm0 }
 0x506   :  { %9675 = vmatprep.mubr.msk.f32.mxu1 %vm18496_vm11, %v13255_v12  ;;  %vm18512_vm11 = vmmov %vm18326_vm0 }
 0x509   :  { %9676 = vmatmul.mubr.msk.f32.gmra.mrb[108].mxu1 %vm18497_vm12, %v13257_v14  ;;  %vm18514_vm12 = vmmov %vm18326_vm0 }
 0x50a   :  { %9678 = vmatprep.mubr.msk.f32.mxu1 %vm18498_vm3, %v13265_v17  ;;  %vm18515_vm3 = vmmov %vm18326_vm0 }
 0x50d   :  { %9679 = vmatmul.mubr.msk.f32.gmra.mrb[110].mxu1 %vm18499_vm13, %v13267_v53  ;;  %vm18516_vm13 = vmmov %vm18326_vm0 }
 0x50e   :  { %9681 = vmatprep.mubr.msk.f32.mxu1 %vm18500_vm5, %v13275_v57  ;;  %vm5065_vm5 = vcmask 523264  }
 0x511   :  { %9682 = vmatmul.mubr.msk.f32.gmra.mrb[112].mxu1 %vm18501_vm14, %v13277_v28  ;;  %vm5198_vm14 = vcmask 1041409  }
 0x512   :  { %9684 = vmatprep.mubr.msk.f32.mxu1 %vm18502_vm15, %v13285_v37  ;;  %vm5200_vm15 = vcmask 1043459  }
 0x515   :  { %9685 = vmatmul.mubr.msk.f32.gmra.mrb[114].mxu1 %vm18326_vm0, %v13287_v23  ;;  %vm5202_vm0 = vcmask 1045509  }
 0x516   :  { %9687 = vmatprep.mubr.msk.f32.mxu1 %vm18503_vm1, %v13295_v33  ;;  %vm5204_vm1 = vcmask 1047559  }
 0x519   :  { %9688 = vmatmul.mubr.msk.f32.gmra.mrb[116].mxu1 %vm18504_vm2, %v13297_v21  ;;  %vm5207_vm2 = vcmask 517120  }
 0x51a   :  { %9690 = vmatprep.mubr.msk.f32.mxu1 %vm18505_vm7, %v13305_v20  ;;  %vm5219_vm7 = vcmask 1041920  }
 0x51d   :  { %9691 = vmatmul.mubr.msk.f32.gmra.mrb[118].mxu1 %vm18506_vm4, %v18443_v46 }
 0x51e   :  { %9693 = vmatprep.mubr.msk.f32.mxu1 %vm18507_vm8, %v18445_v45 }
 0x521   :  { %9694 = vmatmul.mubr.msk.f32.gmra.mrb[120].mxu1 %vm18508_vm9, %v18447_v31 }
 0x522   :  { %9696 = vmatprep.mubr.msk.f32.mxu1 %vm18509_vm10, %v18449_v49 }
 0x525   :  { %9697 = vmatmul.mubr.msk.f32.gmra.mrb[122].mxu1 %vm18510_vm6, %v18451_v4 }
 0x526   :  { %9699 = vmatprep.mubr.msk.f32.mxu1 %vm18512_vm11, %v18511_v27 }
 0x529   :  { %9700 = vmatmul.mubr.msk.f32.gmra.mrb[124].mxu1 %vm18514_vm12, %v18513_v42 }
 0x52a   :  { %9702 = vmatprep.mubr.msk.f32.mxu1 %vm18515_vm3, %v4242_v3 }
 0x52d   :  { %9703 = vmatmul.mubr.msk.f32.gmra.mrb[126].mxu1 %vm18516_vm13, %v4243_v61 }
 0x584   :  { %v9611_v41 = vpop.f32.mrb[64].mxu1 }
 0x585   :  { %v4515_v19 = vpop.f32.mrb[65].mxu1  ;;  %v4906_v32 = vadd.f32 %v9611_v41, %v13623_v36 }
 0x586   :  { %v4905_v2 = vadd.f32 %v13623_v36, %v4515_v19 }
 0x587   :  { %v4970_v24 = vmax.f32 %v4906_v32, 0.0  ;;  %v5181_v32 = vunpack.c.0.s8 %v5180_v0 }
 0x588   :  { %v9614_v11 = vpop.f32.mrb[66].mxu1  ;;  %v4969_v59 = vmax.f32 %v4905_v2, 0.0 }
 0x589   :  { %v4908_v18 = vadd.f32 %v9614_v11, %v13623_v36  ;;  %v4525_v51 = vpop.f32.mrb[67].mxu1 }
 0x58a   :  { %v4907_v38 = vadd.f32 %v13623_v36, %v4525_v51 }
 0x58b   :  { %v4972_v35 = vmax.f32 %v4908_v18, 0.0 }
 0x58c   :  { %v4971_v40 = vmax.f32 %v4907_v38, 0.0  ;;  %v9617_v6 = vpop.f32.mrb[68].mxu1 }
 0x58d   :  { %v5034_v50 = vmax.f32 %v4970_v24, %v4972_v35  ;;  %v4535_v13 = vpop.f32.mrb[69].mxu1  ;;  %v4910_v60 = vadd.f32 %v9617_v6, %v13623_v36  ;;  %v18517_v6 = vld [vmem:[#allocation20_spill] sm:$0xff] }
 0x58e   :  { %v5033_v26 = vmax.f32 %v4969_v59, %v4971_v40  ;;  %v4909_v9 = vadd.f32 %v13623_v36, %v4535_v13 }
 0x58f   :  { %5067 = vst.msk [vmem:[#allocation3 + $0x8] sm:$0xff] %vm5065_vm5, %v5034_v50  ;;  %v4974_v25 = vmax.f32 %v4910_v60, 0.0  ;;  %v13654_v50 = vsub.s32 %v5181_v32, %v18517_v6 }
 0x590   :  { %5066 = vst.msk [vmem:[#allocation3] sm:$0xff] %vm5065_vm5, %v5033_v26  ;;  %v9620_v15 = vpop.f32.mrb[70].mxu1  ;;  %v4973_v62 = vmax.f32 %v4909_v9, 0.0 }
 0x591   :  { %v4912_v47 = vadd.f32 %v9620_v15, %v13623_v36  ;;  %v4545_v54 = vpop.f32.mrb[71].mxu1  ;;  %18518 = vst [vmem:[#allocation10_spill] sm:$0xff] %v13654_v50 }
 0x592   :  { %v4911_v63 = vadd.f32 %v13623_v36, %v4545_v54 }
 0x593   :  { %v4976_v52 = vmax.f32 %v4912_v47, 0.0 }
 0x594   :  { %v4975_v16 = vmax.f32 %v4911_v63, 0.0  ;;  %v9623_v10 = vpop.f32.mrb[72].mxu1 }
 0x595   :  { %v5036_v58 = vmax.f32 %v4974_v25, %v4976_v52  ;;  %v4555_v1 = vpop.f32.mrb[73].mxu1  ;;  %v4914_v55 = vadd.f32 %v9623_v10, %v13623_v36 }
 0x596   :  { %v5035_v44 = vmax.f32 %v4973_v62, %v4975_v16  ;;  %v4913_v12 = vadd.f32 %v13623_v36, %v4555_v1  ;;  %v6380_v1 = vld [vmem:[%s17987_s5 + $0x818] sm:$0xff] }
 0x597   :  { %5069 = vst.msk [vmem:[#allocation3 + $0x18] sm:$0xff] %vm5065_vm5, %v5036_v58  ;;  %v4978_v28 = vmax.f32 %v4914_v55, 0.0  ;;  %v5098_v42 = vld [vmem:[#allocation3] ss:$2 sm:$0xff]  ;;  %v5130_v61 = vld [vmem:[#allocation3 + $0x1] ss:$2 sm:$0xff] }
 0x598   :  { %5068 = vst.msk [vmem:[#allocation3 + $0x10] sm:$0xff] %vm5065_vm5, %v5035_v44  ;;  %v9626_v14 = vpop.f32.mrb[74].mxu1  ;;  %v4977_v23 = vmax.f32 %v4913_v12, 0.0  ;;  %v5161_v51 = vmax.f32 %v5098_v42, %v5130_v61  ;;  %v6378_v58 = vld [vmem:[%s17987_s5 + $0x808] sm:$0xff]  ;;  %v6377_v44 = vld [vmem:[%s17987_s5 + $0x800] sm:$0xff] }
 0x599   :  { %v4916_v17 = vadd.f32 %v9626_v14, %v13623_v36  ;;  %v4565_v53 = vpop.f32.mrb[75].mxu1 }
 0x59a   :  { %v4915_v57 = vadd.f32 %v13623_v36, %v4565_v53  ;;  %v5243_v47 = vcombine.high %v5161_v51, %v5161_v51  ;;  %v13661_v52 = vrot.slane %v5161_v51, %v13654_v50  ;;  %v6379_v53 = vld [vmem:[%s17987_s5 + $0x810] sm:$0xff] }
 0x59b   :  { %v4980_v37 = vmax.f32 %v4916_v17, 0.0  ;;  %v10063_v17 = vpack.c.bf16 %v6380_v1, %v6378_v58  ;;  %v6396_v58 = vld [vmem:[%s17987_s5 + $0x898] sm:$0xff] }
 0x59c   :  { %v4979_v33 = vmax.f32 %v4915_v57, 0.0  ;;  %v9629_v21 = vpop.f32.mrb[76].mxu1  ;;  %v13675_v14 = vrot.slane %v5243_v47, %v13654_v50  ;;  %v6382_v57 = vld [vmem:[%s17987_s5 + $0x828] sm:$0xff]  ;;  %v5209_v61 = vrot.slane %v13661_v52, 1  ;;  %v6389_v47 = vld [vmem:[%s17987_s5 + $0x860] sm:$0xff] }
 0x59d   :  { %v5038_v20 = vmax.f32 %v4978_v28, %v4980_v37  ;;  %v4575_v48 = vpop.f32.mrb[77].mxu1  ;;  %v4918_v7 = vadd.f32 %v9629_v21, %v13623_v36  ;;  %v6384_v28 = vld [vmem:[%s17987_s5 + $0x838] sm:$0xff]  ;;  %10064 = vmatprep.subr.bf16.mxu0 %v10063_v17  ;;  %v6122_v17 = vld [vmem:[%s17987_s5 + $0x8] sm:$0xff] }
 0x59e   :  { %v5037_v22 = vmax.f32 %v4977_v23, %v4979_v33  ;;  %v4917_v39 = vadd.f32 %v13623_v36, %v4575_v48  ;;  %18519 = vst [vmem:[#allocation12_spill] sm:$0xff] %v13675_v14  ;;  %v10065_v33 = vpack.c.bf16 %v6379_v53, %v6377_v44  ;;  %v10067_v21 = vpack.c.bf16 %v6384_v28, %v6382_v57  ;;  %v6383_v48 = vld [vmem:[%s17987_s5 + $0x830] sm:$0xff]  ;;  %v6124_v53 = vld [vmem:[%s17987_s5 + $0x18] sm:$0xff] }
 0x59f   :  { %5071 = vst.msk [vmem:[#allocation3 + $0x28] sm:$0xff] %vm5065_vm5, %v5038_v20  ;;  %v4982_v46 = vmax.f32 %v4918_v7, 0.0  ;;  %v5100_v60 = vld [vmem:[#allocation3 + $0x10] ss:$2 sm:$0xff]  ;;  %v5132_v9 = vld [vmem:[#allocation3 + $0x11] ss:$2 sm:$0xff]  ;;  %v13707_v0 = vcombine.high %v13675_v14, %v13675_v14 }
 0x5a0   :  { %5070 = vst.msk [vmem:[#allocation3 + $0x20] sm:$0xff] %vm5065_vm5, %v5037_v22  ;;  %v9632_v5 = vpop.f32.mrb[78].mxu1  ;;  %v4981_v31 = vmax.f32 %v4917_v39, 0.0  ;;  %v5162_v62 = vmax.f32 %v5100_v60, %v5132_v9  ;;  %v6381_v20 = vld [vmem:[%s17987_s5 + $0x820] sm:$0xff]  ;;  %v6386_v22 = vld [vmem:[%s17987_s5 + $0x848] sm:$0xff]  ;;  %10066 = vmatpush1.bf16.msra.mxu0 %v10065_v33 }
 0x5a1   :  { %v4920_v29 = vadd.f32 %v9632_v5, %v13623_v36  ;;  %v4585_v8 = vpop.f32.mrb[79].mxu1  ;;  %18522 = vst [vmem:[#allocation16_spill] sm:$0xff] %v13707_v0  ;;  %10068 = vmatprep.subr.bf16.mxu0 %v10067_v21  ;;  %v5290_v60 = vrot.slane %v13707_v0, 1 }
 0x5a2   :  { %v4919_v56 = vadd.f32 %v13623_v36, %v4585_v8  ;;  %v13697_v8 = vcombine.high %v13661_v52, %v13661_v52 }
 0x5a3   :  { %v4984_v45 = vmax.f32 %v4920_v29, 0.0 }
 0x5a4   :  { %v4983_v49 = vmax.f32 %v4919_v56, 0.0  ;;  %v9635_v4 = vpop.f32.mrb[80].mxu1  ;;  %18520 = vst [vmem:[#allocation14_spill] sm:$0xff] %v13697_v8  ;;  %v13700_v56 = vrot.slane %v5162_v62, %v13654_v50  ;;  %v5232_v51 = vrot.slane %v13697_v8, 1 }
 0x5a5   :  { %v5040_v43 = vmax.f32 %v4982_v46, %v4984_v45  ;;  %v4595_v34 = vpop.f32.mrb[81].mxu1  ;;  %v4922_v3 = vadd.f32 %v9635_v4, %v13623_v36  ;;  %v6388_v46 = vld [vmem:[%s17987_s5 + $0x858] sm:$0xff]  ;;  %v10069_v4 = vpack.c.bf16 %v6383_v48, %v6381_v20  ;;  %v6121_v20 = vld [vmem:[%s17987_s5] sm:$0xff] }
 0x5a6   :  { %v5039_v27 = vmax.f32 %v4981_v31, %v4983_v49  ;;  %v4921_v41 = vadd.f32 %v13623_v36, %v4595_v34  ;;  %18521 = vst [vmem:[#allocation11_spill] sm:$0xff] %v13700_v56  ;;  %v5359_v49 = vcombine.high %v5162_v62, %v5162_v62  ;;  %v6385_v34 = vld [vmem:[%s17987_s5 + $0x840] sm:$0xff]  ;;  %v5326_v9 = vrot.slane %v13700_v56, 1 }
 0x5a7   :  { %5073 = vst.msk [vmem:[#allocation3 + $0x38] sm:$0xff] %vm5065_vm5, %v5040_v43  ;;  %v4986_v38 = vmax.f32 %v4922_v3, 0.0  ;;  %v5102_v12 = vld [vmem:[#allocation3 + $0x20] ss:$2 sm:$0xff]  ;;  %v5134_v29 = vld [vmem:[#allocation3 + $0x21] ss:$2 sm:$0xff]  ;;  %v10071_v43 = vpack.c.bf16 %v6388_v46, %v6386_v22  ;;  %10070 = vmatpush1.bf16.msra.mxu0 %v10069_v4 }
 0x5a8   :  { %5072 = vst.msk [vmem:[#allocation3 + $0x30] sm:$0xff] %vm5065_vm5, %v5039_v27  ;;  %v9638_v19 = vpop.f32.mrb[82].mxu1  ;;  %v4985_v35 = vmax.f32 %v4921_v41, 0.0  ;;  %v6387_v27 = vld [vmem:[%s17987_s5 + $0x850] sm:$0xff]  ;;  %v5163_v42 = vmax.f32 %v5102_v12, %v5134_v29  ;;  %v6390_v41 = vld [vmem:[%s17987_s5 + $0x868] sm:$0xff] }
 0x5a9   :  { %v4924_v2 = vadd.f32 %v9638_v19, %v13623_v36  ;;  %v4605_v11 = vpop.f32.mrb[83].mxu1  ;;  %v6392_v19 = vld [vmem:[%s17987_s5 + $0x878] sm:$0xff]  ;;  %10072 = vmatprep.subr.bf16.mxu0 %v10071_v43  ;;  %v6395_v29 = vld [vmem:[%s17987_s5 + $0x890] sm:$0xff]  ;;  %v6398_v4 = vld [vmem:[%s17987_s5 + $0x8a8] sm:$0xff]  ;;  %v9807_v43 = vpack.c.bf16 %v6124_v53, %v6122_v17 }
 0x5aa   :  { %v4923_v18 = vadd.f32 %v13623_v36, %v4605_v11  ;;  %v5475_v62 = vcombine.high %v5163_v42, %v5163_v42  ;;  %v13768_v22 = vrot.slane %v5163_v42, %v13654_v50  ;;  %v6123_v46 = vld [vmem:[%s17987_s5 + $0x10] sm:$0xff] }
 0x5ab   :  { %v4988_v24 = vmax.f32 %v4924_v2, 0.0  ;;  %9808 = vmatprep.subr.bf16.mxu1 %v9807_v43  ;;  %v6134_v43 = vld [vmem:[%s17987_s5 + $0x68] sm:$0xff] }
 0x5ac   :  { %v4987_v59 = vmax.f32 %v4923_v18, 0.0  ;;  %v9641_v40 = vpop.f32.mrb[84].mxu1 }
 0x5ad   :  { %v5042_v13 = vmax.f32 %v4986_v38, %v4988_v24  ;;  %v4615_v26 = vpop.f32.mrb[85].mxu1  ;;  %v4926_v54 = vadd.f32 %v9641_v40, %v13623_v36  ;;  %v13729_v38 = vcombine.high %v13700_v56, %v13700_v56  ;;  %v13734_v40 = vrot.slane %v5359_v49, %v13654_v50 }
 0x5ae   :  { %v5041_v15 = vmax.f32 %v4985_v35, %v4987_v59  ;;  %v4925_v63 = vadd.f32 %v13623_v36, %v4615_v26  ;;  %v5268_v59 = vrot.slane %v13675_v14, 1 }
 0x5af   :  { %5075 = vst.msk [vmem:[#allocation3 + $0x48] sm:$0xff] %vm5065_vm5, %v5042_v13  ;;  %v4990_v37 = vmax.f32 %v4926_v54, 0.0  ;;  %v5104_v11 = vld [vmem:[#allocation3 + $0x30] ss:$2 sm:$0xff]  ;;  %v5136_v18 = vld [vmem:[#allocation3 + $0x31] ss:$2 sm:$0xff]  ;;  %v10073_v13 = vpack.c.bf16 %v6387_v27, %v6385_v34  ;;  %v13762_v33 = vcombine.high %v13734_v40, %v13734_v40 }
 0x5b0   :  { %5074 = vst.msk [vmem:[#allocation3 + $0x40] sm:$0xff] %vm5065_vm5, %v5041_v15  ;;  %v9644_v25 = vpop.f32.mrb[86].mxu1  ;;  %v4989_v7 = vmax.f32 %v4925_v63, 0.0  ;;  %18523 = vst [vmem:[#allocation13_spill] sm:$0xff] %v13729_v38  ;;  %v10075_v15 = vpack.c.bf16 %v6392_v19, %v6390_v41  ;;  %v6391_v54 = vld [vmem:[%s17987_s5 + $0x870] sm:$0xff]  ;;  %v5348_v12 = vrot.slane %v13729_v38, 1  ;;  %v9809_v19 = vpack.c.bf16 %v6123_v46, %v6121_v20 }
 0x5b1   :  { %v4928_v16 = vadd.f32 %v9644_v25, %v13623_v36  ;;  %v4625_v10 = vpop.f32.mrb[87].mxu1  ;;  %18524 = vst [vmem:[#allocation17_spill] sm:$0xff] %v13734_v40  ;;  %18525 = vst [vmem:[#allocation15_spill] sm:$0xff] %v13762_v33  ;;  %10074 = vmatpush1.bf16.msra.mxu0 %v10073_v13  ;;  %v10077_v21 = vpack.c.bf16 %v6391_v54, %v6389_v47  ;;  %v6126_v34 = vld [vmem:[%s17987_s5 + $0x28] sm:$0xff]  ;;  %v5442_v54 = vrot.slane %v13768_v22, 1 }
 0x5b2   :  { %v4927_v55 = vadd.f32 %v13623_v36, %v4625_v10  ;;  %v6394_v10 = vld [vmem:[%s17987_s5 + $0x888] sm:$0xff]  ;;  %10076 = vmatprep.subr.bf16.mxu0 %v10075_v15  ;;  %v6127_v15 = vld [vmem:[%s17987_s5 + $0x30] sm:$0xff]  ;;  %9810 = vmatpush1.bf16.msra.mxu1 %v9809_v19  ;;  %v6401_v19 = vld [vmem:[%s17987_s5 + $0x8c0] sm:$0xff] }
 0x5b3   :  { %v4992_v23 = vmax.f32 %v4928_v16, 0.0  ;;  %v13745_v16 = vmax.f32 %v5104_v11, %v5136_v18 }
 0x5b4   :  { %v4991_v39 = vmax.f32 %v4927_v55, 0.0  ;;  %v9647_v5 = vpop.f32.mrb[88].mxu1 }
 0x5b5   :  { %v5044_v45 = vmax.f32 %v4990_v37, %v4992_v23  ;;  %v4635_v31 = vpop.f32.mrb[89].mxu1  ;;  %v4930_v3 = vadd.f32 %v9647_v5, %v13623_v36  ;;  %v6393_v5 = vld [vmem:[%s17987_s5 + $0x880] sm:$0xff]  ;;  %v13787_v49 = vrot.slane %v13745_v16, %v13654_v50  ;;  %v5591_v42 = vcombine.high %v13745_v16, %v13745_v16  ;;  %10078 = vmatpush1.bf16.msra.mxu0 %v10077_v21  ;;  %v6130_v16 = vld [vmem:[%s17987_s5 + $0x48] sm:$0xff] }
 0x5b6   :  { %v5043_v30 = vmax.f32 %v4989_v7, %v4991_v39  ;;  %v4929_v32 = vadd.f32 %v13623_v36, %v4635_v31  ;;  %v10079_v39 = vpack.c.bf16 %v6396_v58, %v6394_v10  ;;  %v13783_v31 = vrot.slane %v5475_v62, %v13654_v50  ;;  %v6399_v62 = vld [vmem:[%s17987_s5 + $0x8b0] sm:$0xff]  ;;  %v6132_v10 = vld [vmem:[%s17987_s5 + $0x58] sm:$0xff] }
 0x5b7   :  { %5077 = vst.msk [vmem:[#allocation3 + $0x58] sm:$0xff] %vm5065_vm5, %v5044_v45  ;;  %v4994_v63 = vmax.f32 %v4930_v3, 0.0  ;;  %v5106_v37 = vld [vmem:[#allocation3 + $0x40] ss:$2 sm:$0xff]  ;;  %v5138_v23 = vld [vmem:[#allocation3 + $0x41] ss:$2 sm:$0xff]  ;;  %v9815_v53 = vpack.c.bf16 %v6132_v10, %v6130_v16  ;;  %v13849_v20 = vrot.slane %v5591_v42, %v13654_v50  ;;  %v13856_v46 = vcombine.high %v13787_v49, %v13787_v49 }
 0x5b8   :  { %5076 = vst.msk [vmem:[#allocation3 + $0x50] sm:$0xff] %vm5065_vm5, %v5043_v30  ;;  %v9650_v2 = vpop.f32.mrb[90].mxu1  ;;  %v4993_v1 = vmax.f32 %v4929_v32, 0.0  ;;  %v6400_v30 = vld [vmem:[%s17987_s5 + $0x8b8] sm:$0xff]  ;;  %v13802_v41 = vmax.f32 %v5106_v37, %v5138_v23  ;;  %10080 = vmatprep.subr.bf16.mxu0 %v10079_v39  ;;  %v13846_v21 = vcombine.high %v13783_v31, %v13783_v31  ;;  %v6131_v39 = vld [vmem:[%s17987_s5 + $0x50] sm:$0xff] }
 0x5b9   :  { %v4932_v24 = vadd.f32 %v9650_v2, %v13623_v36  ;;  %v4645_v35 = vpop.f32.mrb[91].mxu1  ;;  %v6128_v32 = vld [vmem:[%s17987_s5 + $0x38] sm:$0xff]  ;;  %v13898_v10 = vcombine.high %v13849_v20, %v13849_v20 }
 0x5ba   :  { %v4931_v26 = vadd.f32 %v13623_v36, %v4645_v35  ;;  %v13812_v35 = vld [vmem:[%s17987_s5 + $0x8a0] sm:$0xff]  ;;  %v9811_v13 = vpack.c.bf16 %v6128_v32, %v6126_v34  ;;  %v6136_v34 = vld [vmem:[%s17987_s5 + $0x78] sm:$0xff]  ;;  %v6403_v32 = vld [vmem:[%s17987_s5 + $0x8d0] sm:$0xff]  ;;  %v18545_v0 = vrot.slane %v13846_v21, 1 }
 0x5bb   :  { %v4996_v25 = vmax.f32 %v4932_v24, 0.0  ;;  %v10081_v24 = vpack.c.bf16 %v6395_v29, %v6393_v5 }
 0x5bc   :  { %v4995_v44 = vmax.f32 %v4931_v26, 0.0  ;;  %v9653_v55 = vpop.f32.mrb[92].mxu1  ;;  %v6125_v26 = vld [vmem:[%s17987_s5 + $0x20] sm:$0xff]  ;;  %9812 = vmatprep.subr.bf16.mxu1 %v9811_v13  ;;  %v13882_v13 = vrot.slane %v13802_v41, %v13654_v50 }
 0x5bd   :  { %v5046_v57 = vmax.f32 %v4994_v63, %v4996_v25  ;;  %v4655_v28 = vpop.f32.mrb[93].mxu1  ;;  %v4934_v45 = vadd.f32 %v9653_v55, %v13623_v36  ;;  %v13824_v63 = vcombine.high %v13768_v22, %v13768_v22  ;;  %v10083_v25 = vpack.c.bf16 %v6400_v30, %v6398_v4  ;;  %v6404_v55 = vld [vmem:[%s17987_s5 + $0x8d8] sm:$0xff]  ;;  %10082 = vmatpush1.bf16.msra.mxu0 %v10081_v24 }
 0x5be   :  { %v5045_v48 = vmax.f32 %v4993_v1, %v4995_v44  ;;  %v4933_v27 = vadd.f32 %v13623_v36, %v4655_v28  ;;  %v6402_v44 = vld [vmem:[%s17987_s5 + $0x8c8] sm:$0xff]  ;;  %v9813_v17 = vpack.c.bf16 %v6127_v15, %v6125_v26  ;;  %v10085_v30 = vpack.c.bf16 %v6399_v62, %v13812_v35  ;;  %v6408_v26 = vld [vmem:[%s17987_s5 + $0x8f8] sm:$0xff] }
 0x5bf   :  { %5079 = vst.msk [vmem:[#allocation3 + $0x68] sm:$0xff] %vm5065_vm5, %v5046_v57  ;;  %v4998_v58 = vmax.f32 %v4934_v45, 0.0  ;;  %v6129_v57 = vld [vmem:[%s17987_s5 + $0x40] sm:$0xff]  ;;  %v5707_v45 = vcombine.high %v13802_v41, %v13802_v41  ;;  %v5140_v4 = vld [vmem:[#allocation3 + $0x51] ss:$2 sm:$0xff]  ;;  %10084 = vmatprep.subr.bf16.mxu0 %v10083_v25  ;;  %v10087_v42 = vpack.c.bf16 %v6404_v55, %v6402_v44  ;;  %v9819_v15 = vpack.c.bf16 %v6136_v34, %v6134_v43  ;;  %v6410_v34 = vld [vmem:[%s17987_s5 + $0x908] sm:$0xff] }
 0x5c0   :  { %5078 = vst.msk [vmem:[#allocation3 + $0x60] sm:$0xff] %vm5065_vm5, %v5045_v48  ;;  %v9656_v3 = vpop.f32.mrb[94].mxu1  ;;  %v4997_v28 = vmax.f32 %v4933_v27, 0.0  ;;  %v5108_v48 = vld [vmem:[#allocation3 + $0x50] ss:$2 sm:$0xff]  ;;  %9814 = vmatpush1.bf16.msra.mxu1 %v9813_v17  ;;  %v13916_v43 = vcombine.high %v13882_v13, %v13882_v13 }
 0x5c1   :  { %v4936_v2 = vadd.f32 %v9656_v3, %v13623_v36  ;;  %v4665_v11 = vpop.f32.mrb[95].mxu1  ;;  %9816 = vmatprep.subr.bf16.mxu1 %v9815_v53  ;;  %v6135_v25 = vld [vmem:[%s17987_s5 + $0x70] sm:$0xff]  ;;  %v13903_v17 = vrot.slane %v5707_v45, %v13654_v50  ;;  %10086 = vmatpush1.bf16.msra.mxu0 %v10085_v30  ;;  %v10089_v53 = vpack.c.bf16 %v6403_v32, %v6401_v19  ;;  %v6417_v30 = vld [vmem:[%s17987_s5 + $0x940] sm:$0xff] }
 0x5c2   :  { %v4935_v47 = vadd.f32 %v13623_v36, %v4665_v11  ;;  %v9817_v11 = vpack.c.bf16 %v6131_v39, %v6129_v57  ;;  %v6405_v57 = vld [vmem:[%s17987_s5 + $0x8e0] sm:$0xff]  ;;  %10088 = vmatprep.subr.bf16.mxu0 %v10087_v42 }
 0x5c3   :  { %v5000_v1 = vmax.f32 %v4936_v2, 0.0  ;;  %v6406_v2 = vld [vmem:[%s17987_s5 + $0x8e8] sm:$0xff] }
 0x5c4   :  { %v4999_v37 = vmax.f32 %v4935_v47, 0.0  ;;  %v9659_v23 = vpop.f32.mrb[96].mxu1  ;;  %v6133_v47 = vld [vmem:[%s17987_s5 + $0x60] sm:$0xff]  ;;  %v10091_v39 = vpack.c.bf16 %v6408_v26, %v6406_v2  ;;  %9818 = vmatpush1.bf16.msra.mxu1 %v9817_v11 }
 0x5c5   :  { %v5048_v5 = vmax.f32 %v4998_v58, %v5000_v1  ;;  %v4675_v29 = vpop.f32.mrb[97].mxu1  ;;  %v4938_v24 = vadd.f32 %v9659_v23, %v13623_v36  ;;  %v5166_v58 = vmax.f32 %v5108_v48, %v5140_v4  ;;  %9820 = vmatprep.subr.bf16.mxu1 %v9819_v15  ;;  %10090 = vmatpush1.bf16.msra.mxu0 %v10089_v53  ;;  %v6411_v15 = vld [vmem:[%s17987_s5 + $0x910] sm:$0xff]  ;;  %v6414_v53 = vld [vmem:[%s17987_s5 + $0x928] sm:$0xff] }
 0x5c6   :  { %v5047_v27 = vmax.f32 %v4997_v28, %v4999_v37  ;;  %v4937_v62 = vadd.f32 %v13623_v36, %v4675_v29  ;;  %v9821_v29 = vpack.c.bf16 %v6135_v25, %v6133_v47  ;;  %10092 = vmatprep.subr.bf16.mxu0 %v10091_v39 }
 0x5c7   :  { %5081 = vst.msk [vmem:[#allocation3 + $0x78] sm:$0xff] %vm5065_vm5, %v5048_v5  ;;  %v5110_v23 = vld [vmem:[#allocation3 + $0x60] ss:$2 sm:$0xff]  ;;  %v5142_v48 = vld [vmem:[#allocation3 + $0x61] ss:$2 sm:$0xff]  ;;  %v6407_v5 = vld [vmem:[%s17987_s5 + $0x8f0] sm:$0xff]  ;;  %v5823_v11 = vcombine.high %v5166_v58, %v5166_v58  ;;  %v13926_v47 = vrot.slane %v5166_v58, %v13654_v50 }
 0x5c8   :  { %5080 = vst.msk [vmem:[#allocation3 + $0x70] sm:$0xff] %vm5065_vm5, %v5047_v27  ;;  %v9662_v41 = vpop.f32.mrb[98].mxu1  ;;  %v5002_v45 = vmax.f32 %v4938_v24, 0.0  ;;  %v6412_v27 = vld [vmem:[%s17987_s5 + $0x918] sm:$0xff]  ;;  %v5001_v42 = vmax.f32 %v4937_v62, 0.0  ;;  %v5167_v25 = vmax.f32 %v5110_v23, %v5142_v48  ;;  %9822 = vmatpush1.bf16.msra.mxu1 %v9821_v29 }
 0x5c9   :  { %v4940_v1 = vadd.f32 %v9662_v41, %v13623_v36  ;;  %v4685_v44 = vpop.f32.mrb[99].mxu1  ;;  %18526 = vst [vmem:[#allocation26_spill] sm:$0xff] %v13926_v47  ;;  %v10093_v41 = vpack.c.bf16 %v6407_v5, %v6405_v57  ;;  %v10095_v58 = vpack.c.bf16 %v6412_v27, %v6410_v34  ;;  %v13952_v29 = vrot.slane %v5823_v11, %v13654_v50 }
 0x5ca   :  { %v4939_v28 = vadd.f32 %v13623_v36, %v4685_v44  ;;  %v13968_v11 = vrot.slane %v5167_v25, %v13654_v50 }
 0x5cb   :  { %v5004_v4 = vmax.f32 %v4940_v1, 0.0  ;;  %v6409_v1 = vld [vmem:[%s17987_s5 + $0x900] sm:$0xff]  ;;  %18527 = vst [vmem:[#allocation19_spill] sm:$0xff] %v13952_v29  ;;  %10094 = vmatpush1.bf16.msra.mxu0 %v10093_v41 }
 0x5cc   :  { %v5003_v19 = vmax.f32 %v4939_v28, 0.0  ;;  %v9665_v32 = vpop.f32.mrb[100].mxu1  ;;  %v13937_v28 = vcombine.high %v13903_v17, %v13903_v17  ;;  %v10097_v27 = vpack.c.bf16 %v6411_v15, %v6409_v1  ;;  %18528 = vst [vmem:[#allocation22_spill] sm:$0xff] %v13968_v11  ;;  %v5939_v1 = vcombine.high %v5167_v25, %v5167_v25  ;;  %v6418_v15 = vld [vmem:[%s17987_s5 + $0x948] sm:$0xff]  ;;  %10096 = vmatprep.subr.bf16.mxu0 %v10095_v58 }
 0x5cd   :  { %v5050_v24 = vmax.f32 %v5002_v45, %v5004_v4  ;;  %v4695_v26 = vpop.f32.mrb[101].mxu1  ;;  %v4942_v57 = vadd.f32 %v9665_v32, %v13623_v36  ;;  %v6416_v45 = vld [vmem:[%s17987_s5 + $0x938] sm:$0xff]  ;;  %v13988_v58 = vcombine.high %v13952_v29, %v13952_v29 }
 0x5ce   :  { %v5049_v62 = vmax.f32 %v5001_v42, %v5003_v19  ;;  %v4941_v39 = vadd.f32 %v13623_v36, %v4695_v26  ;;  %v13957_v42 = vld [vmem:[%s17987_s5 + $0x920] sm:$0xff]  ;;  %v6415_v19 = vld [vmem:[%s17987_s5 + $0x930] sm:$0xff]  ;;  %v13965_v26 = vcombine.high %v13926_v47, %v13926_v47  ;;  %v10099_v18 = vpack.c.bf16 %v6416_v45, %v6414_v53 }
 0x5cf   :  { %5083 = vst.msk [vmem:[#allocation3 + $0x88] sm:$0xff] %vm5065_vm5, %v5050_v24  ;;  %v5112_v48 = vld [vmem:[#allocation3 + $0x70] ss:$2 sm:$0xff]  ;;  %v5144_v5 = vld [vmem:[#allocation3 + $0x71] ss:$2 sm:$0xff]  ;;  %v5006_v44 = vmax.f32 %v4942_v57, 0.0  ;;  %v10101_v41 = vpack.c.bf16 %v6415_v19, %v13957_v42  ;;  %v13999_v42 = vcombine.high %v13968_v11, %v13968_v11  ;;  %v14002_v19 = vrot.slane %v5939_v1, %v13654_v50  ;;  %10098 = vmatpush1.bf16.msra.mxu0 %v10097_v27 }
 0x5d0   :  { %5082 = vst.msk [vmem:[#allocation3 + $0x80] sm:$0xff] %vm5065_vm5, %v5049_v62  ;;  %v9668_v4 = vpop.f32.mrb[102].mxu1  ;;  %v6420_v62 = vld [vmem:[%s17987_s5 + $0x958] sm:$0xff]  ;;  %v5168_v23 = vmax.f32 %v5112_v48, %v5144_v5  ;;  %v5005_v37 = vmax.f32 %v4941_v39, 0.0  ;;  %18529 = vst [vmem:[#allocation24_spill] sm:$0xff] %v13988_v58  ;;  %v6422_v57 = vld [vmem:[%s17987_s5 + $0x968] sm:$0xff]  ;;  %10100 = vmatprep.subr.bf16.mxu0 %v10099_v18 }
 0x5d1   :  { %v4944_v32 = vadd.f32 %v9668_v4, %v13623_v36  ;;  %v4705_v24 = vpop.f32.mrb[103].mxu1  ;;  %v10103_v53 = vpack.c.bf16 %v6420_v62, %v6418_v15  ;;  %v6424_v48 = vld [vmem:[%s17987_s5 + $0x978] sm:$0xff]  ;;  %18530 = vst [vmem:[#allocation23_spill] sm:$0xff] %v13999_v42  ;;  %18531 = vst [vmem:[#allocation8_spill] sm:$0xff] %v14002_v19 }
 0x5d2   :  { %v4943_v4 = vadd.f32 %v13623_v36, %v4705_v24  ;;  %v6419_v24 = vld [vmem:[%s17987_s5 + $0x950] sm:$0xff]  ;;  %v6055_v62 = vcombine.high %v5168_v23, %v5168_v23  ;;  %v14019_v16 = vrot.slane %v5168_v23, %v13654_v50  ;;  %v10107_v35 = vpack.c.bf16 %v6424_v48, %v6422_v57 }
 0x5d3   :  { %v5008_v2 = vmax.f32 %v4944_v32, 0.0  ;;  %v14007_v32 = vld [vmem:[%s17987_s5 + $0x960] sm:$0xff]  ;;  %v14031_v57 = vcombine.high %v14002_v19, %v14002_v19  ;;  %10102 = vmatpush1.bf16.msra.mxu0 %v10101_v41 }
 0x5d4   :  { %v5007_v55 = vmax.f32 %v4943_v4, 0.0  ;;  %v9671_v34 = vpop.f32.mrb[104].mxu1  ;;  %v10105_v4 = vpack.c.bf16 %v6419_v24, %v6417_v30  ;;  %10104 = vmatprep.subr.bf16.mxu0 %v10103_v53  ;;  %v14040_v23 = vcombine.high %v14019_v16, %v14019_v16 }
 0x5d5   :  { %v5052_v5 = vmax.f32 %v5006_v44, %v5008_v2  ;;  %v4715_v45 = vpop.f32.mrb[105].mxu1  ;;  %v14012_v2 = vld [vmem:[%s17987_s5 + $0x970] sm:$0xff]  ;;  %v4946_v27 = vadd.f32 %v9671_v34, %v13623_v36  ;;  %18532 = vst [vmem:[#allocation21_spill] sm:$0xff] %v14031_v57 }
 0x5d6   :  { %v5051_v44 = vmax.f32 %v5005_v37, %v5007_v55  ;;  %v4945_v1 = vadd.f32 %v13623_v36, %v4715_v45  ;;  %v10109_v34 = vpack.c.bf16 %v14012_v2, %v14007_v32 }
 0x5d7   :  { %5085 = vst.msk [vmem:[#allocation3 + $0x98] sm:$0xff] %vm5065_vm5, %v5052_v5  ;;  %v5114_v39 = vld [vmem:[#allocation3 + $0x80] ss:$2 sm:$0xff]  ;;  %v5146_v25 = vld [vmem:[#allocation3 + $0x81] ss:$2 sm:$0xff]  ;;  %v5010_v32 = vmax.f32 %v4946_v27, 0.0  ;;  %10106 = vmatpush1.bf16.msra.mxu0 %v10105_v4 }
 0x5d8   :  { %5084 = vst.msk [vmem:[#allocation3 + $0x90] sm:$0xff] %vm5065_vm5, %v5051_v44  ;;  %v9674_v55 = vpop.f32.mrb[106].mxu1  ;;  %v5169_v18 = vmax.f32 %v5114_v39, %v5146_v25  ;;  %v14036_v44 = vrot.slane %v6055_v62, %v13654_v50  ;;  %v5009_v2 = vmax.f32 %v4945_v1, 0.0  ;;  %10108 = vmatprep.subr.bf16.mxu0 %v10107_v35 }
 0x5d9   :  { %v4948_v24 = vadd.f32 %v9674_v55, %v13623_v36  ;;  %v4725_v5 = vpop.f32.mrb[107].mxu1 }
 0x5da   :  { %v4947_v48 = vadd.f32 %v13623_v36, %v4725_v5  ;;  %v5192_v25 = vrot.slane %v5169_v18, %v13654_v50  ;;  %v5251_v39 = vcombine.high %v5169_v18, %v5169_v18  ;;  %18533 = vst [vmem:[#allocation18_spill] sm:$0xff] %v14036_v44 }
 0x5db   :  { %v5012_v55 = vmax.f32 %v4948_v24, 0.0  ;;  %10110 = vmatpush1.bf16.msra.mxu0 %v10109_v34 }
 0x5dc   :  { %v5011_v45 = vmax.f32 %v4947_v48, 0.0  ;;  %v9677_v30 = vpop.f32.mrb[108].mxu1  ;;  %v5212_v41 = vsel %vm5198_vm14, %v5192_v25, %v5209_v61  ;;  %v14045_v5 = vcombine.high %v5192_v25, %v5192_v25  ;;  %v14048_v18 = vrot.slane %v5251_v39, %v13654_v50 }
 0x5dd   :  { %v5054_v62 = vmax.f32 %v5010_v32, %v5012_v55  ;;  %v4735_v53 = vpop.f32.mrb[109].mxu1  ;;  %v5213_v27 = vsel %vm5200_vm15, %v5192_v25, %v5212_v41  ;;  %v4950_v37 = vadd.f32 %v9677_v30, %v13623_v36  ;;  %v14060_v39 = vcombine.high %v14036_v44, %v14036_v44 }
 0x5de   :  { %18534 = vst [vmem:[#allocation25_spill] sm:$0xff] %v14048_v18  ;;  %v5053_v48 = vmax.f32 %v5009_v2, %v5011_v45  ;;  %v5235_v61 = vsel %vm5198_vm14, %v14045_v5, %v5232_v51  ;;  %v5271_v4 = vsel %vm5198_vm14, %v14048_v18, %v5268_v59  ;;  %v4949_v51 = vadd.f32 %v13623_v36, %v4735_v53 }
 0x5df   :  { %18535 = vst [vmem:[#allocation9_spill] sm:$0xff] %v14060_v39  ;;  %5087 = vst.msk [vmem:[#allocation3 + $0xa8] sm:$0xff] %vm5065_vm5, %v5054_v62  ;;  %v5116_v45 = vld [vmem:[#allocation3 + $0x90] ss:$2 sm:$0xff]  ;;  %v5148_v32 = vld [vmem:[#allocation3 + $0x91] ss:$2 sm:$0xff]  ;;  %v5214_v35 = vsel %vm5202_vm0, %v5192_v25, %v5213_v27  ;;  %v14074_v41 = vcombine.high %v14048_v18, %v14048_v18  ;;  %v5236_v30 = vsel %vm5200_vm15, %v14045_v5, %v5235_v61 }
 0x5e0   :  { %5086 = vst.msk [vmem:[#allocation3 + $0xa0] sm:$0xff] %vm5065_vm5, %v5053_v48  ;;  %v9680_v55 = vpop.f32.mrb[110].mxu1  ;;  %v14076_v62 = vrot.slane %v5192_v25, 7  ;;  %v5272_v48 = vsel %vm5200_vm15, %v14048_v18, %v5271_v4  ;;  %v5170_v2 = vmax.f32 %v5116_v45, %v5148_v32  ;;  %v5014_v53 = vmax.f32 %v4950_v37, 0.0 }
 0x5e1   :  { %18536 = vst [vmem:[#allocation27_spill] sm:$0xff] %v14074_v41  ;;  %v4952_v59 = vadd.f32 %v9680_v55, %v13623_v36  ;;  %v4745_v24 = vpop.f32.mrb[111].mxu1  ;;  %v5293_v1 = vsel %vm5198_vm14, %v14074_v41, %v5290_v60  ;;  %v14090_v3 = vsel %vm5204_vm1, %v5192_v25, %v5214_v35  ;;  %v5013_v37 = vmax.f32 %v4949_v51, 0.0  ;;  %v6138_v51 = vld [vmem:[%s17987_s5 + $0x88] sm:$0xff]  ;;  %v6140_v35 = vld [vmem:[%s17987_s5 + $0x98] sm:$0xff] }
 0x5e2   :  { %18537 = vst [vmem:[#allocation28_spill] sm:$0xff] %v14076_v62  ;;  %v4951_v27 = vadd.f32 %v13623_v36, %v4745_v24  ;;  %v5294_v61 = vsel %vm5200_vm15, %v14074_v41, %v5293_v1  ;;  %v14095_v4 = vrot.slane %v5170_v2, %v13654_v50  ;;  %v5237_v45 = vsel %vm5202_vm0, %v14045_v5, %v5236_v30 }
 0x5e3   :  { %v5016_v55 = vmax.f32 %v4952_v59, 0.0  ;;  %v5273_v60 = vsel %vm5202_vm0, %v14048_v18, %v5272_v48  ;;  %v5367_v1 = vcombine.high %v5170_v2, %v5170_v2  ;;  %v5199_v30 = vsel %vm5198_vm14, %v14076_v62, %v13661_v52 }
 0x5e4   :  { %18538 = vst [vmem:[#allocation29_spill] sm:$0xff] %v14095_v4  ;;  %v5015_v34 = vmax.f32 %v4951_v27, 0.0  ;;  %v9683_v24 = vpop.f32.mrb[112].mxu1  ;;  %v5329_v25 = vsel %vm5198_vm14, %v14095_v4, %v5326_v9  ;;  %v14120_v2 = vcombine.high %v14095_v4, %v14095_v4  ;;  %v14127_v52 = vsel %vm5204_vm1, %v14045_v5, %v5237_v45 }
 0x5e5   :  { %v5056_v32 = vmax.f32 %v5014_v53, %v5016_v55  ;;  %v4755_v59 = vpop.f32.mrb[113].mxu1  ;;  %v5295_v53 = vsel %vm5202_vm0, %v14074_v41, %v5294_v61  ;;  %v5330_v9 = vsel %vm5200_vm15, %v14095_v4, %v5329_v25  ;;  %v4954_v27 = vadd.f32 %v9683_v24, %v13623_v36 }
 0x5e6   :  { %v5055_v48 = vmax.f32 %v5013_v37, %v5015_v34  ;;  %18539 = vst [vmem:[#allocation30_spill] sm:$0xff] %v14120_v2  ;;  %v4953_v55 = vadd.f32 %v13623_v36, %v4755_v59  ;;  %v9823_v61 = vpack.c.bf16 %v6140_v35, %v6138_v51  ;;  %v14132_v25 = vsel %vm5204_vm1, %v14048_v18, %v5273_v60 }
 0x5e7   :  { %5089 = vst.msk [vmem:[#allocation3 + $0xb8] sm:$0xff] %vm5065_vm5, %v5056_v32  ;;  %v5118_v15 = vld [vmem:[#allocation3 + $0xa0] ss:$2 sm:$0xff]  ;;  %v5150_v7 = vld [vmem:[#allocation3 + $0xa1] ss:$2 sm:$0xff]  ;;  %v5331_v24 = vsel %vm5202_vm0, %v14095_v4, %v5330_v9  ;;  %v14138_v32 = vsel %vm5200_vm15, %v14076_v62, %v5199_v30  ;;  %v14143_v51 = vsel %vm5204_vm1, %v14074_v41, %v5295_v53  ;;  %v5018_v53 = vmax.f32 %v4954_v27, 0.0 }
 0x5e8   :  { %5088 = vst.msk [vmem:[#allocation3 + $0xb0] sm:$0xff] %vm5065_vm5, %v5055_v48  ;;  %v9686_v37 = vpop.f32.mrb[114].mxu1  ;;  %v5171_v34 = vmax.f32 %v5118_v15, %v5150_v7  ;;  %18540 = vst [vmem:[#allocation31_spill] sm:$0xff] %v14138_v32  ;;  %v14146_v7 = vrot.slane %v5367_v1, %v13654_v50  ;;  %9824 = vmatprep.subr.bf16.mxu1 %v9823_v61  ;;  %v14149_v15 = vrot.slane %v14045_v5, 7  ;;  %v5017_v9 = vmax.f32 %v4953_v55, 0.0 }
 0x5e9   :  { %v4956_v59 = vadd.f32 %v9686_v37, %v13623_v36  ;;  %v4765_v45 = vpop.f32.mrb[115].mxu1  ;;  %v5351_v48 = vsel %vm5198_vm14, %v14120_v2, %v5348_v12  ;;  %v14161_v1 = vsel %vm5204_vm1, %v14095_v4, %v5331_v24  ;;  %v18549_v18 = vrot.slane %v13898_v10, 1 }
 0x5ea   :  { %18541 = vst [vmem:[#allocation32_spill] sm:$0xff] %v14149_v15  ;;  %v4955_v60 = vadd.f32 %v13623_v36, %v4765_v45  ;;  %v14153_v35 = vrot.slane %v5171_v34, %v13654_v50  ;;  %v5483_v30 = vcombine.high %v5171_v34, %v5171_v34 }
 0x5eb   :  { %v5020_v37 = vmax.f32 %v4956_v59, 0.0  ;;  %v5352_v59 = vsel %vm5200_vm15, %v14120_v2, %v5351_v48 }
 0x5ec   :  { %v5019_v5 = vmax.f32 %v4955_v60, 0.0  ;;  %v9689_v61 = vpop.f32.mrb[116].mxu1  ;;  %v5445_v45 = vsel %vm5198_vm14, %v14153_v35, %v5442_v54  ;;  %v14169_v34 = vcombine.high %v14153_v35, %v14153_v35  ;;  %v14172_v12 = vrot.slane %v5483_v30, %v13654_v50 }
 0x5ed   :  { %v5058_v27 = vmax.f32 %v5018_v53, %v5020_v37  ;;  %v4775_v55 = vpop.f32.mrb[117].mxu1  ;;  %v5446_v24 = vsel %vm5200_vm15, %v14153_v35, %v5445_v45  ;;  %v18542_v60 = vrot.slane %v13734_v40, 1  ;;  %v4958_v38 = vadd.f32 %v9689_v61, %v13623_v36  ;;  %v14218_v40 = vld [vmem:[%s17986_s4] ss:$0 sm:$0xff] }
 0x5ee   :  { %v5057_v6 = vmax.f32 %v5017_v9, %v5019_v5  ;;  %v5447_v30 = vsel %vm5202_vm0, %v14153_v35, %v5446_v24  ;;  %v18543_v53 = vrot.slane %v13824_v63, 1  ;;  %v18544_v9 = vrot.slane %v13783_v31, 1 }
 0x5ef   :  { %v14182_v54 = vsel %vm5198_vm14, %v14146_v7, %v18542_v60  ;;  %5091 = vst.msk [vmem:[#allocation3 + $0xc8] sm:$0xff] %vm5065_vm5, %v5058_v27  ;;  %v5448_v48 = vsel %vm5204_vm1, %v14153_v35, %v5447_v30  ;;  %v5120_v61 = vld [vmem:[#allocation3 + $0xb0] ss:$2 sm:$0xff]  ;;  %v5152_v24 = vld [vmem:[#allocation3 + $0xb1] ss:$2 sm:$0xff]  ;;  %v14202_v60 = vcombine.high %v14146_v7, %v14146_v7  ;;  %v4957_v27 = vadd.f32 %v13623_v36, %v4775_v55 }
 0x5f0   :  { %v5467_v37 = vsel %vm5198_vm14, %v14169_v34, %v18543_v53  ;;  %v5503_v5 = vsel %vm5198_vm14, %v14172_v12, %v18544_v9  ;;  %5090 = vst.msk [vmem:[#allocation3 + $0xc0] sm:$0xff] %vm5065_vm5, %v5057_v6  ;;  %5449 = vrot.lane.b32.xlu0 %v5448_v48, %s11064_s2  ;;  %v9692_v30 = vpop.f32.mrb[118].mxu1  ;;  %v14213_v9 = vcombine.high %v14172_v12, %v14172_v12 }
 0x5f1   :  { %v5468_v45 = vsel %vm5200_vm15, %v14169_v34, %v5467_v37  ;;  %v5504_v37 = vsel %vm5200_vm15, %v14172_v12, %v5503_v5  ;;  %v4960_v36 = vadd.f32 %v14218_v40, %v9692_v30  ;;  %v4785_v6 = vpop.f32.mrb[119].mxu1  ;;  %v5022_v5 = vmax.f32 %v4958_v38, 0.0 }
 0x5f2   :  { %v5469_v53 = vsel %vm5202_vm0, %v14169_v34, %v5468_v45  ;;  %v5505_v48 = vsel %vm5202_vm0, %v14172_v12, %v5504_v37  ;;  %v5172_v45 = vmax.f32 %v5120_v61, %v5152_v24  ;;  %v4959_v56 = vadd.f32 %v14218_v40, %v4785_v6 }
 0x5f3   :  { %v5470_v55 = vsel %vm5204_vm1, %v14169_v34, %v5469_v53  ;;  %v5506_v4 = vsel %vm5204_vm1, %v14172_v12, %v5505_v48  ;;  %v5525_v30 = vsel %vm5198_vm14, %v14213_v9, %v18545_v0  ;;  %v5024_v41 = vmax.f32 %v4960_v36, 0.0 }
 0x5f4   :  { %5471 = vrot.lane.b32.xlu1 %v5470_v55, %s11064_s2  ;;  %v5526_v53 = vsel %vm5200_vm15, %v14213_v9, %v5525_v30  ;;  %v14236_v37 = vrot.slane %v5172_v45, %v13654_v50  ;;  %v5599_v38 = vcombine.high %v5172_v45, %v5172_v45  ;;  %v5021_v61 = vmax.f32 %v4957_v27, 0.0  ;;  %5507 = vrot.lane.b32.xlu0 %v5506_v4, %s11064_s2  ;;  %v9695_v6 = vpop.f32.mrb[120].mxu1 }
 0x5f5   :  { %v5023_v24 = vmax.f32 %v4959_v56, 0.0  ;;  %v5527_v55 = vsel %vm5202_vm0, %v14213_v9, %v5526_v53  ;;  %v14243_v48 = vsel %vm5202_vm0, %v14120_v2, %v5352_v59  ;;  %v5060_v0 = vmax.f32 %v5022_v5, %v5024_v41  ;;  %v4795_v30 = vpop.f32.mrb[121].mxu1 }
 0x5f6   :  { %v4962_v36 = vadd.f32 %v14218_v40, %v9695_v6  ;;  %v5528_v14 = vsel %vm5204_vm1, %v14213_v9, %v5527_v55  ;;  %v18546_v27 = vrot.slane %v13787_v49, 1  ;;  %v4961_v45 = vadd.f32 %v14218_v40, %v4795_v30 }
 0x5f7   :  { %v5059_v4 = vmax.f32 %v5021_v61, %v5023_v24  ;;  %v14258_v41 = vcombine.high %v14236_v37, %v14236_v37  ;;  %5093 = vst.msk [vmem:[#allocation3 + $0xd8] sm:$0xff] %vm5065_vm5, %v5060_v0  ;;  %v14264_v6 = vrot.slane %v5599_v38, %v13654_v50  ;;  %v5122_v61 = vld [vmem:[#allocation3 + $0xc0] ss:$2 sm:$0xff]  ;;  %v5154_v24 = vld [vmem:[#allocation3 + $0xc1] ss:$2 sm:$0xff]  ;;  %v18547_v0 = vrot.slane %v13856_v46, 1 }
 0x5f8   :  { %v5561_v56 = vsel %vm5198_vm14, %v14236_v37, %v18546_v27  ;;  %5529 = vrot.lane.b32.xlu1 %v5528_v14, %s11064_s2  ;;  %v5026_v5 = vmax.f32 %v4962_v36, 0.0  ;;  %v14267_v14 = vrot.slane %v14153_v35, 7  ;;  %v5025_v55 = vmax.f32 %v4961_v45, 0.0  ;;  %v9698_v27 = vpop.f32.mrb[122].mxu1 }
 0x5f9   :  { %v5562_v59 = vsel %vm5200_vm15, %v14236_v37, %v5561_v56  ;;  %5092 = vst.msk [vmem:[#allocation3 + $0xd0] sm:$0xff] %vm5065_vm5, %v5059_v4  ;;  %v5583_v36 = vsel %vm5198_vm14, %v14258_v41, %v18547_v0  ;;  %v5173_v56 = vmax.f32 %v5122_v61, %v5154_v24  ;;  %v4964_v38 = vadd.f32 %v14218_v40, %v9698_v27 }
 0x5fa   :  { %v5563_v53 = vsel %vm5202_vm0, %v14236_v37, %v5562_v59  ;;  %v4805_v59 = vpop.f32.mrb[123].mxu1  ;;  %v5584_v35 = vsel %vm5200_vm15, %v14258_v41, %v5583_v36  ;;  %v18548_v4 = vrot.slane %v13849_v20, 1 }
 0x5fb   :  { %v5564_v30 = vsel %vm5204_vm1, %v14236_v37, %v5563_v53  ;;  %v14286_v53 = vcombine.high %v14264_v6, %v14264_v6  ;;  %v4963_v0 = vadd.f32 %v14218_v40, %v4805_v59  ;;  %v5585_v61 = vsel %vm5202_vm0, %v14258_v41, %v5584_v35 }
 0x5fc   :  { %5565 = vrot.lane.b32.xlu0 %v5564_v30, %s11064_s2  ;;  %v5619_v45 = vsel %vm5198_vm14, %v14264_v6, %v18548_v4  ;;  %v14294_v30 = vrot.slane %v5173_v56, %v13654_v50  ;;  %v5028_v27 = vmax.f32 %v4964_v38, 0.0  ;;  %v5586_v36 = vsel %vm5204_vm1, %v14258_v41, %v5585_v61 }
 0x5fd   :  { %v5620_v24 = vsel %vm5200_vm15, %v14264_v6, %v5619_v45  ;;  %v5641_v59 = vsel %vm5198_vm14, %v14286_v53, %v18549_v18  ;;  %v5027_v15 = vmax.f32 %v4963_v0, 0.0  ;;  %5587 = vrot.lane.b32.xlu1 %v5586_v36, %s11064_s2  ;;  %v9701_v45 = vpop.f32.mrb[124].mxu1  ;;  %v18550_v61 = vrot.slane %v13882_v13, 1 }
 0x5fe   :  { %v5621_v4 = vsel %vm5202_vm0, %v14264_v6, %v5620_v24  ;;  %v5642_v38 = vsel %vm5200_vm15, %v14286_v53, %v5641_v59  ;;  %v5062_v8 = vmax.f32 %v5026_v5, %v5028_v27  ;;  %v4966_v18 = vadd.f32 %v14218_v40, %v9701_v45  ;;  %v4815_v0 = vpop.f32.mrb[125].mxu1 }
 0x5ff   :  { %v5622_v35 = vsel %vm5204_vm1, %v14264_v6, %v5621_v4  ;;  %v5677_v24 = vsel %vm5198_vm14, %v14294_v30, %v18550_v61  ;;  %v5643_v36 = vsel %vm5202_vm0, %v14286_v53, %v5642_v38  ;;  %v5061_v62 = vmax.f32 %v5025_v55, %v5027_v15 }
 0x600   :  { %5623 = vrot.lane.b32.xlu0 %v5622_v35, %s11064_s2  ;;  %v5678_v4 = vsel %vm5200_vm15, %v14294_v30, %v5677_v24  ;;  %v4965_v59 = vadd.f32 %v14218_v40, %v4815_v0  ;;  %v18551_v61 = vrot.slane %v13762_v33, 1  ;;  %5095 = vst.msk [vmem:[#allocation3 + $0xe8] sm:$0xff] %vm5065_vm5, %v5062_v8  ;;  %v5644_v27 = vsel %vm5204_vm1, %v14286_v53, %v5643_v36  ;;  %v5124_v45 = vld [vmem:[#allocation3 + $0xd0] ss:$2 sm:$0xff]  ;;  %v5156_v38 = vld [vmem:[#allocation3 + $0xd1] ss:$2 sm:$0xff] }
 0x601   :  { %v5679_v32 = vsel %vm5202_vm0, %v14294_v30, %v5678_v4  ;;  %v14335_v15 = vcombine.high %v14294_v30, %v14294_v30  ;;  %v5715_v55 = vcombine.high %v5173_v56, %v5173_v56  ;;  %5094 = vst.msk [vmem:[#allocation3 + $0xe0] sm:$0xff] %vm5065_vm5, %v5061_v62  ;;  %v5030_v24 = vmax.f32 %v4966_v18, 0.0  ;;  %5645 = vrot.lane.b32.xlu1 %v5644_v27, %s11064_s2  ;;  %v9704_v8 = vpop.f32.mrb[126].mxu1 }
 0x602   :  { %v14326_v5 = vsel %vm5198_vm14, %v14202_v60, %v18551_v61  ;;  %v5680_v35 = vsel %vm5204_vm1, %v14294_v30, %v5679_v32  ;;  %v5029_v0 = vmax.f32 %v4965_v59, 0.0  ;;  %v5174_v4 = vmax.f32 %v5124_v45, %v5156_v38  ;;  %v4825_v61 = vpop.f32.mrb[127].mxu1 }
 0x603   :  { %v5436_v36 = vsel %vm5198_vm14, %v14267_v14, %v13768_v22  ;;  %v4968_v32 = vadd.f32 %v14218_v40, %v9704_v8  ;;  %v18552_v56 = vrot.slane %v13916_v43, 1  ;;  %v14349_v18 = vrot.slane %v5715_v55, %v13654_v50 }
 0x604   :  { %5681 = vrot.lane.b32.xlu0 %v5680_v35, %s11064_s2  ;;  %v5437_v59 = vsel %vm5200_vm15, %v14267_v14, %v5436_v36  ;;  %v4967_v27 = vadd.f32 %v14218_v40, %v4825_v61  ;;  %v14357_v35 = vrot.slane %v5174_v4, %v13654_v50  ;;  %v5831_v45 = vcombine.high %v5174_v4, %v5174_v4 }
 0x605   :  { %v5699_v62 = vsel %vm5198_vm14, %v14335_v15, %v18552_v56  ;;  %v5032_v38 = vmax.f32 %v4968_v32, 0.0  ;;  %v18553_v55 = vrot.slane %v13903_v17, 1  ;;  %v14367_v36 = vcombine.high %v14349_v18, %v14349_v18 }
 0x606   :  { %v5700_v22 = vsel %vm5200_vm15, %v14335_v15, %v5699_v62  ;;  %v5031_v40 = vmax.f32 %v4967_v27, 0.0  ;;  %v18554_v32 = vrot.slane %v13926_v47, 1  ;;  %v18555_v33 = vrot.slane %v13937_v28, 1 }
 0x607   :  { %v5701_v8 = vsel %vm5202_vm0, %v14335_v15, %v5700_v22  ;;  %v5735_v56 = vsel %vm5198_vm14, %v14349_v18, %v18553_v55  ;;  %v5064_v22 = vmax.f32 %v5030_v24, %v5032_v38 }
 0x608   :  { %v5702_v61 = vsel %vm5204_vm1, %v14335_v15, %v5701_v8  ;;  %v5736_v4 = vsel %vm5200_vm15, %v14349_v18, %v5735_v56  ;;  %v5793_v62 = vsel %vm5198_vm14, %v14357_v35, %v18554_v32  ;;  %v5757_v27 = vsel %vm5198_vm14, %v14367_v36, %v18555_v33  ;;  %v5158_v32 = vld [vmem:[#allocation3 + $0xe1] ss:$2 sm:$0xff] }
 0x609   :  { %5703 = vrot.lane.b32.xlu1 %v5702_v61, %s11064_s2  ;;  %v5737_v55 = vsel %vm5202_vm0, %v14349_v18, %v5736_v4  ;;  %v5794_v8 = vsel %vm5200_vm15, %v14357_v35, %v5793_v62  ;;  %v5063_v56 = vmax.f32 %v5029_v0, %v5031_v40  ;;  %v5758_v24 = vsel %vm5200_vm15, %v14367_v36, %v5757_v27  ;;  %v5126_v4 = vld [vmem:[#allocation3 + $0xe0] ss:$2 sm:$0xff] }
 0x60a   :  { %v5738_v47 = vsel %vm5204_vm1, %v14349_v18, %v5737_v55  ;;  %v5795_v38 = vsel %vm5202_vm0, %v14357_v35, %v5794_v8  ;;  %5097 = vst.msk [vmem:[#allocation3 + $0xf8] sm:$0xff] %vm5065_vm5, %v5064_v22  ;;  %v5759_v33 = vsel %vm5202_vm0, %v14367_v36, %v5758_v24  ;;  %v14400_v0 = vcombine.high %v14357_v35, %v14357_v35 }
 0x60b   :  { %5739 = vrot.lane.b32.xlu0 %v5738_v47, %s11064_s2  ;;  %v5796_v61 = vsel %vm5204_vm1, %v14357_v35, %v5795_v38  ;;  %v14403_v40 = vrot.slane %v5831_v45, %v13654_v50  ;;  %5096 = vst.msk [vmem:[#allocation3 + $0xf0] sm:$0xff] %vm5065_vm5, %v5063_v56  ;;  %v5760_v47 = vsel %vm5204_vm1, %v14367_v36, %v5759_v33  ;;  %v5457_v55 = vrot.slane %v14169_v34, 7 }
 0x60c   :  { %v5175_v62 = vmax.f32 %v5126_v4, %v5158_v32  ;;  %v5438_v22 = vsel %vm5202_vm0, %v14267_v14, %v5437_v59  ;;  %v18556_v27 = vrot.slane %v13965_v26, 1  ;;  %v18557_v8 = vrot.slane %v13952_v29, 1 }
 0x60d   :  { %5761 = vrot.lane.b32.xlu1 %v5760_v47, %s11064_s2  ;;  %v14422_v24 = vcombine.high %v14403_v40, %v14403_v40  ;;  %v5439_v59 = vsel %vm5204_vm1, %v14267_v14, %v5438_v22  ;;  %v18558_v47 = vrot.slane %v13988_v58, 1  ;;  %v18563_v29 = vrot.slane %v14019_v16, 1 }
 0x60e   :  { %v5815_v45 = vsel %vm5198_vm14, %v14400_v0, %v18556_v27  ;;  %v5851_v56 = vsel %vm5198_vm14, %v14403_v40, %v18557_v8  ;;  %v14431_v33 = vrot.slane %v5175_v62, %v13654_v50  ;;  %v5947_v4 = vcombine.high %v5175_v62, %v5175_v62  ;;  %5441 = vst.msk [vmem:[#allocation4 + $0x10] sm:$0x3] %vm5207_vm2, %v5439_v59  ;;  %v6426_v62 = vld [vmem:[%s17987_s5 + $0x988] sm:$0xff] }
 0x60f   :  { %v5816_v34 = vsel %vm5200_vm15, %v14400_v0, %v5815_v45  ;;  %v5852_v38 = vsel %vm5200_vm15, %v14403_v40, %v5851_v56  ;;  %5797 = vrot.lane.b32.xlu0 %v5796_v61, %s11064_s2  ;;  %v5873_v22 = vsel %vm5198_vm14, %v14422_v24, %v18558_v47  ;;  %v5458_v27 = vsel %vm5198_vm14, %v5457_v55, %v13824_v63  ;;  %v6428_v61 = vld [vmem:[%s17987_s5 + $0x998] sm:$0xff] }
 0x610   :  { %v5817_v32 = vsel %vm5202_vm0, %v14400_v0, %v5816_v34  ;;  %v5853_v14 = vsel %vm5202_vm0, %v14403_v40, %v5852_v38  ;;  %v5874_v8 = vsel %vm5200_vm15, %v14422_v24, %v5873_v22  ;;  %v18559_v56 = vrot.slane %v13968_v11, 1  ;;  %v6427_v11 = vld [vmem:[%s17987_s5 + $0x990] sm:$0xff] }
 0x611   :  { %v5818_v45 = vsel %vm5204_vm1, %v14400_v0, %v5817_v32  ;;  %v14462_v63 = vsel %vm5204_vm1, %v14120_v2, %v14243_v48  ;;  %v5875_v34 = vsel %vm5202_vm0, %v14422_v24, %v5874_v8  ;;  %v14469_v38 = vcombine.high %v14431_v33, %v14431_v33 }
 0x612   :  { %v5909_v59 = vsel %vm5198_vm14, %v14431_v33, %v18559_v56  ;;  %5819 = vrot.lane.b32.xlu1 %v5818_v45, %s11064_s2  ;;  %v14472_v32 = vrot.slane %v5947_v4, %v13654_v50  ;;  %v5388_v47 = vsel %vm5200_vm15, %v14146_v7, %v14182_v54  ;;  %v5854_v48 = vsel %vm5204_vm1, %v14403_v40, %v5853_v14 }
 0x613   :  { %v5410_v22 = vsel %vm5200_vm15, %v14202_v60, %v14326_v5  ;;  %v5459_v45 = vsel %vm5200_vm15, %v5457_v55, %v5458_v27  ;;  %v10111_v8 = vpack.c.bf16 %v6428_v61, %v6426_v62  ;;  %5855 = vrot.lane.b32.xlu0 %v5854_v48, %s11064_s2  ;;  %v5910_v4 = vsel %vm5200_vm15, %v14431_v33, %v5909_v59  ;;  %v5128_v27 = vld [vmem:[#allocation3 + $0xf0] ss:$2 sm:$0xff]  ;;  %v5160_v62 = vld [vmem:[#allocation3 + $0xf1] ss:$2 sm:$0xff]  ;;  %v6137_v61 = vld [vmem:[%s17987_s5 + $0x80] sm:$0xff] }
 0x614   :  { %v18560_v56 = vrot.slane %v13999_v42, 1  ;;  %v18561_v2 = vrot.slane %v14002_v19, 1  ;;  %v14496_v5 = vcombine.high %v14472_v32, %v14472_v32  ;;  %v5876_v59 = vsel %vm5204_vm1, %v14422_v24, %v5875_v34  ;;  %v6425_v42 = vld [vmem:[%s17987_s5 + $0x980] sm:$0xff] }
 0x615   :  { %v5460_v19 = vsel %vm5202_vm0, %v5457_v55, %v5459_v45  ;;  %10112 = vmatprep.subr.bf16.mxu0 %v10111_v8  ;;  %v18562_v45 = vrot.slane %v14031_v57, 1 }
 0x616   :  { %v5931_v54 = vsel %vm5198_vm14, %v14469_v38, %v18560_v56  ;;  %v5967_v14 = vsel %vm5198_vm14, %v14472_v32, %v18561_v2  ;;  %v5176_v56 = vmax.f32 %v5128_v27, %v5160_v62  ;;  %v6139_v2 = vld [vmem:[%s17987_s5 + $0x90] sm:$0xff]  ;;  %5877 = vrot.lane.b32.xlu1 %v5876_v59, %s11064_s2  ;;  %v5461_v27 = vsel %vm5204_vm1, %v5457_v55, %v5460_v19  ;;  %v6144_v19 = vld [vmem:[%s17987_s5 + $0xb8] sm:$0xff] }
 0x617   :  { %v5932_v48 = vsel %vm5200_vm15, %v14469_v38, %v5931_v54  ;;  %v5968_v34 = vsel %vm5200_vm15, %v14472_v32, %v5967_v14  ;;  %v5989_v8 = vsel %vm5198_vm14, %v14496_v5, %v18562_v45  ;;  %v5389_v54 = vsel %vm5202_vm0, %v14146_v7, %v5388_v47  ;;  %5463 = vst.msk [vmem:[#allocation4 + $0x12] sm:$0x3] %vm5207_vm2, %v5461_v27  ;;  %v6142_v47 = vld [vmem:[%s17987_s5 + $0xa8] sm:$0xff]  ;;  %v6432_v27 = vld [vmem:[%s17987_s5 + $0x9b8] sm:$0xff] }
 0x618   :  { %v5911_v62 = vsel %vm5202_vm0, %v14431_v33, %v5910_v4  ;;  %v5933_v58 = vsel %vm5202_vm0, %v14469_v38, %v5932_v48  ;;  %v5411_v59 = vsel %vm5202_vm0, %v14202_v60, %v5410_v22  ;;  %v14532_v14 = vrot.slane %v5176_v56, %v13654_v50  ;;  %5216 = vrot.lane.b32.xlu0 %v14090_v3, %s11064_s2  ;;  %v6430_v45 = vld [vmem:[%s17987_s5 + $0x9a8] sm:$0xff] }
 0x619   :  { %v5990_v55 = vsel %vm5200_vm15, %v14496_v5, %v5989_v8  ;;  %v6063_v22 = vcombine.high %v5176_v56, %v5176_v56  ;;  %v9825_v4 = vpack.c.bf16 %v6139_v2, %v6137_v61  ;;  %v10113_v48 = vpack.c.bf16 %v6427_v11, %v6425_v42 }
 0x61a   :  { %v5969_v57 = vsel %vm5202_vm0, %v14472_v32, %v5968_v34  ;;  %v6025_v3 = vsel %vm5198_vm14, %v14532_v14, %v18563_v29  ;;  %v14559_v61 = vcombine.high %v14532_v14, %v14532_v14  ;;  %v5493_v11 = vrot.slane %v14172_v12, 7  ;;  %5239 = vrot.lane.b32.xlu1 %v14127_v52, %s11064_s2 }
 0x61b   :  { %v6026_v42 = vsel %vm5200_vm15, %v14532_v14, %v6025_v3  ;;  %v14567_v56 = vrot.slane %v6063_v22, %v13654_v50  ;;  %9826 = vmatpush1.bf16.msra.mxu1 %v9825_v4  ;;  %v5515_v2 = vrot.slane %v14213_v9, 7  ;;  %v9827_v34 = vpack.c.bf16 %v6144_v19, %v6142_v47  ;;  %10114 = vmatpush1.bf16.msra.mxu0 %v10113_v48  ;;  %v6143_v22 = vld [vmem:[%s17987_s5 + $0xb0] sm:$0xff]  ;;  %v6429_v4 = vld [vmem:[%s17987_s5 + $0x9a0] sm:$0xff] }
 0x61c   :  { %v5991_v29 = vsel %vm5202_vm0, %v14496_v5, %v5990_v55  ;;  %v18564_v8 = vrot.slane %v14040_v23, 1  ;;  %v5494_v52 = vsel %vm5198_vm14, %v5493_v11, %v13783_v31  ;;  %v10115_v3 = vpack.c.bf16 %v6432_v27, %v6430_v45  ;;  %5275 = vrot.lane.b32.xlu0 %v14132_v25, %s11064_s2  ;;  %v6141_v31 = vld [vmem:[%s17987_s5 + $0xa0] sm:$0xff]  ;;  %v6431_v48 = vld [vmem:[%s17987_s5 + $0x9b0] sm:$0xff] }
 0x61d   :  { %v5912_v9 = vsel %vm5204_vm1, %v14431_v33, %v5911_v62  ;;  %v14584_v47 = vsel %vm5204_vm1, %v14146_v7, %v5389_v54  ;;  %v14588_v19 = vsel %vm5204_vm1, %v14202_v60, %v5411_v59  ;;  %v6027_v55 = vsel %vm5202_vm0, %v14532_v14, %v6026_v42  ;;  %9828 = vmatprep.subr.bf16.mxu1 %v9827_v34  ;;  %v6146_v34 = vld [vmem:[%s17987_s5 + $0xc8] sm:$0xff]  ;;  %v6147_v50 = vld [vmem:[%s17987_s5 + $0xd0] sm:$0xff] }
 0x61e   :  { %v6047_v12 = vsel %vm5198_vm14, %v14559_v61, %v18564_v8  ;;  %v14599_v62 = vcombine.high %v14567_v56, %v14567_v56  ;;  %v5495_v54 = vsel %vm5200_vm15, %v5493_v11, %v5494_v52  ;;  %v5516_v59 = vsel %vm5198_vm14, %v5515_v2, %v13846_v21  ;;  %5297 = vrot.lane.b32.xlu1 %v14143_v51, %s11064_s2  ;;  %v6148_v8 = vld [vmem:[%s17987_s5 + $0xd8] sm:$0xff] }
 0x61f   :  { %v6048_v25 = vsel %vm5200_vm15, %v14559_v61, %v6047_v12  ;;  %v5934_v45 = vsel %vm5204_vm1, %v14469_v38, %v5933_v58  ;;  %v5970_v21 = vsel %vm5204_vm1, %v14472_v32, %v5969_v57  ;;  %v5992_v27 = vsel %vm5204_vm1, %v14496_v5, %v5991_v29  ;;  %v6434_v58 = vld [vmem:[%s17987_s5 + $0x9c8] sm:$0xff]  ;;  %10116 = vmatprep.subr.bf16.mxu0 %v10115_v3 }
 0x620   :  { %v5496_v42 = vsel %vm5202_vm0, %v5493_v11, %v5495_v54  ;;  %v14633_v57 = vsel %vm5204_vm1, %v14532_v14, %v6027_v55  ;;  %v18565_v51 = vrot.slane %v14036_v44, 1  ;;  %v5517_v52 = vsel %vm5200_vm15, %v5515_v2, %v5516_v59  ;;  %v6436_v54 = vld [vmem:[%s17987_s5 + $0x9d8] sm:$0xff]  ;;  %v6145_v55 = vld [vmem:[%s17987_s5 + $0xc0] sm:$0xff]  ;;  %5913 = vrot.lane.b32.xlu0 %v5912_v9, %s11064_s2  ;;  %v6435_v44 = vld [vmem:[%s17987_s5 + $0x9d0] sm:$0xff] }
 0x621   :  { %v5497_v12 = vsel %vm5204_vm1, %v5493_v11, %v5496_v42  ;;  %v14655_v11 = vsel %vm5202_vm0, %v14559_v61, %v6048_v25  ;;  %v5518_v3 = vsel %vm5202_vm0, %v5515_v2, %v5517_v52  ;;  %v9829_v59 = vpack.c.bf16 %v6143_v22, %v6141_v31 }
 0x622   :  { %v14639_v29 = vsel %vm5198_vm14, %v14567_v56, %v18565_v51  ;;  %5499 = vst.msk [vmem:[#allocation4 + $0x14] sm:$0x3] %vm5207_vm2, %v5497_v12  ;;  %v10117_v42 = vpack.c.bf16 %v6431_v48, %v6429_v4  ;;  %v6433_v51 = vld [vmem:[%s17987_s5 + $0x9c0] sm:$0xff]  ;;  %v18566_v9 = vrot.slane %v14060_v39, 1  ;;  %v5519_v12 = vsel %vm5204_vm1, %v5515_v2, %v5518_v3  ;;  %5935 = vrot.lane.b32.xlu1 %v5934_v45, %s11064_s2  ;;  %v6150_v45 = vld [vmem:[%s17987_s5 + $0xe8] sm:$0xff] }
 0x623   :  { %v5551_v52 = vrot.slane %v14236_v37, 7  ;;  %v5573_v31 = vrot.slane %v14258_v41, 7  ;;  %5521 = vst.msk [vmem:[#allocation4 + $0x16] sm:$0x3] %vm5207_vm2, %v5519_v12  ;;  %9830 = vmatpush1.bf16.msra.mxu1 %v9829_v59  ;;  %v9831_v22 = vpack.c.bf16 %v6148_v8, %v6146_v34  ;;  %v10119_v4 = vpack.c.bf16 %v6436_v54, %v6434_v58  ;;  %v6437_v3 = vld [vmem:[%s17987_s5 + $0x9e0] sm:$0xff] }
 0x624   :  { %v14669_v25 = vsel %vm5198_vm14, %v14599_v62, %v18566_v9  ;;  %v9833_v48 = vpack.c.bf16 %v6147_v50, %v6145_v55  ;;  %v5609_v39 = vrot.slane %v14264_v6, 7  ;;  %10118 = vmatpush1.bf16.msra.mxu0 %v10117_v42  ;;  %v10121_v37 = vpack.c.bf16 %v6435_v44, %v6433_v51  ;;  %v6152_v50 = vld [vmem:[%s17987_s5 + $0xf8] sm:$0xff]  ;;  %5971 = vrot.lane.b32.xlu0 %v5970_v21, %s11064_s2  ;;  %v6438_v44 = vld [vmem:[%s17987_s5 + $0x9e8] sm:$0xff]  ;;  %v6149_v21 = vld [vmem:[%s17987_s5 + $0xe0] sm:$0xff] }
 0x625   :  { %v5552_v9 = vsel %vm5198_vm14, %v5551_v52, %v13787_v49  ;;  %v5574_v2 = vsel %vm5198_vm14, %v5573_v31, %v13856_v46  ;;  %v5631_v41 = vrot.slane %v14286_v53, 7  ;;  %9832 = vmatprep.subr.bf16.mxu1 %v9831_v22  ;;  %v6440_v53 = vld [vmem:[%s17987_s5 + $0x9f8] sm:$0xff]  ;;  %v5667_v34 = vrot.slane %v14294_v30, 7  ;;  %10120 = vmatprep.subr.bf16.mxu0 %v10119_v4  ;;  %v6151_v55 = vld [vmem:[%s17987_s5 + $0xf0] sm:$0xff] }
 0x626   :  { %v5553_v6 = vsel %vm5200_vm15, %v5551_v52, %v5552_v9  ;;  %v5575_v49 = vsel %vm5200_vm15, %v5573_v31, %v5574_v2  ;;  %v5610_v46 = vsel %vm5198_vm14, %v5609_v39, %v13849_v20  ;;  %v6439_v30 = vld [vmem:[%s17987_s5 + $0x9f0] sm:$0xff]  ;;  %5993 = vrot.lane.b32.xlu1 %v5992_v27, %s11064_s2  ;;  %v5689_v51 = vrot.slane %v14335_v15, 7  ;;  %v6442_v15 = vld [vmem:[%s17987_s5 + $0xa08] sm:$0xff] }
 0x627   :  { %v5554_v8 = vsel %vm5202_vm0, %v5551_v52, %v5553_v6  ;;  %v5576_v58 = vsel %vm5202_vm0, %v5573_v31, %v5575_v49  ;;  %v5611_v20 = vsel %vm5200_vm15, %v5609_v39, %v5610_v46  ;;  %v5632_v54 = vsel %vm5198_vm14, %v5631_v41, %v13898_v10  ;;  %9834 = vmatpush1.bf16.msra.mxu1 %v9833_v48 }
 0x628   :  { %v5555_v59 = vsel %vm5204_vm1, %v5551_v52, %v5554_v8  ;;  %v5577_v42 = vsel %vm5204_vm1, %v5573_v31, %v5576_v58  ;;  %v5612_v10 = vsel %vm5202_vm0, %v5609_v39, %v5611_v20  ;;  %10122 = vmatpush1.bf16.msra.mxu0 %v10121_v37  ;;  %v5633_v22 = vsel %vm5200_vm15, %v5631_v41, %v5632_v54  ;;  %v6154_v52 = vld [vmem:[%s17987_s5 + $0x108] sm:$0xff]  ;;  %v6156_v31 = vld [vmem:[%s17987_s5 + $0x118] sm:$0xff]  ;;  %v6157_v20 = vld [vmem:[%s17987_s5 + $0x120] sm:$0xff] }
 0x629   :  { %5557 = vst.msk [vmem:[#allocation4 + $0x18] sm:$0x3] %vm5207_vm2, %v5555_v59  ;;  %5579 = vst.msk [vmem:[#allocation4 + $0x1a] sm:$0x3] %vm5207_vm2, %v5577_v42  ;;  %v5613_v12 = vsel %vm5204_vm1, %v5609_v39, %v5612_v10  ;;  %v9835_v4 = vpack.c.bf16 %v6152_v50, %v6150_v45  ;;  %v10123_v27 = vpack.c.bf16 %v6440_v53, %v6438_v44  ;;  %5333 = vrot.lane.b32.xlu0 %v14161_v1, %s11064_s2  ;;  %v6444_v37 = vld [vmem:[%s17987_s5 + $0xa18] sm:$0xff]  ;;  %v6153_v45 = vld [vmem:[%s17987_s5 + $0x100] sm:$0xff] }
 0x62a   :  { %5615 = vst.msk [vmem:[#allocation4 + $0x1c] sm:$0x3] %vm5207_vm2, %v5613_v12  ;;  %v5634_v39 = vsel %vm5202_vm0, %v5631_v41, %v5633_v22  ;;  %v9837_v48 = vpack.c.bf16 %v6151_v55, %v6149_v21  ;;  %v10125_v9 = vpack.c.bf16 %v6439_v30, %v6437_v3  ;;  %v5668_v2 = vsel %vm5198_vm14, %v5667_v34, %v13882_v13  ;;  %v6155_v1 = vld [vmem:[%s17987_s5 + $0x110] sm:$0xff]  ;;  %v6158_v21 = vld [vmem:[%s17987_s5 + $0x128] sm:$0xff] }
 0x62b   :  { %v5635_v50 = vsel %vm5204_vm1, %v5631_v41, %v5634_v39  ;;  %9836 = vmatprep.subr.bf16.mxu1 %v9835_v4  ;;  %10124 = vmatprep.subr.bf16.mxu0 %v10123_v27  ;;  %v5669_v6 = vsel %vm5200_vm15, %v5667_v34, %v5668_v2  ;;  %v5690_v13 = vsel %vm5198_vm14, %v5689_v51, %v13916_v43  ;;  %v5725_v49 = vrot.slane %v14349_v18, 7  ;;  %v6160_v43 = vld [vmem:[%s17987_s5 + $0x138] sm:$0xff]  ;;  %v6162_v42 = vld [vmem:[%s17987_s5 + $0x148] sm:$0xff] }
 0x62c   :  { %5355 = vrot.lane.b32.xlu1 %v14462_v63, %s11064_s2  ;;  %5637 = vst.msk [vmem:[#allocation4 + $0x1e] sm:$0x3] %vm5207_vm2, %v5635_v50  ;;  %9838 = vmatpush1.bf16.msra.mxu1 %v9837_v48  ;;  %v5670_v46 = vsel %vm5202_vm0, %v5667_v34, %v5669_v6  ;;  %v5691_v44 = vsel %vm5200_vm15, %v5689_v51, %v5690_v13  ;;  %v5747_v53 = vrot.slane %v14367_v36, 7  ;;  %v6159_v36 = vld [vmem:[%s17987_s5 + $0x130] sm:$0xff]  ;;  %v5783_v3 = vrot.slane %v14357_v35, 7  ;;  %v6166_v48 = vld [vmem:[%s17987_s5 + $0x168] sm:$0xff] }
 0x62d   :  { %v9839_v41 = vpack.c.bf16 %v6156_v31, %v6154_v52  ;;  %10126 = vmatpush1.bf16.msra.mxu0 %v10125_v9  ;;  %v5671_v18 = vsel %vm5204_vm1, %v5667_v34, %v5670_v46  ;;  %v5692_v63 = vsel %vm5202_vm0, %v5689_v51, %v5691_v44  ;;  %v10127_v8 = vpack.c.bf16 %v6444_v37, %v6442_v15  ;;  %v18567_v4 = vld [vmem:[#allocation26_spill] sm:$0xff] }
 0x62e   :  { %v9841_v58 = vpack.c.bf16 %v6155_v1, %v6153_v45  ;;  %5391 = vrot.lane.b32.xlu0 %v14584_v47, %s11064_s2  ;;  %v6084_v54 = vsel %vm5200_vm15, %v14567_v56, %v14639_v29  ;;  %5673 = vst.msk [vmem:[#allocation4 + $0x20] sm:$0x3] %vm5207_vm2, %v5671_v18  ;;  %v5693_v34 = vsel %vm5204_vm1, %v5689_v51, %v5692_v63  ;;  %v6163_v52 = vld [vmem:[%s17987_s5 + $0x150] sm:$0xff]  ;;  %v6168_v9 = vld [vmem:[%s17987_s5 + $0x178] sm:$0xff]  ;;  %v6165_v45 = vld [vmem:[%s17987_s5 + $0x160] sm:$0xff]  ;;  %v5841_v13 = vrot.slane %v14403_v40, 7 }
 0x62f   :  { %9840 = vmatprep.subr.bf16.mxu1 %v9839_v41  ;;  %v5726_v55 = vsel %vm5198_vm14, %v5725_v49, %v13903_v17  ;;  %v6106_v30 = vsel %vm5200_vm15, %v14599_v62, %v14669_v25  ;;  %5695 = vst.msk [vmem:[#allocation4 + $0x22] sm:$0x3] %vm5207_vm2, %v5693_v34  ;;  %10128 = vmatprep.subr.bf16.mxu0 %v10127_v8  ;;  %v6164_v17 = vld [vmem:[%s17987_s5 + $0x158] sm:$0xff]  ;;  %v6167_v1 = vld [vmem:[%s17987_s5 + $0x170] sm:$0xff]  ;;  %v5863_v44 = vrot.slane %v14422_v24, 7  ;;  %v18570_v63 = vld [vmem:[#allocation28_spill] sm:$0xff] }
 0x630   :  { %v5727_v47 = vsel %vm5200_vm15, %v5725_v49, %v5726_v55  ;;  %v5748_v29 = vsel %vm5198_vm14, %v5747_v53, %v13937_v28  ;;  %v9843_v59 = vpack.c.bf16 %v6160_v43, %v6158_v21  ;;  %5413 = vrot.lane.b32.xlu1 %v14588_v19, %s11064_s2  ;;  %9842 = vmatpush1.bf16.msra.mxu1 %v9841_v58  ;;  %v5805_v28 = vrot.slane %v14400_v0, 7  ;;  %v6161_v19 = vld [vmem:[%s17987_s5 + $0x140] sm:$0xff]  ;;  %v6170_v24 = vld [vmem:[%s17987_s5 + $0x188] sm:$0xff]  ;;  %v6172_v58 = vld [vmem:[%s17987_s5 + $0x198] sm:$0xff] }
 0x631   :  { %v5728_v35 = vsel %vm5202_vm0, %v5725_v49, %v5727_v47  ;;  %v5749_v25 = vsel %vm5200_vm15, %v5747_v53, %v5748_v29  ;;  %v9845_v10 = vpack.c.bf16 %v6159_v36, %v6157_v20  ;;  %v6085_v51 = vsel %vm5202_vm0, %v14567_v56, %v6084_v54  ;;  %v18568_v21 = vld [vmem:[#allocation19_spill] sm:$0xff]  ;;  %v18571_v36 = vld [vmem:[#allocation24_spill] sm:$0xff]  ;;  %v18572_v55 = vld [vmem:[#allocation14_spill] sm:$0xff] }
 0x632   :  { %v5729_v12 = vsel %vm5204_vm1, %v5725_v49, %v5728_v35  ;;  %v5750_v22 = vsel %vm5202_vm0, %v5747_v53, %v5749_v25  ;;  %9844 = vmatprep.subr.bf16.mxu1 %v9843_v59  ;;  %v5784_v27 = vsel %vm5198_vm14, %v5783_v3, %v18567_v4  ;;  %6029 = vrot.lane.b32.xlu0 %v14633_v57, %s11064_s2  ;;  %v18569_v18 = vld [vmem:[#allocation31_spill] sm:$0xff] }
 0x633   :  { %5731 = vst.msk [vmem:[#allocation4 + $0x24] sm:$0x3] %vm5207_vm2, %v5729_v12  ;;  %v5751_v0 = vsel %vm5204_vm1, %v5747_v53, %v5750_v22  ;;  %v5785_v31 = vsel %vm5200_vm15, %v5783_v3, %v5784_v27  ;;  %v5806_v15 = vsel %vm5198_vm14, %v5805_v28, %v13965_v26  ;;  %v9847_v39 = vpack.c.bf16 %v6164_v17, %v6162_v42  ;;  %v6169_v42 = vld [vmem:[%s17987_s5 + $0x180] sm:$0xff]  ;;  %v18574_v17 = vld [vmem:[#allocation25_spill] sm:$0xff]  ;;  %v6176_v4 = vld [vmem:[%s17987_s5 + $0x1b8] sm:$0xff] }
 0x634   :  { %v6050_v57 = vsel %vm5204_vm1, %v14559_v61, %v14655_v11  ;;  %v6107_v2 = vsel %vm5202_vm0, %v14599_v62, %v6106_v30  ;;  %5753 = vst.msk [vmem:[#allocation4 + $0x26] sm:$0x3] %vm5207_vm2, %v5751_v0  ;;  %v5786_v26 = vsel %vm5202_vm0, %v5783_v3, %v5785_v31  ;;  %v5807_v37 = vsel %vm5200_vm15, %v5805_v28, %v5806_v15  ;;  %v6171_v12 = vld [vmem:[%s17987_s5 + $0x190] sm:$0xff]  ;;  %v6174_v22 = vld [vmem:[%s17987_s5 + $0x1a8] sm:$0xff]  ;;  %v18576_v31 = vld [vmem:[#allocation27_spill] sm:$0xff] }
 0x635   :  { %6051 = vrot.lane.b32.xlu1 %v6050_v57, %s11064_s2  ;;  %9846 = vmatpush1.bf16.msra.mxu1 %v9845_v10  ;;  %v5787_v11 = vsel %vm5204_vm1, %v5783_v3, %v5786_v26  ;;  %v5808_v50 = vsel %vm5202_vm0, %v5805_v28, %v5807_v37  ;;  %v9849_v6 = vpack.c.bf16 %v6163_v52, %v6161_v19  ;;  %v18573_v3 = vld [vmem:[#allocation32_spill] sm:$0xff]  ;;  %v5261_v35 = vrot.slane %v18574_v17, 7 }
 0x636   :  { %v6086_v49 = vsel %vm5204_vm1, %v14567_v56, %v6085_v51  ;;  %5789 = vst.msk [vmem:[#allocation4 + $0x28] sm:$0x3] %vm5207_vm2, %v5787_v11  ;;  %v5809_v46 = vsel %vm5204_vm1, %v5805_v28, %v5808_v50  ;;  %9848 = vmatprep.subr.bf16.mxu1 %v9847_v39  ;;  %v9851_v41 = vpack.c.bf16 %v6168_v9, %v6166_v48  ;;  %v18575_v52 = vld [vmem:[#allocation12_spill] sm:$0xff]  ;;  %v5283_v15 = vrot.slane %v18576_v31, 7  ;;  %v18585_v31 = vld [vmem:[#allocation13_spill] sm:$0xff] }
 0x637   :  { %6087 = vrot.lane.b32.xlu0 %v6086_v49, %s11064_s2  ;;  %v6108_v53 = vsel %vm5204_vm1, %v14599_v62, %v6107_v2  ;;  %5811 = vst.msk [vmem:[#allocation4 + $0x2a] sm:$0x3] %vm5207_vm2, %v5809_v46  ;;  %v5842_v40 = vsel %vm5198_vm14, %v5841_v13, %v18568_v21  ;;  %v9853_v43 = vpack.c.bf16 %v6167_v1, %v6165_v45  ;;  %v6173_v57 = vld [vmem:[%s17987_s5 + $0x1a0] sm:$0xff]  ;;  %v6175_v2 = vld [vmem:[%s17987_s5 + $0x1b0] sm:$0xff]  ;;  %v5899_v1 = vrot.slane %v14431_v33, 7  ;;  %v6178_v50 = vld [vmem:[%s17987_s5 + $0x1c8] sm:$0xff] }
 0x638   :  { %v5203_v8 = vsel %vm5202_vm0, %v18570_v63, %v18569_v18  ;;  %v5843_v20 = vsel %vm5200_vm15, %v5841_v13, %v5842_v40  ;;  %v5864_v54 = vsel %vm5198_vm14, %v5863_v44, %v18571_v36  ;;  %v5226_v30 = vsel %vm5198_vm14, %v18573_v3, %v18572_v55  ;;  %v18577_v37 = vld [vmem:[#allocation16_spill] sm:$0xff]  ;;  %v18578_v33 = vld [vmem:[#allocation22_spill] sm:$0xff] }
 0x639   :  { %v5205_v34 = vsel %vm5204_vm1, %v18570_v63, %v5203_v8  ;;  %6109 = vrot.lane.b32.xlu1 %v6108_v53, %s11064_s2  ;;  %9850 = vmatpush1.bf16.msra.mxu1 %v9849_v6  ;;  %v5844_v47 = vsel %vm5202_vm0, %v5841_v13, %v5843_v20  ;;  %v5865_v29 = vsel %vm5200_vm15, %v5863_v44, %v5864_v54  ;;  %v5921_v11 = vrot.slane %v14469_v38, 7  ;;  %v6180_v6 = vld [vmem:[%s17987_s5 + $0x1d8] sm:$0xff]  ;;  %v6177_v63 = vld [vmem:[%s17987_s5 + $0x1c0] sm:$0xff]  ;;  %v6179_v8 = vld [vmem:[%s17987_s5 + $0x1d0] sm:$0xff] }
 0x63a   :  { %5208 = vst.msk [vmem:[#allocation4] sm:$0x3] %vm5207_vm2, %v5205_v34  ;;  %v5227_v59 = vsel %vm5200_vm15, %v18573_v3, %v5226_v30  ;;  %v5845_v25 = vsel %vm5204_vm1, %v5841_v13, %v5844_v47  ;;  %v5866_v10 = vsel %vm5202_vm0, %v5863_v44, %v5865_v29  ;;  %9852 = vmatprep.subr.bf16.mxu1 %v9851_v41  ;;  %v18579_v41 = vld [vmem:[#allocation23_spill] sm:$0xff]  ;;  %v5957_v20 = vrot.slane %v14472_v32, 7  ;;  %v6182_v55 = vld [vmem:[%s17987_s5 + $0x1e8] sm:$0xff] }
 0x63b   :  { %v5228_v28 = vsel %vm5202_vm0, %v18573_v3, %v5227_v59  ;;  %v9855_v51 = vpack.c.bf16 %v6172_v58, %v6170_v24  ;;  %5847 = vst.msk [vmem:[#allocation4 + $0x2c] sm:$0x3] %vm5207_vm2, %v5845_v25  ;;  %v5867_v27 = vsel %vm5204_vm1, %v5863_v44, %v5866_v10  ;;  %v5262_v0 = vsel %vm5198_vm14, %v5261_v35, %v18575_v52  ;;  %v18580_v32 = vld [vmem:[#allocation8_spill] sm:$0xff]  ;;  %v18581_v47 = vld [vmem:[#allocation21_spill] sm:$0xff]  ;;  %v18584_v52 = vld [vmem:[#allocation11_spill] sm:$0xff] }
 0x63c   :  { %v5229_v19 = vsel %vm5204_vm1, %v18573_v3, %v5228_v28  ;;  %5869 = vst.msk [vmem:[#allocation4 + $0x2e] sm:$0x3] %vm5207_vm2, %v5867_v27  ;;  %v9857_v39 = vpack.c.bf16 %v6171_v12, %v6169_v42  ;;  %v5263_v48 = vsel %vm5200_vm15, %v5261_v35, %v5262_v0  ;;  %v9859_v9 = vpack.c.bf16 %v6176_v4, %v6174_v22  ;;  %v6184_v3 = vld [vmem:[%s17987_s5 + $0x1f8] sm:$0xff]  ;;  %v6181_v17 = vld [vmem:[%s17987_s5 + $0x1e0] sm:$0xff]  ;;  %v18582_v25 = vld [vmem:[#allocation29_spill] sm:$0xff] }
 0x63d   :  { %5231 = vst.msk [vmem:[#allocation4 + $0x2] sm:$0x3] %vm5207_vm2, %v5229_v19  ;;  %9854 = vmatpush1.bf16.msra.mxu1 %v9853_v43  ;;  %v5264_v26 = vsel %vm5202_vm0, %v5261_v35, %v5263_v48  ;;  %v5284_v45 = vsel %vm5198_vm14, %v5283_v15, %v18577_v37  ;;  %v9861_v44 = vpack.c.bf16 %v6175_v2, %v6173_v57  ;;  %v5979_v36 = vrot.slane %v14496_v5, 7  ;;  %v18583_v28 = vld [vmem:[#allocation30_spill] sm:$0xff] }
 0x63e   :  { %9856 = vmatprep.subr.bf16.mxu1 %v9855_v51  ;;  %v5265_v13 = vsel %vm5204_vm1, %v5261_v35, %v5264_v26  ;;  %v5285_v49 = vsel %vm5200_vm15, %v5283_v15, %v5284_v45  ;;  %v5900_v38 = vsel %vm5198_vm14, %v5899_v1, %v18578_v33  ;;  %v5922_v53 = vsel %vm5198_vm14, %v5921_v11, %v18579_v41  ;;  %v6183_v35 = vld [vmem:[%s17987_s5 + $0x1f0] sm:$0xff]  ;;  %v6188_v48 = vld [vmem:[%s17987_s5 + $0x218] sm:$0xff] }
 0x63f   :  { %5267 = vst.msk [vmem:[#allocation4 + $0x4] sm:$0x3] %vm5207_vm2, %v5265_v13  ;;  %v5286_v46 = vsel %vm5202_vm0, %v5283_v15, %v5285_v49  ;;  %v5901_v40 = vsel %vm5200_vm15, %v5899_v1, %v5900_v38  ;;  %v5923_v43 = vsel %vm5200_vm15, %v5921_v11, %v5922_v53  ;;  %v9863_v18 = vpack.c.bf16 %v6180_v6, %v6178_v50  ;;  %v18586_v13 = vld [vmem:[#allocation17_spill] sm:$0xff] }
 0x640   :  { %v5287_v21 = vsel %vm5204_vm1, %v5283_v15, %v5286_v46  ;;  %v5902_v24 = vsel %vm5202_vm0, %v5899_v1, %v5901_v40  ;;  %v5924_v58 = vsel %vm5202_vm0, %v5921_v11, %v5923_v43  ;;  %v9865_v30 = vpack.c.bf16 %v6179_v8, %v6177_v63  ;;  %v18587_v46 = vld [vmem:[#allocation15_spill] sm:$0xff] }
 0x641   :  { %9858 = vmatpush1.bf16.msra.mxu1 %v9857_v39  ;;  %5289 = vst.msk [vmem:[#allocation4 + $0x6] sm:$0x3] %vm5207_vm2, %v5287_v21  ;;  %v5903_v54 = vsel %vm5204_vm1, %v5899_v1, %v5902_v24  ;;  %v5925_v34 = vsel %vm5204_vm1, %v5921_v11, %v5924_v58  ;;  %v5958_v5 = vsel %vm5198_vm14, %v5957_v20, %v18580_v32  ;;  %v5319_v10 = vrot.slane %v18582_v25, 7  ;;  %v6186_v39 = vld [vmem:[%s17987_s5 + $0x208] sm:$0xff] }
 0x642   :  { %9860 = vmatprep.subr.bf16.mxu1 %v9859_v9  ;;  %5905 = vst.msk [vmem:[#allocation4 + $0x30] sm:$0x3] %vm5207_vm2, %v5903_v54  ;;  %5927 = vst.msk [vmem:[#allocation4 + $0x32] sm:$0x3] %vm5207_vm2, %v5925_v34  ;;  %v5980_v29 = vsel %vm5198_vm14, %v5979_v36, %v18581_v47  ;;  %v5959_v59 = vsel %vm5200_vm15, %v5957_v20, %v5958_v5  ;;  %v5341_v51 = vrot.slane %v18583_v28, 7  ;;  %v5377_v45 = vrot.slane %v14146_v7, 7 }
 0x643   :  { %v5981_v42 = vsel %vm5200_vm15, %v5979_v36, %v5980_v29  ;;  %v5960_v12 = vsel %vm5202_vm0, %v5957_v20, %v5959_v59  ;;  %v9867_v4 = vpack.c.bf16 %v6184_v3, %v6182_v55  ;;  %v5320_v0 = vsel %vm5198_vm14, %v5319_v10, %v18584_v52  ;;  %v18589_v54 = vld [vmem:[#allocation9_spill] sm:$0xff] }
 0x644   :  { %v5982_v22 = vsel %vm5202_vm0, %v5979_v36, %v5981_v42  ;;  %v5961_v27 = vsel %vm5204_vm1, %v5957_v20, %v5960_v12  ;;  %v5342_v15 = vsel %vm5198_vm14, %v5341_v51, %v18585_v31  ;;  %v9869_v9 = vpack.c.bf16 %v6183_v35, %v6181_v17  ;;  %v18588_v20 = vld [vmem:[#allocation18_spill] sm:$0xff] }
 0x645   :  { %9862 = vmatpush1.bf16.msra.mxu1 %v9861_v44  ;;  %v5983_v19 = vsel %vm5204_vm1, %v5979_v36, %v5982_v22  ;;  %5963 = vst.msk [vmem:[#allocation4 + $0x34] sm:$0x3] %vm5207_vm2, %v5961_v27  ;;  %v5321_v57 = vsel %vm5200_vm15, %v5319_v10, %v5320_v0  ;;  %v5343_v2 = vsel %vm5200_vm15, %v5341_v51, %v5342_v15  ;;  %v5399_v1 = vrot.slane %v14202_v60, 7  ;;  %v6443_v28 = vld [vmem:[%s17987_s5 + $0xa10] sm:$0xff]  ;;  %v6448_v27 = vld [vmem:[%s17987_s5 + $0xa38] sm:$0xff] }
 0x646   :  { %9864 = vmatprep.subr.bf16.mxu1 %v9863_v18  ;;  %5985 = vst.msk [vmem:[#allocation4 + $0x36] sm:$0x3] %vm5207_vm2, %v5983_v19  ;;  %v5322_v26 = vsel %vm5202_vm0, %v5319_v10, %v5321_v57  ;;  %v5344_v37 = vsel %vm5202_vm0, %v5341_v51, %v5343_v2  ;;  %v9871_v6 = vpack.c.bf16 %v6188_v48, %v6186_v39  ;;  %v6015_v33 = vrot.slane %v14532_v14, 7  ;;  %v18590_v12 = vld [vmem:[#allocation10_spill] sm:$0xff]  ;;  %v6445_v48 = vld [vmem:[%s17987_s5 + $0xa20] sm:$0xff]  ;;  %v6450_v2 = vld [vmem:[%s17987_s5 + $0xa48] sm:$0xff] }
 0x647   :  { %v5323_v11 = vsel %vm5204_vm1, %v5319_v10, %v5322_v26  ;;  %v5345_v50 = vsel %vm5204_vm1, %v5341_v51, %v5344_v37  ;;  %v5378_v49 = vsel %vm5198_vm14, %v5377_v45, %v18586_v13  ;;  %v5400_v44 = vsel %vm5198_vm14, %v5399_v1, %v18587_v46  ;;  %v6441_v10 = vld [vmem:[%s17987_s5 + $0xa00] sm:$0xff]  ;;  %v6452_v26 = vld [vmem:[%s17987_s5 + $0xa58] sm:$0xff]  ;;  %v6454_v13 = vld [vmem:[%s17987_s5 + $0xa68] sm:$0xff] }
 0x648   :  { %5325 = vst.msk [vmem:[#allocation4 + $0x8] sm:$0x3] %vm5207_vm2, %v5323_v11  ;;  %5347 = vst.msk [vmem:[#allocation4 + $0xa] sm:$0x3] %vm5207_vm2, %v5345_v50  ;;  %v5379_v7 = vsel %vm5200_vm15, %v5377_v45, %v5378_v49  ;;  %v5401_v60 = vsel %vm5200_vm15, %v5399_v1, %v5400_v44  ;;  %v6037_v38 = vrot.slane %v14559_v61, 7  ;;  %v6016_v43 = vsel %vm5198_vm14, %v6015_v33, %v14019_v16  ;;  %v6449_v11 = vld [vmem:[%s17987_s5 + $0xa40] sm:$0xff] }
 0x649   :  { %9866 = vmatpush1.bf16.msra.mxu1 %v9865_v30  ;;  %v5380_v41 = vsel %vm5202_vm0, %v5377_v45, %v5379_v7  ;;  %v5402_v53 = vsel %vm5202_vm0, %v5399_v1, %v5401_v60  ;;  %v6017_v14 = vsel %vm5200_vm15, %v6015_v33, %v6016_v43  ;;  %v6073_v24 = vrot.slane %v14567_v56, 7  ;;  %v6451_v50 = vld [vmem:[%s17987_s5 + $0xa50] sm:$0xff]  ;;  %v6456_v49 = vld [vmem:[%s17987_s5 + $0xa78] sm:$0xff]  ;;  %v6453_v60 = vld [vmem:[%s17987_s5 + $0xa60] sm:$0xff] }
 0x64a   :  { %9868 = vmatprep.subr.bf16.mxu1 %v9867_v4  ;;  %v5381_v21 = vsel %vm5204_vm1, %v5377_v45, %v5380_v41  ;;  %v5403_v40 = vsel %vm5204_vm1, %v5399_v1, %v5402_v53  ;;  %v6038_v18 = vsel %vm5198_vm14, %v6037_v38, %v14040_v23  ;;  %v6018_v63 = vsel %vm5202_vm0, %v6015_v33, %v6017_v14  ;;  %v6446_v4 = vld [vmem:[%s17987_s5 + $0xa28] sm:$0xff]  ;;  %v6460_v53 = vld [vmem:[%s17987_s5 + $0xa98] sm:$0xff]  ;;  %v6459_v14 = vld [vmem:[%s17987_s5 + $0xa90] sm:$0xff] }
 0x64b   :  { %5383 = vst.msk [vmem:[#allocation4 + $0xc] sm:$0x3] %vm5207_vm2, %v5381_v21  ;;  %5405 = vst.msk [vmem:[#allocation4 + $0xe] sm:$0x3] %vm5207_vm2, %v5403_v40  ;;  %v6039_v61 = vsel %vm5200_vm15, %v6037_v38, %v6038_v18  ;;  %v6095_v58 = vrot.slane %v14599_v62, 7  ;;  %v6019_v16 = vsel %vm5204_vm1, %v6015_v33, %v6018_v63  ;;  %v6074_v36 = vsel %vm5198_vm14, %v6073_v24, %v18588_v20  ;;  %v6455_v33 = vld [vmem:[%s17987_s5 + $0xa70] sm:$0xff] }
 0x64c   :  { %v6040_v8 = vsel %vm5202_vm0, %v6037_v38, %v6039_v61  ;;  %6021 = vst.msk [vmem:[#allocation4 + $0x38] sm:$0x3] %vm5207_vm2, %v6019_v16  ;;  %v6075_v55 = vsel %vm5200_vm15, %v6073_v24, %v6074_v36  ;;  %v10129_v31 = vpack.c.bf16 %v6443_v28, %v6441_v10  ;;  %v10131_v39 = vpack.c.bf16 %v6448_v27, %v6446_v4  ;;  %v6458_v41 = vld [vmem:[%s17987_s5 + $0xa88] sm:$0xff]  ;;  %v6457_v18 = vld [vmem:[%s17987_s5 + $0xa80] sm:$0xff]  ;;  %v6463_v20 = vld [vmem:[%s17987_s5 + $0xab0] sm:$0xff] }
 0x64d   :  { %9870 = vmatpush1.bf16.msra.mxu1 %v9869_v9  ;;  %v6041_v23 = vsel %vm5204_vm1, %v6037_v38, %v6040_v8  ;;  %v6096_v34 = vsel %vm5198_vm14, %v6095_v58, %v18589_v54  ;;  %v6076_v62 = vsel %vm5202_vm0, %v6073_v24, %v6075_v55  ;;  %v6447_v9 = vld [vmem:[%s17987_s5 + $0xa30] sm:$0xff]  ;;  %v10135_v1 = vpack.c.bf16 %v6452_v26, %v6450_v2  ;;  %v6462_v63 = vld [vmem:[%s17987_s5 + $0xaa8] sm:$0xff]  ;;  %v6464_v8 = vld [vmem:[%s17987_s5 + $0xab8] sm:$0xff] }
 0x64e   :  { %9872 = vmatprep.subr.bf16.mxu1 %v9871_v6  ;;  %6043 = vst.msk [vmem:[#allocation4 + $0x3a] sm:$0x3] %vm5207_vm2, %v6041_v23  ;;  %v6097_v56 = vsel %vm5200_vm15, %v6095_v58, %v6096_v34  ;;  %v6077_v30 = vsel %vm5204_vm1, %v6073_v24, %v6076_v62  ;;  %v10133_v45 = vpack.c.bf16 %v6447_v9, %v6445_v48  ;;  %v6461_v23 = vld [vmem:[%s17987_s5 + $0xaa0] sm:$0xff]  ;;  %v6466_v54 = vld [vmem:[%s17987_s5 + $0xac8] sm:$0xff]  ;;  %v6468_v34 = vld [vmem:[%s17987_s5 + $0xad8] sm:$0xff] }
 0x64f   :  { %v6098_v3 = vsel %vm5202_vm0, %v6095_v58, %v6097_v56  ;;  %6079 = vst.msk [vmem:[#allocation4 + $0x3c] sm:$0x3] %vm5207_vm2, %v6077_v30  ;;  %v10137_v44 = vpack.c.bf16 %v6451_v50, %v6449_v11  ;;  %v10139_v7 = vpack.c.bf16 %v6456_v49, %v6454_v13  ;;  %v10141_v40 = vpack.c.bf16 %v6455_v33, %v6453_v60  ;;  %v6467_v30 = vld [vmem:[%s17987_s5 + $0xad0] sm:$0xff]  ;;  %v6474_v10 = vld [vmem:[%s17987_s5 + $0xb08] sm:$0xff]  ;;  %v6476_v28 = vld [vmem:[%s17987_s5 + $0xb18] sm:$0xff] }
 0x650   :  { %v6099_v32 = vsel %vm5204_vm1, %v6095_v58, %v6098_v3  ;;  %v10143_v43 = vpack.c.bf16 %v6460_v53, %v6458_v41  ;;  %v10145_v58 = vpack.c.bf16 %v6459_v14, %v6457_v18  ;;  %v10147_v16 = vpack.c.bf16 %v6464_v8, %v6462_v63  ;;  %v6465_v3 = vld [vmem:[%s17987_s5 + $0xac0] sm:$0xff]  ;;  %v6190_v26 = vld [vmem:[%s17987_s5 + $0x228] sm:$0xff]  ;;  %v6191_v53 = vld [vmem:[%s17987_s5 + $0x230] sm:$0xff] }
 0x651   :  { %6101 = vst.msk [vmem:[#allocation4 + $0x3e] sm:$0x3] %vm5207_vm2, %v6099_v32  ;;  %v10149_v56 = vpack.c.bf16 %v6463_v20, %v6461_v23  ;;  %v10151_v62 = vpack.c.bf16 %v6468_v34, %v6466_v54  ;;  %v10159_v4 = vpack.c.bf16 %v6476_v28, %v6474_v10  ;;  %v6473_v27 = vld [vmem:[%s17987_s5 + $0xb00] sm:$0xff]  ;;  %v6482_v49 = vld [vmem:[%s17987_s5 + $0xb48] sm:$0xff]  ;;  %v6196_v18 = vld [vmem:[%s17987_s5 + $0x258] sm:$0xff] }
 0x652   :  { %v6477_v50 = vld [vmem:[%s17987_s5 + $0xb20] sm:$0xff]  ;;  %v6483_v63 = vld [vmem:[%s17987_s5 + $0xb50] sm:$0xff]  ;;  %v6202_v10 = vld [vmem:[%s17987_s5 + $0x288] sm:$0xff] }
 0x653   :  { %v6189_v41 = vld [vmem:[%s17987_s5 + $0x220] sm:$0xff]  ;;  %v6195_v54 = vld [vmem:[%s17987_s5 + $0x250] sm:$0xff]  ;;  %v6204_v28 = vld [vmem:[%s17987_s5 + $0x298] sm:$0xff] }
 0x662   :  { %v5450_v5 = vpop.permute.xlu0 %5449 }
 0x663   :  { %5452 = vst.msk [vmem:[#allocation4 + $0x10] sm:$0x3] %vm5219_vm7, %v5450_v5  ;;  %v6470_v5 = vld [vmem:[%s17987_s5 + $0xae8] sm:$0xff] }
 0x666   :  { %v5472_v47 = vpop.permute.xlu1 %5471  ;;  %v5508_v29 = vpop.permute.xlu0 %5507 }
 0x667   :  { %5474 = vst.msk [vmem:[#allocation4 + $0x12] sm:$0x3] %vm5219_vm7, %v5472_v47  ;;  %5510 = vst.msk [vmem:[#allocation4 + $0x14] sm:$0x3] %vm5219_vm7, %v5508_v29  ;;  %v6472_v47 = vld [vmem:[%s17987_s5 + $0xaf8] sm:$0xff] }
 0x66a   :  { %v5530_v59 = vpop.permute.xlu1 %5529 }
 0x66b   :  { %5532 = vst.msk [vmem:[#allocation4 + $0x16] sm:$0x3] %vm5219_vm7, %v5530_v59  ;;  %v10153_v59 = vpack.c.bf16 %v6467_v30, %v6465_v3  ;;  %v6485_v3 = vld [vmem:[%s17987_s5 + $0xb60] sm:$0xff]  ;;  %v6487_v30 = vld [vmem:[%s17987_s5 + $0xb70] sm:$0xff] }
 0x66e   :  { %v5566_v42 = vpop.permute.xlu0 %5565 }
 0x66f   :  { %5568 = vst.msk [vmem:[#allocation4 + $0x18] sm:$0x3] %vm5219_vm7, %v5566_v42  ;;  %v5588_v17 = vpop.permute.xlu1 %5587  ;;  %v10155_v42 = vpack.c.bf16 %v6472_v47, %v6470_v5  ;;  %v6490_v5 = vld [vmem:[%s17987_s5 + $0xb88] sm:$0xff]  ;;  %v6492_v47 = vld [vmem:[%s17987_s5 + $0xb98] sm:$0xff] }
 0x670   :  { %5590 = vst.msk [vmem:[#allocation4 + $0x1a] sm:$0x3] %vm5219_vm7, %v5588_v17  ;;  %v6469_v17 = vld [vmem:[%s17987_s5 + $0xae0] sm:$0xff] }
 0x672   :  { %v5624_v35 = vpop.permute.xlu0 %5623  ;;  %v6115_v25 = vld [vmem:[#allocation4 + $0x10] sm:$0xff] }
 0x673   :  { %5626 = vst.msk [vmem:[#allocation4 + $0x1c] sm:$0x3] %vm5219_vm7, %v5624_v35  ;;  %v7199_v51 = vcombine.high %v6115_v25, %v6115_v25  ;;  %v7206_v22 = vrot.slane %v6115_v25, %v18590_v12  ;;  %v5646_v19 = vpop.permute.xlu1 %5645  ;;  %v6471_v35 = vld [vmem:[%s17987_s5 + $0xaf0] sm:$0xff] }
 0x674   :  { %5648 = vst.msk [vmem:[#allocation4 + $0x1e] sm:$0x3] %vm5219_vm7, %v5646_v19  ;;  %v6475_v19 = vld [vmem:[%s17987_s5 + $0xb10] sm:$0xff] }
 0x675   :  { %v7214_v0 = vcombine.high %v7206_v22, %v7206_v22  ;;  %v15058_v15 = vrot.slane %v7199_v51, %v18590_v12  ;;  %v10161_v2 = vpack.c.bf16 %v6475_v19, %v6473_v27  ;;  %v6494_v19 = vld [vmem:[%s17987_s5 + $0xba8] sm:$0xff] }
 0x676   :  { %v5682_v52 = vpop.permute.xlu0 %5681 }
 0x677   :  { %5684 = vst.msk [vmem:[#allocation4 + $0x20] sm:$0x3] %vm5219_vm7, %v5682_v52  ;;  %7681 = vmatprep.mubr.f32.mxu0 %v7214_v0  ;;  %v7215_v57 = vcombine.high %v15058_v15, %v15058_v15  ;;  %v6478_v0 = vld [vmem:[%s17987_s5 + $0xb28] sm:$0xff] }
 0x678   :  { %7682 = vmatmul.mubr.f32.vlgmr.msra.gmra.mrb[0].mxu0 %v7206_v22  ;;  %v10157_v22 = vpack.c.bf16 %v6471_v35, %v6469_v17  ;;  %v6197_v17 = vld [vmem:[%s17987_s5 + $0x260] sm:$0xff]  ;;  %v6199_v35 = vld [vmem:[%s17987_s5 + $0x270] sm:$0xff] }
 0x679   :  { %10130 = vmatpush1.bf16.msra.mxu0 %v10129_v31  ;;  %7752 = vmatprep.mubr.f32.mxu0 %v7215_v57  ;;  %v6480_v31 = vld [vmem:[%s17987_s5 + $0xb38] sm:$0xff]  ;;  %v6187_v57 = vld [vmem:[%s17987_s5 + $0x210] sm:$0xff] }
 0x67a   :  { %10132 = vmatprep.subr.bf16.mxu0 %v10131_v39  ;;  %v6185_v39 = vld [vmem:[%s17987_s5 + $0x200] sm:$0xff]  ;;  %v10163_v11 = vpack.c.bf16 %v6480_v31, %v6478_v0  ;;  %v9885_v0 = vpack.c.bf16 %v6199_v35, %v6197_v17 }
 0x67b   :  { %v5704_v37 = vpop.permute.xlu1 %5703 }
 0x67c   :  { %5706 = vst.msk [vmem:[#allocation4 + $0x22] sm:$0x3] %vm5219_vm7, %v5704_v37 }
 0x67d   :  { %v5740_v6 = vpop.permute.xlu0 %5739  ;;  %10134 = vmatpush1.bf16.msra.mxu0 %v10133_v45 }
 0x67e   :  { %5742 = vst.msk [vmem:[#allocation4 + $0x24] sm:$0x3] %vm5219_vm7, %v5740_v6  ;;  %10136 = vmatprep.subr.bf16.mxu0 %v10135_v1  ;;  %v6192_v1 = vld [vmem:[%s17987_s5 + $0x238] sm:$0xff]  ;;  %v6479_v6 = vld [vmem:[%s17987_s5 + $0xb30] sm:$0xff] }
 0x67f   :  { %v5762_v46 = vpop.permute.xlu1 %5761 }
 0x680   :  { %5764 = vst.msk [vmem:[#allocation4 + $0x26] sm:$0x3] %vm5219_vm7, %v5762_v46  ;;  %v6484_v46 = vld [vmem:[%s17987_s5 + $0xb58] sm:$0xff] }
 0x681   :  { %v5798_v38 = vpop.permute.xlu0 %5797  ;;  %10138 = vmatpush1.bf16.msra.mxu0 %v10137_v44  ;;  %v10167_v14 = vpack.c.bf16 %v6484_v46, %v6482_v49  ;;  %v6205_v49 = vld [vmem:[%s17987_s5 + $0x2a0] sm:$0xff]  ;;  %v6207_v46 = vld [vmem:[%s17987_s5 + $0x2b0] sm:$0xff] }
 0x682   :  { %5800 = vst.msk [vmem:[#allocation4 + $0x28] sm:$0x3] %vm5219_vm7, %v5798_v38  ;;  %10140 = vmatprep.subr.bf16.mxu0 %v10139_v7  ;;  %v9873_v7 = vpack.c.bf16 %v6187_v57, %v6185_v39  ;;  %v9875_v38 = vpack.c.bf16 %v6192_v1, %v6190_v26  ;;  %v9887_v39 = vpack.c.bf16 %v6204_v28, %v6202_v10  ;;  %v6208_v26 = vld [vmem:[%s17987_s5 + $0x2b8] sm:$0xff]  ;;  %v6495_v1 = vld [vmem:[%s17987_s5 + $0xbb0] sm:$0xff]  ;;  %v6217_v10 = vld [vmem:[%s17987_s5 + $0x300] sm:$0xff] }
 0x683   :  { %v6219_v28 = vld [vmem:[%s17987_s5 + $0x310] sm:$0xff] }
 0x684   :  { %v5820_v21 = vpop.permute.xlu1 %5819 }
 0x685   :  { %5822 = vst.msk [vmem:[#allocation4 + $0x2a] sm:$0x3] %vm5219_vm7, %v5820_v21  ;;  %v5856_v61 = vpop.permute.xlu0 %5855  ;;  %10142 = vmatpush1.bf16.msra.mxu0 %v10141_v40  ;;  %v10165_v21 = vpack.c.bf16 %v6479_v6, %v6477_v50  ;;  %v6194_v40 = vld [vmem:[%s17987_s5 + $0x248] sm:$0xff]  ;;  %v6500_v50 = vld [vmem:[%s17987_s5 + $0xbd8] sm:$0xff] }
 0x686   :  { %5858 = vst.msk [vmem:[#allocation4 + $0x2c] sm:$0x3] %vm5219_vm7, %v5856_v61  ;;  %10144 = vmatprep.subr.bf16.mxu0 %v10143_v43  ;;  %v6481_v61 = vld [vmem:[%s17987_s5 + $0xb40] sm:$0xff]  ;;  %v9879_v20 = vpack.c.bf16 %v6196_v18, %v6194_v40  ;;  %v6504_v40 = vld [vmem:[%s17987_s5 + $0xbf8] sm:$0xff] }
 0x687   :  { %v10169_v34 = vpack.c.bf16 %v6483_v63, %v6481_v61  ;;  %v6211_v61 = vld [vmem:[%s17987_s5 + $0x2d0] sm:$0xff] }
 0x688   :  { %v5878_v24 = vpop.permute.xlu1 %5877 }
 0x689   :  { %5880 = vst.msk [vmem:[#allocation4 + $0x2e] sm:$0x3] %vm5219_vm7, %v5878_v24  ;;  %10146 = vmatpush1.bf16.msra.mxu0 %v10145_v58  ;;  %v6486_v24 = vld [vmem:[%s17987_s5 + $0xb68] sm:$0xff]  ;;  %v6488_v58 = vld [vmem:[%s17987_s5 + $0xb78] sm:$0xff] }
 0x68a   :  { %v5217_v36 = vpop.permute.xlu0 %5216  ;;  %10148 = vmatprep.subr.bf16.mxu0 %v10147_v16  ;;  %v9877_v16 = vpack.c.bf16 %v6191_v53, %v6189_v41  ;;  %v6497_v41 = vld [vmem:[%s17987_s5 + $0xbc0] sm:$0xff]  ;;  %v6499_v53 = vld [vmem:[%s17987_s5 + $0xbd0] sm:$0xff] }
 0x68b   :  { %5220 = vst.msk [vmem:[#allocation4] sm:$0x3] %vm5219_vm7, %v5217_v36  ;;  %v6193_v36 = vld [vmem:[%s17987_s5 + $0x240] sm:$0xff]  ;;  %v10185_v63 = vpack.c.bf16 %v6499_v53, %v6497_v41 }
 0x68c   :  { %v5240_v55 = vpop.permute.xlu1 %5239  ;;  %v6517_v53 = vld [vmem:[%s17987_s5 + $0xc60] sm:$0xff] }
 0x68d   :  { %5242 = vst.msk [vmem:[#allocation4 + $0x2] sm:$0x3] %vm5219_vm7, %v5240_v55  ;;  %10150 = vmatpush1.bf16.msra.mxu0 %v10149_v56  ;;  %v6198_v55 = vld [vmem:[%s17987_s5 + $0x268] sm:$0xff]  ;;  %v6200_v56 = vld [vmem:[%s17987_s5 + $0x278] sm:$0xff] }
 0x68e   :  { %v5276_v32 = vpop.permute.xlu0 %5275  ;;  %10152 = vmatprep.subr.bf16.mxu0 %v10151_v62  ;;  %v10171_v62 = vpack.c.bf16 %v6488_v58, %v6486_v24  ;;  %v6216_v24 = vld [vmem:[%s17987_s5 + $0x2f8] sm:$0xff] }
 0x68f   :  { %5278 = vst.msk [vmem:[#allocation4 + $0x4] sm:$0x3] %vm5219_vm7, %v5276_v32 }
 0x690   :  { %v5298_v29 = vpop.permute.xlu1 %5297 }
 0x691   :  { %5300 = vst.msk [vmem:[#allocation4 + $0x6] sm:$0x3] %vm5219_vm7, %v5298_v29  ;;  %10154 = vmatpush1.bf16.msra.mxu0 %v10153_v59  ;;  %v9881_v29 = vpack.c.bf16 %v6195_v54, %v6193_v36  ;;  %v6508_v36 = vld [vmem:[%s17987_s5 + $0xc18] sm:$0xff] }
 0x692   :  { %v5914_v25 = vpop.permute.xlu0 %5913  ;;  %10156 = vmatprep.subr.bf16.mxu0 %v10155_v42  ;;  %v9883_v42 = vpack.c.bf16 %v6200_v56, %v6198_v55  ;;  %v6215_v56 = vld [vmem:[%s17987_s5 + $0x2f0] sm:$0xff] }
 0x693   :  { %5916 = vst.msk [vmem:[#allocation4 + $0x30] sm:$0x3] %vm5219_vm7, %v5914_v25  ;;  %v10173_v25 = vpack.c.bf16 %v6487_v30, %v6485_v3  ;;  %v6218_v3 = vld [vmem:[%s17987_s5 + $0x308] sm:$0xff]  ;;  %v15365_v30 = vld [vmem:[#allocation4 + $0x18] sm:$0xff] }
 0x694   :  { %v5936_v51 = vpop.permute.xlu1 %5935  ;;  %v15384_v35 = vrot.slane %v15365_v30, %v18590_v12 }
 0x695   :  { %5938 = vst.msk [vmem:[#allocation4 + $0x32] sm:$0x3] %vm5219_vm7, %v5936_v51  ;;  %10158 = vmatpush1.bf16.msra.mxu0 %v10157_v22  ;;  %v10175_v51 = vpack.c.bf16 %v6492_v47, %v6490_v5  ;;  %v6489_v22 = vld [vmem:[%s17987_s5 + $0xb80] sm:$0xff] }
 0x696   :  { %v5972_v52 = vpop.permute.xlu0 %5971  ;;  %10160 = vmatprep.subr.bf16.mxu0 %v10159_v4  ;;  %v6491_v4 = vld [vmem:[%s17987_s5 + $0xb90] sm:$0xff]  ;;  %v6505_v47 = vld [vmem:[%s17987_s5 + $0xc00] sm:$0xff] }
 0x697   :  { %5974 = vst.msk [vmem:[#allocation4 + $0x34] sm:$0x3] %vm5219_vm7, %v5972_v52  ;;  %v6496_v52 = vld [vmem:[%s17987_s5 + $0xbb8] sm:$0xff]  ;;  %v10177_v57 = vpack.c.bf16 %v6491_v4, %v6489_v22  ;;  %v6222_v22 = vld [vmem:[%s17987_s5 + $0x328] sm:$0xff] }
 0x698   :  { %v5994_v48 = vpop.permute.xlu1 %5993  ;;  %v6113_v9 = vld [vmem:[#allocation4] sm:$0xff]  ;;  %v6224_v4 = vld [vmem:[%s17987_s5 + $0x338] sm:$0xff] }
 0x699   :  { %5996 = vst.msk [vmem:[#allocation4 + $0x36] sm:$0x3] %vm5219_vm7, %v5994_v48  ;;  %v7172_v37 = vrot.slane %v6113_v9, %v18590_v12  ;;  %v7165_v45 = vcombine.high %v6113_v9, %v6113_v9  ;;  %10162 = vmatpush1.bf16.msra.mxu0 %v10161_v2  ;;  %v6201_v48 = vld [vmem:[%s17987_s5 + $0x280] sm:$0xff]  ;;  %v6203_v9 = vld [vmem:[%s17987_s5 + $0x290] sm:$0xff]  ;;  %v6206_v2 = vld [vmem:[%s17987_s5 + $0x2a8] sm:$0xff] }
 0x69a   :  { %10164 = vmatprep.subr.bf16.mxu0 %v10163_v11  ;;  %v6498_v11 = vld [vmem:[%s17987_s5 + $0xbc8] sm:$0xff]  ;;  %v9889_v6 = vpack.c.bf16 %v6203_v9, %v6201_v48  ;;  %v7231_v48 = vcombine.high %v15384_v35, %v15384_v35  ;;  %v9907_v9 = vpack.c.bf16 %v6224_v4, %v6222_v22 }
 0x69b   :  { %v5334_v13 = vpop.permute.xlu0 %5333  ;;  %v7180_v44 = vcombine.high %v7172_v37, %v7172_v37  ;;  %v15201_v60 = vrot.slane %v7165_v45, %v18590_v12  ;;  %v6493_v45 = vld [vmem:[%s17987_s5 + $0xba0] sm:$0xff]  ;;  %v6242_v4 = vld [vmem:[%s17987_s5 + $0x3c8] sm:$0xff] }
 0x69c   :  { %5336 = vst.msk [vmem:[#allocation4 + $0x8] sm:$0x3] %vm5219_vm7, %v5334_v13  ;;  %v9891_v13 = vpack.c.bf16 %v6208_v26, %v6206_v2  ;;  %v6223_v2 = vld [vmem:[%s17987_s5 + $0x330] sm:$0xff] }
 0x69d   :  { %7397 = vmatprep.mubr.f32.mxu1 %v7180_v44  ;;  %v7181_v43 = vcombine.high %v15201_v60, %v15201_v60  ;;  %10166 = vmatpush1.bf16.msra.mxu0 %v10165_v21  ;;  %v10181_v44 = vpack.c.bf16 %v6495_v1, %v6493_v45  ;;  %v6502_v21 = vld [vmem:[%s17987_s5 + $0xbe8] sm:$0xff]  ;;  %v6513_v1 = vld [vmem:[%s17987_s5 + $0xc40] sm:$0xff] }
 0x69e   :  { %v5356_v33 = vpop.permute.xlu1 %5355  ;;  %7398 = vmatmul.mubr.f32.vlgmr.msra.gmra.mrb[128].mxu1 %v7172_v37  ;;  %10168 = vmatprep.subr.bf16.mxu0 %v10167_v14  ;;  %v10179_v37 = vpack.c.bf16 %v6496_v52, %v6494_v19  ;;  %v6209_v14 = vld [vmem:[%s17987_s5 + $0x2c0] sm:$0xff]  ;;  %v10187_v58 = vpack.c.bf16 %v6504_v40, %v6502_v21  ;;  %v6511_v52 = vld [vmem:[%s17987_s5 + $0xc30] sm:$0xff]  ;;  %v6522_v40 = vld [vmem:[%s17987_s5 + $0xc88] sm:$0xff] }
 0x69f   :  { %5358 = vst.msk [vmem:[#allocation4 + $0xa] sm:$0x3] %vm5219_vm7, %v5356_v33  ;;  %9874 = vmatpush1.bf16.msra.mxu1 %v9873_v7  ;;  %7468 = vmatprep.mubr.f32.mxu1 %v7181_v43  ;;  %v6210_v7 = vld [vmem:[%s17987_s5 + $0x2c8] sm:$0xff]  ;;  %v6212_v33 = vld [vmem:[%s17987_s5 + $0x2d8] sm:$0xff]  ;;  %v9893_v43 = vpack.c.bf16 %v6207_v46, %v6205_v49  ;;  %v9897_v54 = vpack.c.bf16 %v6211_v61, %v6209_v14  ;;  %v6509_v19 = vld [vmem:[%s17987_s5 + $0xc20] sm:$0xff] }
 0x6a0   :  { %v5392_v8 = vpop.permute.xlu0 %5391  ;;  %9876 = vmatprep.subr.bf16.mxu1 %v9875_v38  ;;  %v10183_v38 = vpack.c.bf16 %v6500_v50, %v6498_v11  ;;  %v9895_v18 = vpack.c.bf16 %v6212_v33, %v6210_v7  ;;  %v10197_v26 = vpack.c.bf16 %v6511_v52, %v6509_v19  ;;  %v6515_v11 = vld [vmem:[%s17987_s5 + $0xc50] sm:$0xff]  ;;  %v6518_v50 = vld [vmem:[%s17987_s5 + $0xc68] sm:$0xff]  ;;  %v6225_v46 = vld [vmem:[%s17987_s5 + $0x340] sm:$0xff] }
 0x6a1   :  { %5394 = vst.msk [vmem:[#allocation4 + $0xc] sm:$0x3] %vm5219_vm7, %v5392_v8  ;;  %10170 = vmatpush1.bf16.msra.mxu0 %v10169_v34  ;;  %v6214_v8 = vld [vmem:[%s17987_s5 + $0x2e8] sm:$0xff]  ;;  %v6213_v34 = vld [vmem:[%s17987_s5 + $0x2e0] sm:$0xff]  ;;  %v10201_v7 = vpack.c.bf16 %v6515_v11, %v6513_v1  ;;  %v6519_v21 = vld [vmem:[%s17987_s5 + $0xc70] sm:$0xff] }
 0x6a2   :  { %v5414_v23 = vpop.permute.xlu1 %5413  ;;  %10172 = vmatprep.subr.bf16.mxu0 %v10171_v62  ;;  %v9899_v55 = vpack.c.bf16 %v6216_v24, %v6214_v8  ;;  %v9901_v17 = vpack.c.bf16 %v6215_v56, %v6213_v34  ;;  %v6230_v33 = vld [vmem:[%s17987_s5 + $0x368] sm:$0xff]  ;;  %v6229_v61 = vld [vmem:[%s17987_s5 + $0x360] sm:$0xff]  ;;  %v10205_v8 = vpack.c.bf16 %v6519_v21, %v6517_v53  ;;  %v6535_v11 = vld [vmem:[%s17987_s5 + $0xcf0] sm:$0xff] }
 0x6a3   :  { %5416 = vst.msk [vmem:[#allocation4 + $0xe] sm:$0x3] %vm5219_vm7, %v5414_v23  ;;  %9878 = vmatpush1.bf16.msra.mxu1 %v9877_v16  ;;  %v6501_v16 = vld [vmem:[%s17987_s5 + $0xbe0] sm:$0xff]  ;;  %v6503_v23 = vld [vmem:[%s17987_s5 + $0xbf0] sm:$0xff]  ;;  %v6234_v24 = vld [vmem:[%s17987_s5 + $0x388] sm:$0xff] }
 0x6a4   :  { %v6030_v32 = vpop.permute.xlu0 %6029  ;;  %9880 = vmatprep.subr.bf16.mxu1 %v9879_v20  ;;  %v6506_v20 = vld [vmem:[%s17987_s5 + $0xc08] sm:$0xff]  ;;  %v10189_v62 = vpack.c.bf16 %v6503_v23, %v6501_v16  ;;  %v6521_v23 = vld [vmem:[%s17987_s5 + $0xc80] sm:$0xff]  ;;  %v6539_v21 = vld [vmem:[%s17987_s5 + $0xd10] sm:$0xff] }
 0x6a5   :  { %6032 = vst.msk [vmem:[#allocation4 + $0x38] sm:$0x3] %vm5219_vm7, %v6030_v32  ;;  %10174 = vmatpush1.bf16.msra.mxu0 %v10173_v25  ;;  %v6220_v32 = vld [vmem:[%s17987_s5 + $0x318] sm:$0xff]  ;;  %v10191_v5 = vpack.c.bf16 %v6508_v36, %v6506_v20  ;;  %v6523_v20 = vld [vmem:[%s17987_s5 + $0xc90] sm:$0xff]  ;;  %v6526_v36 = vld [vmem:[%s17987_s5 + $0xca8] sm:$0xff] }
 0x6a6   :  { %10176 = vmatprep.subr.bf16.mxu0 %v10175_v51  ;;  %v9903_v25 = vpack.c.bf16 %v6220_v32, %v6218_v3  ;;  %v6233_v56 = vld [vmem:[%s17987_s5 + $0x380] sm:$0xff]  ;;  %v10209_v3 = vpack.c.bf16 %v6523_v20, %v6521_v23  ;;  %v6238_v32 = vld [vmem:[%s17987_s5 + $0x3a8] sm:$0xff]  ;;  %v6256_v23 = vld [vmem:[%s17987_s5 + $0x438] sm:$0xff] }
 0x6a7   :  { %v6052_v59 = vpop.permute.xlu1 %6051  ;;  %9882 = vmatpush1.bf16.msra.mxu1 %v9881_v29  ;;  %v6507_v29 = vld [vmem:[%s17987_s5 + $0xc10] sm:$0xff]  ;;  %v6529_v52 = vld [vmem:[%s17987_s5 + $0xcc0] sm:$0xff] }
 0x6a8   :  { %6054 = vst.msk [vmem:[#allocation4 + $0x3a] sm:$0x3] %vm5219_vm7, %v6052_v59  ;;  %9884 = vmatprep.subr.bf16.mxu1 %v9883_v42  ;;  %v6510_v59 = vld [vmem:[%s17987_s5 + $0xc28] sm:$0xff]  ;;  %v6512_v42 = vld [vmem:[%s17987_s5 + $0xc38] sm:$0xff]  ;;  %v10193_v51 = vpack.c.bf16 %v6507_v29, %v6505_v47  ;;  %v6525_v29 = vld [vmem:[%s17987_s5 + $0xca0] sm:$0xff] }
 0x6a9   :  { %v6088_v27 = vpop.permute.xlu0 %6087  ;;  %10178 = vmatpush1.bf16.msra.mxu0 %v10177_v57  ;;  %v6221_v57 = vld [vmem:[%s17987_s5 + $0x320] sm:$0xff] }
 0x6aa   :  { %6090 = vst.msk [vmem:[#allocation4 + $0x3c] sm:$0x3] %vm5219_vm7, %v6088_v27  ;;  %10180 = vmatprep.subr.bf16.mxu0 %v10179_v37  ;;  %v10195_v27 = vpack.c.bf16 %v6512_v42, %v6510_v59  ;;  %v6228_v37 = vld [vmem:[%s17987_s5 + $0x358] sm:$0xff]  ;;  %v6527_v59 = vld [vmem:[%s17987_s5 + $0xcb0] sm:$0xff]  ;;  %v6530_v42 = vld [vmem:[%s17987_s5 + $0xcc8] sm:$0xff] }
 0x6ab   :  { %v6110_v31 = vpop.permute.xlu1 %6109  ;;  %9886 = vmatpush1.bf16.msra.mxu1 %v9885_v0  ;;  %v6514_v0 = vld [vmem:[%s17987_s5 + $0xc48] sm:$0xff]  ;;  %v10213_v22 = vpack.c.bf16 %v6527_v59, %v6525_v29  ;;  %v6533_v1 = vld [vmem:[%s17987_s5 + $0xce0] sm:$0xff]  ;;  %v6260_v59 = vld [vmem:[%s17987_s5 + $0x458] sm:$0xff] }
 0x6ac   :  { %6112 = vst.msk [vmem:[#allocation4 + $0x3e] sm:$0x3] %vm5219_vm7, %v6110_v31  ;;  %9888 = vmatprep.subr.bf16.mxu1 %v9887_v39  ;;  %v6516_v31 = vld [vmem:[%s17987_s5 + $0xc58] sm:$0xff]  ;;  %v9905_v39 = vpack.c.bf16 %v6219_v28, %v6217_v10  ;;  %v6237_v28 = vld [vmem:[%s17987_s5 + $0x3a0] sm:$0xff] }
 0x6ad   :  { %10182 = vmatpush1.bf16.msra.mxu0 %v10181_v44  ;;  %v10199_v45 = vpack.c.bf16 %v6516_v31, %v6514_v0  ;;  %v6227_v44 = vld [vmem:[%s17987_s5 + $0x350] sm:$0xff]  ;;  %v6534_v31 = vld [vmem:[%s17987_s5 + $0xce8] sm:$0xff]  ;;  %v6537_v53 = vld [vmem:[%s17987_s5 + $0xd00] sm:$0xff] }
 0x6ae   :  { %10184 = vmatprep.subr.bf16.mxu0 %v10183_v38  ;;  %v6232_v38 = vld [vmem:[%s17987_s5 + $0x378] sm:$0xff]  ;;  %v6531_v0 = vld [vmem:[%s17987_s5 + $0xcd0] sm:$0xff] }
 0x6af   :  { %9890 = vmatpush1.bf16.msra.mxu1 %v9889_v6  ;;  %v6520_v6 = vld [vmem:[%s17987_s5 + $0xc78] sm:$0xff]  ;;  %v9915_v14 = vpack.c.bf16 %v6232_v38, %v6230_v33  ;;  %v6250_v33 = vld [vmem:[%s17987_s5 + $0x408] sm:$0xff] }
 0x6b0   :  { %9892 = vmatprep.subr.bf16.mxu1 %v9891_v13  ;;  %v9909_v13 = vpack.c.bf16 %v6223_v2, %v6221_v57  ;;  %v10203_v41 = vpack.c.bf16 %v6520_v6, %v6518_v50  ;;  %v6241_v57 = vld [vmem:[%s17987_s5 + $0x3c0] sm:$0xff]  ;;  %v6243_v2 = vld [vmem:[%s17987_s5 + $0x3d0] sm:$0xff]  ;;  %v6538_v50 = vld [vmem:[%s17987_s5 + $0xd08] sm:$0xff] }
 0x6b1   :  { %10186 = vmatpush1.bf16.msra.mxu0 %v10185_v63  ;;  %v6231_v63 = vld [vmem:[%s17987_s5 + $0x370] sm:$0xff]  ;;  %v6540_v6 = vld [vmem:[%s17987_s5 + $0xd18] sm:$0xff] }
 0x6b2   :  { %10188 = vmatprep.subr.bf16.mxu0 %v10187_v58  ;;  %v6236_v58 = vld [vmem:[%s17987_s5 + $0x398] sm:$0xff]  ;;  %v9917_v34 = vpack.c.bf16 %v6231_v63, %v6229_v61  ;;  %v6249_v63 = vld [vmem:[%s17987_s5 + $0x400] sm:$0xff] }
 0x6b3   :  { %9894 = vmatpush1.bf16.msra.mxu1 %v9893_v43  ;;  %v6524_v43 = vld [vmem:[%s17987_s5 + $0xc98] sm:$0xff] }
 0x6b4   :  { %9896 = vmatprep.subr.bf16.mxu1 %v9895_v18  ;;  %v9913_v18 = vpack.c.bf16 %v6227_v44, %v6225_v46  ;;  %v10207_v16 = vpack.c.bf16 %v6524_v43, %v6522_v40  ;;  %v6245_v46 = vld [vmem:[%s17987_s5 + $0x3e0] sm:$0xff]  ;;  %v6247_v44 = vld [vmem:[%s17987_s5 + $0x3f0] sm:$0xff]  ;;  %v6252_v38 = vld [vmem:[%s17987_s5 + $0x418] sm:$0xff] }
 0x6b5   :  { %10190 = vmatpush1.bf16.msra.mxu0 %v10189_v62  ;;  %v6235_v62 = vld [vmem:[%s17987_s5 + $0x390] sm:$0xff]  ;;  %v15575_v40 = vld [vmem:[#allocation4 + $0x8] sm:$0xff]  ;;  %v9935_v61 = vpack.c.bf16 %v6252_v38, %v6250_v33 }
 0x6b6   :  { %10192 = vmatprep.subr.bf16.mxu0 %v10191_v5  ;;  %v6240_v5 = vld [vmem:[%s17987_s5 + $0x3b8] sm:$0xff]  ;;  %v6542_v43 = vld [vmem:[%s17987_s5 + $0xd28] sm:$0xff]  ;;  %v6267_v33 = vld [vmem:[%s17987_s5 + $0x490] sm:$0xff] }
 0x6b7   :  { %9898 = vmatpush1.bf16.msra.mxu1 %v9897_v54  ;;  %v6528_v54 = vld [vmem:[%s17987_s5 + $0xcb8] sm:$0xff]  ;;  %v9923_v10 = vpack.c.bf16 %v6240_v5, %v6238_v32  ;;  %v6255_v32 = vld [vmem:[%s17987_s5 + $0x430] sm:$0xff] }
 0x6b8   :  { %9900 = vmatprep.subr.bf16.mxu1 %v9899_v55  ;;  %7753 = vmatmul.mubr.f32.vlgmr.msra.gmra.mrb[0].mxu0 %v15058_v15  ;;  %v6226_v15 = vld [vmem:[%s17987_s5 + $0x348] sm:$0xff]  ;;  %v9919_v55 = vpack.c.bf16 %v6236_v58, %v6234_v24  ;;  %v10211_v47 = vpack.c.bf16 %v6528_v54, %v6526_v36  ;;  %v10225_v24 = vpack.c.bf16 %v6539_v21, %v6537_v53  ;;  %v6541_v36 = vld [vmem:[%s17987_s5 + $0xd20] sm:$0xff]  ;;  %v6543_v54 = vld [vmem:[%s17987_s5 + $0xd30] sm:$0xff] }
 0x6b9   :  { %10194 = vmatpush1.bf16.msra.mxu0 %v10193_v51  ;;  %7823 = vmatprep.mubr.f32.mxu0 %v7231_v48  ;;  %v9911_v49 = vpack.c.bf16 %v6228_v37, %v6226_v15  ;;  %v6239_v51 = vld [vmem:[%s17987_s5 + $0x3b0] sm:$0xff]  ;;  %v6246_v15 = vld [vmem:[%s17987_s5 + $0x3e8] sm:$0xff]  ;;  %v6248_v37 = vld [vmem:[%s17987_s5 + $0x3f8] sm:$0xff]  ;;  %v10229_v5 = vpack.c.bf16 %v6543_v54, %v6541_v36 }
 0x6ba   :  { %10196 = vmatprep.subr.bf16.mxu0 %v10195_v27  ;;  %v6244_v27 = vld [vmem:[%s17987_s5 + $0x3d8] sm:$0xff]  ;;  %v9925_v48 = vpack.c.bf16 %v6239_v51, %v6237_v28  ;;  %v6254_v58 = vld [vmem:[%s17987_s5 + $0x428] sm:$0xff] }
 0x6bb   :  { %9902 = vmatpush1.bf16.msra.mxu1 %v9901_v17  ;;  %v6532_v17 = vld [vmem:[%s17987_s5 + $0xcd8] sm:$0xff] }
 0x6bc   :  { %9904 = vmatprep.subr.bf16.mxu1 %v9903_v25  ;;  %v9921_v25 = vpack.c.bf16 %v6235_v62, %v6233_v56  ;;  %v10215_v19 = vpack.c.bf16 %v6532_v17, %v6530_v42  ;;  %v9939_v62 = vpack.c.bf16 %v6256_v23, %v6254_v58  ;;  %v6545_v17 = vld [vmem:[%s17987_s5 + $0xd40] sm:$0xff]  ;;  %v6552_v28 = vld [vmem:[%s17987_s5 + $0xd78] sm:$0xff]  ;;  %v6271_v58 = vld [vmem:[%s17987_s5 + $0x4b0] sm:$0xff] }
 0x6bd   :  { %10198 = vmatpush1.bf16.msra.mxu0 %v10197_v26  ;;  %v10217_v26 = vpack.c.bf16 %v6531_v0, %v6529_v52  ;;  %v6264_v52 = vld [vmem:[%s17987_s5 + $0x478] sm:$0xff] }
 0x6be   :  { %10200 = vmatprep.subr.bf16.mxu0 %v10199_v45  ;;  %v6272_v53 = vld [vmem:[%s17987_s5 + $0x4b8] sm:$0xff] }
 0x6bf   :  { %9906 = vmatpush1.bf16.msra.mxu1 %v9905_v39  ;;  %v6536_v39 = vld [vmem:[%s17987_s5 + $0xcf8] sm:$0xff] }
 0x6c0   :  { %9908 = vmatprep.subr.bf16.mxu1 %v9907_v9  ;;  %v9927_v9 = vpack.c.bf16 %v6244_v27, %v6242_v4  ;;  %v10219_v45 = vpack.c.bf16 %v6536_v39, %v6534_v31  ;;  %v6257_v4 = vld [vmem:[%s17987_s5 + $0x440] sm:$0xff]  ;;  %v6551_v39 = vld [vmem:[%s17987_s5 + $0xd70] sm:$0xff]  ;;  %v6276_v36 = vld [vmem:[%s17987_s5 + $0x4d8] sm:$0xff] }
 0x6c1   :  { %10202 = vmatpush1.bf16.msra.mxu0 %v10201_v7  ;;  %v10221_v7 = vpack.c.bf16 %v6535_v11, %v6533_v1  ;;  %v6549_v31 = vld [vmem:[%s17987_s5 + $0xd60] sm:$0xff]  ;;  %v6268_v1 = vld [vmem:[%s17987_s5 + $0x498] sm:$0xff] }
 0x6c2   :  { %10204 = vmatprep.subr.bf16.mxu0 %v10203_v41  ;;  %v10223_v41 = vpack.c.bf16 %v6540_v6, %v6538_v50  ;;  %v6553_v50 = vld [vmem:[%s17987_s5 + $0xd80] sm:$0xff]  ;;  %v6555_v6 = vld [vmem:[%s17987_s5 + $0xd90] sm:$0xff] }
 0x6c3   :  { %9910 = vmatpush1.bf16.msra.mxu1 %v9909_v13  ;;  %v9929_v13 = vpack.c.bf16 %v6243_v2, %v6241_v57  ;;  %v10241_v38 = vpack.c.bf16 %v6555_v6, %v6553_v50  ;;  %v6288_v50 = vld [vmem:[%s17987_s5 + $0x538] sm:$0xff] }
 0x6c4   :  { %9912 = vmatprep.subr.bf16.mxu1 %v9911_v49  ;;  %v9931_v49 = vpack.c.bf16 %v6248_v37, %v6246_v15  ;;  %v6263_v15 = vld [vmem:[%s17987_s5 + $0x470] sm:$0xff]  ;;  %v10237_v37 = vpack.c.bf16 %v6551_v39, %v6549_v31  ;;  %v6569_v39 = vld [vmem:[%s17987_s5 + $0xe00] sm:$0xff] }
 0x6c5   :  { %10206 = vmatpush1.bf16.msra.mxu0 %v10205_v8  ;;  %v6251_v8 = vld [vmem:[%s17987_s5 + $0x410] sm:$0xff] }
 0x6c6   :  { %10208 = vmatprep.subr.bf16.mxu0 %v10207_v16  ;;  %v15594_v16 = vrot.slane %v15575_v40, %v18590_v12  ;;  %v9937_v56 = vpack.c.bf16 %v6251_v8, %v6249_v63 }
 0x6c7   :  { %9914 = vmatpush1.bf16.msra.mxu1 %v9913_v18  ;;  %v6544_v18 = vld [vmem:[%s17987_s5 + $0xd38] sm:$0xff] }
 0x6c8   :  { %9916 = vmatprep.subr.bf16.mxu1 %v9915_v14  ;;  %v9933_v14 = vpack.c.bf16 %v6247_v44, %v6245_v46  ;;  %v10227_v20 = vpack.c.bf16 %v6544_v18, %v6542_v43  ;;  %v7197_v29 = vcombine.high %v15594_v16, %v15594_v16  ;;  %v6557_v43 = vld [vmem:[%s17987_s5 + $0xda0] sm:$0xff]  ;;  %v6559_v18 = vld [vmem:[%s17987_s5 + $0xdb0] sm:$0xff] }
 0x6c9   :  { %10210 = vmatpush1.bf16.msra.mxu0 %v10209_v3  ;;  %v6253_v3 = vld [vmem:[%s17987_s5 + $0x420] sm:$0xff]  ;;  %v10245_v23 = vpack.c.bf16 %v6559_v18, %v6557_v43  ;;  %v6292_v43 = vld [vmem:[%s17987_s5 + $0x558] sm:$0xff] }
 0x6ca   :  { %10212 = vmatprep.subr.bf16.mxu0 %v10211_v47  ;;  %v6258_v47 = vld [vmem:[%s17987_s5 + $0x448] sm:$0xff]  ;;  %v9941_v51 = vpack.c.bf16 %v6255_v32, %v6253_v3 }
 0x6cb   :  { %9918 = vmatpush1.bf16.msra.mxu1 %v9917_v34  ;;  %v6546_v34 = vld [vmem:[%s17987_s5 + $0xd48] sm:$0xff] }
 0x6cc   :  { %9920 = vmatprep.subr.bf16.mxu1 %v9919_v55  ;;  %v6548_v55 = vld [vmem:[%s17987_s5 + $0xd58] sm:$0xff] }
 0x6cd   :  { %10214 = vmatpush1.bf16.msra.mxu0 %v10213_v22  ;;  %v10231_v42 = vpack.c.bf16 %v6548_v55, %v6546_v34  ;;  %v9943_v22 = vpack.c.bf16 %v6260_v59, %v6258_v47  ;;  %v6561_v34 = vld [vmem:[%s17987_s5 + $0xdc0] sm:$0xff]  ;;  %v6563_v55 = vld [vmem:[%s17987_s5 + $0xdd0] sm:$0xff]  ;;  %v6278_v59 = vld [vmem:[%s17987_s5 + $0x4e8] sm:$0xff] }
 0x6ce   :  { %10216 = vmatprep.subr.bf16.mxu0 %v10215_v19  ;;  %v6262_v19 = vld [vmem:[%s17987_s5 + $0x468] sm:$0xff]  ;;  %v6275_v47 = vld [vmem:[%s17987_s5 + $0x4d0] sm:$0xff] }
 0x6cf   :  { %9922 = vmatpush1.bf16.msra.mxu1 %v9921_v25  ;;  %v6547_v25 = vld [vmem:[%s17987_s5 + $0xd50] sm:$0xff]  ;;  %v9947_v2 = vpack.c.bf16 %v6264_v52, %v6262_v19 }
 0x6d0   :  { %9924 = vmatprep.subr.bf16.mxu1 %v9923_v10  ;;  %v6550_v10 = vld [vmem:[%s17987_s5 + $0xd68] sm:$0xff]  ;;  %v10233_v27 = vpack.c.bf16 %v6547_v25, %v6545_v17  ;;  %v6565_v25 = vld [vmem:[%s17987_s5 + $0xde0] sm:$0xff]  ;;  %v6279_v19 = vld [vmem:[%s17987_s5 + $0x4f0] sm:$0xff] }
 0x6d1   :  { %10218 = vmatpush1.bf16.msra.mxu0 %v10217_v26  ;;  %v10235_v0 = vpack.c.bf16 %v6552_v28, %v6550_v10  ;;  %v6261_v26 = vld [vmem:[%s17987_s5 + $0x460] sm:$0xff]  ;;  %v6567_v10 = vld [vmem:[%s17987_s5 + $0xdf0] sm:$0xff]  ;;  %v6570_v28 = vld [vmem:[%s17987_s5 + $0xe08] sm:$0xff] }
 0x6d2   :  { %10220 = vmatprep.subr.bf16.mxu0 %v10219_v45  ;;  %v6266_v45 = vld [vmem:[%s17987_s5 + $0x488] sm:$0xff]  ;;  %v9949_v46 = vpack.c.bf16 %v6263_v15, %v6261_v26  ;;  %v10253_v52 = vpack.c.bf16 %v6567_v10, %v6565_v25  ;;  %v6300_v25 = vld [vmem:[%s17987_s5 + $0x598] sm:$0xff] }
 0x6d3   :  { %9926 = vmatpush1.bf16.msra.mxu1 %v9925_v48  ;;  %v6554_v48 = vld [vmem:[%s17987_s5 + $0xd88] sm:$0xff]  ;;  %v9951_v44 = vpack.c.bf16 %v6268_v1, %v6266_v45  ;;  %v6283_v45 = vld [vmem:[%s17987_s5 + $0x510] sm:$0xff] }
 0x6d4   :  { %9928 = vmatprep.subr.bf16.mxu1 %v9927_v9  ;;  %v6556_v9 = vld [vmem:[%s17987_s5 + $0xd98] sm:$0xff] }
 0x6d5   :  { %10222 = vmatpush1.bf16.msra.mxu0 %v10221_v7  ;;  %v10239_v11 = vpack.c.bf16 %v6556_v9, %v6554_v48  ;;  %v6265_v7 = vld [vmem:[%s17987_s5 + $0x480] sm:$0xff]  ;;  %v6571_v48 = vld [vmem:[%s17987_s5 + $0xe10] sm:$0xff]  ;;  %v6574_v9 = vld [vmem:[%s17987_s5 + $0xe28] sm:$0xff] }
 0x6d6   :  { %10224 = vmatprep.subr.bf16.mxu0 %v10223_v41  ;;  %v6270_v41 = vld [vmem:[%s17987_s5 + $0x4a8] sm:$0xff]  ;;  %v9953_v63 = vpack.c.bf16 %v6267_v33, %v6265_v7  ;;  %v10257_v1 = vpack.c.bf16 %v6571_v48, %v6569_v39  ;;  %v6589_v48 = vld [vmem:[%s17987_s5 + $0xea0] sm:$0xff] }
 0x6d7   :  { %9930 = vmatpush1.bf16.msra.mxu1 %v9929_v13  ;;  %v6558_v13 = vld [vmem:[%s17987_s5 + $0xda8] sm:$0xff]  ;;  %v9955_v8 = vpack.c.bf16 %v6272_v53, %v6270_v41  ;;  %v6285_v41 = vld [vmem:[%s17987_s5 + $0x520] sm:$0xff]  ;;  %v6287_v53 = vld [vmem:[%s17987_s5 + $0x530] sm:$0xff] }
 0x6d8   :  { %9932 = vmatprep.subr.bf16.mxu1 %v9931_v49  ;;  %v6560_v49 = vld [vmem:[%s17987_s5 + $0xdb8] sm:$0xff] }
 0x6d9   :  { %10226 = vmatpush1.bf16.msra.mxu0 %v10225_v24  ;;  %v10243_v21 = vpack.c.bf16 %v6560_v49, %v6558_v13  ;;  %v6269_v24 = vld [vmem:[%s17987_s5 + $0x4a0] sm:$0xff]  ;;  %v6575_v49 = vld [vmem:[%s17987_s5 + $0xe30] sm:$0xff] }
 0x6da   :  { %10228 = vmatprep.subr.bf16.mxu0 %v10227_v20  ;;  %v6274_v20 = vld [vmem:[%s17987_s5 + $0x4c8] sm:$0xff]  ;;  %v9957_v3 = vpack.c.bf16 %v6271_v58, %v6269_v24  ;;  %v6573_v13 = vld [vmem:[%s17987_s5 + $0xe20] sm:$0xff]  ;;  %v9973_v24 = vpack.c.bf16 %v6287_v53, %v6285_v41  ;;  %v6307_v53 = vld [vmem:[%s17987_s5 + $0x5d0] sm:$0xff] }
 0x6db   :  { %9934 = vmatpush1.bf16.msra.mxu1 %v9933_v14  ;;  %v6562_v14 = vld [vmem:[%s17987_s5 + $0xdc8] sm:$0xff]  ;;  %v9959_v32 = vpack.c.bf16 %v6276_v36, %v6274_v20  ;;  %v6291_v20 = vld [vmem:[%s17987_s5 + $0x550] sm:$0xff]  ;;  %v6305_v41 = vld [vmem:[%s17987_s5 + $0x5c0] sm:$0xff] }
 0x6dc   :  { %9936 = vmatprep.subr.bf16.mxu1 %v9935_v61  ;;  %v6564_v61 = vld [vmem:[%s17987_s5 + $0xdd8] sm:$0xff] }
 0x6dd   :  { %10230 = vmatpush1.bf16.msra.mxu0 %v10229_v5  ;;  %v10247_v54 = vpack.c.bf16 %v6564_v61, %v6562_v14  ;;  %v6273_v5 = vld [vmem:[%s17987_s5 + $0x4c0] sm:$0xff]  ;;  %v6579_v61 = vld [vmem:[%s17987_s5 + $0xe50] sm:$0xff] }
 0x6de   :  { %7469 = vmatmul.mubr.f32.vlgmr.msra.gmra.mrb[128].mxu1 %v15201_v60  ;;  %v6259_v60 = vld [vmem:[%s17987_s5 + $0x450] sm:$0xff]  ;;  %10232 = vmatprep.subr.bf16.mxu0 %v10231_v42  ;;  %v6280_v42 = vld [vmem:[%s17987_s5 + $0x4f8] sm:$0xff]  ;;  %v6577_v14 = vld [vmem:[%s17987_s5 + $0xe40] sm:$0xff] }
 0x6df   :  { %9938 = vmatpush1.bf16.msra.mxu1 %v9937_v56  ;;  %7539 = vmatprep.mubr.f32.mxu1 %v7197_v29  ;;  %v9945_v57 = vpack.c.bf16 %v6259_v60, %v6257_v4  ;;  %v6566_v56 = vld [vmem:[%s17987_s5 + $0xde8] sm:$0xff]  ;;  %v10249_v29 = vpack.c.bf16 %v6563_v55, %v6561_v34  ;;  %v7216_v4 = vcombine.high %v15365_v30, %v15365_v30  ;;  %v6284_v30 = vld [vmem:[%s17987_s5 + $0x518] sm:$0xff] }
 0x6e0   :  { %9940 = vmatprep.subr.bf16.mxu1 %v9939_v62  ;;  %v6568_v62 = vld [vmem:[%s17987_s5 + $0xdf8] sm:$0xff]  ;;  %v9963_v60 = vpack.c.bf16 %v6280_v42, %v6278_v59  ;;  %v10265_v36 = vpack.c.bf16 %v6579_v61, %v6577_v14  ;;  %v6295_v59 = vld [vmem:[%s17987_s5 + $0x570] sm:$0xff]  ;;  %v6597_v14 = vld [vmem:[%s17987_s5 + $0xee0] sm:$0xff] }
 0x6e1   :  { %10234 = vmatpush1.bf16.msra.mxu0 %v10233_v27  ;;  %v10251_v17 = vpack.c.bf16 %v6568_v62, %v6566_v56  ;;  %v6277_v27 = vld [vmem:[%s17987_s5 + $0x4e0] sm:$0xff]  ;;  %v15785_v26 = vrot.slane %v7216_v4, %v18590_v12  ;;  %v6296_v34 = vld [vmem:[%s17987_s5 + $0x578] sm:$0xff]  ;;  %v6583_v62 = vld [vmem:[%s17987_s5 + $0xe70] sm:$0xff] }
 0x6e2   :  { %10236 = vmatprep.subr.bf16.mxu0 %v10235_v0  ;;  %v6282_v0 = vld [vmem:[%s17987_s5 + $0x508] sm:$0xff]  ;;  %v6581_v56 = vld [vmem:[%s17987_s5 + $0xe60] sm:$0xff]  ;;  %v6592_v4 = vld [vmem:[%s17987_s5 + $0xeb8] sm:$0xff] }
 0x6e3   :  { %9942 = vmatpush1.bf16.msra.mxu1 %v9941_v51  ;;  %v6572_v51 = vld [vmem:[%s17987_s5 + $0xe18] sm:$0xff]  ;;  %v9967_v15 = vpack.c.bf16 %v6284_v30, %v6282_v0  ;;  %v7232_v33 = vcombine.high %v15785_v26, %v15785_v26  ;;  %v10269_v42 = vpack.c.bf16 %v6583_v62, %v6581_v56  ;;  %v6302_v30 = vld [vmem:[%s17987_s5 + $0x5a8] sm:$0xff]  ;;  %v6599_v61 = vld [vmem:[%s17987_s5 + $0xef0] sm:$0xff]  ;;  %v7182_v56 = vcombine.high %v15575_v40, %v15575_v40 }
 0x6e4   :  { %9944 = vmatprep.subr.bf16.mxu1 %v9943_v22  ;;  %v9961_v22 = vpack.c.bf16 %v6275_v47, %v6273_v5  ;;  %v10255_v31 = vpack.c.bf16 %v6572_v51, %v6570_v28  ;;  %v6585_v28 = vld [vmem:[%s17987_s5 + $0xe80] sm:$0xff]  ;;  %v6587_v51 = vld [vmem:[%s17987_s5 + $0xe90] sm:$0xff] }
 0x6e5   :  { %10238 = vmatpush1.bf16.msra.mxu0 %v10237_v37  ;;  %v6281_v37 = vld [vmem:[%s17987_s5 + $0x500] sm:$0xff]  ;;  %v10273_v0 = vpack.c.bf16 %v6587_v51, %v6585_v28 }
 0x6e6   :  { %10240 = vmatprep.subr.bf16.mxu0 %v10239_v11  ;;  %v6286_v11 = vld [vmem:[%s17987_s5 + $0x528] sm:$0xff]  ;;  %v9969_v7 = vpack.c.bf16 %v6283_v45, %v6281_v37  ;;  %v6301_v45 = vld [vmem:[%s17987_s5 + $0x5a0] sm:$0xff] }
 0x6e7   :  { %9946 = vmatpush1.bf16.msra.mxu1 %v9945_v57  ;;  %v6576_v57 = vld [vmem:[%s17987_s5 + $0xe38] sm:$0xff]  ;;  %v6601_v62 = vld [vmem:[%s17987_s5 + $0xf00] sm:$0xff] }
 0x6e8   :  { %9948 = vmatprep.subr.bf16.mxu1 %v9947_v2  ;;  %v9965_v2 = vpack.c.bf16 %v6279_v19, %v6277_v27  ;;  %v10259_v6 = vpack.c.bf16 %v6576_v57, %v6574_v9  ;;  %v6297_v19 = vld [vmem:[%s17987_s5 + $0x580] sm:$0xff]  ;;  %v6591_v9 = vld [vmem:[%s17987_s5 + $0xeb0] sm:$0xff]  ;;  %v6594_v57 = vld [vmem:[%s17987_s5 + $0xec8] sm:$0xff] }
 0x6e9   :  { %10242 = vmatpush1.bf16.msra.mxu0 %v10241_v38  ;;  %v9971_v38 = vpack.c.bf16 %v6288_v50, %v6286_v11  ;;  %v10277_v11 = vpack.c.bf16 %v6591_v9, %v6589_v48  ;;  %v6306_v50 = vld [vmem:[%s17987_s5 + $0x5c8] sm:$0xff]  ;;  %v6605_v51 = vld [vmem:[%s17987_s5 + $0xf20] sm:$0xff]  ;;  %v6324_v48 = vld [vmem:[%s17987_s5 + $0x658] sm:$0xff] }
 0x6ea   :  { %10244 = vmatprep.subr.bf16.mxu0 %v10243_v21  ;;  %v10261_v21 = vpack.c.bf16 %v6575_v49, %v6573_v13  ;;  %v6593_v49 = vld [vmem:[%s17987_s5 + $0xec0] sm:$0xff] }
 0x6eb   :  { %9950 = vmatpush1.bf16.msra.mxu1 %v9949_v46  ;;  %v6578_v46 = vld [vmem:[%s17987_s5 + $0xe48] sm:$0xff] }
 0x6ec   :  { %9952 = vmatprep.subr.bf16.mxu1 %v9951_v44  ;;  %v6580_v44 = vld [vmem:[%s17987_s5 + $0xe58] sm:$0xff] }
 0x6ed   :  { %10246 = vmatpush1.bf16.msra.mxu0 %v10245_v23  ;;  %v10263_v18 = vpack.c.bf16 %v6580_v44, %v6578_v46  ;;  %v6289_v23 = vld [vmem:[%s17987_s5 + $0x540] sm:$0xff]  ;;  %v6595_v46 = vld [vmem:[%s17987_s5 + $0xed0] sm:$0xff]  ;;  %v6598_v44 = vld [vmem:[%s17987_s5 + $0xee8] sm:$0xff] }
 0x6ee   :  { %10248 = vmatprep.subr.bf16.mxu0 %v10247_v54  ;;  %v6294_v54 = vld [vmem:[%s17987_s5 + $0x568] sm:$0xff]  ;;  %v9977_v5 = vpack.c.bf16 %v6291_v20, %v6289_v23  ;;  %v6309_v23 = vld [vmem:[%s17987_s5 + $0x5e0] sm:$0xff]  ;;  %v6311_v20 = vld [vmem:[%s17987_s5 + $0x5f0] sm:$0xff] }
 0x6ef   :  { %9954 = vmatpush1.bf16.msra.mxu1 %v9953_v63  ;;  %v6582_v63 = vld [vmem:[%s17987_s5 + $0xe68] sm:$0xff]  ;;  %v9979_v47 = vpack.c.bf16 %v6296_v34, %v6294_v54  ;;  %v6316_v34 = vld [vmem:[%s17987_s5 + $0x618] sm:$0xff] }
 0x6f0   :  { %9956 = vmatprep.subr.bf16.mxu1 %v9955_v8  ;;  %v6584_v8 = vld [vmem:[%s17987_s5 + $0xe78] sm:$0xff]  ;;  %v6314_v54 = vld [vmem:[%s17987_s5 + $0x608] sm:$0xff] }
 0x6f1   :  { %10250 = vmatpush1.bf16.msra.mxu0 %v10249_v29  ;;  %v10267_v55 = vpack.c.bf16 %v6584_v8, %v6582_v63  ;;  %v6293_v29 = vld [vmem:[%s17987_s5 + $0x560] sm:$0xff]  ;;  %v6602_v63 = vld [vmem:[%s17987_s5 + $0xf08] sm:$0xff]  ;;  %v6604_v8 = vld [vmem:[%s17987_s5 + $0xf18] sm:$0xff]  ;;  %v9999_v40 = vpack.c.bf16 %v6316_v34, %v6314_v54 }
 0x6f2   :  { %10252 = vmatprep.subr.bf16.mxu0 %v10251_v17  ;;  %v6298_v17 = vld [vmem:[%s17987_s5 + $0x588] sm:$0xff] }
 0x6f3   :  { %9958 = vmatpush1.bf16.msra.mxu1 %v9957_v3  ;;  %v6586_v3 = vld [vmem:[%s17987_s5 + $0xe88] sm:$0xff]  ;;  %v9983_v27 = vpack.c.bf16 %v6300_v25, %v6298_v17  ;;  %v15994_v25 = vrot.slane %v7182_v56, %v18590_v12 }
 0x6f4   :  { %9960 = vmatprep.subr.bf16.mxu1 %v9959_v32  ;;  %v6588_v32 = vld [vmem:[%s17987_s5 + $0xe98] sm:$0xff]  ;;  %v6318_v17 = vld [vmem:[%s17987_s5 + $0x628] sm:$0xff] }
 0x6f5   :  { %10254 = vmatpush1.bf16.msra.mxu0 %v10253_v52  ;;  %v10271_v10 = vpack.c.bf16 %v6588_v32, %v6586_v3  ;;  %v6299_v52 = vld [vmem:[%s17987_s5 + $0x590] sm:$0xff]  ;;  %v6606_v32 = vld [vmem:[%s17987_s5 + $0xf28] sm:$0xff] }
 0x6f6   :  { %10256 = vmatprep.subr.bf16.mxu0 %v10255_v31  ;;  %v6304_v31 = vld [vmem:[%s17987_s5 + $0x5b8] sm:$0xff]  ;;  %v6603_v3 = vld [vmem:[%s17987_s5 + $0xf10] sm:$0xff]  ;;  %v6334_v34 = vld [vmem:[%s17987_s5 + $0x6a8] sm:$0xff] }
 0x6f7   :  { %9962 = vmatpush1.bf16.msra.mxu1 %v9961_v22  ;;  %v6590_v22 = vld [vmem:[%s17987_s5 + $0xea8] sm:$0xff]  ;;  %v9987_v37 = vpack.c.bf16 %v6304_v31, %v6302_v30 }
 0x6f8   :  { %9964 = vmatprep.subr.bf16.mxu1 %v9963_v60  ;;  %7824 = vmatmul.mubr.f32.vlgmr.msra.gmra.mrb[0].mxu0 %v15384_v35  ;;  %v6290_v35 = vld [vmem:[%s17987_s5 + $0x548] sm:$0xff]  ;;  %v9981_v60 = vpack.c.bf16 %v6295_v59, %v6293_v29  ;;  %v10275_v39 = vpack.c.bf16 %v6592_v4, %v6590_v22  ;;  %v6313_v29 = vld [vmem:[%s17987_s5 + $0x600] sm:$0xff]  ;;  %v6315_v59 = vld [vmem:[%s17987_s5 + $0x610] sm:$0xff] }
 0x6f9   :  { %10258 = vmatpush1.bf16.msra.mxu0 %v10257_v1  ;;  %7894 = vmatprep.mubr.f32.mxu0 %v7232_v33  ;;  %v9975_v58 = vpack.c.bf16 %v6292_v43, %v6290_v35  ;;  %v6303_v1 = vld [vmem:[%s17987_s5 + $0x5b0] sm:$0xff]  ;;  %v6310_v35 = vld [vmem:[%s17987_s5 + $0x5e8] sm:$0xff]  ;;  %v6312_v43 = vld [vmem:[%s17987_s5 + $0x5f8] sm:$0xff] }
 0x6fa   :  { %10260 = vmatprep.subr.bf16.mxu0 %v10259_v6  ;;  %v6308_v6 = vld [vmem:[%s17987_s5 + $0x5d8] sm:$0xff]  ;;  %v9989_v33 = vpack.c.bf16 %v6303_v1, %v6301_v45  ;;  %v6607_v22 = vld [vmem:[%s17987_s5 + $0xf30] sm:$0xff]  ;;  %v6610_v4 = vld [vmem:[%s17987_s5 + $0xf48] sm:$0xff] }
 0x6fb   :  { %9966 = vmatpush1.bf16.msra.mxu1 %v9965_v2  ;;  %v6596_v2 = vld [vmem:[%s17987_s5 + $0xed8] sm:$0xff]  ;;  %v10293_v30 = vpack.c.bf16 %v6607_v22, %v6605_v51  ;;  %v6322_v31 = vld [vmem:[%s17987_s5 + $0x648] sm:$0xff]  ;;  %v6625_v51 = vld [vmem:[%s17987_s5 + $0xfc0] sm:$0xff] }
 0x6fc   :  { %9968 = vmatprep.subr.bf16.mxu1 %v9967_v15  ;;  %v9985_v15 = vpack.c.bf16 %v6299_v52, %v6297_v19  ;;  %v10279_v13 = vpack.c.bf16 %v6596_v2, %v6594_v57  ;;  %v6317_v52 = vld [vmem:[%s17987_s5 + $0x620] sm:$0xff]  ;;  %v6611_v2 = vld [vmem:[%s17987_s5 + $0xf50] sm:$0xff]  ;;  %v10007_v1 = vpack.c.bf16 %v6324_v48, %v6322_v31  ;;  %v6342_v31 = vld [vmem:[%s17987_s5 + $0x6e8] sm:$0xff] }
 0x6fd   :  { %10262 = vmatpush1.bf16.msra.mxu0 %v10261_v21  ;;  %v10281_v21 = vpack.c.bf16 %v6595_v46, %v6593_v49  ;;  %v6609_v57 = vld [vmem:[%s17987_s5 + $0xf40] sm:$0xff]  ;;  %v6627_v22 = vld [vmem:[%s17987_s5 + $0xfd0] sm:$0xff] }
 0x6fe   :  { %10264 = vmatprep.subr.bf16.mxu0 %v10263_v18  ;;  %v6613_v46 = vld [vmem:[%s17987_s5 + $0xf60] sm:$0xff] }
 0x6ff   :  { %9970 = vmatpush1.bf16.msra.mxu1 %v9969_v7  ;;  %v6600_v7 = vld [vmem:[%s17987_s5 + $0xef8] sm:$0xff] }
 0x700   :  { %9972 = vmatprep.subr.bf16.mxu1 %v9971_v38  ;;  %v9991_v38 = vpack.c.bf16 %v6308_v6, %v6306_v50  ;;  %v10283_v18 = vpack.c.bf16 %v6600_v7, %v6598_v44  ;;  %v10297_v50 = vpack.c.bf16 %v6611_v2, %v6609_v57  ;;  %v6326_v6 = vld [vmem:[%s17987_s5 + $0x668] sm:$0xff]  ;;  %v6615_v44 = vld [vmem:[%s17987_s5 + $0xf70] sm:$0xff] }
 0x701   :  { %10266 = vmatpush1.bf16.msra.mxu0 %v10265_v36  ;;  %v10285_v36 = vpack.c.bf16 %v6599_v61, %v6597_v14  ;;  %v6618_v7 = vld [vmem:[%s17987_s5 + $0xf88] sm:$0xff]  ;;  %v6617_v61 = vld [vmem:[%s17987_s5 + $0xf80] sm:$0xff]  ;;  %v6631_v57 = vld [vmem:[%s17987_s5 + $0xff0] sm:$0xff] }
 0x702   :  { %10268 = vmatprep.subr.bf16.mxu0 %v10267_v55  ;;  %v10287_v55 = vpack.c.bf16 %v6604_v8, %v6602_v63  ;;  %v6619_v63 = vld [vmem:[%s17987_s5 + $0xf90] sm:$0xff]  ;;  %v6622_v8 = vld [vmem:[%s17987_s5 + $0xfa8] sm:$0xff] }
 0x703   :  { %9974 = vmatpush1.bf16.msra.mxu1 %v9973_v24  ;;  %v9993_v24 = vpack.c.bf16 %v6307_v53, %v6305_v41  ;;  %v6325_v53 = vld [vmem:[%s17987_s5 + $0x660] sm:$0xff]  ;;  %v10305_v54 = vpack.c.bf16 %v6619_v63, %v6617_v61  ;;  %v6634_v2 = vld [vmem:[%s17987_s5 + $0x1008] sm:$0xff] }
 0x704   :  { %9976 = vmatprep.subr.bf16.mxu1 %v9975_v58  ;;  %v9995_v58 = vpack.c.bf16 %v6312_v43, %v6310_v35  ;;  %v10301_v35 = vpack.c.bf16 %v6615_v44, %v6613_v46  ;;  %v6330_v43 = vld [vmem:[%s17987_s5 + $0x688] sm:$0xff]  ;;  %v6633_v46 = vld [vmem:[%s17987_s5 + $0x1000] sm:$0xff]  ;;  %v6635_v44 = vld [vmem:[%s17987_s5 + $0x1010] sm:$0xff] }
 0x705   :  { %10270 = vmatpush1.bf16.msra.mxu0 %v10269_v42  ;;  %v10289_v42 = vpack.c.bf16 %v6603_v3, %v6601_v62  ;;  %v6621_v62 = vld [vmem:[%s17987_s5 + $0xfa0] sm:$0xff]  ;;  %v6623_v3 = vld [vmem:[%s17987_s5 + $0xfb0] sm:$0xff] }
 0x706   :  { %10272 = vmatprep.subr.bf16.mxu0 %v10271_v10  ;;  %v6320_v10 = vld [vmem:[%s17987_s5 + $0x638] sm:$0xff]  ;;  %v6637_v63 = vld [vmem:[%s17987_s5 + $0x1020] sm:$0xff] }
 0x707   :  { %9978 = vmatpush1.bf16.msra.mxu1 %v9977_v5  ;;  %v6608_v5 = vld [vmem:[%s17987_s5 + $0xf38] sm:$0xff]  ;;  %v10003_v19 = vpack.c.bf16 %v6320_v10, %v6318_v17  ;;  %v6338_v17 = vld [vmem:[%s17987_s5 + $0x6c8] sm:$0xff] }
 0x708   :  { %9980 = vmatprep.subr.bf16.mxu1 %v9979_v47  ;;  %v9997_v47 = vpack.c.bf16 %v6311_v20, %v6309_v23  ;;  %v10291_v28 = vpack.c.bf16 %v6608_v5, %v6606_v32  ;;  %v6329_v20 = vld [vmem:[%s17987_s5 + $0x680] sm:$0xff]  ;;  %v6626_v32 = vld [vmem:[%s17987_s5 + $0xfc8] sm:$0xff]  ;;  %v6628_v5 = vld [vmem:[%s17987_s5 + $0xfd8] sm:$0xff] }
 0x709   :  { %10274 = vmatpush1.bf16.msra.mxu0 %v10273_v0  ;;  %v6319_v0 = vld [vmem:[%s17987_s5 + $0x630] sm:$0xff]  ;;  %v6340_v10 = vld [vmem:[%s17987_s5 + $0x6d8] sm:$0xff] }
 0x70a   :  { %10276 = vmatprep.subr.bf16.mxu0 %v10275_v39  ;;  %v7198_v39 = vcombine.high %v15994_v25, %v15994_v25  ;;  %v10005_v45 = vpack.c.bf16 %v6319_v0, %v6317_v52  ;;  %v6337_v52 = vld [vmem:[%s17987_s5 + $0x6c0] sm:$0xff]  ;;  %v6339_v0 = vld [vmem:[%s17987_s5 + $0x6d0] sm:$0xff] }
 0x70b   :  { %9982 = vmatpush1.bf16.msra.mxu1 %v9981_v60  ;;  %v6612_v60 = vld [vmem:[%s17987_s5 + $0xf58] sm:$0xff] }
 0x70c   :  { %9984 = vmatprep.subr.bf16.mxu1 %v9983_v27  ;;  %v10001_v27 = vpack.c.bf16 %v6315_v59, %v6313_v29  ;;  %v10295_v9 = vpack.c.bf16 %v6612_v60, %v6610_v4  ;;  %v6333_v29 = vld [vmem:[%s17987_s5 + $0x6a0] sm:$0xff]  ;;  %v6335_v59 = vld [vmem:[%s17987_s5 + $0x6b0] sm:$0xff]  ;;  %v6630_v4 = vld [vmem:[%s17987_s5 + $0xfe8] sm:$0xff] }
 0x70d   :  { %10278 = vmatpush1.bf16.msra.mxu0 %v10277_v11  ;;  %v6321_v11 = vld [vmem:[%s17987_s5 + $0x640] sm:$0xff]  ;;  %v6632_v60 = vld [vmem:[%s17987_s5 + $0xff8] sm:$0xff] }
 0x70e   :  { %10280 = vmatprep.subr.bf16.mxu0 %v10279_v13  ;;  %v6328_v13 = vld [vmem:[%s17987_s5 + $0x678] sm:$0xff]  ;;  %v10315_v48 = vpack.c.bf16 %v6632_v60, %v6630_v4  ;;  %v6647_v4 = vld [vmem:[%s17987_s5 + $0x1070] sm:$0xff]  ;;  %v6650_v60 = vld [vmem:[%s17987_s5 + $0x1088] sm:$0xff] }
 0x70f   :  { %9986 = vmatpush1.bf16.msra.mxu1 %v9985_v15  ;;  %v6614_v15 = vld [vmem:[%s17987_s5 + $0xf68] sm:$0xff]  ;;  %v10011_v41 = vpack.c.bf16 %v6328_v13, %v6326_v6  ;;  %v6348_v13 = vld [vmem:[%s17987_s5 + $0x718] sm:$0xff] }
 0x710   :  { %9988 = vmatprep.subr.bf16.mxu1 %v9987_v37  ;;  %v6616_v37 = vld [vmem:[%s17987_s5 + $0xf78] sm:$0xff]  ;;  %v6346_v6 = vld [vmem:[%s17987_s5 + $0x708] sm:$0xff] }
 0x711   :  { %10282 = vmatpush1.bf16.msra.mxu0 %v10281_v21  ;;  %v10299_v49 = vpack.c.bf16 %v6616_v37, %v6614_v15  ;;  %v6327_v21 = vld [vmem:[%s17987_s5 + $0x670] sm:$0xff]  ;;  %v6636_v15 = vld [vmem:[%s17987_s5 + $0x1018] sm:$0xff]  ;;  %v10025_v37 = vpack.c.bf16 %v6339_v0, %v6337_v52  ;;  %v6357_v0 = vld [vmem:[%s17987_s5 + $0x760] sm:$0xff] }
 0x712   :  { %10284 = vmatprep.subr.bf16.mxu0 %v10283_v18  ;;  %v6332_v18 = vld [vmem:[%s17987_s5 + $0x698] sm:$0xff] }
 0x713   :  { %9990 = vmatpush1.bf16.msra.mxu1 %v9989_v33  ;;  %v6620_v33 = vld [vmem:[%s17987_s5 + $0xf98] sm:$0xff]  ;;  %v10015_v23 = vpack.c.bf16 %v6332_v18, %v6330_v43  ;;  %v10321_v43 = vpack.c.bf16 %v6635_v44, %v6633_v46  ;;  %v6350_v18 = vld [vmem:[%s17987_s5 + $0x728] sm:$0xff]  ;;  %v6653_v44 = vld [vmem:[%s17987_s5 + $0x10a0] sm:$0xff] }
 0x714   :  { %9992 = vmatprep.subr.bf16.mxu1 %v9991_v38  ;;  %v10303_v14 = vpack.c.bf16 %v6620_v33, %v6618_v7  ;;  %v6638_v7 = vld [vmem:[%s17987_s5 + $0x1028] sm:$0xff]  ;;  %v6640_v33 = vld [vmem:[%s17987_s5 + $0x1038] sm:$0xff] }
 0x715   :  { %10286 = vmatpush1.bf16.msra.mxu0 %v10285_v36  ;;  %v6331_v36 = vld [vmem:[%s17987_s5 + $0x690] sm:$0xff]  ;;  %v10323_v61 = vpack.c.bf16 %v6640_v33, %v6638_v7  ;;  %v6658_v33 = vld [vmem:[%s17987_s5 + $0x10c8] sm:$0xff] }
 0x716   :  { %10288 = vmatprep.subr.bf16.mxu0 %v10287_v55  ;;  %v6336_v55 = vld [vmem:[%s17987_s5 + $0x6b8] sm:$0xff]  ;;  %v6655_v7 = vld [vmem:[%s17987_s5 + $0x10b0] sm:$0xff] }
 0x717   :  { %9994 = vmatpush1.bf16.msra.mxu1 %v9993_v24  ;;  %v6624_v24 = vld [vmem:[%s17987_s5 + $0xfb8] sm:$0xff] }
 0x718   :  { %9996 = vmatprep.subr.bf16.mxu1 %v9995_v58  ;;  %v10013_v58 = vpack.c.bf16 %v6327_v21, %v6325_v53  ;;  %v10307_v56 = vpack.c.bf16 %v6624_v24, %v6622_v8  ;;  %v10031_v53 = vpack.c.bf16 %v6348_v13, %v6346_v6  ;;  %v6345_v21 = vld [vmem:[%s17987_s5 + $0x700] sm:$0xff]  ;;  %v6639_v8 = vld [vmem:[%s17987_s5 + $0x1030] sm:$0xff]  ;;  %v6642_v24 = vld [vmem:[%s17987_s5 + $0x1048] sm:$0xff] }
 0x719   :  { %10290 = vmatpush1.bf16.msra.mxu0 %v10289_v42  ;;  %v10309_v42 = vpack.c.bf16 %v6623_v3, %v6621_v62  ;;  %v6641_v3 = vld [vmem:[%s17987_s5 + $0x1040] sm:$0xff]  ;;  %v6366_v13 = vld [vmem:[%s17987_s5 + $0x7a8] sm:$0xff] }
 0x71a   :  { %10292 = vmatprep.subr.bf16.mxu0 %v10291_v28  ;;  %v10311_v28 = vpack.c.bf16 %v6628_v5, %v6626_v32  ;;  %v6643_v32 = vld [vmem:[%s17987_s5 + $0x1050] sm:$0xff]  ;;  %v6646_v5 = vld [vmem:[%s17987_s5 + $0x1068] sm:$0xff] }
 0x71b   :  { %9998 = vmatpush1.bf16.msra.mxu1 %v9997_v47  ;;  %v10017_v47 = vpack.c.bf16 %v6331_v36, %v6329_v20 }
 0x71c   :  { %10000 = vmatprep.subr.bf16.mxu1 %v9999_v40  ;;  %v10019_v40 = vpack.c.bf16 %v6336_v55, %v6334_v34  ;;  %v6351_v34 = vld [vmem:[%s17987_s5 + $0x730] sm:$0xff]  ;;  %v10325_v55 = vpack.c.bf16 %v6639_v8, %v6637_v63  ;;  %v6657_v8 = vld [vmem:[%s17987_s5 + $0x10c0] sm:$0xff] }
 0x71d   :  { %10294 = vmatpush1.bf16.msra.mxu0 %v10293_v30  ;;  %v10313_v30 = vpack.c.bf16 %v6627_v22, %v6625_v51  ;;  %v6645_v22 = vld [vmem:[%s17987_s5 + $0x1060] sm:$0xff] }
 0x71e   :  { %7540 = vmatmul.mubr.f32.vlgmr.msra.gmra.mrb[128].mxu1 %v15594_v16  ;;  %v6323_v16 = vld [vmem:[%s17987_s5 + $0x650] sm:$0xff]  ;;  %10296 = vmatprep.subr.bf16.mxu0 %v10295_v9  ;;  %v6629_v9 = vld [vmem:[%s17987_s5 + $0xfe0] sm:$0xff] }
 0x71f   :  { %10002 = vmatpush1.bf16.msra.mxu1 %v10001_v27  ;;  %7610 = vmatprep.mubr.f32.mxu1 %v7198_v39  ;;  %v10009_v38 = vpack.c.bf16 %v6323_v16, %v6321_v11  ;;  %v10021_v27 = vpack.c.bf16 %v6335_v59, %v6333_v29  ;;  %v6344_v39 = vld [vmem:[%s17987_s5 + $0x6f8] sm:$0xff]  ;;  %v6341_v11 = vld [vmem:[%s17987_s5 + $0x6e0] sm:$0xff]  ;;  %v6343_v16 = vld [vmem:[%s17987_s5 + $0x6f0] sm:$0xff] }
 0x720   :  { %10004 = vmatprep.subr.bf16.mxu1 %v10003_v19  ;;  %v10023_v19 = vpack.c.bf16 %v6340_v10, %v6338_v17  ;;  %v6353_v59 = vld [vmem:[%s17987_s5 + $0x740] sm:$0xff]  ;;  %v10329_v17 = vpack.c.bf16 %v6643_v32, %v6641_v3  ;;  %v6358_v10 = vld [vmem:[%s17987_s5 + $0x768] sm:$0xff]  ;;  %v6663_v32 = vld [vmem:[%s17987_s5 + $0x10f0] sm:$0xff] }
 0x721   :  { %10298 = vmatpush1.bf16.msra.mxu0 %v10297_v50  ;;  %v10317_v50 = vpack.c.bf16 %v6631_v57, %v6629_v9  ;;  %v6649_v57 = vld [vmem:[%s17987_s5 + $0x1080] sm:$0xff] }
 0x722   :  { %10300 = vmatprep.subr.bf16.mxu0 %v10299_v49  ;;  %v10319_v49 = vpack.c.bf16 %v6636_v15, %v6634_v2  ;;  %v6651_v2 = vld [vmem:[%s17987_s5 + $0x1090] sm:$0xff]  ;;  %v6654_v15 = vld [vmem:[%s17987_s5 + $0x10a8] sm:$0xff]  ;;  %v6661_v3 = vld [vmem:[%s17987_s5 + $0x10e0] sm:$0xff] }
 0x723   :  { %10006 = vmatpush1.bf16.msra.mxu1 %v10005_v45  ;;  %v16158_v45 = vld [vmem:[#allocation4 + $0x20] sm:$0xff]  ;;  %v10337_v6 = vpack.c.bf16 %v6651_v2, %v6649_v57  ;;  %v6675_v57 = vld [vmem:[%s17987_s5 + $0x1150] sm:$0xff]  ;;  %v6678_v2 = vld [vmem:[%s17987_s5 + $0x1168] sm:$0xff] }
 0x724   :  { %10008 = vmatprep.subr.bf16.mxu1 %v10007_v1  ;;  %v10027_v1 = vpack.c.bf16 %v6344_v39, %v6342_v31  ;;  %v10333_v31 = vpack.c.bf16 %v6647_v4, %v6645_v22  ;;  %v6362_v39 = vld [vmem:[%s17987_s5 + $0x788] sm:$0xff]  ;;  %v6672_v4 = vld [vmem:[%s17987_s5 + $0x1138] sm:$0xff] }
 0x725   :  { %10302 = vmatpush1.bf16.msra.mxu0 %v10301_v35  ;;  %v6347_v35 = vld [vmem:[%s17987_s5 + $0x710] sm:$0xff]  ;;  %v6670_v22 = vld [vmem:[%s17987_s5 + $0x1128] sm:$0xff] }
 0x726   :  { %10304 = vmatprep.subr.bf16.mxu0 %v10303_v14  ;;  %v6352_v14 = vld [vmem:[%s17987_s5 + $0x738] sm:$0xff] }
 0x727   :  { %10010 = vmatpush1.bf16.msra.mxu1 %v10009_v38  ;;  %v10029_v38 = vpack.c.bf16 %v6343_v16, %v6341_v11  ;;  %v10035_v36 = vpack.c.bf16 %v6352_v14, %v6350_v18  ;;  %v6361_v16 = vld [vmem:[%s17987_s5 + $0x780] sm:$0xff]  ;;  %v10341_v18 = vpack.c.bf16 %v6655_v7, %v6653_v44  ;;  %v6370_v14 = vld [vmem:[%s17987_s5 + $0x7c8] sm:$0xff]  ;;  %v6688_v7 = vld [vmem:[%s17987_s5 + $0x11b8] sm:$0xff] }
 0x728   :  { %10012 = vmatprep.subr.bf16.mxu1 %v10011_v41  ;;  %v16186_v41 = vrot.slane %v16158_v45, %v18590_v12  ;;  %v6686_v44 = vld [vmem:[%s17987_s5 + $0x11a8] sm:$0xff] }
 0x729   :  { %10306 = vmatpush1.bf16.msra.mxu0 %v10305_v54  ;;  %v6349_v54 = vld [vmem:[%s17987_s5 + $0x720] sm:$0xff] }
 0x72a   :  { %10308 = vmatprep.subr.bf16.mxu0 %v10307_v56  ;;  %v7248_v20 = vcombine.high %v16186_v41, %v16186_v41  ;;  %v6356_v56 = vld [vmem:[%s17987_s5 + $0x758] sm:$0xff] }
 0x72b   :  { %10014 = vmatpush1.bf16.msra.mxu1 %v10013_v58  ;;  %v6644_v58 = vld [vmem:[%s17987_s5 + $0x1058] sm:$0xff] }
 0x72c   :  { %10016 = vmatprep.subr.bf16.mxu1 %v10015_v23  ;;  %v10033_v23 = vpack.c.bf16 %v6347_v35, %v6345_v21  ;;  %v10327_v62 = vpack.c.bf16 %v6644_v58, %v6642_v24  ;;  %v6365_v35 = vld [vmem:[%s17987_s5 + $0x7a0] sm:$0xff]  ;;  %v6659_v24 = vld [vmem:[%s17987_s5 + $0x10d0] sm:$0xff]  ;;  %v6662_v58 = vld [vmem:[%s17987_s5 + $0x10e8] sm:$0xff] }
 0x72d   :  { %10310 = vmatpush1.bf16.msra.mxu0 %v10309_v42  ;;  %v6355_v42 = vld [vmem:[%s17987_s5 + $0x750] sm:$0xff] }
 0x72e   :  { %10312 = vmatprep.subr.bf16.mxu0 %v10311_v28  ;;  %v6360_v28 = vld [vmem:[%s17987_s5 + $0x778] sm:$0xff] }
 0x72f   :  { %10018 = vmatpush1.bf16.msra.mxu1 %v10017_v47  ;;  %v6648_v47 = vld [vmem:[%s17987_s5 + $0x1078] sm:$0xff]  ;;  %v10043_v52 = vpack.c.bf16 %v6360_v28, %v6358_v10  ;;  %v6665_v28 = vld [vmem:[%s17987_s5 + $0x1100] sm:$0xff] }
 0x730   :  { %10020 = vmatprep.subr.bf16.mxu1 %v10019_v40  ;;  %v10037_v40 = vpack.c.bf16 %v6351_v34, %v6349_v54  ;;  %v10331_v51 = vpack.c.bf16 %v6648_v47, %v6646_v5  ;;  %v6369_v54 = vld [vmem:[%s17987_s5 + $0x7c0] sm:$0xff]  ;;  %v6371_v34 = vld [vmem:[%s17987_s5 + $0x7d0] sm:$0xff]  ;;  %v6666_v5 = vld [vmem:[%s17987_s5 + $0x1108] sm:$0xff] }
 0x731   :  { %10314 = vmatpush1.bf16.msra.mxu0 %v10313_v30  ;;  %v6359_v30 = vld [vmem:[%s17987_s5 + $0x770] sm:$0xff]  ;;  %v6668_v47 = vld [vmem:[%s17987_s5 + $0x1118] sm:$0xff] }
 0x732   :  { %10316 = vmatprep.subr.bf16.mxu0 %v10315_v48  ;;  %v6364_v48 = vld [vmem:[%s17987_s5 + $0x798] sm:$0xff]  ;;  %v10351_v10 = vpack.c.bf16 %v6668_v47, %v6666_v5  ;;  %v6702_v5 = vld [vmem:[%s17987_s5 + $0x1228] sm:$0xff] }
 0x733   :  { %10022 = vmatpush1.bf16.msra.mxu1 %v10021_v27  ;;  %v6652_v27 = vld [vmem:[%s17987_s5 + $0x1098] sm:$0xff]  ;;  %v10047_v11 = vpack.c.bf16 %v6364_v48, %v6362_v39 }
 0x734   :  { %10024 = vmatprep.subr.bf16.mxu1 %v10023_v19  ;;  %v10041_v19 = vpack.c.bf16 %v6355_v42, %v6353_v59  ;;  %v10335_v9 = vpack.c.bf16 %v6652_v27, %v6650_v60  ;;  %v6373_v59 = vld [vmem:[%s17987_s5 + $0x7e0] sm:$0xff]  ;;  %v6375_v42 = vld [vmem:[%s17987_s5 + $0x7f0] sm:$0xff] }
 0x735   :  { %10318 = vmatpush1.bf16.msra.mxu0 %v10317_v50  ;;  %v6363_v50 = vld [vmem:[%s17987_s5 + $0x790] sm:$0xff]  ;;  %v10061_v60 = vpack.c.bf16 %v6375_v42, %v6373_v59 }
 0x736   :  { %10320 = vmatprep.subr.bf16.mxu0 %v10319_v49  ;;  %v6368_v49 = vld [vmem:[%s17987_s5 + $0x7b8] sm:$0xff]  ;;  %v6703_v59 = vld [vmem:[%s17987_s5 + $0x1230] sm:$0xff] }
 0x737   :  { %10026 = vmatpush1.bf16.msra.mxu1 %v10025_v37  ;;  %v6656_v37 = vld [vmem:[%s17987_s5 + $0x10b8] sm:$0xff]  ;;  %v10051_v21 = vpack.c.bf16 %v6368_v49, %v6366_v13  ;;  %v6681_v49 = vld [vmem:[%s17987_s5 + $0x1180] sm:$0xff] }
 0x738   :  { %10028 = vmatprep.subr.bf16.mxu1 %v10027_v1  ;;  %7895 = vmatmul.mubr.f32.vlgmr.msra.gmra.mrb[0].mxu0 %v15785_v26  ;;  %v6354_v26 = vld [vmem:[%s17987_s5 + $0x748] sm:$0xff]  ;;  %v10045_v1 = vpack.c.bf16 %v6359_v30, %v6357_v0  ;;  %v10339_v46 = vpack.c.bf16 %v6656_v37, %v6654_v15  ;;  %v6671_v0 = vld [vmem:[%s17987_s5 + $0x1130] sm:$0xff]  ;;  %v6680_v15 = vld [vmem:[%s17987_s5 + $0x1178] sm:$0xff] }
 0x739   :  { %10322 = vmatpush1.bf16.msra.mxu0 %v10321_v43  ;;  %7965 = vmatprep.mubr.f32.mxu0 %v7248_v20  ;;  %v10039_v29 = vpack.c.bf16 %v6356_v56, %v6354_v26  ;;  %v6367_v43 = vld [vmem:[%s17987_s5 + $0x7b0] sm:$0xff]  ;;  %v6374_v26 = vld [vmem:[%s17987_s5 + $0x7e8] sm:$0xff]  ;;  %v6376_v56 = vld [vmem:[%s17987_s5 + $0x7f8] sm:$0xff] }
 0x73a   :  { %10324 = vmatprep.subr.bf16.mxu0 %v10323_v61  ;;  %v6372_v61 = vld [vmem:[%s17987_s5 + $0x7d8] sm:$0xff]  ;;  %v10053_v20 = vpack.c.bf16 %v6367_v43, %v6365_v35  ;;  %v6674_v30 = vld [vmem:[%s17987_s5 + $0x1148] sm:$0xff] }
 0x73b   :  { %10030 = vmatpush1.bf16.msra.mxu1 %v10029_v38  ;;  %v6660_v38 = vld [vmem:[%s17987_s5 + $0x10d8] sm:$0xff]  ;;  %v6690_v35 = vld [vmem:[%s17987_s5 + $0x11c8] sm:$0xff] }
 0x73c   :  { %10032 = vmatprep.subr.bf16.mxu1 %v10031_v53  ;;  %v10049_v53 = vpack.c.bf16 %v6363_v50, %v6361_v16  ;;  %v10343_v63 = vpack.c.bf16 %v6660_v38, %v6658_v33  ;;  %v6682_v16 = vld [vmem:[%s17987_s5 + $0x1188] sm:$0xff]  ;;  %v6684_v50 = vld [vmem:[%s17987_s5 + $0x1198] sm:$0xff]  ;;  %v10371_v38 = vpack.c.bf16 %v6688_v7, %v6686_v44 }
 0x73d   :  { %10326 = vmatpush1.bf16.msra.mxu0 %v10325_v55  ;;  %v10345_v55 = vpack.c.bf16 %v6659_v24, %v6657_v8  ;;  %v10367_v13 = vpack.c.bf16 %v6684_v50, %v6682_v16  ;;  %v6692_v43 = vld [vmem:[%s17987_s5 + $0x11d8] sm:$0xff]  ;;  %v6694_v8 = vld [vmem:[%s17987_s5 + $0x11e8] sm:$0xff] }
 0x73e   :  { %10328 = vmatprep.subr.bf16.mxu0 %v10327_v62  ;;  %v6696_v24 = vld [vmem:[%s17987_s5 + $0x11f8] sm:$0xff]  ;;  %v6722_v16 = vld [vmem:[%s17987_s5 + $0x12c8] sm:$0xff] }
 0x73f   :  { %10034 = vmatpush1.bf16.msra.mxu1 %v10033_v23  ;;  %v6664_v23 = vld [vmem:[%s17987_s5 + $0x10f8] sm:$0xff]  ;;  %v6726_v44 = vld [vmem:[%s17987_s5 + $0x12e8] sm:$0xff] }
 0x740   :  { %10036 = vmatprep.subr.bf16.mxu1 %v10035_v36  ;;  %v10055_v36 = vpack.c.bf16 %v6372_v61, %v6370_v14  ;;  %v10347_v62 = vpack.c.bf16 %v6664_v23, %v6662_v58  ;;  %v10375_v14 = vpack.c.bf16 %v6692_v43, %v6690_v35  ;;  %v6689_v61 = vld [vmem:[%s17987_s5 + $0x11c0] sm:$0xff]  ;;  %v10379_v23 = vpack.c.bf16 %v6696_v24, %v6694_v8  ;;  %v6724_v50 = vld [vmem:[%s17987_s5 + $0x12d8] sm:$0xff]  ;;  %v6730_v35 = vld [vmem:[%s17987_s5 + $0x1308] sm:$0xff] }
 0x741   :  { %10330 = vmatpush1.bf16.msra.mxu0 %v10329_v17  ;;  %v10349_v17 = vpack.c.bf16 %v6663_v32, %v6661_v3  ;;  %v6699_v3 = vld [vmem:[%s17987_s5 + $0x1210] sm:$0xff]  ;;  %v6728_v7 = vld [vmem:[%s17987_s5 + $0x12f8] sm:$0xff]  ;;  %v6734_v8 = vld [vmem:[%s17987_s5 + $0x1328] sm:$0xff] }
 0x742   :  { %10332 = vmatprep.subr.bf16.mxu0 %v10331_v51  ;;  %v6667_v51 = vld [vmem:[%s17987_s5 + $0x1110] sm:$0xff]  ;;  %v6732_v43 = vld [vmem:[%s17987_s5 + $0x1318] sm:$0xff] }
 0x743   :  { %10038 = vmatpush1.bf16.msra.mxu1 %v10037_v40  ;;  %v10057_v40 = vpack.c.bf16 %v6371_v34, %v6369_v54  ;;  %v10353_v27 = vpack.c.bf16 %v6667_v51, %v6665_v28  ;;  %v6698_v54 = vld [vmem:[%s17987_s5 + $0x1208] sm:$0xff]  ;;  %v6700_v34 = vld [vmem:[%s17987_s5 + $0x1218] sm:$0xff] }
 0x744   :  { %10040 = vmatprep.subr.bf16.mxu1 %v10039_v29  ;;  %v10059_v29 = vpack.c.bf16 %v6376_v56, %v6374_v26  ;;  %v10383_v56 = vpack.c.bf16 %v6700_v34, %v6698_v54  ;;  %v6736_v24 = vld [vmem:[%s17987_s5 + $0x1338] sm:$0xff]  ;;  %v6738_v54 = vld [vmem:[%s17987_s5 + $0x1348] sm:$0xff] }
 0x745   :  { %10334 = vmatpush1.bf16.msra.mxu0 %v10333_v31  ;;  %v6676_v31 = vld [vmem:[%s17987_s5 + $0x1158] sm:$0xff] }
 0x746   :  { %10336 = vmatprep.subr.bf16.mxu0 %v10335_v9  ;;  %v10359_v48 = vpack.c.bf16 %v6676_v31, %v6674_v30  ;;  %v6673_v9 = vld [vmem:[%s17987_s5 + $0x1140] sm:$0xff]  ;;  %v6714_v30 = vld [vmem:[%s17987_s5 + $0x1288] sm:$0xff]  ;;  %v6716_v31 = vld [vmem:[%s17987_s5 + $0x1298] sm:$0xff] }
 0x747   :  { %10042 = vmatpush1.bf16.msra.mxu1 %v10041_v19  ;;  %v10355_v19 = vpack.c.bf16 %v6672_v4, %v6670_v22  ;;  %v10361_v37 = vpack.c.bf16 %v6675_v57, %v6673_v9  ;;  %v6705_v22 = vld [vmem:[%s17987_s5 + $0x1240] sm:$0xff]  ;;  %v6707_v4 = vld [vmem:[%s17987_s5 + $0x1250] sm:$0xff]  ;;  %v6740_v34 = vld [vmem:[%s17987_s5 + $0x1358] sm:$0xff] }
 0x748   :  { %10044 = vmatprep.subr.bf16.mxu1 %v10043_v52  ;;  %v6669_v52 = vld [vmem:[%s17987_s5 + $0x1120] sm:$0xff]  ;;  %v6715_v57 = vld [vmem:[%s17987_s5 + $0x1290] sm:$0xff] }
 0x749   :  { %10338 = vmatpush1.bf16.msra.mxu0 %v10337_v6  ;;  %v10357_v39 = vpack.c.bf16 %v6671_v0, %v6669_v52  ;;  %v6709_v52 = vld [vmem:[%s17987_s5 + $0x1260] sm:$0xff]  ;;  %v6711_v0 = vld [vmem:[%s17987_s5 + $0x1270] sm:$0xff] }
 0x74a   :  { %10340 = vmatprep.subr.bf16.mxu0 %v10339_v46  ;;  %v6683_v46 = vld [vmem:[%s17987_s5 + $0x1190] sm:$0xff]  ;;  %v6713_v9 = vld [vmem:[%s17987_s5 + $0x1280] sm:$0xff] }
 0x74b   :  { %10046 = vmatpush1.bf16.msra.mxu1 %v10045_v1  ;;  %v10363_v1 = vpack.c.bf16 %v6680_v15, %v6678_v2  ;;  %v10369_v33 = vpack.c.bf16 %v6683_v46, %v6681_v49  ;;  %v6718_v2 = vld [vmem:[%s17987_s5 + $0x12a8] sm:$0xff]  ;;  %v6720_v15 = vld [vmem:[%s17987_s5 + $0x12b8] sm:$0xff]  ;;  %v6721_v49 = vld [vmem:[%s17987_s5 + $0x12c0] sm:$0xff] }
 0x74c   :  { %10048 = vmatprep.subr.bf16.mxu1 %v10047_v11  ;;  %v6677_v11 = vld [vmem:[%s17987_s5 + $0x1160] sm:$0xff]  ;;  %v6723_v46 = vld [vmem:[%s17987_s5 + $0x12d0] sm:$0xff] }
 0x74d   :  { %10342 = vmatpush1.bf16.msra.mxu0 %v10341_v18 }
 0x74e   :  { %10344 = vmatprep.subr.bf16.mxu0 %v10343_v63  ;;  %v6691_v63 = vld [vmem:[%s17987_s5 + $0x11d0] sm:$0xff] }
 0x74f   :  { %10050 = vmatpush1.bf16.msra.mxu1 %v10049_v53  ;;  %v6685_v53 = vld [vmem:[%s17987_s5 + $0x11a0] sm:$0xff]  ;;  %v10377_v58 = vpack.c.bf16 %v6691_v63, %v6689_v61  ;;  %v6731_v63 = vld [vmem:[%s17987_s5 + $0x1310] sm:$0xff] }
 0x750   :  { %10052 = vmatprep.subr.bf16.mxu1 %v10051_v21  ;;  %v6687_v21 = vld [vmem:[%s17987_s5 + $0x11b0] sm:$0xff]  ;;  %v6729_v61 = vld [vmem:[%s17987_s5 + $0x1300] sm:$0xff] }
 0x751   :  { %10346 = vmatpush1.bf16.msra.mxu0 %v10345_v55  ;;  %v10373_v18 = vpack.c.bf16 %v6687_v21, %v6685_v53  ;;  %v7233_v55 = vcombine.high %v16158_v45, %v16158_v45  ;;  %v6704_v45 = vld [vmem:[%s17987_s5 + $0x1238] sm:$0xff]  ;;  %v6725_v53 = vld [vmem:[%s17987_s5 + $0x12e0] sm:$0xff]  ;;  %v6727_v21 = vld [vmem:[%s17987_s5 + $0x12f0] sm:$0xff] }
 0x752   :  { %10348 = vmatprep.subr.bf16.mxu0 %v10347_v62  ;;  %v6697_v62 = vld [vmem:[%s17987_s5 + $0x1200] sm:$0xff] }
 0x753   :  { %10054 = vmatpush1.bf16.msra.mxu1 %v10053_v20  ;;  %v6693_v20 = vld [vmem:[%s17987_s5 + $0x11e0] sm:$0xff]  ;;  %v16471_v32 = vrot.slane %v7233_v55, %v18590_v12  ;;  %v10385_v47 = vpack.c.bf16 %v6699_v3, %v6697_v62  ;;  %v6739_v62 = vld [vmem:[%s17987_s5 + $0x1350] sm:$0xff]  ;;  %v6742_v3 = vld [vmem:[%s17987_s5 + $0x1368] sm:$0xff] }
 0x754   :  { %10056 = vmatprep.subr.bf16.mxu1 %v10055_v36  ;;  %v6695_v36 = vld [vmem:[%s17987_s5 + $0x11f0] sm:$0xff] }
 0x755   :  { %10350 = vmatpush1.bf16.msra.mxu0 %v10349_v17  ;;  %v10381_v26 = vpack.c.bf16 %v6695_v36, %v6693_v20  ;;  %v7249_v42 = vcombine.high %v16471_v32, %v16471_v32  ;;  %v6706_v17 = vld [vmem:[%s17987_s5 + $0x1248] sm:$0xff]  ;;  %v6733_v20 = vld [vmem:[%s17987_s5 + $0x1320] sm:$0xff]  ;;  %v6735_v36 = vld [vmem:[%s17987_s5 + $0x1330] sm:$0xff] }
 0x756   :  { %10352 = vmatprep.subr.bf16.mxu0 %v10351_v10  ;;  %v6708_v10 = vld [vmem:[%s17987_s5 + $0x1258] sm:$0xff]  ;;  %v10421_v55 = vpack.c.bf16 %v6735_v36, %v6733_v20  ;;  %v6773_v20 = vld [vmem:[%s17987_s5 + $0x1460] sm:$0xff]  ;;  %v6775_v36 = vld [vmem:[%s17987_s5 + $0x1470] sm:$0xff] }
 0x757   :  { %10058 = vmatpush1.bf16.msra.mxu1 %v10057_v40  ;;  %v10387_v40 = vpack.c.bf16 %v6704_v45, %v6702_v5  ;;  %v10391_v51 = vpack.c.bf16 %v6708_v10, %v6706_v17  ;;  %v6744_v5 = vld [vmem:[%s17987_s5 + $0x1378] sm:$0xff] }
 0x758   :  { %10060 = vmatprep.subr.bf16.mxu1 %v10059_v29  ;;  %v6701_v29 = vld [vmem:[%s17987_s5 + $0x1220] sm:$0xff] }
 0x759   :  { %10354 = vmatpush1.bf16.msra.mxu0 %v10353_v27  ;;  %v10389_v28 = vpack.c.bf16 %v6703_v59, %v6701_v29  ;;  %v10393_v27 = vpack.c.bf16 %v6707_v4, %v6705_v22  ;;  %v6743_v29 = vld [vmem:[%s17987_s5 + $0x1370] sm:$0xff]  ;;  %v6746_v59 = vld [vmem:[%s17987_s5 + $0x1388] sm:$0xff]  ;;  %v6752_v4 = vld [vmem:[%s17987_s5 + $0x13b8] sm:$0xff] }
 0x75a   :  { %10356 = vmatprep.subr.bf16.mxu0 %v10355_v19  ;;  %v6750_v22 = vld [vmem:[%s17987_s5 + $0x13a8] sm:$0xff] }
 0x75b   :  { %10062 = vmatpush1.bf16.msra.mxu1 %v10061_v60  ;;  %v6710_v60 = vld [vmem:[%s17987_s5 + $0x1268] sm:$0xff] }
 0x75d   :  { %10358 = vmatpush1.bf16.msra.mxu0 %v10357_v39  ;;  %v10397_v39 = vpack.c.bf16 %v6711_v0, %v6709_v52  ;;  %v6754_v52 = vld [vmem:[%s17987_s5 + $0x13c8] sm:$0xff]  ;;  %v6756_v0 = vld [vmem:[%s17987_s5 + $0x13d8] sm:$0xff] }
 0x75e   :  { %7611 = vmatmul.mubr.f32.vlgmr.msra.gmra.mrb[128].mxu1 %v15994_v25  ;;  %10360 = vmatprep.subr.bf16.mxu0 %v10359_v48  ;;  %v6679_v25 = vld [vmem:[%s17987_s5 + $0x1170] sm:$0xff]  ;;  %v10399_v48 = vpack.c.bf16 %v6716_v31, %v6714_v30  ;;  %v10439_v31 = vpack.c.bf16 %v6756_v0, %v6754_v52  ;;  %v6794_v52 = vld [vmem:[%s17987_s5 + $0x1508] sm:$0xff]  ;;  %v6796_v0 = vld [vmem:[%s17987_s5 + $0x1518] sm:$0xff] }
 0x75f   :  { %v10365_v6 = vpack.c.bf16 %v6679_v25, %v6677_v11  ;;  %v6717_v11 = vld [vmem:[%s17987_s5 + $0x12a0] sm:$0xff]  ;;  %v6719_v25 = vld [vmem:[%s17987_s5 + $0x12b0] sm:$0xff] }
 0x761   :  { %10362 = vmatpush1.bf16.msra.mxu0 %v10361_v37  ;;  %v10401_v37 = vpack.c.bf16 %v6715_v57, %v6713_v9  ;;  %v6758_v9 = vld [vmem:[%s17987_s5 + $0x13e8] sm:$0xff]  ;;  %v6760_v57 = vld [vmem:[%s17987_s5 + $0x13f8] sm:$0xff] }
 0x762   :  { %10364 = vmatprep.subr.bf16.mxu0 %v10363_v1  ;;  %v10403_v1 = vpack.c.bf16 %v6720_v15, %v6718_v2  ;;  %v10443_v15 = vpack.c.bf16 %v6760_v57, %v6758_v9  ;;  %v6798_v9 = vld [vmem:[%s17987_s5 + $0x1528] sm:$0xff]  ;;  %v6800_v57 = vld [vmem:[%s17987_s5 + $0x1538] sm:$0xff] }
 0x765   :  { %10366 = vmatpush1.bf16.msra.mxu0 %v10365_v6  ;;  %v10405_v6 = vpack.c.bf16 %v6719_v25, %v6717_v11  ;;  %v6762_v11 = vld [vmem:[%s17987_s5 + $0x1408] sm:$0xff]  ;;  %v6764_v25 = vld [vmem:[%s17987_s5 + $0x1418] sm:$0xff] }
 0x766   :  { %10368 = vmatprep.subr.bf16.mxu0 %v10367_v13  ;;  %v10407_v13 = vpack.c.bf16 %v6724_v50, %v6722_v16  ;;  %v16662_v16 = vld [vmem:[#allocation4 + $0x28] sm:$0xff] }
 0x769   :  { %10370 = vmatpush1.bf16.msra.mxu0 %v10369_v33  ;;  %v10409_v33 = vpack.c.bf16 %v6723_v46, %v6721_v49  ;;  %v6763_v49 = vld [vmem:[%s17987_s5 + $0x1410] sm:$0xff]  ;;  %v16672_v46 = vrot.slane %v16662_v16, %v18590_v12 }
 0x76a   :  { %10372 = vmatprep.subr.bf16.mxu0 %v10371_v38  ;;  %v10411_v38 = vpack.c.bf16 %v6728_v7, %v6726_v44  ;;  %v6766_v44 = vld [vmem:[%s17987_s5 + $0x1428] sm:$0xff]  ;;  %v6768_v7 = vld [vmem:[%s17987_s5 + $0x1438] sm:$0xff] }
 0x76d   :  { %10374 = vmatpush1.bf16.msra.mxu0 %v10373_v18  ;;  %v10413_v18 = vpack.c.bf16 %v6727_v21, %v6725_v53  ;;  %v6765_v53 = vld [vmem:[%s17987_s5 + $0x1420] sm:$0xff]  ;;  %v6767_v21 = vld [vmem:[%s17987_s5 + $0x1430] sm:$0xff] }
 0x76e   :  { %10376 = vmatprep.subr.bf16.mxu0 %v10375_v14  ;;  %v10415_v14 = vpack.c.bf16 %v6732_v43, %v6730_v35  ;;  %v7265_v35 = vcombine.high %v16672_v46, %v16672_v46  ;;  %v6770_v43 = vld [vmem:[%s17987_s5 + $0x1448] sm:$0xff] }
 0x771   :  { %10378 = vmatpush1.bf16.msra.mxu0 %v10377_v58  ;;  %v10417_v58 = vpack.c.bf16 %v6731_v63, %v6729_v61  ;;  %v6769_v63 = vld [vmem:[%s17987_s5 + $0x1440] sm:$0xff] }
 0x772   :  { %10380 = vmatprep.subr.bf16.mxu0 %v10379_v23  ;;  %v10419_v23 = vpack.c.bf16 %v6736_v24, %v6734_v8  ;;  %v6771_v8 = vld [vmem:[%s17987_s5 + $0x1450] sm:$0xff]  ;;  %v6774_v24 = vld [vmem:[%s17987_s5 + $0x1468] sm:$0xff] }
 0x775   :  { %10382 = vmatpush1.bf16.msra.mxu0 %v10381_v26  ;;  %v10423_v26 = vpack.c.bf16 %v6740_v34, %v6738_v54  ;;  %v6778_v54 = vld [vmem:[%s17987_s5 + $0x1488] sm:$0xff]  ;;  %v6780_v34 = vld [vmem:[%s17987_s5 + $0x1498] sm:$0xff] }
 0x776   :  { %10384 = vmatprep.subr.bf16.mxu0 %v10383_v56  ;;  %v6737_v56 = vld [vmem:[%s17987_s5 + $0x1340] sm:$0xff] }
 0x777   :  { %v10425_v45 = vpack.c.bf16 %v6739_v62, %v6737_v56  ;;  %v6777_v56 = vld [vmem:[%s17987_s5 + $0x1480] sm:$0xff]  ;;  %v6779_v62 = vld [vmem:[%s17987_s5 + $0x1490] sm:$0xff] }
 0x778   :  { %7966 = vmatmul.mubr.f32.vlgmr.msra.gmra.mrb[0].mxu0 %v16186_v41  ;;  %v6712_v41 = vld [vmem:[%s17987_s5 + $0x1278] sm:$0xff] }
 0x779   :  { %10386 = vmatpush1.bf16.msra.mxu0 %v10385_v47  ;;  %8036 = vmatprep.mubr.f32.mxu0 %v7249_v42  ;;  %v10395_v19 = vpack.c.bf16 %v6712_v41, %v6710_v60  ;;  %v10427_v47 = vpack.c.bf16 %v6744_v5, %v6742_v3  ;;  %v6748_v42 = vld [vmem:[%s17987_s5 + $0x1398] sm:$0xff]  ;;  %v10435_v41 = vpack.c.bf16 %v6752_v4, %v6750_v22  ;;  %v6782_v3 = vld [vmem:[%s17987_s5 + $0x14a8] sm:$0xff] }
 0x77a   :  { %10388 = vmatprep.subr.bf16.mxu0 %v10387_v40  ;;  %v6741_v40 = vld [vmem:[%s17987_s5 + $0x1360] sm:$0xff]  ;;  %v10431_v10 = vpack.c.bf16 %v6748_v42, %v6746_v59  ;;  %v6784_v5 = vld [vmem:[%s17987_s5 + $0x14b8] sm:$0xff]  ;;  %v6786_v59 = vld [vmem:[%s17987_s5 + $0x14c8] sm:$0xff] }
 0x77b   :  { %v10429_v17 = vpack.c.bf16 %v6743_v29, %v6741_v40  ;;  %v6781_v40 = vld [vmem:[%s17987_s5 + $0x14a0] sm:$0xff]  ;;  %v6783_v29 = vld [vmem:[%s17987_s5 + $0x14b0] sm:$0xff]  ;;  %v6788_v42 = vld [vmem:[%s17987_s5 + $0x14d8] sm:$0xff] }
 0x77c   :  { %v6790_v22 = vld [vmem:[%s17987_s5 + $0x14e8] sm:$0xff]  ;;  %v6792_v4 = vld [vmem:[%s17987_s5 + $0x14f8] sm:$0xff] }
 0x77d   :  { %10390 = vmatpush1.bf16.msra.mxu0 %v10389_v28  ;;  %v6745_v28 = vld [vmem:[%s17987_s5 + $0x1380] sm:$0xff] }
 0x77e   :  { %10392 = vmatprep.subr.bf16.mxu0 %v10391_v51  ;;  %v6747_v51 = vld [vmem:[%s17987_s5 + $0x1390] sm:$0xff] }
 0x77f   :  { %v10433_v60 = vpack.c.bf16 %v6747_v51, %v6745_v28  ;;  %v6785_v28 = vld [vmem:[%s17987_s5 + $0x14c0] sm:$0xff]  ;;  %v6787_v51 = vld [vmem:[%s17987_s5 + $0x14d0] sm:$0xff] }
 0x781   :  { %10394 = vmatpush1.bf16.msra.mxu0 %v10393_v27  ;;  %v6749_v27 = vld [vmem:[%s17987_s5 + $0x13a0] sm:$0xff] }
 0x782   :  { %10396 = vmatprep.subr.bf16.mxu0 %v10395_v19  ;;  %v6751_v19 = vld [vmem:[%s17987_s5 + $0x13b0] sm:$0xff] }
 0x783   :  { %v10437_v30 = vpack.c.bf16 %v6751_v19, %v6749_v27  ;;  %v6789_v27 = vld [vmem:[%s17987_s5 + $0x14e0] sm:$0xff]  ;;  %v6791_v19 = vld [vmem:[%s17987_s5 + $0x14f0] sm:$0xff] }
 0x785   :  { %10398 = vmatpush1.bf16.msra.mxu0 %v10397_v39  ;;  %v6753_v39 = vld [vmem:[%s17987_s5 + $0x13c0] sm:$0xff] }
 0x786   :  { %10400 = vmatprep.subr.bf16.mxu0 %v10399_v48  ;;  %v6755_v48 = vld [vmem:[%s17987_s5 + $0x13d0] sm:$0xff] }
 0x787   :  { %v10441_v2 = vpack.c.bf16 %v6755_v48, %v6753_v39  ;;  %v6793_v39 = vld [vmem:[%s17987_s5 + $0x1500] sm:$0xff]  ;;  %v6795_v48 = vld [vmem:[%s17987_s5 + $0x1510] sm:$0xff] }
 0x789   :  { %10402 = vmatpush1.bf16.msra.mxu0 %v10401_v37  ;;  %v6757_v37 = vld [vmem:[%s17987_s5 + $0x13e0] sm:$0xff] }
 0x78a   :  { %10404 = vmatprep.subr.bf16.mxu0 %v10403_v1  ;;  %v6759_v1 = vld [vmem:[%s17987_s5 + $0x13f0] sm:$0xff] }
 0x78b   :  { %v10445_v50 = vpack.c.bf16 %v6759_v1, %v6757_v37  ;;  %v6797_v37 = vld [vmem:[%s17987_s5 + $0x1520] sm:$0xff]  ;;  %v6799_v1 = vld [vmem:[%s17987_s5 + $0x1530] sm:$0xff] }
 0x78d   :  { %10406 = vmatpush1.bf16.msra.mxu0 %v10405_v6  ;;  %v10447_v6 = vpack.c.bf16 %v6764_v25, %v6762_v11  ;;  %v6802_v11 = vld [vmem:[%s17987_s5 + $0x1548] sm:$0xff]  ;;  %v6804_v25 = vld [vmem:[%s17987_s5 + $0x1558] sm:$0xff] }
 0x78e   :  { %10408 = vmatprep.subr.bf16.mxu0 %v10407_v13  ;;  %v6761_v13 = vld [vmem:[%s17987_s5 + $0x1400] sm:$0xff] }
 0x791   :  { %10410 = vmatpush1.bf16.msra.mxu0 %v10409_v33  ;;  %v10449_v33 = vpack.c.bf16 %v6763_v49, %v6761_v13  ;;  %v6801_v13 = vld [vmem:[%s17987_s5 + $0x1540] sm:$0xff]  ;;  %v6803_v49 = vld [vmem:[%s17987_s5 + $0x1550] sm:$0xff] }
 0x792   :  { %10412 = vmatprep.subr.bf16.mxu0 %v10411_v38  ;;  %v10451_v38 = vpack.c.bf16 %v6768_v7, %v6766_v44  ;;  %v6806_v44 = vld [vmem:[%s17987_s5 + $0x1568] sm:$0xff]  ;;  %v6808_v7 = vld [vmem:[%s17987_s5 + $0x1578] sm:$0xff] }
 0x795   :  { %10414 = vmatpush1.bf16.msra.mxu0 %v10413_v18  ;;  %v6772_v18 = vld [vmem:[%s17987_s5 + $0x1458] sm:$0xff] }
 0x796   :  { %10416 = vmatprep.subr.bf16.mxu0 %v10415_v14  ;;  %v10453_v14 = vpack.c.bf16 %v6767_v21, %v6765_v53  ;;  %v10455_v61 = vpack.c.bf16 %v6772_v18, %v6770_v43  ;;  %v6805_v53 = vld [vmem:[%s17987_s5 + $0x1560] sm:$0xff]  ;;  %v6807_v21 = vld [vmem:[%s17987_s5 + $0x1570] sm:$0xff]  ;;  %v6812_v43 = vld [vmem:[%s17987_s5 + $0x1598] sm:$0xff] }
 0x797   :  { %v10493_v18 = vpack.c.bf16 %v6807_v21, %v6805_v53  ;;  %v6845_v53 = vld [vmem:[%s17987_s5 + $0x16a0] sm:$0xff]  ;;  %v6847_v21 = vld [vmem:[%s17987_s5 + $0x16b0] sm:$0xff] }
 0x799   :  { %10418 = vmatpush1.bf16.msra.mxu0 %v10417_v58  ;;  %v10457_v58 = vpack.c.bf16 %v6771_v8, %v6769_v63  ;;  %v6811_v63 = vld [vmem:[%s17987_s5 + $0x1590] sm:$0xff]  ;;  %v6814_v8 = vld [vmem:[%s17987_s5 + $0x15a8] sm:$0xff] }
 0x79a   :  { %10420 = vmatprep.subr.bf16.mxu0 %v10419_v23 }
 0x79d   :  { %10422 = vmatpush1.bf16.msra.mxu0 %v10421_v55  ;;  %v10461_v55 = vpack.c.bf16 %v6775_v36, %v6773_v20  ;;  %v6815_v20 = vld [vmem:[%s17987_s5 + $0x15b0] sm:$0xff]  ;;  %v6818_v36 = vld [vmem:[%s17987_s5 + $0x15c8] sm:$0xff] }
 0x79e   :  { %10424 = vmatprep.subr.bf16.mxu0 %v10423_v26  ;;  %v10463_v26 = vpack.c.bf16 %v6780_v34, %v6778_v54  ;;  %v6820_v54 = vld [vmem:[%s17987_s5 + $0x15d8] sm:$0xff] }
 0x7a1   :  { %10426 = vmatpush1.bf16.msra.mxu0 %v10425_v45  ;;  %v10465_v45 = vpack.c.bf16 %v6779_v62, %v6777_v56  ;;  %v6819_v56 = vld [vmem:[%s17987_s5 + $0x15d0] sm:$0xff]  ;;  %v6822_v62 = vld [vmem:[%s17987_s5 + $0x15e8] sm:$0xff] }
 0x7a2   :  { %10428 = vmatprep.subr.bf16.mxu0 %v10427_v47  ;;  %v10467_v47 = vpack.c.bf16 %v6784_v5, %v6782_v3  ;;  %v6824_v3 = vld [vmem:[%s17987_s5 + $0x15f8] sm:$0xff] }
 0x7a5   :  { %10430 = vmatpush1.bf16.msra.mxu0 %v10429_v17  ;;  %v10469_v17 = vpack.c.bf16 %v6783_v29, %v6781_v40  ;;  %v6823_v40 = vld [vmem:[%s17987_s5 + $0x15f0] sm:$0xff]  ;;  %v6826_v29 = vld [vmem:[%s17987_s5 + $0x1608] sm:$0xff] }
 0x7a6   :  { %10432 = vmatprep.subr.bf16.mxu0 %v10431_v10  ;;  %v10471_v10 = vpack.c.bf16 %v6788_v42, %v6786_v59  ;;  %v6828_v59 = vld [vmem:[%s17987_s5 + $0x1618] sm:$0xff]  ;;  %v7250_v42 = vcombine.high %v16662_v16, %v16662_v16 }
 0x7a7   :  { %v6832_v16 = vld [vmem:[%s17987_s5 + $0x1638] sm:$0xff] }
 0x7a9   :  { %10434 = vmatpush1.bf16.msra.mxu0 %v10433_v60  ;;  %v10473_v60 = vpack.c.bf16 %v6787_v51, %v6785_v28  ;;  %v6825_v28 = vld [vmem:[%s17987_s5 + $0x1600] sm:$0xff]  ;;  %v6827_v51 = vld [vmem:[%s17987_s5 + $0x1610] sm:$0xff] }
 0x7aa   :  { %10436 = vmatprep.subr.bf16.mxu0 %v10435_v41  ;;  %v10475_v41 = vpack.c.bf16 %v6792_v4, %v6790_v22  ;;  %v16872_v22 = vrot.slane %v7250_v42, %v18590_v12  ;;  %v6830_v4 = vld [vmem:[%s17987_s5 + $0x1628] sm:$0xff] }
 0x7ad   :  { %10438 = vmatpush1.bf16.msra.mxu0 %v10437_v30  ;;  %v10477_v30 = vpack.c.bf16 %v6791_v19, %v6789_v27  ;;  %v6829_v27 = vld [vmem:[%s17987_s5 + $0x1620] sm:$0xff]  ;;  %v6831_v19 = vld [vmem:[%s17987_s5 + $0x1630] sm:$0xff] }
 0x7ae   :  { %10440 = vmatprep.subr.bf16.mxu0 %v10439_v31  ;;  %v10479_v31 = vpack.c.bf16 %v6796_v0, %v6794_v52  ;;  %v7266_v52 = vcombine.high %v16872_v22, %v16872_v22  ;;  %v6834_v0 = vld [vmem:[%s17987_s5 + $0x1648] sm:$0xff] }
 0x7b1   :  { %10442 = vmatpush1.bf16.msra.mxu0 %v10441_v2  ;;  %v10481_v2 = vpack.c.bf16 %v6795_v48, %v6793_v39  ;;  %v6833_v48 = vld [vmem:[%s17987_s5 + $0x1640] sm:$0xff] }
 0x7b2   :  { %10444 = vmatprep.subr.bf16.mxu0 %v10443_v15  ;;  %v10483_v15 = vpack.c.bf16 %v6800_v57, %v6798_v9  ;;  %v6835_v9 = vld [vmem:[%s17987_s5 + $0x1650] sm:$0xff]  ;;  %v6838_v57 = vld [vmem:[%s17987_s5 + $0x1668] sm:$0xff] }
 0x7b5   :  { %10446 = vmatpush1.bf16.msra.mxu0 %v10445_v50  ;;  %v10485_v50 = vpack.c.bf16 %v6799_v1, %v6797_v37  ;;  %v6837_v37 = vld [vmem:[%s17987_s5 + $0x1660] sm:$0xff]  ;;  %v6839_v1 = vld [vmem:[%s17987_s5 + $0x1670] sm:$0xff] }
 0x7b6   :  { %10448 = vmatprep.subr.bf16.mxu0 %v10447_v6  ;;  %v10487_v6 = vpack.c.bf16 %v6804_v25, %v6802_v11  ;;  %v6842_v11 = vld [vmem:[%s17987_s5 + $0x1688] sm:$0xff]  ;;  %v6844_v25 = vld [vmem:[%s17987_s5 + $0x1698] sm:$0xff] }
 0x7b8   :  { %8037 = vmatmul.mubr.f32.vlgmr.msra.gmra.mrb[0].mxu0 %v16471_v32  ;;  %v6776_v32 = vld [vmem:[%s17987_s5 + $0x1478] sm:$0xff] }
 0x7b9   :  { %10450 = vmatpush1.bf16.msra.mxu0 %v10449_v33  ;;  %8107 = vmatprep.mubr.f32.mxu0 %v7265_v35  ;;  %v10459_v23 = vpack.c.bf16 %v6776_v32, %v6774_v24  ;;  %v10489_v33 = vpack.c.bf16 %v6803_v49, %v6801_v13  ;;  %v6810_v35 = vld [vmem:[%s17987_s5 + $0x1588] sm:$0xff]  ;;  %v6816_v24 = vld [vmem:[%s17987_s5 + $0x15b8] sm:$0xff]  ;;  %v6841_v13 = vld [vmem:[%s17987_s5 + $0x1680] sm:$0xff] }
 0x7ba   :  { %10452 = vmatprep.subr.bf16.mxu0 %v10451_v38  ;;  %v10491_v38 = vpack.c.bf16 %v6808_v7, %v6806_v44  ;;  %v6843_v49 = vld [vmem:[%s17987_s5 + $0x1690] sm:$0xff]  ;;  %v6846_v44 = vld [vmem:[%s17987_s5 + $0x16a8] sm:$0xff]  ;;  %v6848_v7 = vld [vmem:[%s17987_s5 + $0x16b8] sm:$0xff] }
 0x7bd   :  { %10454 = vmatpush1.bf16.msra.mxu0 %v10453_v14  ;;  %v10495_v14 = vpack.c.bf16 %v6812_v43, %v6810_v35  ;;  %v6850_v35 = vld [vmem:[%s17987_s5 + $0x16c8] sm:$0xff]  ;;  %v6852_v43 = vld [vmem:[%s17987_s5 + $0x16d8] sm:$0xff] }
 0x7be   :  { %10456 = vmatprep.subr.bf16.mxu0 %v10455_v61  ;;  %v6809_v61 = vld [vmem:[%s17987_s5 + $0x1580] sm:$0xff] }
 0x7bf   :  { %v10497_v32 = vpack.c.bf16 %v6811_v63, %v6809_v61  ;;  %v6849_v61 = vld [vmem:[%s17987_s5 + $0x16c0] sm:$0xff]  ;;  %v6851_v63 = vld [vmem:[%s17987_s5 + $0x16d0] sm:$0xff] }
 0x7c1   :  { %10458 = vmatpush1.bf16.msra.mxu0 %v10457_v58  ;;  %v10499_v58 = vpack.c.bf16 %v6816_v24, %v6814_v8  ;;  %v6854_v8 = vld [vmem:[%s17987_s5 + $0x16e8] sm:$0xff]  ;;  %v6856_v24 = vld [vmem:[%s17987_s5 + $0x16f8] sm:$0xff] }
 0x7c2   :  { %10460 = vmatprep.subr.bf16.mxu0 %v10459_v23  ;;  %v6813_v23 = vld [vmem:[%s17987_s5 + $0x15a0] sm:$0xff] }
 0x7c3   :  { %v10501_v34 = vpack.c.bf16 %v6815_v20, %v6813_v23  ;;  %v6853_v23 = vld [vmem:[%s17987_s5 + $0x16e0] sm:$0xff]  ;;  %v6855_v20 = vld [vmem:[%s17987_s5 + $0x16f0] sm:$0xff] }
 0x7c5   :  { %10462 = vmatpush1.bf16.msra.mxu0 %v10461_v55  ;;  %v10503_v55 = vpack.c.bf16 %v6820_v54, %v6818_v36  ;;  %v6858_v36 = vld [vmem:[%s17987_s5 + $0x1708] sm:$0xff]  ;;  %v6860_v54 = vld [vmem:[%s17987_s5 + $0x1718] sm:$0xff] }
 0x7c6   :  { %10464 = vmatprep.subr.bf16.mxu0 %v10463_v26  ;;  %v6817_v26 = vld [vmem:[%s17987_s5 + $0x15c0] sm:$0xff] }
 0x7c7   :  { %v10505_v5 = vpack.c.bf16 %v6819_v56, %v6817_v26  ;;  %v6857_v26 = vld [vmem:[%s17987_s5 + $0x1700] sm:$0xff]  ;;  %v6859_v56 = vld [vmem:[%s17987_s5 + $0x1710] sm:$0xff] }
 0x7c9   :  { %10466 = vmatpush1.bf16.msra.mxu0 %v10465_v45  ;;  %v10507_v45 = vpack.c.bf16 %v6824_v3, %v6822_v62  ;;  %v6862_v62 = vld [vmem:[%s17987_s5 + $0x1728] sm:$0xff]  ;;  %v6864_v3 = vld [vmem:[%s17987_s5 + $0x1738] sm:$0xff] }
 0x7ca   :  { %10468 = vmatprep.subr.bf16.mxu0 %v10467_v47  ;;  %v6821_v47 = vld [vmem:[%s17987_s5 + $0x15e0] sm:$0xff] }
 0x7cd   :  { %10470 = vmatpush1.bf16.msra.mxu0 %v10469_v17  ;;  %v10509_v17 = vpack.c.bf16 %v6823_v40, %v6821_v47  ;;  %v6861_v47 = vld [vmem:[%s17987_s5 + $0x1720] sm:$0xff]  ;;  %v6863_v40 = vld [vmem:[%s17987_s5 + $0x1730] sm:$0xff] }
 0x7ce   :  { %10472 = vmatprep.subr.bf16.mxu0 %v10471_v10  ;;  %v10511_v10 = vpack.c.bf16 %v6828_v59, %v6826_v29  ;;  %v6866_v29 = vld [vmem:[%s17987_s5 + $0x1748] sm:$0xff]  ;;  %v6868_v59 = vld [vmem:[%s17987_s5 + $0x1758] sm:$0xff]  ;;  %v10549_v42 = vpack.c.bf16 %v6863_v40, %v6861_v47 }
 0x7d1   :  { %10474 = vmatpush1.bf16.msra.mxu0 %v10473_v60  ;;  %v10513_v60 = vpack.c.bf16 %v6827_v51, %v6825_v28  ;;  %v6867_v28 = vld [vmem:[%s17987_s5 + $0x1750] sm:$0xff]  ;;  %v6870_v51 = vld [vmem:[%s17987_s5 + $0x1768] sm:$0xff] }
 0x7d2   :  { %10476 = vmatprep.subr.bf16.mxu0 %v10475_v41  ;;  %v10515_v41 = vpack.c.bf16 %v6832_v16, %v6830_v4  ;;  %v6872_v4 = vld [vmem:[%s17987_s5 + $0x1778] sm:$0xff] }
 0x7d5   :  { %10478 = vmatpush1.bf16.msra.mxu0 %v10477_v30  ;;  %v6836_v30 = vld [vmem:[%s17987_s5 + $0x1658] sm:$0xff] }
 0x7d6   :  { %10480 = vmatprep.subr.bf16.mxu0 %v10479_v31  ;;  %v10517_v31 = vpack.c.bf16 %v6831_v19, %v6829_v27  ;;  %v10519_v39 = vpack.c.bf16 %v6836_v30, %v6834_v0  ;;  %v6871_v27 = vld [vmem:[%s17987_s5 + $0x1770] sm:$0xff]  ;;  %v6874_v19 = vld [vmem:[%s17987_s5 + $0x1788] sm:$0xff] }
 0x7d9   :  { %10482 = vmatpush1.bf16.msra.mxu0 %v10481_v2  ;;  %v10521_v2 = vpack.c.bf16 %v6835_v9, %v6833_v48  ;;  %v6878_v48 = vld [vmem:[%s17987_s5 + $0x17a8] sm:$0xff]  ;;  %v6880_v9 = vld [vmem:[%s17987_s5 + $0x17b8] sm:$0xff] }
 0x7da   :  { %10484 = vmatprep.subr.bf16.mxu0 %v10483_v15 }
 0x7dd   :  { %10486 = vmatpush1.bf16.msra.mxu0 %v10485_v50  ;;  %v10525_v50 = vpack.c.bf16 %v6839_v1, %v6837_v37  ;;  %v6882_v37 = vld [vmem:[%s17987_s5 + $0x17c8] sm:$0xff]  ;;  %v6884_v1 = vld [vmem:[%s17987_s5 + $0x17d8] sm:$0xff] }
 0x7de   :  { %10488 = vmatprep.subr.bf16.mxu0 %v10487_v6  ;;  %v10527_v6 = vpack.c.bf16 %v6844_v25, %v6842_v11  ;;  %v10567_v25 = vpack.c.bf16 %v6884_v1, %v6882_v37  ;;  %v6917_v37 = vld [vmem:[%s17987_s5 + $0x18e0] sm:$0xff]  ;;  %v6919_v1 = vld [vmem:[%s17987_s5 + $0x18f0] sm:$0xff] }
 0x7e1   :  { %10490 = vmatpush1.bf16.msra.mxu0 %v10489_v33  ;;  %v10529_v33 = vpack.c.bf16 %v6843_v49, %v6841_v13  ;;  %v6886_v13 = vld [vmem:[%s17987_s5 + $0x17e8] sm:$0xff]  ;;  %v6888_v49 = vld [vmem:[%s17987_s5 + $0x17f8] sm:$0xff] }
 0x7e2   :  { %10492 = vmatprep.subr.bf16.mxu0 %v10491_v38  ;;  %v10531_v38 = vpack.c.bf16 %v6848_v7, %v6846_v44 }
 0x7e5   :  { %10494 = vmatpush1.bf16.msra.mxu0 %v10493_v18  ;;  %v10533_v18 = vpack.c.bf16 %v6847_v21, %v6845_v53  ;;  %v6887_v53 = vld [vmem:[%s17987_s5 + $0x17f0] sm:$0xff] }
 0x7e6   :  { %10496 = vmatprep.subr.bf16.mxu0 %v10495_v14  ;;  %v10535_v14 = vpack.c.bf16 %v6852_v43, %v6850_v35  ;;  %v6890_v35 = vld [vmem:[%s17987_s5 + $0x1808] sm:$0xff]  ;;  %v6892_v43 = vld [vmem:[%s17987_s5 + $0x1818] sm:$0xff] }
 0x7e9   :  { %10498 = vmatpush1.bf16.msra.mxu0 %v10497_v32  ;;  %v10537_v32 = vpack.c.bf16 %v6851_v63, %v6849_v61  ;;  %v10575_v61 = vpack.c.bf16 %v6892_v43, %v6890_v35  ;;  %v6889_v63 = vld [vmem:[%s17987_s5 + $0x1800] sm:$0xff]  ;;  %v6927_v43 = vld [vmem:[%s17987_s5 + $0x1930] sm:$0xff] }
 0x7ea   :  { %10500 = vmatprep.subr.bf16.mxu0 %v10499_v58  ;;  %v10539_v58 = vpack.c.bf16 %v6856_v24, %v6854_v8  ;;  %v6891_v8 = vld [vmem:[%s17987_s5 + $0x1810] sm:$0xff]  ;;  %v6925_v35 = vld [vmem:[%s17987_s5 + $0x1920] sm:$0xff] }
 0x7ed   :  { %10502 = vmatpush1.bf16.msra.mxu0 %v10501_v34  ;;  %v10541_v34 = vpack.c.bf16 %v6855_v20, %v6853_v23  ;;  %v10577_v23 = vpack.c.bf16 %v6891_v8, %v6889_v63  ;;  %v10613_v63 = vpack.c.bf16 %v6927_v43, %v6925_v35 }
 0x7ee   :  { %10504 = vmatprep.subr.bf16.mxu0 %v10503_v55  ;;  %v10543_v55 = vpack.c.bf16 %v6860_v54, %v6858_v36  ;;  %v6893_v36 = vld [vmem:[%s17987_s5 + $0x1820] sm:$0xff]  ;;  %v6895_v54 = vld [vmem:[%s17987_s5 + $0x1830] sm:$0xff] }
 0x7f1   :  { %10506 = vmatpush1.bf16.msra.mxu0 %v10505_v5  ;;  %v10545_v5 = vpack.c.bf16 %v6859_v56, %v6857_v26  ;;  %v6900_v26 = vld [vmem:[%s17987_s5 + $0x1858] sm:$0xff]  ;;  %v10581_v56 = vpack.c.bf16 %v6895_v54, %v6893_v36 }
 0x7f2   :  { %10508 = vmatprep.subr.bf16.mxu0 %v10507_v45  ;;  %v10547_v45 = vpack.c.bf16 %v6864_v3, %v6862_v62  ;;  %v6897_v3 = vld [vmem:[%s17987_s5 + $0x1840] sm:$0xff] }
 0x7f5   :  { %10510 = vmatpush1.bf16.msra.mxu0 %v10509_v17  ;;  %v10551_v17 = vpack.c.bf16 %v6868_v59, %v6866_v29  ;;  %v6901_v29 = vld [vmem:[%s17987_s5 + $0x1860] sm:$0xff]  ;;  %v6903_v59 = vld [vmem:[%s17987_s5 + $0x1870] sm:$0xff] }
 0x7f6   :  { %10512 = vmatprep.subr.bf16.mxu0 %v10511_v10  ;;  %v6865_v10 = vld [vmem:[%s17987_s5 + $0x1740] sm:$0xff] }
 0x7f7   :  { %v10553_v16 = vpack.c.bf16 %v6867_v28, %v6865_v10  ;;  %v10589_v10 = vpack.c.bf16 %v6903_v59, %v6901_v29  ;;  %v6941_v59 = vld [vmem:[%s17987_s5 + $0x19a0] sm:$0xff] }
 0x7f8   :  { %8108 = vmatmul.mubr.f32.vlgmr.msra.gmra.mrb[0].mxu0 %v16672_v46  ;;  %v6840_v46 = vld [vmem:[%s17987_s5 + $0x1678] sm:$0xff] }
 0x7f9   :  { %10514 = vmatpush1.bf16.msra.mxu0 %v10513_v60  ;;  %8178 = vmatprep.mubr.f32.mxu0 %v7266_v52  ;;  %v10523_v15 = vpack.c.bf16 %v6840_v46, %v6838_v57  ;;  %v10555_v60 = vpack.c.bf16 %v6872_v4, %v6870_v51  ;;  %v6876_v52 = vld [vmem:[%s17987_s5 + $0x1798] sm:$0xff]  ;;  %v10563_v46 = vpack.c.bf16 %v6880_v9, %v6878_v48  ;;  %v6905_v51 = vld [vmem:[%s17987_s5 + $0x1880] sm:$0xff]  ;;  %v6907_v4 = vld [vmem:[%s17987_s5 + $0x1890] sm:$0xff] }
 0x7fa   :  { %10516 = vmatprep.subr.bf16.mxu0 %v10515_v41  ;;  %v6869_v41 = vld [vmem:[%s17987_s5 + $0x1760] sm:$0xff]  ;;  %v10559_v30 = vpack.c.bf16 %v6876_v52, %v6874_v19  ;;  %v6911_v52 = vld [vmem:[%s17987_s5 + $0x18b0] sm:$0xff] }
 0x7fb   :  { %v10557_v0 = vpack.c.bf16 %v6871_v27, %v6869_v41  ;;  %v10593_v41 = vpack.c.bf16 %v6907_v4, %v6905_v51  ;;  %v6909_v19 = vld [vmem:[%s17987_s5 + $0x18a0] sm:$0xff]  ;;  %v6915_v9 = vld [vmem:[%s17987_s5 + $0x18d0] sm:$0xff] }
 0x7fc   :  { %v6913_v48 = vld [vmem:[%s17987_s5 + $0x18c0] sm:$0xff] }
 0x7fd   :  { %10518 = vmatpush1.bf16.msra.mxu0 %v10517_v31  ;;  %v6873_v31 = vld [vmem:[%s17987_s5 + $0x1780] sm:$0xff] }
 0x7fe   :  { %10520 = vmatprep.subr.bf16.mxu0 %v10519_v39  ;;  %v6875_v39 = vld [vmem:[%s17987_s5 + $0x1790] sm:$0xff]  ;;  %v6945_v4 = vld [vmem:[%s17987_s5 + $0x19c0] sm:$0xff] }
 0x7ff   :  { %v10561_v57 = vpack.c.bf16 %v6875_v39, %v6873_v31  ;;  %v10597_v31 = vpack.c.bf16 %v6911_v52, %v6909_v19  ;;  %v6949_v52 = vld [vmem:[%s17987_s5 + $0x19e0] sm:$0xff] }
 0x801   :  { %10522 = vmatpush1.bf16.msra.mxu0 %v10521_v2  ;;  %v6877_v2 = vld [vmem:[%s17987_s5 + $0x17a0] sm:$0xff] }
 0x802   :  { %10524 = vmatprep.subr.bf16.mxu0 %v10523_v15  ;;  %v6879_v15 = vld [vmem:[%s17987_s5 + $0x17b0] sm:$0xff] }
 0x803   :  { %v10565_v11 = vpack.c.bf16 %v6879_v15, %v6877_v2  ;;  %v10601_v2 = vpack.c.bf16 %v6915_v9, %v6913_v48 }
 0x805   :  { %10526 = vmatpush1.bf16.msra.mxu0 %v10525_v50  ;;  %v6881_v50 = vld [vmem:[%s17987_s5 + $0x17c0] sm:$0xff] }
 0x806   :  { %10528 = vmatprep.subr.bf16.mxu0 %v10527_v6  ;;  %v6883_v6 = vld [vmem:[%s17987_s5 + $0x17d0] sm:$0xff] }
 0x807   :  { %v10569_v44 = vpack.c.bf16 %v6883_v6, %v6881_v50  ;;  %v10605_v50 = vpack.c.bf16 %v6919_v1, %v6917_v37 }
 0x809   :  { %10530 = vmatpush1.bf16.msra.mxu0 %v10529_v33  ;;  %v10571_v33 = vpack.c.bf16 %v6888_v49, %v6886_v13  ;;  %v6921_v13 = vld [vmem:[%s17987_s5 + $0x1900] sm:$0xff]  ;;  %v6923_v49 = vld [vmem:[%s17987_s5 + $0x1910] sm:$0xff] }
 0x80a   :  { %10532 = vmatprep.subr.bf16.mxu0 %v10531_v38  ;;  %v6885_v38 = vld [vmem:[%s17987_s5 + $0x17e0] sm:$0xff] }
 0x80d   :  { %10534 = vmatpush1.bf16.msra.mxu0 %v10533_v18  ;;  %v17067_v18 = vld [vmem:[#allocation4 + $0x30] sm:$0xff] }
 0x80e   :  { %10536 = vmatprep.subr.bf16.mxu0 %v10535_v14  ;;  %v10573_v14 = vpack.c.bf16 %v6887_v53, %v6885_v38  ;;  %v17077_v24 = vrot.slane %v17067_v18, %v18590_v12  ;;  %v10609_v38 = vpack.c.bf16 %v6923_v49, %v6921_v13  ;;  %v6964_v13 = vld [vmem:[%s17987_s5 + $0x1a58] sm:$0xff] }
 0x811   :  { %10538 = vmatpush1.bf16.msra.mxu0 %v10537_v32  ;;  %v6894_v32 = vld [vmem:[%s17987_s5 + $0x1828] sm:$0xff] }
 0x812   :  { %10540 = vmatprep.subr.bf16.mxu0 %v10539_v58  ;;  %v6896_v58 = vld [vmem:[%s17987_s5 + $0x1838] sm:$0xff] }
 0x813   :  { %v10579_v20 = vpack.c.bf16 %v6896_v58, %v6894_v32  ;;  %v6929_v32 = vld [vmem:[%s17987_s5 + $0x1940] sm:$0xff]  ;;  %v6931_v58 = vld [vmem:[%s17987_s5 + $0x1950] sm:$0xff] }
 0x814   :  { %v10617_v36 = vpack.c.bf16 %v6931_v58, %v6929_v32 }
 0x815   :  { %10542 = vmatpush1.bf16.msra.mxu0 %v10541_v34  ;;  %v7282_v34 = vcombine.high %v17077_v24, %v17077_v24 }
 0x816   :  { %10544 = vmatprep.subr.bf16.mxu0 %v10543_v55  ;;  %v6898_v55 = vld [vmem:[%s17987_s5 + $0x1848] sm:$0xff] }
 0x817   :  { %v10583_v62 = vpack.c.bf16 %v6900_v26, %v6898_v55  ;;  %v6935_v55 = vld [vmem:[%s17987_s5 + $0x1970] sm:$0xff]  ;;  %v6938_v26 = vld [vmem:[%s17987_s5 + $0x1988] sm:$0xff] }
 0x819   :  { %10546 = vmatpush1.bf16.msra.mxu0 %v10545_v5  ;;  %v6899_v5 = vld [vmem:[%s17987_s5 + $0x1850] sm:$0xff] }
 0x81a   :  { %10548 = vmatprep.subr.bf16.mxu0 %v10547_v45  ;;  %v6902_v45 = vld [vmem:[%s17987_s5 + $0x1868] sm:$0xff]  ;;  %v10585_v47 = vpack.c.bf16 %v6899_v5, %v6897_v3  ;;  %v6937_v5 = vld [vmem:[%s17987_s5 + $0x1980] sm:$0xff] }
 0x81d   :  { %10550 = vmatpush1.bf16.msra.mxu0 %v10549_v42  ;;  %v6906_v42 = vld [vmem:[%s17987_s5 + $0x1888] sm:$0xff] }
 0x81e   :  { %10552 = vmatprep.subr.bf16.mxu0 %v10551_v17  ;;  %v6908_v17 = vld [vmem:[%s17987_s5 + $0x1898] sm:$0xff] }
 0x81f   :  { %v10591_v28 = vpack.c.bf16 %v6908_v17, %v6906_v42  ;;  %v6943_v42 = vld [vmem:[%s17987_s5 + $0x19b0] sm:$0xff]  ;;  %v6946_v17 = vld [vmem:[%s17987_s5 + $0x19c8] sm:$0xff] }
 0x821   :  { %10554 = vmatpush1.bf16.msra.mxu0 %v10553_v16  ;;  %v6910_v16 = vld [vmem:[%s17987_s5 + $0x18a8] sm:$0xff] }
 0x822   :  { %10556 = vmatprep.subr.bf16.mxu0 %v10555_v60  ;;  %v6912_v60 = vld [vmem:[%s17987_s5 + $0x18b8] sm:$0xff] }
 0x823   :  { %v10595_v27 = vpack.c.bf16 %v6912_v60, %v6910_v16  ;;  %v6947_v16 = vld [vmem:[%s17987_s5 + $0x19d0] sm:$0xff]  ;;  %v6950_v60 = vld [vmem:[%s17987_s5 + $0x19e8] sm:$0xff] }
 0x825   :  { %10558 = vmatpush1.bf16.msra.mxu0 %v10557_v0  ;;  %v6914_v0 = vld [vmem:[%s17987_s5 + $0x18c8] sm:$0xff] }
 0x826   :  { %10560 = vmatprep.subr.bf16.mxu0 %v10559_v30  ;;  %v6916_v30 = vld [vmem:[%s17987_s5 + $0x18d8] sm:$0xff] }
 0x827   :  { %v10599_v39 = vpack.c.bf16 %v6916_v30, %v6914_v0  ;;  %v6951_v0 = vld [vmem:[%s17987_s5 + $0x19f0] sm:$0xff]  ;;  %v6954_v30 = vld [vmem:[%s17987_s5 + $0x1a08] sm:$0xff] }
 0x828   :  { %v10637_v48 = vpack.c.bf16 %v6951_v0, %v6949_v52 }
 0x829   :  { %10562 = vmatpush1.bf16.msra.mxu0 %v10561_v57  ;;  %v6918_v57 = vld [vmem:[%s17987_s5 + $0x18e8] sm:$0xff] }
 0x82a   :  { %10564 = vmatprep.subr.bf16.mxu0 %v10563_v46  ;;  %v6920_v46 = vld [vmem:[%s17987_s5 + $0x18f8] sm:$0xff] }
 0x82b   :  { %v10603_v15 = vpack.c.bf16 %v6920_v46, %v6918_v57  ;;  %v6953_v57 = vld [vmem:[%s17987_s5 + $0x1a00] sm:$0xff]  ;;  %v6955_v46 = vld [vmem:[%s17987_s5 + $0x1a10] sm:$0xff] }
 0x82c   :  { %v10641_v37 = vpack.c.bf16 %v6955_v46, %v6953_v57  ;;  %v6993_v46 = vld [vmem:[%s17987_s5 + $0x1b40] sm:$0xff] }
 0x82d   :  { %10566 = vmatpush1.bf16.msra.mxu0 %v10565_v11  ;;  %v6922_v11 = vld [vmem:[%s17987_s5 + $0x1908] sm:$0xff] }
 0x82e   :  { %10568 = vmatprep.subr.bf16.mxu0 %v10567_v25  ;;  %v6924_v25 = vld [vmem:[%s17987_s5 + $0x1918] sm:$0xff] }
 0x82f   :  { %v10607_v6 = vpack.c.bf16 %v6924_v25, %v6922_v11  ;;  %v6957_v11 = vld [vmem:[%s17987_s5 + $0x1a20] sm:$0xff]  ;;  %v6959_v25 = vld [vmem:[%s17987_s5 + $0x1a30] sm:$0xff] }
 0x830   :  { %v10645_v49 = vpack.c.bf16 %v6959_v25, %v6957_v11  ;;  %v6997_v25 = vld [vmem:[%s17987_s5 + $0x1b60] sm:$0xff] }
 0x831   :  { %v17051_v7 = vpop.f32.mrb[128].mxu1  ;;  %10570 = vmatpush1.bf16.msra.mxu0 %v10569_v44  ;;  %v6926_v44 = vld [vmem:[%s17987_s5 + $0x1928] sm:$0xff] }
 0x832   :  { %v17059_v21 = vpop.f32.mrb[129].mxu1  ;;  %10572 = vmatprep.subr.bf16.mxu0 %v10571_v33  ;;  %v6928_v33 = vld [vmem:[%s17987_s5 + $0x1938] sm:$0xff] }
 0x833   :  { %v10611_v53 = vpack.c.bf16 %v6928_v33, %v6926_v44  ;;  %v6961_v33 = vld [vmem:[%s17987_s5 + $0x1a40] sm:$0xff] }
 0x835   :  { %10574 = vmatpush1.bf16.msra.mxu0 %v10573_v14  ;;  %v6930_v14 = vld [vmem:[%s17987_s5 + $0x1948] sm:$0xff] }
 0x836   :  { %10576 = vmatprep.subr.bf16.mxu0 %v10575_v61  ;;  %v6932_v61 = vld [vmem:[%s17987_s5 + $0x1958] sm:$0xff] }
 0x837   :  { %v10615_v8 = vpack.c.bf16 %v6932_v61, %v6930_v14  ;;  %v6965_v14 = vld [vmem:[%s17987_s5 + $0x1a60] sm:$0xff]  ;;  %v6967_v61 = vld [vmem:[%s17987_s5 + $0x1a70] sm:$0xff] }
 0x838   :  { %8179 = vmatmul.mubr.f32.vlgmr.msra.gmra.mrb[0].mxu0 %v16872_v22  ;;  %v6904_v22 = vld [vmem:[%s17987_s5 + $0x1878] sm:$0xff]  ;;  %v10653_v32 = vpack.c.bf16 %v6967_v61, %v6965_v14  ;;  %v7005_v14 = vld [vmem:[%s17987_s5 + $0x1ba0] sm:$0xff]  ;;  %v7007_v61 = vld [vmem:[%s17987_s5 + $0x1bb0] sm:$0xff] }
 0x839   :  { %10578 = vmatpush1.bf16.msra.mxu0 %v10577_v23  ;;  %8249 = vmatprep.mubr.f32.mxu0 %v7282_v34  ;;  %v10587_v40 = vpack.c.bf16 %v6904_v22, %v6902_v45  ;;  %v6934_v23 = vld [vmem:[%s17987_s5 + $0x1968] sm:$0xff]  ;;  %v6933_v34 = vld [vmem:[%s17987_s5 + $0x1960] sm:$0xff]  ;;  %v6939_v45 = vld [vmem:[%s17987_s5 + $0x1990] sm:$0xff] }
 0x83a   :  { %10580 = vmatprep.subr.bf16.mxu0 %v10579_v20  ;;  %v6936_v20 = vld [vmem:[%s17987_s5 + $0x1978] sm:$0xff]  ;;  %v6942_v22 = vld [vmem:[%s17987_s5 + $0x19a8] sm:$0xff] }
 0x83b   :  { %v10619_v54 = vpack.c.bf16 %v6936_v20, %v6934_v23  ;;  %v6969_v23 = vld [vmem:[%s17987_s5 + $0x1a80] sm:$0xff]  ;;  %v6971_v20 = vld [vmem:[%s17987_s5 + $0x1a90] sm:$0xff] }
 0x83d   :  { %10582 = vmatpush1.bf16.msra.mxu0 %v10581_v56  ;;  %v6940_v56 = vld [vmem:[%s17987_s5 + $0x1998] sm:$0xff] }
 0x83e   :  { %10584 = vmatprep.subr.bf16.mxu0 %v10583_v62  ;;  %v10621_v62 = vpack.c.bf16 %v6935_v55, %v6933_v34  ;;  %v10623_v3 = vpack.c.bf16 %v6940_v56, %v6938_v26  ;;  %v10657_v34 = vpack.c.bf16 %v6971_v20, %v6969_v23  ;;  %v6973_v26 = vld [vmem:[%s17987_s5 + $0x1aa0] sm:$0xff]  ;;  %v6975_v56 = vld [vmem:[%s17987_s5 + $0x1ab0] sm:$0xff] }
 0x83f   :  { %v7009_v23 = vld [vmem:[%s17987_s5 + $0x1bc0] sm:$0xff]  ;;  %v7011_v20 = vld [vmem:[%s17987_s5 + $0x1bd0] sm:$0xff] }
 0x841   :  { %10586 = vmatpush1.bf16.msra.mxu0 %v10585_v47  ;;  %v6944_v47 = vld [vmem:[%s17987_s5 + $0x19b8] sm:$0xff] }
 0x842   :  { %10588 = vmatprep.subr.bf16.mxu0 %v10587_v40  ;;  %v10625_v40 = vpack.c.bf16 %v6939_v45, %v6937_v5  ;;  %v10627_v29 = vpack.c.bf16 %v6944_v47, %v6942_v22  ;;  %v10661_v5 = vpack.c.bf16 %v6975_v56, %v6973_v26  ;;  %v6977_v22 = vld [vmem:[%s17987_s5 + $0x1ac0] sm:$0xff]  ;;  %v6979_v47 = vld [vmem:[%s17987_s5 + $0x1ad0] sm:$0xff] }
 0x843   :  { %v7013_v26 = vld [vmem:[%s17987_s5 + $0x1be0] sm:$0xff]  ;;  %v7015_v56 = vld [vmem:[%s17987_s5 + $0x1bf0] sm:$0xff] }
 0x845   :  { %10590 = vmatpush1.bf16.msra.mxu0 %v10589_v10  ;;  %v6948_v10 = vld [vmem:[%s17987_s5 + $0x19d8] sm:$0xff] }
 0x846   :  { %10592 = vmatprep.subr.bf16.mxu0 %v10591_v28  ;;  %v10629_v28 = vpack.c.bf16 %v6943_v42, %v6941_v59  ;;  %v10631_v51 = vpack.c.bf16 %v6948_v10, %v6946_v17  ;;  %v10665_v59 = vpack.c.bf16 %v6979_v47, %v6977_v22  ;;  %v6981_v17 = vld [vmem:[%s17987_s5 + $0x1ae0] sm:$0xff]  ;;  %v6983_v10 = vld [vmem:[%s17987_s5 + $0x1af0] sm:$0xff] }
 0x847   :  { %v7017_v47 = vld [vmem:[%s17987_s5 + $0x1c00] sm:$0xff] }
 0x849   :  { %10594 = vmatpush1.bf16.msra.mxu0 %v10593_v41  ;;  %v6952_v41 = vld [vmem:[%s17987_s5 + $0x19f8] sm:$0xff] }
 0x84a   :  { %10596 = vmatprep.subr.bf16.mxu0 %v10595_v27  ;;  %v10633_v27 = vpack.c.bf16 %v6947_v16, %v6945_v4  ;;  %v10635_v19 = vpack.c.bf16 %v6952_v41, %v6950_v60  ;;  %v10669_v4 = vpack.c.bf16 %v6983_v10, %v6981_v17  ;;  %v6985_v60 = vld [vmem:[%s17987_s5 + $0x1b00] sm:$0xff]  ;;  %v6987_v41 = vld [vmem:[%s17987_s5 + $0x1b10] sm:$0xff] }
 0x84b   :  { %v10673_v52 = vpack.c.bf16 %v6987_v41, %v6985_v60  ;;  %v7028_v60 = vld [vmem:[%s17987_s5 + $0x1c58] sm:$0xff]  ;;  %v7025_v41 = vld [vmem:[%s17987_s5 + $0x1c40] sm:$0xff] }
 0x84d   :  { %10598 = vmatpush1.bf16.msra.mxu0 %v10597_v31  ;;  %v6956_v31 = vld [vmem:[%s17987_s5 + $0x1a18] sm:$0xff] }
 0x84e   :  { %10600 = vmatprep.subr.bf16.mxu0 %v10599_v39  ;;  %v7267_v39 = vcombine.high %v17067_v18, %v17067_v18  ;;  %v10639_v9 = vpack.c.bf16 %v6956_v31, %v6954_v30  ;;  %v6960_v18 = vld [vmem:[%s17987_s5 + $0x1a38] sm:$0xff]  ;;  %v6989_v30 = vld [vmem:[%s17987_s5 + $0x1b20] sm:$0xff]  ;;  %v6991_v31 = vld [vmem:[%s17987_s5 + $0x1b30] sm:$0xff] }
 0x851   :  { %10602 = vmatpush1.bf16.msra.mxu0 %v10601_v2  ;;  %v17277_v2 = vrot.slane %v7267_v39, %v18590_v12  ;;  %v6994_v39 = vld [vmem:[%s17987_s5 + $0x1b48] sm:$0xff] }
 0x852   :  { %10604 = vmatprep.subr.bf16.mxu0 %v10603_v15  ;;  %v6958_v15 = vld [vmem:[%s17987_s5 + $0x1a28] sm:$0xff] }
 0x853   :  { %v10643_v1 = vpack.c.bf16 %v6960_v18, %v6958_v15  ;;  %v6995_v15 = vld [vmem:[%s17987_s5 + $0x1b50] sm:$0xff]  ;;  %v6998_v18 = vld [vmem:[%s17987_s5 + $0x1b68] sm:$0xff] }
 0x855   :  { %10606 = vmatpush1.bf16.msra.mxu0 %v10605_v50  ;;  %v7283_v50 = vcombine.high %v17277_v2, %v17277_v2 }
 0x856   :  { %10608 = vmatprep.subr.bf16.mxu0 %v10607_v6  ;;  %v6962_v6 = vld [vmem:[%s17987_s5 + $0x1a48] sm:$0xff] }
 0x857   :  { %v10647_v44 = vpack.c.bf16 %v6964_v13, %v6962_v6  ;;  %v7002_v6 = vld [vmem:[%s17987_s5 + $0x1b88] sm:$0xff]  ;;  %v7004_v13 = vld [vmem:[%s17987_s5 + $0x1b98] sm:$0xff] }
 0x859   :  { %10610 = vmatpush1.bf16.msra.mxu0 %v10609_v38  ;;  %v6963_v38 = vld [vmem:[%s17987_s5 + $0x1a50] sm:$0xff] }
 0x85a   :  { %10612 = vmatprep.subr.bf16.mxu0 %v10611_v53  ;;  %v6966_v53 = vld [vmem:[%s17987_s5 + $0x1a68] sm:$0xff]  ;;  %v10649_v35 = vpack.c.bf16 %v6963_v38, %v6961_v33  ;;  %v7001_v33 = vld [vmem:[%s17987_s5 + $0x1b80] sm:$0xff]  ;;  %v7003_v38 = vld [vmem:[%s17987_s5 + $0x1b90] sm:$0xff] }
 0x85d   :  { %10614 = vmatpush1.bf16.msra.mxu0 %v10613_v63  ;;  %v6970_v63 = vld [vmem:[%s17987_s5 + $0x1a88] sm:$0xff] }
 0x85e   :  { %10616 = vmatprep.subr.bf16.mxu0 %v10615_v8  ;;  %v6972_v8 = vld [vmem:[%s17987_s5 + $0x1a98] sm:$0xff] }
 0x85f   :  { %v10655_v58 = vpack.c.bf16 %v6972_v8, %v6970_v63  ;;  %v7010_v63 = vld [vmem:[%s17987_s5 + $0x1bc8] sm:$0xff]  ;;  %v7012_v8 = vld [vmem:[%s17987_s5 + $0x1bd8] sm:$0xff] }
 0x861   :  { %10618 = vmatpush1.bf16.msra.mxu0 %v10617_v36  ;;  %v6974_v36 = vld [vmem:[%s17987_s5 + $0x1aa8] sm:$0xff] }
 0x862   :  { %10620 = vmatprep.subr.bf16.mxu0 %v10619_v54  ;;  %v6976_v54 = vld [vmem:[%s17987_s5 + $0x1ab8] sm:$0xff] }
 0x863   :  { %v10659_v55 = vpack.c.bf16 %v6976_v54, %v6974_v36  ;;  %v7014_v36 = vld [vmem:[%s17987_s5 + $0x1be8] sm:$0xff]  ;;  %v7016_v54 = vld [vmem:[%s17987_s5 + $0x1bf8] sm:$0xff] }
 0x865   :  { %10622 = vmatpush1.bf16.msra.mxu0 %v10621_v62  ;;  %v6978_v62 = vld [vmem:[%s17987_s5 + $0x1ac8] sm:$0xff] }
 0x866   :  { %10624 = vmatprep.subr.bf16.mxu0 %v10623_v3  ;;  %v6980_v3 = vld [vmem:[%s17987_s5 + $0x1ad8] sm:$0xff] }
 0x867   :  { %v10663_v45 = vpack.c.bf16 %v6980_v3, %v6978_v62  ;;  %v7018_v62 = vld [vmem:[%s17987_s5 + $0x1c08] sm:$0xff]  ;;  %v7020_v3 = vld [vmem:[%s17987_s5 + $0x1c18] sm:$0xff] }
 0x868   :  { %v10703_v22 = vpack.c.bf16 %v7020_v3, %v7018_v62  ;;  %v7037_v3 = vld [vmem:[%s17987_s5 + $0x1ca0] sm:$0xff] }
 0x869   :  { %10626 = vmatpush1.bf16.msra.mxu0 %v10625_v40  ;;  %v6982_v40 = vld [vmem:[%s17987_s5 + $0x1ae8] sm:$0xff] }
 0x86a   :  { %10628 = vmatprep.subr.bf16.mxu0 %v10627_v29  ;;  %v6984_v29 = vld [vmem:[%s17987_s5 + $0x1af8] sm:$0xff] }
 0x86b   :  { %v10667_v42 = vpack.c.bf16 %v6984_v29, %v6982_v40  ;;  %v7019_v40 = vld [vmem:[%s17987_s5 + $0x1c10] sm:$0xff] }
 0x86c   :  { %v10705_v17 = vpack.c.bf16 %v7019_v40, %v7017_v47  ;;  %v8480_v47 = vld [vmem:[%s17989_s7 + $0x48] sm:$0xff] }
 0x86d   :  { %10630 = vmatpush1.bf16.msra.mxu0 %v10629_v28  ;;  %v6986_v28 = vld [vmem:[%s17987_s5 + $0x1b08] sm:$0xff] }
 0x86e   :  { %10632 = vmatprep.subr.bf16.mxu0 %v10631_v51  ;;  %v6988_v51 = vld [vmem:[%s17987_s5 + $0x1b18] sm:$0xff] }
 0x86f   :  { %v10671_v16 = vpack.c.bf16 %v6988_v51, %v6986_v28  ;;  %v7021_v28 = vld [vmem:[%s17987_s5 + $0x1c20] sm:$0xff]  ;;  %v7023_v51 = vld [vmem:[%s17987_s5 + $0x1c30] sm:$0xff] }
 0x871   :  { %10634 = vmatpush1.bf16.msra.mxu0 %v10633_v27  ;;  %v6990_v27 = vld [vmem:[%s17987_s5 + $0x1b28] sm:$0xff] }
 0x872   :  { %10636 = vmatprep.subr.bf16.mxu0 %v10635_v19  ;;  %v6992_v19 = vld [vmem:[%s17987_s5 + $0x1b38] sm:$0xff] }
 0x873   :  { %v10675_v0 = vpack.c.bf16 %v6992_v19, %v6990_v27  ;;  %v7027_v27 = vld [vmem:[%s17987_s5 + $0x1c50] sm:$0xff]  ;;  %v8487_v19 = vld [vmem:[%s17989_s7 + $0x80] sm:$0xff] }
 0x875   :  { %10638 = vmatpush1.bf16.msra.mxu0 %v10637_v48  ;;  %v6996_v48 = vld [vmem:[%s17987_s5 + $0x1b58] sm:$0xff] }
 0x876   :  { %10640 = vmatprep.subr.bf16.mxu0 %v10639_v9  ;;  %v10677_v9 = vpack.c.bf16 %v6991_v31, %v6989_v30  ;;  %v10679_v57 = vpack.c.bf16 %v6996_v48, %v6994_v39  ;;  %v8472_v31 = vld [vmem:[%s17989_s7 + $0x8] sm:$0xff]  ;;  %v8489_v39 = vld [vmem:[%s17989_s7 + $0x90] sm:$0xff]  ;;  %v8490_v48 = vld [vmem:[%s17989_s7 + $0x98] sm:$0xff] }
 0x878   :  { %8250 = vmatmul.mubr.f32.vlgmr.msra.gmra.mrb[0].mxu0 %v17077_v24  ;;  %v6968_v24 = vld [vmem:[%s17987_s5 + $0x1a78] sm:$0xff] }
 0x879   :  { %10642 = vmatpush1.bf16.msra.mxu0 %v10641_v37  ;;  %8320 = vmatprep.mubr.f32.mxu0 %v7283_v50  ;;  %v10651_v43 = vpack.c.bf16 %v6968_v24, %v6966_v53  ;;  %v7000_v37 = vld [vmem:[%s17987_s5 + $0x1b78] sm:$0xff]  ;;  %v6999_v50 = vld [vmem:[%s17987_s5 + $0x1b70] sm:$0xff]  ;;  %v7006_v53 = vld [vmem:[%s17987_s5 + $0x1ba8] sm:$0xff] }
 0x87a   :  { %10644 = vmatprep.subr.bf16.mxu0 %v10643_v1  ;;  %v10681_v1 = vpack.c.bf16 %v6995_v15, %v6993_v46  ;;  %v10683_v11 = vpack.c.bf16 %v7000_v37, %v6998_v18  ;;  %v7008_v24 = vld [vmem:[%s17987_s5 + $0x1bb8] sm:$0xff]  ;;  %v10835_v46 = vpack.c.bf16 %v8490_v48, %v8489_v39  ;;  %v8473_v15 = vld [vmem:[%s17989_s7 + $0x10] sm:$0xff]  ;;  %v8491_v37 = vld [vmem:[%s17989_s7 + $0xa0] sm:$0xff] }
 0x87b   :  { %v8474_v18 = vld [vmem:[%s17989_s7 + $0x18] sm:$0xff] }
 0x87d   :  { %10646 = vmatpush1.bf16.msra.mxu0 %v10645_v49  ;;  %v10685_v49 = vpack.c.bf16 %v6999_v50, %v6997_v25  ;;  %v8492_v25 = vld [vmem:[%s17989_s7 + $0xa8] sm:$0xff]  ;;  %v10837_v50 = vpack.c.bf16 %v8474_v18, %v8473_v15  ;;  %v7047_v15 = vld [vmem:[%s17987_s5 + $0x1cf0] sm:$0xff] }
 0x87e   :  { %10648 = vmatprep.subr.bf16.mxu0 %v10647_v44  ;;  %v10687_v44 = vpack.c.bf16 %v7004_v13, %v7002_v6  ;;  %v10713_v6 = vpack.c.bf16 %v7027_v27, %v7025_v41  ;;  %v7029_v13 = vld [vmem:[%s17987_s5 + $0x1c60] sm:$0xff]  ;;  %v8481_v41 = vld [vmem:[%s17989_s7 + $0x50] sm:$0xff]  ;;  %v8482_v27 = vld [vmem:[%s17989_s7 + $0x58] sm:$0xff] }
 0x87f   :  { %v10853_v39 = vpack.c.bf16 %v8482_v27, %v8481_v41  ;;  %v7050_v18 = vld [vmem:[%s17987_s5 + $0x1d08] sm:$0xff]  ;;  %v7077_v27 = vld [vmem:[%s17987_s5 + $0x1de0] sm:$0xff] }
 0x881   :  { %10650 = vmatpush1.bf16.msra.mxu0 %v10649_v35  ;;  %v10689_v35 = vpack.c.bf16 %v7003_v38, %v7001_v33  ;;  %v8476_v33 = vld [vmem:[%s17989_s7 + $0x28] sm:$0xff] }
 0x882   :  { %10652 = vmatprep.subr.bf16.mxu0 %v10651_v43  ;;  %v10691_v43 = vpack.c.bf16 %v7008_v24, %v7006_v53  ;;  %v7031_v53 = vld [vmem:[%s17987_s5 + $0x1c70] sm:$0xff] }
 0x883   :  { %v8493_v24 = vld [vmem:[%s17989_s7 + $0xb0] sm:$0xff] }
 0x885   :  { %10654 = vmatpush1.bf16.msra.mxu0 %v10653_v32  ;;  %v10693_v32 = vpack.c.bf16 %v7007_v61, %v7005_v14  ;;  %v7036_v14 = vld [vmem:[%s17987_s5 + $0x1c98] sm:$0xff] }
 0x886   :  { %10656 = vmatprep.subr.bf16.mxu0 %v10655_v58  ;;  %v10695_v58 = vpack.c.bf16 %v7012_v8, %v7010_v63  ;;  %v10717_v63 = vpack.c.bf16 %v7031_v53, %v7029_v13  ;;  %v7033_v8 = vld [vmem:[%s17987_s5 + $0x1c80] sm:$0xff]  ;;  %v7056_v13 = vld [vmem:[%s17987_s5 + $0x1d38] sm:$0xff]  ;;  %v7058_v53 = vld [vmem:[%s17987_s5 + $0x1d48] sm:$0xff] }
 0x889   :  { %10658 = vmatpush1.bf16.msra.mxu0 %v10657_v34  ;;  %v10697_v34 = vpack.c.bf16 %v7011_v20, %v7009_v23  ;;  %v8478_v23 = vld [vmem:[%s17989_s7 + $0x38] sm:$0xff] }
 0x88a   :  { %10660 = vmatprep.subr.bf16.mxu0 %v10659_v55  ;;  %v10699_v55 = vpack.c.bf16 %v7016_v54, %v7014_v36  ;;  %v7035_v36 = vld [vmem:[%s17987_s5 + $0x1c90] sm:$0xff]  ;;  %v8495_v54 = vld [vmem:[%s17989_s7 + $0xc0] sm:$0xff] }
 0x88b   :  { %v10721_v62 = vpack.c.bf16 %v7035_v36, %v7033_v8  ;;  %v7064_v8 = vld [vmem:[%s17987_s5 + $0x1d78] sm:$0xff]  ;;  %v7066_v36 = vld [vmem:[%s17987_s5 + $0x1d88] sm:$0xff] }
 0x88d   :  { %10662 = vmatpush1.bf16.msra.mxu0 %v10661_v5  ;;  %v17468_v5 = vld [vmem:[#allocation4 + $0x38] sm:$0xff] }
 0x88e   :  { %10664 = vmatprep.subr.bf16.mxu0 %v10663_v45  ;;  %v10701_v45 = vpack.c.bf16 %v7015_v56, %v7013_v26  ;;  %v17478_v29 = vrot.slane %v17468_v5, %v18590_v12  ;;  %v7040_v26 = vld [vmem:[%s17987_s5 + $0x1cb8] sm:$0xff] }
 0x891   :  { %10666 = vmatpush1.bf16.msra.mxu0 %v10665_v59  ;;  %v7022_v59 = vld [vmem:[%s17987_s5 + $0x1c28] sm:$0xff] }
 0x892   :  { %10668 = vmatprep.subr.bf16.mxu0 %v10667_v42  ;;  %v7024_v42 = vld [vmem:[%s17987_s5 + $0x1c38] sm:$0xff] }
 0x893   :  { %v10707_v10 = vpack.c.bf16 %v7024_v42, %v7022_v59  ;;  %v7039_v59 = vld [vmem:[%s17987_s5 + $0x1cb0] sm:$0xff] }
 0x894   :  { %v8497_v42 = vld [vmem:[%s17989_s7 + $0xd0] sm:$0xff] }
 0x895   :  { %10670 = vmatpush1.bf16.msra.mxu0 %v10669_v4  ;;  %v7299_v4 = vcombine.high %v17478_v29, %v17478_v29 }
 0x896   :  { %10672 = vmatprep.subr.bf16.mxu0 %v10671_v16  ;;  %v7026_v16 = vld [vmem:[%s17987_s5 + $0x1c48] sm:$0xff] }
 0x899   :  { %10674 = vmatpush1.bf16.msra.mxu0 %v10673_v52  ;;  %v8488_v52 = vld [vmem:[%s17989_s7 + $0x88] sm:$0xff] }
 0x89a   :  { %10676 = vmatprep.subr.bf16.mxu0 %v10675_v0  ;;  %v10709_v0 = vpack.c.bf16 %v7023_v51, %v7021_v28  ;;  %v10831_v30 = vpack.c.bf16 %v8488_v52, %v8487_v19  ;;  %v7044_v28 = vld [vmem:[%s17987_s5 + $0x1cd8] sm:$0xff]  ;;  %v7043_v52 = vld [vmem:[%s17987_s5 + $0x1cd0] sm:$0xff] }
 0x89c   :  { %10832 = vmatprep.subr.bf16.mxu1 %v10831_v30  ;;  %v7046_v30 = vld [vmem:[%s17987_s5 + $0x1ce8] sm:$0xff] }
 0x89d   :  { %10678 = vmatpush1.bf16.msra.mxu0 %v10677_v9  ;;  %v10711_v9 = vpack.c.bf16 %v7028_v60, %v7026_v16  ;;  %v7041_v16 = vld [vmem:[%s17987_s5 + $0x1cc0] sm:$0xff] }
 0x89e   :  { %10680 = vmatprep.subr.bf16.mxu0 %v10679_v57  ;;  %v10729_v48 = vpack.c.bf16 %v7043_v52, %v7041_v16  ;;  %v7080_v16 = vld [vmem:[%s17987_s5 + $0x1df8] sm:$0xff]  ;;  %v7082_v52 = vld [vmem:[%s17987_s5 + $0x1e08] sm:$0xff] }
 0x8a1   :  { %10682 = vmatpush1.bf16.msra.mxu0 %v10681_v1  ;;  %v7030_v1 = vld [vmem:[%s17987_s5 + $0x1c68] sm:$0xff] }
 0x8a2   :  { %10684 = vmatprep.subr.bf16.mxu0 %v10683_v11  ;;  %v7032_v11 = vld [vmem:[%s17987_s5 + $0x1c78] sm:$0xff] }
 0x8a3   :  { %v10715_v38 = vpack.c.bf16 %v7032_v11, %v7030_v1 }
 0x8a5   :  { %10686 = vmatpush1.bf16.msra.mxu0 %v10685_v49  ;;  %v10839_v49 = vpack.c.bf16 %v8492_v25, %v8491_v37  ;;  %v7052_v37 = vld [vmem:[%s17987_s5 + $0x1d18] sm:$0xff]  ;;  %v7049_v25 = vld [vmem:[%s17987_s5 + $0x1d00] sm:$0xff] }
 0x8a6   :  { %10688 = vmatprep.subr.bf16.mxu0 %v10687_v44  ;;  %v8475_v44 = vld [vmem:[%s17989_s7 + $0x20] sm:$0xff]  ;;  %v10735_v11 = vpack.c.bf16 %v7052_v37, %v7050_v18 }
 0x8a7   :  { %v10841_v61 = vpack.c.bf16 %v8476_v33, %v8475_v44  ;;  %v7053_v33 = vld [vmem:[%s17987_s5 + $0x1d20] sm:$0xff] }
 0x8a8   :  { %v7085_v18 = vld [vmem:[%s17987_s5 + $0x1e20] sm:$0xff] }
 0x8a9   :  { %10690 = vmatpush1.bf16.msra.mxu0 %v10689_v35  ;;  %v8494_v35 = vld [vmem:[%s17989_s7 + $0xb8] sm:$0xff] }
 0x8aa   :  { %10692 = vmatprep.subr.bf16.mxu0 %v10691_v43  ;;  %v7034_v43 = vld [vmem:[%s17987_s5 + $0x1c88] sm:$0xff] }
 0x8ab   :  { %v10719_v20 = vpack.c.bf16 %v7036_v14, %v7034_v43  ;;  %v7057_v14 = vld [vmem:[%s17987_s5 + $0x1d40] sm:$0xff] }
 0x8ad   :  { %10694 = vmatpush1.bf16.msra.mxu0 %v10693_v32  ;;  %v10843_v32 = vpack.c.bf16 %v8494_v35, %v8493_v24  ;;  %v7060_v24 = vld [vmem:[%s17987_s5 + $0x1d58] sm:$0xff] }
 0x8ae   :  { %10696 = vmatprep.subr.bf16.mxu0 %v10695_v58  ;;  %v8477_v58 = vld [vmem:[%s17989_s7 + $0x30] sm:$0xff]  ;;  %v10743_v43 = vpack.c.bf16 %v7060_v24, %v7058_v53  ;;  %v7098_v24 = vld [vmem:[%s17987_s5 + $0x1e88] sm:$0xff] }
 0x8af   :  { %v10845_v56 = vpack.c.bf16 %v8478_v23, %v8477_v58  ;;  %v7061_v23 = vld [vmem:[%s17987_s5 + $0x1d60] sm:$0xff]  ;;  %v7095_v53 = vld [vmem:[%s17987_s5 + $0x1e70] sm:$0xff] }
 0x8b1   :  { %10698 = vmatpush1.bf16.msra.mxu0 %v10697_v34  ;;  %v8496_v34 = vld [vmem:[%s17989_s7 + $0xc8] sm:$0xff] }
 0x8b2   :  { %10700 = vmatprep.subr.bf16.mxu0 %v10699_v55  ;;  %v7038_v55 = vld [vmem:[%s17987_s5 + $0x1ca8] sm:$0xff] }
 0x8b3   :  { %v10723_v40 = vpack.c.bf16 %v7040_v26, %v7038_v55  ;;  %v7065_v26 = vld [vmem:[%s17987_s5 + $0x1d80] sm:$0xff] }
 0x8b5   :  { %10702 = vmatpush1.bf16.msra.mxu0 %v10701_v45  ;;  %v10847_v45 = vpack.c.bf16 %v8496_v34, %v8495_v54  ;;  %v7068_v54 = vld [vmem:[%s17987_s5 + $0x1d98] sm:$0xff] }
 0x8b6   :  { %10704 = vmatprep.subr.bf16.mxu0 %v10703_v22  ;;  %v8479_v22 = vld [vmem:[%s17989_s7 + $0x40] sm:$0xff]  ;;  %v10751_v55 = vpack.c.bf16 %v7068_v54, %v7066_v36  ;;  %v7103_v36 = vld [vmem:[%s17987_s5 + $0x1eb0] sm:$0xff]  ;;  %v7106_v54 = vld [vmem:[%s17987_s5 + $0x1ec8] sm:$0xff] }
 0x8b7   :  { %v10849_v51 = vpack.c.bf16 %v8480_v47, %v8479_v22  ;;  %v7069_v47 = vld [vmem:[%s17987_s5 + $0x1da0] sm:$0xff] }
 0x8b8   :  { %8321 = vmatmul.mubr.f32.vlgmr.msra.gmra.mrb[0].mxu0 %v17277_v2  ;;  %v8471_v2 = vld [vmem:[%s17989_s7] sm:$0xff] }
 0x8b9   :  { %10706 = vmatpush1.bf16.msra.mxu0 %v10705_v17  ;;  %8391 = vmatprep.mubr.f32.mxu0 %v7299_v4  ;;  %v10833_v57 = vpack.c.bf16 %v8472_v31, %v8471_v2  ;;  %v8498_v17 = vld [vmem:[%s17989_s7 + $0xd8] sm:$0xff]  ;;  %v10725_v4 = vpack.c.bf16 %v7039_v59, %v7037_v3  ;;  %v8499_v2 = vld [vmem:[%s17989_s7 + $0xe0] sm:$0xff]  ;;  %v7074_v59 = vld [vmem:[%s17987_s5 + $0x1dc8] sm:$0xff] }
 0x8ba   :  { %10708 = vmatprep.subr.bf16.mxu0 %v10707_v10  ;;  %v7042_v10 = vld [vmem:[%s17987_s5 + $0x1cc8] sm:$0xff]  ;;  %v10851_v60 = vpack.c.bf16 %v8498_v17, %v8497_v42  ;;  %v7048_v31 = vld [vmem:[%s17987_s5 + $0x1cf8] sm:$0xff] }
 0x8bb   :  { %10834 = vmatpush3.bf16.msra.mxu1 %v10833_v57  ;;  %v10727_v19 = vpack.c.bf16 %v7044_v28, %v7042_v10  ;;  %v10731_v57 = vpack.c.bf16 %v7048_v31, %v7046_v30  ;;  %v7072_v3 = vld [vmem:[%s17987_s5 + $0x1db8] sm:$0xff]  ;;  %v7073_v28 = vld [vmem:[%s17987_s5 + $0x1dc0] sm:$0xff] }
 0x8bc   :  { %10836 = vmatprep.subr.bf16.mxu1 %v10835_v46  ;;  %v7045_v46 = vld [vmem:[%s17987_s5 + $0x1ce0] sm:$0xff]  ;;  %v7076_v42 = vld [vmem:[%s17987_s5 + $0x1dd8] sm:$0xff] }
 0x8bd   :  { %10710 = vmatpush1.bf16.msra.mxu0 %v10709_v0  ;;  %v8500_v0 = vld [vmem:[%s17989_s7 + $0xe8] sm:$0xff]  ;;  %v10733_v1 = vpack.c.bf16 %v7047_v15, %v7045_v46  ;;  %v10759_v10 = vpack.c.bf16 %v7076_v42, %v7074_v59  ;;  %v7111_v59 = vld [vmem:[%s17987_s5 + $0x1ef0] sm:$0xff] }
 0x8be   :  { %10712 = vmatprep.subr.bf16.mxu0 %v10711_v9  ;;  %v10855_v9 = vpack.c.bf16 %v8500_v0, %v8499_v2  ;;  %v7084_v2 = vld [vmem:[%s17987_s5 + $0x1e18] sm:$0xff]  ;;  %v7284_v0 = vcombine.high %v17468_v5, %v17468_v5  ;;  %v7114_v42 = vld [vmem:[%s17987_s5 + $0x1f08] sm:$0xff] }
 0x8bf   :  { %10838 = vmatpush3.bf16.msra.mxu1 %v10837_v50  ;;  %v7051_v50 = vld [vmem:[%s17987_s5 + $0x1d10] sm:$0xff]  ;;  %v10767_v31 = vpack.c.bf16 %v7084_v2, %v7082_v52  ;;  %v7088_v5 = vld [vmem:[%s17987_s5 + $0x1e38] sm:$0xff]  ;;  %v7122_v2 = vld [vmem:[%s17987_s5 + $0x1f48] sm:$0xff] }
 0x8c0   :  { %10840 = vmatprep.subr.bf16.mxu1 %v10839_v49  ;;  %v10737_v49 = vpack.c.bf16 %v7051_v50, %v7049_v25  ;;  %v7119_v52 = vld [vmem:[%s17987_s5 + $0x1f30] sm:$0xff] }
 0x8c1   :  { %10714 = vmatpush1.bf16.msra.mxu0 %v10713_v6  ;;  %v7054_v6 = vld [vmem:[%s17987_s5 + $0x1d28] sm:$0xff] }
 0x8c2   :  { %10716 = vmatprep.subr.bf16.mxu0 %v10715_v38  ;;  %v10739_v44 = vpack.c.bf16 %v7056_v13, %v7054_v6  ;;  %v7055_v38 = vld [vmem:[%s17987_s5 + $0x1d30] sm:$0xff]  ;;  %v7089_v6 = vld [vmem:[%s17987_s5 + $0x1e40] sm:$0xff] }
 0x8c3   :  { %10842 = vmatpush3.bf16.msra.mxu1 %v10841_v61  ;;  %v10741_v35 = vpack.c.bf16 %v7055_v38, %v7053_v33  ;;  %v7059_v61 = vld [vmem:[%s17987_s5 + $0x1d50] sm:$0xff]  ;;  %v7093_v38 = vld [vmem:[%s17987_s5 + $0x1e60] sm:$0xff] }
 0x8c4   :  { %10844 = vmatprep.subr.bf16.mxu1 %v10843_v32  ;;  %v10745_v32 = vpack.c.bf16 %v7059_v61, %v7057_v14  ;;  %v7091_v13 = vld [vmem:[%s17987_s5 + $0x1e50] sm:$0xff]  ;;  %v7097_v61 = vld [vmem:[%s17987_s5 + $0x1e80] sm:$0xff] }
 0x8c5   :  { %10718 = vmatpush1.bf16.msra.mxu0 %v10717_v63  ;;  %v7062_v63 = vld [vmem:[%s17987_s5 + $0x1d68] sm:$0xff] }
 0x8c6   :  { %10720 = vmatprep.subr.bf16.mxu0 %v10719_v20  ;;  %v10747_v58 = vpack.c.bf16 %v7064_v8, %v7062_v63  ;;  %v7063_v20 = vld [vmem:[%s17987_s5 + $0x1d70] sm:$0xff]  ;;  %v7102_v8 = vld [vmem:[%s17987_s5 + $0x1ea8] sm:$0xff] }
 0x8c7   :  { %10846 = vmatpush3.bf16.msra.mxu1 %v10845_v56  ;;  %v10749_v34 = vpack.c.bf16 %v7063_v20, %v7061_v23  ;;  %v7067_v56 = vld [vmem:[%s17987_s5 + $0x1d90] sm:$0xff]  ;;  %v7101_v20 = vld [vmem:[%s17987_s5 + $0x1ea0] sm:$0xff] }
 0x8c8   :  { %10848 = vmatprep.subr.bf16.mxu1 %v10847_v45  ;;  %v10753_v45 = vpack.c.bf16 %v7067_v56, %v7065_v26  ;;  %v7099_v63 = vld [vmem:[%s17987_s5 + $0x1e90] sm:$0xff]  ;;  %v7105_v56 = vld [vmem:[%s17987_s5 + $0x1ec0] sm:$0xff] }
 0x8c9   :  { %10722 = vmatpush1.bf16.msra.mxu0 %v10721_v62  ;;  %v7070_v62 = vld [vmem:[%s17987_s5 + $0x1da8] sm:$0xff] }
 0x8ca   :  { %10724 = vmatprep.subr.bf16.mxu0 %v10723_v40  ;;  %v10755_v22 = vpack.c.bf16 %v7072_v3, %v7070_v62  ;;  %v7071_v40 = vld [vmem:[%s17987_s5 + $0x1db0] sm:$0xff]  ;;  %v7110_v3 = vld [vmem:[%s17987_s5 + $0x1ee8] sm:$0xff] }
 0x8cb   :  { %10850 = vmatpush3.bf16.msra.mxu1 %v10849_v51  ;;  %v10757_v17 = vpack.c.bf16 %v7071_v40, %v7069_v47  ;;  %v7075_v51 = vld [vmem:[%s17987_s5 + $0x1dd0] sm:$0xff]  ;;  %v7109_v40 = vld [vmem:[%s17987_s5 + $0x1ee0] sm:$0xff] }
 0x8cc   :  { %10852 = vmatprep.subr.bf16.mxu1 %v10851_v60  ;;  %v10761_v60 = vpack.c.bf16 %v7075_v51, %v7073_v28  ;;  %v7107_v62 = vld [vmem:[%s17987_s5 + $0x1ed0] sm:$0xff]  ;;  %v7113_v51 = vld [vmem:[%s17987_s5 + $0x1f00] sm:$0xff] }
 0x8cd   :  { %10726 = vmatpush1.bf16.msra.mxu0 %v10725_v4  ;;  %v7078_v4 = vld [vmem:[%s17987_s5 + $0x1de8] sm:$0xff] }
 0x8ce   :  { %10728 = vmatprep.subr.bf16.mxu0 %v10727_v19  ;;  %v10763_v41 = vpack.c.bf16 %v7080_v16, %v7078_v4  ;;  %v7079_v19 = vld [vmem:[%s17987_s5 + $0x1df0] sm:$0xff]  ;;  %v7118_v16 = vld [vmem:[%s17987_s5 + $0x1f28] sm:$0xff] }
 0x8cf   :  { %10854 = vmatpush3.bf16.msra.mxu1 %v10853_v39  ;;  %v10765_v30 = vpack.c.bf16 %v7079_v19, %v7077_v27  ;;  %v7081_v39 = vld [vmem:[%s17987_s5 + $0x1e00] sm:$0xff]  ;;  %v7115_v4 = vld [vmem:[%s17987_s5 + $0x1f10] sm:$0xff] }
 0x8d0   :  { %10856 = vmatprep.subr.bf16.mxu1 %v10855_v9  ;;  %v17756_v9 = vrot.slane %v7284_v0, %v18590_v12  ;;  %v7087_v12 = vld [vmem:[%s17987_s5 + $0x1e30] sm:$0xff]  ;;  %v7117_v19 = vld [vmem:[%s17987_s5 + $0x1f20] sm:$0xff]  ;;  %v7124_v0 = vld [vmem:[%s17987_s5 + $0x1f58] sm:$0xff] }
 0x8d1   :  { %10730 = vmatpush1.bf16.msra.mxu0 %v10729_v48  ;;  %v7083_v48 = vld [vmem:[%s17987_s5 + $0x1e10] sm:$0xff]  ;;  %v10773_v25 = vpack.c.bf16 %v7087_v12, %v7085_v18  ;;  %v7125_v18 = vld [vmem:[%s17987_s5 + $0x1f60] sm:$0xff] }
 0x8d2   :  { %10732 = vmatprep.subr.bf16.mxu0 %v10731_v57  ;;  %v7086_v57 = vld [vmem:[%s17987_s5 + $0x1e28] sm:$0xff]  ;;  %v10769_v46 = vpack.c.bf16 %v7083_v48, %v7081_v39  ;;  %v7300_v37 = vcombine.high %v17756_v9, %v17756_v9  ;;  %v7121_v39 = vld [vmem:[%s17987_s5 + $0x1f40] sm:$0xff]  ;;  %v7123_v48 = vld [vmem:[%s17987_s5 + $0x1f50] sm:$0xff] }
 0x8d3   :  { %v10771_v15 = vpack.c.bf16 %v7088_v5, %v7086_v57  ;;  %v7126_v57 = vld [vmem:[%s17987_s5 + $0x1f68] sm:$0xff]  ;;  %v7128_v5 = vld [vmem:[%s17987_s5 + $0x1f78] sm:$0xff]  ;;  %v7127_v12 = vld [vmem:[%s17987_s5 + $0x1f70] sm:$0xff] }
 0x8d5   :  { %10734 = vmatpush1.bf16.msra.mxu0 %v10733_v1  ;;  %v7090_v1 = vld [vmem:[%s17987_s5 + $0x1e48] sm:$0xff] }
 0x8d6   :  { %10736 = vmatprep.subr.bf16.mxu0 %v10735_v11  ;;  %v7092_v11 = vld [vmem:[%s17987_s5 + $0x1e58] sm:$0xff] }
 0x8d7   :  { %v10775_v50 = vpack.c.bf16 %v7092_v11, %v7090_v1  ;;  %v7132_v1 = vld [vmem:[%s17987_s5 + $0x1f98] sm:$0xff]  ;;  %v10813_v11 = vpack.c.bf16 %v7127_v12, %v7125_v18 }
 0x8d9   :  { %10738 = vmatpush1.bf16.msra.mxu0 %v10737_v49  ;;  %v7094_v49 = vld [vmem:[%s17987_s5 + $0x1e68] sm:$0xff] }
 0x8da   :  { %10740 = vmatprep.subr.bf16.mxu0 %v10739_v44  ;;  %v10777_v44 = vpack.c.bf16 %v7091_v13, %v7089_v6  ;;  %v7131_v6 = vld [vmem:[%s17987_s5 + $0x1f90] sm:$0xff]  ;;  %v7134_v13 = vld [vmem:[%s17987_s5 + $0x1fa8] sm:$0xff] }
 0x8dd   :  { %10742 = vmatpush1.bf16.msra.mxu0 %v10741_v35  ;;  %v7100_v35 = vld [vmem:[%s17987_s5 + $0x1e98] sm:$0xff] }
 0x8de   :  { %10744 = vmatprep.subr.bf16.mxu0 %v10743_v43  ;;  %v10781_v43 = vpack.c.bf16 %v7095_v53, %v7093_v38  ;;  %v10783_v14 = vpack.c.bf16 %v7100_v35, %v7098_v24  ;;  %v7135_v38 = vld [vmem:[%s17987_s5 + $0x1fb0] sm:$0xff]  ;;  %v7138_v53 = vld [vmem:[%s17987_s5 + $0x1fc8] sm:$0xff]  ;;  %v7140_v24 = vld [vmem:[%s17987_s5 + $0x1fd8] sm:$0xff] }
 0x8e1   :  { %10746 = vmatpush1.bf16.msra.mxu0 %v10745_v32  ;;  %v7104_v32 = vld [vmem:[%s17987_s5 + $0x1eb8] sm:$0xff] }
 0x8e2   :  { %10748 = vmatprep.subr.bf16.mxu0 %v10747_v58  ;;  %v10785_v58 = vpack.c.bf16 %v7099_v63, %v7097_v61  ;;  %v10787_v23 = vpack.c.bf16 %v7104_v32, %v7102_v8  ;;  %v7139_v61 = vld [vmem:[%s17987_s5 + $0x1fd0] sm:$0xff]  ;;  %v7142_v63 = vld [vmem:[%s17987_s5 + $0x1fe8] sm:$0xff]  ;;  %v7144_v8 = vld [vmem:[%s17987_s5 + $0x1ff8] sm:$0xff] }
 0x8e5   :  { %10750 = vmatpush1.bf16.msra.mxu0 %v10749_v34  ;;  %v7108_v34 = vld [vmem:[%s17987_s5 + $0x1ed8] sm:$0xff] }
 0x8e6   :  { %10752 = vmatprep.subr.bf16.mxu0 %v10751_v55  ;;  %v10789_v55 = vpack.c.bf16 %v7103_v36, %v7101_v20  ;;  %v10791_v26 = vpack.c.bf16 %v7108_v34, %v7106_v54  ;;  %v7143_v20 = vld [vmem:[%s17987_s5 + $0x1ff0] sm:$0xff]  ;;  %v8483_v54 = vld [vmem:[%s17989_s7 + $0x60] sm:$0xff]  ;;  %v8484_v34 = vld [vmem:[%s17989_s7 + $0x68] sm:$0xff] }
 0x8e9   :  { %10754 = vmatpush1.bf16.msra.mxu0 %v10753_v45  ;;  %v7112_v45 = vld [vmem:[%s17987_s5 + $0x1ef8] sm:$0xff] }
 0x8ea   :  { %10756 = vmatprep.subr.bf16.mxu0 %v10755_v22  ;;  %v10793_v22 = vpack.c.bf16 %v7107_v62, %v7105_v56  ;;  %v10795_v47 = vpack.c.bf16 %v7112_v45, %v7110_v3  ;;  %v8502_v56 = vld [vmem:[%s17989_s7 + $0xf8] sm:$0xff] }
 0x8eb   :  { %v8486_v3 = vld [vmem:[%s17989_s7 + $0x78] sm:$0xff] }
 0x8ed   :  { %10758 = vmatpush1.bf16.msra.mxu0 %v10757_v17  ;;  %v7116_v17 = vld [vmem:[%s17987_s5 + $0x1f18] sm:$0xff] }
 0x8ee   :  { %10760 = vmatprep.subr.bf16.mxu0 %v10759_v10  ;;  %v10797_v10 = vpack.c.bf16 %v7111_v59, %v7109_v40  ;;  %v10799_v28 = vpack.c.bf16 %v7116_v17, %v7114_v42  ;;  %v7145_v40 = vld [vmem:[%s17988_s6] sm:$0x3]  ;;  %s11068_s6 = smov [#allocation5]  }
 0x8ef   :  { %s8588_s3 = sshll.u32 %s11068_s6, 4  ;;  %s8589_s3 = int_to_ptr.vmem [resolvable:$true] %s8588_s3 }
 0x8f0   :  { %s11038_s21 = scalar_lea.vmem %s8589_s3, 32  ;;  %p11043_p1 = scmp.lt.s32.totalorder %s8589_s3, %s8589_s3 }
 0x8f1   :  { %10762 = vmatpush1.bf16.msra.mxu0 %v10761_v60  ;;  %v7120_v60 = vld [vmem:[%s17987_s5 + $0x1f38] sm:$0xff]  ;;  %p11039_p0 = scmp.ne.s32.totalorder %s8589_s3, %s11038_s21  ;;  %p11044_p2 = scmp.lt.s32.totalorder %s11038_s21, %s11038_s21 }
 0x8f2   :  { %10764 = vmatprep.subr.bf16.mxu0 %v10763_v41  ;;  %v10801_v41 = vpack.c.bf16 %v7115_v4, %v7113_v51  ;;  %v10803_v27 = vpack.c.bf16 %v7120_v60, %v7118_v16 }
 0x8f3   :  { %p11045_p3 = por %p11044_p2, %p11043_p1 }
 0x8f5   :  { %10766 = vmatpush1.bf16.msra.mxu0 %v10765_v30  ;;  %v10805_v30 = vpack.c.bf16 %v7119_v52, %v7117_v19  ;;  %v8879_v52 = vld [vmem:[%s17990_s8] ss:$0 sm:$0xff]  ;;  %p11046_p4 = pnand %p11045_p3, %p11039_p0 }
 0x8f6   :  { %10768 = vmatprep.subr.bf16.mxu0 %v10767_v31  ;;  %v10807_v31 = vpack.c.bf16 %v7124_v0, %v7122_v2 }
 0x8f8   :  { %8392 = vmatmul.mubr.f32.vlgmr.msra.gmra.mrb[0].mxu0 %v17478_v29  ;;  %v7096_v29 = vld [vmem:[%s17987_s5 + $0x1e78] sm:$0xff] }
 0x8f9   :  { %10770 = vmatpush1.bf16.msra.mxu0 %v10769_v46  ;;  %8462 = vmatprep.mubr.f32.mxu0 %v7300_v37  ;;  %v10779_v33 = vpack.c.bf16 %v7096_v29, %v7094_v49  ;;  %v10809_v46 = vpack.c.bf16 %v7123_v48, %v7121_v39  ;;  %v7130_v37 = vld [vmem:[%s17987_s5 + $0x1f88] sm:$0xff]  ;;  %v7136_v49 = vld [vmem:[%s17987_s5 + $0x1fb8] sm:$0xff] }
 0x8fa   :  { %10772 = vmatprep.subr.bf16.mxu0 %v10771_v15  ;;  %v10811_v15 = vpack.c.bf16 %v7128_v5, %v7126_v57 }
 0x8fd   :  { %10774 = vmatpush1.bf16.msra.mxu0 %v10773_v25  ;;  %v10815_v25 = vpack.c.bf16 %v7132_v1, %v7130_v37 }
 0x8fe   :  { %10776 = vmatprep.subr.bf16.mxu0 %v10775_v50  ;;  %v7129_v50 = vld [vmem:[%s17987_s5 + $0x1f80] sm:$0xff] }
 0x8ff   :  { %v10817_v29 = vpack.c.bf16 %v7131_v6, %v7129_v50 }
 0x901   :  { %10778 = vmatpush1.bf16.msra.mxu0 %v10777_v44  ;;  %v10819_v44 = vpack.c.bf16 %v7136_v49, %v7134_v13 }
 0x902   :  { %10780 = vmatprep.subr.bf16.mxu0 %v10779_v33  ;;  %v7133_v33 = vld [vmem:[%s17987_s5 + $0x1fa0] sm:$0xff] }
 0x903   :  { %v10821_v35 = vpack.c.bf16 %v7135_v38, %v7133_v33 }
 0x905   :  { %10782 = vmatpush1.bf16.msra.mxu0 %v10781_v43  ;;  %v10823_v43 = vpack.c.bf16 %v7140_v24, %v7138_v53 }
 0x906   :  { %10784 = vmatprep.subr.bf16.mxu0 %v10783_v14  ;;  %v7137_v14 = vld [vmem:[%s17987_s5 + $0x1fc0] sm:$0xff] }
 0x907   :  { %v10825_v32 = vpack.c.bf16 %v7139_v61, %v7137_v14 }
 0x909   :  { %10786 = vmatpush1.bf16.msra.mxu0 %v10785_v58  ;;  %v10827_v58 = vpack.c.bf16 %v7144_v8, %v7142_v63 }
 0x90a   :  { %10788 = vmatprep.subr.bf16.mxu0 %v10787_v23  ;;  %v7141_v23 = vld [vmem:[%s17987_s5 + $0x1fe0] sm:$0xff] }
 0x90b   :  { %v10829_v36 = vpack.c.bf16 %v7143_v20, %v7141_v23 }
 0x90d   :  { %10790 = vmatpush1.bf16.msra.mxu0 %v10789_v55  ;;  %v10857_v55 = vpack.c.bf16 %v8484_v34, %v8483_v54 }
 0x90e   :  { %10792 = vmatprep.subr.bf16.mxu0 %v10791_v26  ;;  %v8501_v26 = vld [vmem:[%s17989_s7 + $0xf0] sm:$0xff] }
 0x90f   :  { %v10859_v62 = vpack.c.bf16 %v8502_v56, %v8501_v26  ;;  %10858 = vmatpush3.bf16.msra.mxu1 %v10857_v55 }
 0x911   :  { %10794 = vmatpush1.bf16.msra.mxu0 %v10793_v22  ;;  %10860 = vmatprep.subr.bf16.mxu1 %v10859_v62  ;;  %v18591_v22 = vld [vmem:[#allocation20_spill] sm:$0xff] }
 0x912   :  { %10796 = vmatprep.subr.bf16.mxu0 %v10795_v47  ;;  %v7149_v47 = vsub.s32 0, %v18591_v22  ;;  %v7153_v59 = vsub.s32 1, %v18591_v22 }
 0x914   :  { %v7150_v42 = vrot.slane %v7145_v40, %v7149_v47  ;;  %v7154_v17 = vrot.slane %v7145_v40, %v7153_v59 }
 0x915   :  { %10798 = vmatpush1.bf16.msra.mxu0 %v10797_v10 }
 0x916   :  { %10800 = vmatprep.subr.bf16.mxu0 %v10799_v28  ;;  %v10863_v10 = vadd.f32 %v17051_v7, %v7150_v42  ;;  %v10865_v28 = vadd.f32 %v17059_v21, %v7154_v17 }
 0x919   :  { %10802 = vmatpush1.bf16.msra.mxu0 %v10801_v41 }
 0x91a   :  { %10804 = vmatprep.subr.bf16.mxu0 %v10803_v27 }
 0x91d   :  { %10806 = vmatpush1.bf16.msra.mxu0 %v10805_v30 }
 0x91e   :  { %10808 = vmatprep.subr.bf16.mxu0 %v10807_v31 }
 0x921   :  { %10810 = vmatpush1.bf16.msra.mxu0 %v10809_v46 }
 0x922   :  { %10812 = vmatprep.subr.bf16.mxu0 %v10811_v15 }
 0x925   :  { %10814 = vmatpush1.bf16.msra.mxu0 %v10813_v11 }
 0x926   :  { %10816 = vmatprep.subr.bf16.mxu0 %v10815_v25 }
 0x929   :  { %10818 = vmatpush1.bf16.msra.mxu0 %v10817_v29 }
 0x92a   :  { %10820 = vmatprep.subr.bf16.mxu0 %v10819_v44 }
 0x92d   :  { %10822 = vmatpush1.bf16.msra.mxu0 %v10821_v35 }
 0x92e   :  { %10824 = vmatprep.subr.bf16.mxu0 %v10823_v43 }
 0x931   :  { %10826 = vmatpush1.bf16.msra.mxu0 %v10825_v32 }
 0x932   :  { %10828 = vmatprep.subr.bf16.mxu0 %v10827_v58 }
 0x935   :  { %10830 = vmatpush1.bf16.msra.mxu0 %v10829_v36 }
 0x938   :  { %8463 = vmatmul.mubr.f32.vlgmr.msra.gmra.mrb[0].mxu0 %v17756_v9  ;;  %v8485_v9 = vld [vmem:[%s17989_s7 + $0x70] sm:$0xff] }
 0x939   :  { %v10861_v45 = vpack.c.bf16 %v8486_v3, %v8485_v9 }
 0x93b   :  { %10862 = vmatpush3.bf16.msra.mxu1 %v10861_v45 }
 0xa0b   :  { %v8464_v51 = vpop.f32.mrb[0].mxu0 }
 0xa0c   :  { %v10864_v4 = vadd.f32 %v10863_v10, %v8464_v51  ;;  %v8466_v16 = vpop.f32.mrb[1].mxu0 }
 0xa0d   :  { %v10866_v60 = vadd.f32 %v10865_v28, %v8466_v16 }
 0xa0e   :  { %v8469_v27 = vmax.f32 %v10864_v4, 0.0 }
 0xa0f   :  { %v8470_v41 = vmax.f32 %v10866_v60, 0.0 }
 0xa11   :  { %8574 = vmatprep.mubr.f32.mxu1 %v8470_v41 }
 0xa12   :  { %8575 = vmatmul.mubr.f32.vlgmr.msra.gmra.mrb[130].mxu1 %v8469_v27 }
 0xae5   :  { %v9218_v19 = vpop.f32.mrb[130].mxu1 }
 0xae6   :  { %v9219_v2 = vpop.f32.mrb[131].mxu1 }
 0xae7   :  { %v9220_v0 = vadd.f32 %v9219_v2, %v9218_v19 }
 0xae9   :  { %v8577_v7 = vadd.f32 %v9220_v0, %v8879_v52 }
 0xaeb   :  { %v8580_v30 = vmax.f32 %v8577_v7, 0.0 }
 0xaed   :  { %8581 = vst [vmem:[#allocation5] sm:$0x3] %v8580_v30 }
 0xaee   :  { %11049 = shalt.err (!%p11046_p4)
}
 0xaef   :  { %s11050_s14 = scalar_lea.hbm %s17991_s9, 32 }
 0xaf0   :  { %p11051_p5 = scmp.ne.s32.totalorder %s17991_s9, %s11050_s14  ;;  %p11054_p6 = scmp.lt.u32.totalorder %s11050_s14, %s17991_s9 }
 0xaf2   :  { %p11056_p7 = pnand %p11054_p6, %p11051_p5 }
 0xaf4   :  { %11059 = shalt.err (!%p11056_p7)
}
 0xaf5   :  { %8591 = dma.vmem_to_hbm [thread:$0]  %s8589_s3, 32, %s17991_s9, [#allocation6]  }
 0xaf6   :  { %11060 = dma.done.wait [#allocation6], 32  }
 0xaf7   :  { %11061 = vsyncadd [#allocation6], 4294967264 }
 0xaf8   :  { %8595 = vsyncpa [#allocation6], 1 }

</bundles_post_ra>
